<compile_context>
chip_gen: v7x
topology: tpu7x:2x2x1
jax: 0.10.0
libtpu: 0.0.40
codegen_flags: <defaults>
</compile_context>

<pallas_src>
import jax
import jax.numpy as jnp
from jax import lax
from jax.experimental import pallas as pl
from jax.experimental.pallas import tpu as pltpu


# ----------------------------------------------------------------------------
# Pallas kernel
# ----------------------------------------------------------------------------
def lstm_kernel(x_ref,            # (T, Bb, I)      bf16
                h0_ref, c0_ref,   # (2, Bb, Hp)     f32
                wih0_ref,         # (I, 4Hp)        bf16   layer-0 input proj
                b0_ref,           # (1, 4Hp)        f32    b_ih0 + b_hh0
                wrec_ref,         # (2Hp, 8Hp)      bf16   fused recurrent wt
                b1_ref,           # (1, 4Hp)        f32    b_ih1 + b_hh1
                fcw_ref,          # (Hp, Op)        bf16
                fcb_ref,          # (1, Op)         f32
                out_ref,          # (T, Bb, Op)     f32
                hN_ref, cN_ref,   # (2, Bb, Hp)     f32
                gin_ref,          # scratch (T*Bb, 4Hp) f32
                hseq_ref):        # scratch (T*Bb, Hp)  bf16
    T, Bb, I = x_ref.shape
    Hp = h0_ref.shape[-1]
    G = 4 * Hp
    Op = out_ref.shape[-1]

    # ---- hoisted layer-0 input projection: one GEMM over all timesteps -----
    x2 = x_ref[...].reshape(T * Bb, I)
    gin_ref[...] = (jnp.dot(x2, wih0_ref[...],
                            preferred_element_type=jnp.float32)
                    + b0_ref[...])

    # hoisted broadcast of layer-1 bias (JAX does not CSE broadcast_in_dim)
    b1b = jnp.broadcast_to(b1_ref[...], (Bb, G))

    h0 = h0_ref[0]
    c0 = c0_ref[0]
    h1 = h0_ref[1]
    c1 = c0_ref[1]

    def cell(gates, c):
        # gates: (Bb, 4Hp) f32, gate order (i, f, o, g)
        # sigmoid(z) = 0.5 * tanh(0.5 z) + 0.5  -> one EUP op per element
        sg = 0.5 * jnp.tanh(0.5 * gates[:, :3 * Hp]) + 0.5
        i_g = sg[:, 0:Hp]
        f_g = sg[:, Hp:2 * Hp]
        o_g = sg[:, 2 * Hp:3 * Hp]
        g_g = jnp.tanh(gates[:, 3 * Hp:4 * Hp])
        c_new = f_g * c + i_g * g_g
        h_new = o_g * jnp.tanh(c_new)
        return h_new, c_new

    # ---- wavefront recurrence: step s does layer-0 cell(s) and layer-1
    #      cell(s-1); one fused matmul per step, read from VMEM each step. ----
    for s in range(T + 1):
        lhs = jnp.concatenate([h0, h1], axis=-1).astype(jnp.bfloat16)  # (Bb,2Hp)
        rec = jnp.dot(lhs, wrec_ref[...],
                      preferred_element_type=jnp.float32)              # (Bb,8Hp)
        if s < T:                                    # layer 0, time s
            gates0 = gin_ref[pl.ds(s * Bb, Bb), :] + rec[:, :G]
            h0, c0 = cell(gates0, c0)
        if s >= 1:                                   # layer 1, time s-1
            gates1 = rec[:, G:] + b1b
            h1, c1 = cell(gates1, c1)
            hseq_ref[pl.ds((s - 1) * Bb, Bb), :] = h1.astype(jnp.bfloat16)

    hN_ref[0] = h0
    cN_ref[0] = c0
    hN_ref[1] = h1
    cN_ref[1] = c1

    # ---- hoisted final Linear: one GEMM, lane-dense (Op % 128 == 0) store ---
    out = (jnp.dot(hseq_ref[...], fcw_ref[...],
                   preferred_element_type=jnp.float32)
           + fcb_ref[...])
    out_ref[...] = out.reshape(T, Bb, Op)


# ----------------------------------------------------------------------------
# Wrapper: gate permutation + lane padding, bias fold, bf16 casts, batch grid.
# ----------------------------------------------------------------------------
def _round_up(n, m):
    return -(-n // m) * m


def _vmem_limit_bytes():
    try:
        info = pltpu.get_tpu_info()
        cap = getattr(info, "vmem_capacity_bytes", None) or 64 * 1024 * 1024
    except Exception:
        cap = 64 * 1024 * 1024
    # ~48 MiB on v7x (64 MiB physical), 96 MiB on v5e/v6e (128 MiB physical)
    return min(96 * 1024 * 1024, (3 * cap) // 4)


def _prep_gate_cols(w, H, Hp):
    """(..., 4H) in PyTorch gate order (i,f,g,o) -> (..., 4Hp) in (i,f,o,g),
    each gate zero-padded to Hp lanes."""
    i, f, g, o = (w[..., k * H:(k + 1) * H] for k in range(4))

    def padc(a):
        pads = [(0, 0)] * (a.ndim - 1) + [(0, Hp - H)]
        return jnp.pad(a, pads)

    return jnp.concatenate([padc(i), padc(f), padc(o), padc(g)], axis=-1)


@jax.jit
def lstm_forward(x, hidden, params):
    h0, c0 = hidden                       # each (L=2, B, H)
    B, T, I = x.shape
    L, _, H = h0.shape
    O = params["fc_w"].shape[0]
    assert L == 2  # kernel is specialized for the module's num_layers=2

    Hp = _round_up(H, 128)                # lane-dense hidden / gate slabs
    Op = _round_up(O, 128)                # lane-dense output store
    Bp = _round_up(B, 16)                 # bf16 sublane packing
    Bb = min(Bp, 256)                     # batch chunk per grid step
    Bp = _round_up(Bp, Bb)
    nb = Bp // Bb

    f32 = jnp.float32
    bf16 = jnp.bfloat16

    # ---- weights: transpose, gate-permute, pad, bias-fold, cast ------------
    wih0 = _prep_gate_cols(params["w_ih0"].T, H, Hp).astype(bf16)       # (I,4Hp)
    b0 = _prep_gate_cols(
        (params["b_ih0"] + params["b_hh0"])[None, :], H, Hp).astype(f32)

    def pad_rows(w):                       # (H, 4Hp) -> (Hp, 4Hp)
        return jnp.pad(w, ((0, Hp - H), (0, 0)))

    whh0 = pad_rows(_prep_gate_cols(params["w_hh0"].T, H, Hp))
    wih1 = pad_rows(_prep_gate_cols(params["w_ih1"].T, H, Hp))
    whh1 = pad_rows(_prep_gate_cols(params["w_hh1"].T, H, Hp))
    w_rec = jnp.concatenate(
        [jnp.concatenate([whh0, wih1], axis=1),
         jnp.concatenate([jnp.zeros_like(whh1), whh1], axis=1)],
        axis=0).astype(bf16)                                            # (2Hp,8Hp)
    b1 = _prep_gate_cols(
        (params["b_ih1"] + params["b_hh1"])[None, :], H, Hp).astype(f32)

    fcw = jnp.pad(params["fc_w"].T,
                  ((0, Hp - H), (0, Op - O))).astype(bf16)              # (Hp,Op)
    fcb = jnp.pad(params["fc_b"][None, :],
                  ((0, 0), (0, Op - O))).astype(f32)                    # (1,Op)

    # ---- activations / state: pad batch + hidden lanes, cast ---------------
    xf = x.astype(f32)
    h0f = h0.astype(f32)
    c0f = c0.astype(f32)
    if Bp != B:
        xf = jnp.pad(xf, ((0, Bp - B), (0, 0), (0, 0)))
        h0f = jnp.pad(h0f, ((0, 0), (0, Bp - B), (0, 0)))
        c0f = jnp.pad(c0f, ((0, 0), (0, Bp - B), (0, 0)))
    if Hp != H:
        h0f = jnp.pad(h0f, ((0, 0), (0, 0), (0, Hp - H)))
        c0f = jnp.pad(c0f, ((0, 0), (0, 0), (0, Hp - H)))
    # TODO(synk): fold this time-major transpose (and the output transpose
    # back) into BlockSpec index_maps once a time-chunk grid axis exists.
    x_tm = jnp.transpose(xf, (1, 0, 2)).astype(bf16)                    # (T,Bp,I)

    ins = (x_tm, h0f, c0f, wih0, b0, w_rec, b1, fcw, fcb)

    def const_spec(shape):
        return pl.BlockSpec(shape, lambda b: tuple(0 for _ in shape))

    out_p, hN, cN = pl.pallas_call(
        lstm_kernel,
        out_shape=(
            jax.ShapeDtypeStruct((T, Bp, Op), f32),
            jax.ShapeDtypeStruct((L, Bp, Hp), f32),
            jax.ShapeDtypeStruct((L, Bp, Hp), f32),
        ),
        grid=(nb,),
        in_specs=[
            pl.BlockSpec((T, Bb, I), lambda b: (0, b, 0)),
            pl.BlockSpec((L, Bb, Hp), lambda b: (0, b, 0)),
            pl.BlockSpec((L, Bb, Hp), lambda b: (0, b, 0)),
            const_spec((I, 4 * Hp)),
            const_spec((1, 4 * Hp)),
            const_spec((2 * Hp, 8 * Hp)),
            const_spec((1, 4 * Hp)),
            const_spec((Hp, Op)),
            const_spec((1, Op)),
        ],
        out_specs=(
            pl.BlockSpec((T, Bb, Op), lambda b: (0, b, 0)),
            pl.BlockSpec((L, Bb, Hp), lambda b: (0, b, 0)),
            pl.BlockSpec((L, Bb, Hp), lambda b: (0, b, 0)),
        ),
        scratch_shapes=[
            pltpu.VMEM((T * Bb, 4 * Hp), f32),    # layer-0 gate pre-activations
            pltpu.VMEM((T * Bb, Hp), bf16),       # layer-1 per-step h sequence
        ],
        compiler_params=pltpu.CompilerParams(
            dimension_semantics=("parallel",),
            vmem_limit_bytes=_vmem_limit_bytes()),
    )(*ins)

    out = jnp.transpose(out_p, (1, 0, 2))[:B, :, :O]                    # (B,T,O)
    return out, (hN[:, :B, :H], cN[:, :B, :H])


# ----------------------------------------------------------------------------
# Pure-JAX reference (mirrors torch.nn.LSTM semantics) for a sanity check
# ----------------------------------------------------------------------------
def lstm_reference(x, hidden, params):
    h, c = hidden

    def cell(x_t, h, c, w_ih, w_hh, b_ih, b_hh):
        gates = x_t @ w_ih.T + h @ w_hh.T + b_ih + b_hh
        i, f, g, o = jnp.split(gates, 4, axis=-1)
        c_new = jax.nn.sigmoid(f) * c + jax.nn.sigmoid(i) * jnp.tanh(g)
        h_new = jax.nn.sigmoid(o) * jnp.tanh(c_new)
        return h_new, c_new

    def step(carry, x_t):
        h0, c0, h1, c1 = carry
        h0, c0 = cell(x_t, h0, c0, params["w_ih0"], params["w_hh0"],
                      params["b_ih0"], params["b_hh0"])
        h1, c1 = cell(h0, h1, c1, params["w_ih1"], params["w_hh1"],
                      params["b_ih1"], params["b_hh1"])
        return (h0, c0, h1, c1), h1

    carry0 = (h[0], c[0], h[1], c[1])
    carryN, outs = lax.scan(step, carry0, jnp.transpose(x, (1, 0, 2)))
    out = jnp.transpose(outs, (1, 0, 2)) @ params["fc_w"].T + params["fc_b"]
    hN = jnp.stack([carryN[0], carryN[2]])
    cN = jnp.stack([carryN[1], carryN[3]])
    return out, (hN, cN)


def init_params(key, input_size, hidden_size, output_size):
    """Deterministic init matching torch.nn.LSTM / nn.Linear shapes."""
    H, I, O = hidden_size, input_size, output_size
    k_lstm = 1.0 / jnp.sqrt(H)
    k_fc = 1.0 / jnp.sqrt(H)
    keys = jax.random.split(key, 10)
    u = lambda k, shape, scale: jax.random.uniform(
        k, shape, jnp.float32, minval=-scale, maxval=scale)
    return {
        "w_ih0": u(keys[0], (4 * H, I), k_lstm),
        "w_hh0": u(keys[1], (4 * H, H), k_lstm),
        "b_ih0": u(keys[2], (4 * H,), k_lstm),
        "b_hh0": u(keys[3], (4 * H,), k_lstm),
        "w_ih1": u(keys[4], (4 * H, H), k_lstm),
        "w_hh1": u(keys[5], (4 * H, H), k_lstm),
        "b_ih1": u(keys[6], (4 * H,), k_lstm),
        "b_hh1": u(keys[7], (4 * H,), k_lstm),
        "fc_w": u(keys[8], (O, H), k_fc),
        "fc_b": u(keys[9], (O,), k_fc),
    }


if __name__ == "__main__":
    B, T, I, H, O, L = 2, 8, 16, 32, 8, 2

    key = jax.random.PRNGKey(0)
    k_x, k_p = jax.random.split(key)
    x = jax.random.normal(k_x, (B, T, I), jnp.float32)
    params = init_params(k_p, I, H, O)

    # reset_hidden_state equivalent
    hidden = (jnp.zeros((L, B, H), jnp.float32),
              jnp.zeros((L, B, H), jnp.float32))

    out, (hN, cN) = lstm_forward(x, hidden, params)
    jax.block_until_ready((out, hN, cN))

    out_ref, (hN_ref, cN_ref) = lstm_reference(x, hidden, params)
    assert out.shape == (B, T, O) and hN.shape == (L, B, H) and cN.shape == (L, B, H)
    # bf16 MXU operands -> slightly looser tolerance than the all-f32 version
    assert jnp.allclose(out, out_ref, atol=3e-2, rtol=3e-2)
    assert jnp.allclose(hN, hN_ref, atol=3e-2, rtol=3e-2)
    assert jnp.allclose(cN, cN_ref, atol=3e-2, rtol=3e-2)

    print("KERNEL_OK")
</pallas_src>

<mosaic_0001>
module attributes {stable_mosaic.version = 11 : i64} {
  func.func @lstm_kernel(%arg0: i32, %arg1: memref<8x16x16xbf16, #tpu.memory_space<vmem>>, %arg2: memref<2x16x128xf32, #tpu.memory_space<vmem>>, %arg3: memref<2x16x128xf32, #tpu.memory_space<vmem>>, %arg4: memref<16x512xbf16, #tpu.memory_space<vmem>>, %arg5: memref<1x512xf32, #tpu.memory_space<vmem>>, %arg6: memref<256x1024xbf16, #tpu.memory_space<vmem>>, %arg7: memref<1x512xf32, #tpu.memory_space<vmem>>, %arg8: memref<128x128xbf16, #tpu.memory_space<vmem>>, %arg9: memref<1x128xf32, #tpu.memory_space<vmem>>, %arg10: memref<8x16x128xf32, #tpu.memory_space<vmem>>, %arg11: memref<2x16x128xf32, #tpu.memory_space<vmem>>, %arg12: memref<2x16x128xf32, #tpu.memory_space<vmem>>, %arg13: memref<128x512xf32, #tpu.memory_space<vmem>>, %arg14: memref<128x128xbf16, #tpu.memory_space<vmem>>) attributes {dimension_semantics = [#tpu.dimension_semantics<parallel>], iteration_bounds = array<i64: 1>, scalar_prefetch = 0 : i64, scratch_operands = 2 : i64, tpu.core_type = #tpu.core_type<tc>, window_params = [{transform_indices = @transform_0, window_bounds = array<i64: 8, 16, 16>}, {transform_indices = @transform_1, window_bounds = array<i64: 2, 16, 128>}, {transform_indices = @transform_2, window_bounds = array<i64: 2, 16, 128>}, {pipeline_mode = #tpu.pipeline_mode<synchronous>, transform_indices = @transform_3, window_bounds = array<i64: 16, 512>}, {pipeline_mode = #tpu.pipeline_mode<synchronous>, transform_indices = @transform_4, window_bounds = array<i64: 1, 512>}, {pipeline_mode = #tpu.pipeline_mode<synchronous>, transform_indices = @transform_5, window_bounds = array<i64: 256, 1024>}, {pipeline_mode = #tpu.pipeline_mode<synchronous>, transform_indices = @transform_6, window_bounds = array<i64: 1, 512>}, {pipeline_mode = #tpu.pipeline_mode<synchronous>, transform_indices = @transform_7, window_bounds = array<i64: 128, 128>}, {pipeline_mode = #tpu.pipeline_mode<synchronous>, transform_indices = @transform_8, window_bounds = array<i64: 1, 128>}, {transform_indices = @transform_9, window_bounds = array<i64: 8, 16, 128>}, {transform_indices = @transform_10, window_bounds = array<i64: 2, 16, 128>}, {transform_indices = @transform_11, window_bounds = array<i64: 2, 16, 128>}]} {
    %c0 = arith.constant 0 : index
    %c0_0 = arith.constant 0 : index
    %c0_1 = arith.constant 0 : index
    %0 = vector.load %arg1[%c0, %c0_0, %c0_1] : memref<8x16x16xbf16, #tpu.memory_space<vmem>>, vector<8x16x16xbf16>
    %1 = vector.shape_cast %0 : vector<8x16x16xbf16> to vector<128x16xbf16>
    %c0_2 = arith.constant 0 : index
    %c0_3 = arith.constant 0 : index
    %2 = vector.load %arg4[%c0_2, %c0_3] : memref<16x512xbf16, #tpu.memory_space<vmem>>, vector<16x512xbf16>
    %cst = arith.constant dense<0.000000e+00> : vector<128x512xf32>
    %3 = tpu.matmul %1, %2, %cst {dimension_numbers = #tpu.dot_dimension_numbers<[1], [0], [0], [1], [0, 0, 1, 1], [], []>} : vector<128x16xbf16>, vector<16x512xbf16>, vector<128x512xf32> -> vector<128x512xf32>
    %c0_4 = arith.constant 0 : index
    %c0_5 = arith.constant 0 : index
    %4 = vector.load %arg5[%c0_4, %c0_5] : memref<1x512xf32, #tpu.memory_space<vmem>>, vector<1x512xf32>
    %5 = vector.broadcast %4 : vector<1x512xf32> to vector<128x512xf32>
    %6 = arith.addf %3, %5 : vector<128x512xf32>
    %c0_6 = arith.constant 0 : index
    %c0_7 = arith.constant 0 : index
    %7 = vector.load %arg13[%c0_6, %c0_7] : memref<128x512xf32, #tpu.memory_space<vmem>>, vector<128x512xf32>
    tpu.vector_store %arg13[%c0_6, %c0_7], %6 {strides = array<i32>} : memref<128x512xf32, #tpu.memory_space<vmem>>, vector<128x512xf32>,
    %c0_8 = arith.constant 0 : index
    %c0_9 = arith.constant 0 : index
    %8 = vector.load %arg7[%c0_8, %c0_9] : memref<1x512xf32, #tpu.memory_space<vmem>>, vector<1x512xf32>
    %9 = vector.shape_cast %8 : vector<1x512xf32> to vector<1x512xf32>
    %10 = vector.broadcast %9 : vector<1x512xf32> to vector<16x512xf32>
    %c0_10 = arith.constant 0 : index
    %c0_11 = arith.constant 0 : index
    %c0_12 = arith.constant 0 : index
    %11 = vector.load %arg2[%c0_10, %c0_11, %c0_12] : memref<2x16x128xf32, #tpu.memory_space<vmem>>, vector<1x16x128xf32>
    %12 = vector.shape_cast %11 : vector<1x16x128xf32> to vector<16x128xf32>
    %c0_13 = arith.constant 0 : index
    %c0_14 = arith.constant 0 : index
    %c0_15 = arith.constant 0 : index
    %13 = vector.load %arg3[%c0_13, %c0_14, %c0_15] : memref<2x16x128xf32, #tpu.memory_space<vmem>>, vector<1x16x128xf32>
    %14 = vector.shape_cast %13 : vector<1x16x128xf32> to vector<16x128xf32>
    %c1 = arith.constant 1 : index
    %c0_16 = arith.constant 0 : index
    %c0_17 = arith.constant 0 : index
    %15 = vector.load %arg2[%c1, %c0_16, %c0_17] : memref<2x16x128xf32, #tpu.memory_space<vmem>>, vector<1x16x128xf32>
    %16 = vector.shape_cast %15 : vector<1x16x128xf32> to vector<16x128xf32>
    %c1_18 = arith.constant 1 : index
    %c0_19 = arith.constant 0 : index
    %c0_20 = arith.constant 0 : index
    %17 = vector.load %arg3[%c1_18, %c0_19, %c0_20] : memref<2x16x128xf32, #tpu.memory_space<vmem>>, vector<1x16x128xf32>
    %18 = vector.shape_cast %17 : vector<1x16x128xf32> to vector<16x128xf32>
    %19 = tpu.concatenate %12, %16 in 1 : vector<16x128xf32>, vector<16x128xf32> -> vector<16x256xf32>
    %20 = arith.truncf %19 : vector<16x256xf32> to vector<16x256xbf16>
    %c0_21 = arith.constant 0 : index
    %c0_22 = arith.constant 0 : index
    %21 = vector.load %arg6[%c0_21, %c0_22] : memref<256x1024xbf16, #tpu.memory_space<vmem>>, vector<256x1024xbf16>
    %cst_23 = arith.constant dense<0.000000e+00> : vector<16x1024xf32>
    %22 = tpu.matmul %20, %21, %cst_23 {dimension_numbers = #tpu.dot_dimension_numbers<[1], [0], [0], [1], [0, 0, 1, 1], [], []>} : vector<16x256xbf16>, vector<256x1024xbf16>, vector<16x1024xf32> -> vector<16x1024xf32>
    %c0_24 = arith.constant 0 : index
    %c0_25 = arith.constant 0 : index
    %23 = vector.load %arg13[%c0_24, %c0_25] : memref<128x512xf32, #tpu.memory_space<vmem>>, vector<16x512xf32>
    %24 = vector.extract_strided_slice %22 {offsets = [0, 0], sizes = [16, 512], strides = [1, 1]} : vector<16x1024xf32> to vector<16x512xf32>
    %25 = arith.addf %23, %24 : vector<16x512xf32>
    %26 = vector.extract_strided_slice %25 {offsets = [0, 0], sizes = [16, 384], strides = [1, 1]} : vector<16x512xf32> to vector<16x384xf32>
    %cst_26 = arith.constant 5.000000e-01 : f32
    %27 = vector.broadcast %cst_26 : f32 to vector<16x384xf32>
    %28 = arith.mulf %27, %26 : vector<16x384xf32>
    %29 = math.tanh %28 : vector<16x384xf32>
    %cst_27 = arith.constant 5.000000e-01 : f32
    %30 = vector.broadcast %cst_27 : f32 to vector<16x384xf32>
    %31 = arith.mulf %30, %29 : vector<16x384xf32>
    %cst_28 = arith.constant 5.000000e-01 : f32
    %32 = vector.broadcast %cst_28 : f32 to vector<16x384xf32>
    %33 = arith.addf %31, %32 : vector<16x384xf32>
    %34 = vector.extract_strided_slice %33 {offsets = [0, 0], sizes = [16, 128], strides = [1, 1]} : vector<16x384xf32> to vector<16x128xf32>
    %35 = vector.extract_strided_slice %33 {offsets = [0, 128], sizes = [16, 128], strides = [1, 1]} : vector<16x384xf32> to vector<16x128xf32>
    %36 = vector.extract_strided_slice %33 {offsets = [0, 256], sizes = [16, 128], strides = [1, 1]} : vector<16x384xf32> to vector<16x128xf32>
    %37 = vector.extract_strided_slice %25 {offsets = [0, 384], sizes = [16, 128], strides = [1, 1]} : vector<16x512xf32> to vector<16x128xf32>
    %38 = math.tanh %37 : vector<16x128xf32>
    %39 = arith.mulf %35, %14 : vector<16x128xf32>
    %40 = arith.mulf %34, %38 : vector<16x128xf32>
    %41 = arith.addf %39, %40 : vector<16x128xf32>
    %42 = math.tanh %41 : vector<16x128xf32>
    %43 = arith.mulf %36, %42 : vector<16x128xf32>
    %44 = tpu.concatenate %43, %16 in 1 : vector<16x128xf32>, vector<16x128xf32> -> vector<16x256xf32>
    %45 = arith.truncf %44 : vector<16x256xf32> to vector<16x256xbf16>
    %c0_29 = arith.constant 0 : index
    %c0_30 = arith.constant 0 : index
    %46 = vector.load %arg6[%c0_29, %c0_30] : memref<256x1024xbf16, #tpu.memory_space<vmem>>, vector<256x1024xbf16>
    %cst_31 = arith.constant dense<0.000000e+00> : vector<16x1024xf32>
    %47 = tpu.matmul %45, %46, %cst_31 {dimension_numbers = #tpu.dot_dimension_numbers<[1], [0], [0], [1], [0, 0, 1, 1], [], []>} : vector<16x256xbf16>, vector<256x1024xbf16>, vector<16x1024xf32> -> vector<16x1024xf32>
    %c16 = arith.constant 16 : index
    %c0_32 = arith.constant 0 : index
    %48 = vector.load %arg13[%c16, %c0_32] : memref<128x512xf32, #tpu.memory_space<vmem>>, vector<16x512xf32>
    %49 = vector.extract_strided_slice %47 {offsets = [0, 0], sizes = [16, 512], strides = [1, 1]} : vector<16x1024xf32> to vector<16x512xf32>
    %50 = arith.addf %48, %49 : vector<16x512xf32>
    %51 = vector.extract_strided_slice %50 {offsets = [0, 0], sizes = [16, 384], strides = [1, 1]} : vector<16x512xf32> to vector<16x384xf32>
    %cst_33 = arith.constant 5.000000e-01 : f32
    %52 = vector.broadcast %cst_33 : f32 to vector<16x384xf32>
    %53 = arith.mulf %52, %51 : vector<16x384xf32>
    %54 = math.tanh %53 : vector<16x384xf32>
    %cst_34 = arith.constant 5.000000e-01 : f32
    %55 = vector.broadcast %cst_34 : f32 to vector<16x384xf32>
    %56 = arith.mulf %55, %54 : vector<16x384xf32>
    %cst_35 = arith.constant 5.000000e-01 : f32
    %57 = vector.broadcast %cst_35 : f32 to vector<16x384xf32>
    %58 = arith.addf %56, %57 : vector<16x384xf32>
    %59 = vector.extract_strided_slice %58 {offsets = [0, 0], sizes = [16, 128], strides = [1, 1]} : vector<16x384xf32> to vector<16x128xf32>
    %60 = vector.extract_strided_slice %58 {offsets = [0, 128], sizes = [16, 128], strides = [1, 1]} : vector<16x384xf32> to vector<16x128xf32>
    %61 = vector.extract_strided_slice %58 {offsets = [0, 256], sizes = [16, 128], strides = [1, 1]} : vector<16x384xf32> to vector<16x128xf32>
    %62 = vector.extract_strided_slice %50 {offsets = [0, 384], sizes = [16, 128], strides = [1, 1]} : vector<16x512xf32> to vector<16x128xf32>
    %63 = math.tanh %62 : vector<16x128xf32>
    %64 = arith.mulf %60, %41 : vector<16x128xf32>
    %65 = arith.mulf %59, %63 : vector<16x128xf32>
    %66 = arith.addf %64, %65 : vector<16x128xf32>
    %67 = math.tanh %66 : vector<16x128xf32>
    %68 = arith.mulf %61, %67 : vector<16x128xf32>
    %69 = vector.extract_strided_slice %47 {offsets = [0, 512], sizes = [16, 512], strides = [1, 1]} : vector<16x1024xf32> to vector<16x512xf32>
    %70 = arith.addf %69, %10 : vector<16x512xf32>
    %71 = vector.extract_strided_slice %70 {offsets = [0, 0], sizes = [16, 384], strides = [1, 1]} : vector<16x512xf32> to vector<16x384xf32>
    %cst_36 = arith.constant 5.000000e-01 : f32
    %72 = vector.broadcast %cst_36 : f32 to vector<16x384xf32>
    %73 = arith.mulf %72, %71 : vector<16x384xf32>
    %74 = math.tanh %73 : vector<16x384xf32>
    %cst_37 = arith.constant 5.000000e-01 : f32
    %75 = vector.broadcast %cst_37 : f32 to vector<16x384xf32>
    %76 = arith.mulf %75, %74 : vector<16x384xf32>
    %cst_38 = arith.constant 5.000000e-01 : f32
    %77 = vector.broadcast %cst_38 : f32 to vector<16x384xf32>
    %78 = arith.addf %76, %77 : vector<16x384xf32>
    %79 = vector.extract_strided_slice %78 {offsets = [0, 0], sizes = [16, 128], strides = [1, 1]} : vector<16x384xf32> to vector<16x128xf32>
    %80 = vector.extract_strided_slice %78 {offsets = [0, 128], sizes = [16, 128], strides = [1, 1]} : vector<16x384xf32> to vector<16x128xf32>
    %81 = vector.extract_strided_slice %78 {offsets = [0, 256], sizes = [16, 128], strides = [1, 1]} : vector<16x384xf32> to vector<16x128xf32>
    %82 = vector.extract_strided_slice %70 {offsets = [0, 384], sizes = [16, 128], strides = [1, 1]} : vector<16x512xf32> to vector<16x128xf32>
    %83 = math.tanh %82 : vector<16x128xf32>
    %84 = arith.mulf %80, %18 : vector<16x128xf32>
    %85 = arith.mulf %79, %83 : vector<16x128xf32>
    %86 = arith.addf %84, %85 : vector<16x128xf32>
    %87 = math.tanh %86 : vector<16x128xf32>
    %88 = arith.mulf %81, %87 : vector<16x128xf32>
    %89 = arith.truncf %88 : vector<16x128xf32> to vector<16x128xbf16>
    %c0_39 = arith.constant 0 : index
    %c0_40 = arith.constant 0 : index
    %90 = vector.load %arg14[%c0_39, %c0_40] : memref<128x128xbf16, #tpu.memory_space<vmem>>, vector<16x128xbf16>
    tpu.vector_store %arg14[%c0_39, %c0_40], %89 {strides = array<i32>} : memref<128x128xbf16, #tpu.memory_space<vmem>>, vector<16x128xbf16>,
    %91 = tpu.concatenate %68, %88 in 1 : vector<16x128xf32>, vector<16x128xf32> -> vector<16x256xf32>
    %92 = arith.truncf %91 : vector<16x256xf32> to vector<16x256xbf16>
    %c0_41 = arith.constant 0 : index
    %c0_42 = arith.constant 0 : index
    %93 = vector.load %arg6[%c0_41, %c0_42] : memref<256x1024xbf16, #tpu.memory_space<vmem>>, vector<256x1024xbf16>
    %cst_43 = arith.constant dense<0.000000e+00> : vector<16x1024xf32>
    %94 = tpu.matmul %92, %93, %cst_43 {dimension_numbers = #tpu.dot_dimension_numbers<[1], [0], [0], [1], [0, 0, 1, 1], [], []>} : vector<16x256xbf16>, vector<256x1024xbf16>, vector<16x1024xf32> -> vector<16x1024xf32>
    %c32 = arith.constant 32 : index
    %c0_44 = arith.constant 0 : index
    %95 = vector.load %arg13[%c32, %c0_44] : memref<128x512xf32, #tpu.memory_space<vmem>>, vector<16x512xf32>
    %96 = vector.extract_strided_slice %94 {offsets = [0, 0], sizes = [16, 512], strides = [1, 1]} : vector<16x1024xf32> to vector<16x512xf32>
    %97 = arith.addf %95, %96 : vector<16x512xf32>
    %98 = vector.extract_strided_slice %97 {offsets = [0, 0], sizes = [16, 384], strides = [1, 1]} : vector<16x512xf32> to vector<16x384xf32>
    %cst_45 = arith.constant 5.000000e-01 : f32
    %99 = vector.broadcast %cst_45 : f32 to vector<16x384xf32>
    %100 = arith.mulf %99, %98 : vector<16x384xf32>
    %101 = math.tanh %100 : vector<16x384xf32>
    %cst_46 = arith.constant 5.000000e-01 : f32
    %102 = vector.broadcast %cst_46 : f32 to vector<16x384xf32>
    %103 = arith.mulf %102, %101 : vector<16x384xf32>
    %cst_47 = arith.constant 5.000000e-01 : f32
    %104 = vector.broadcast %cst_47 : f32 to vector<16x384xf32>
    %105 = arith.addf %103, %104 : vector<16x384xf32>
    %106 = vector.extract_strided_slice %105 {offsets = [0, 0], sizes = [16, 128], strides = [1, 1]} : vector<16x384xf32> to vector<16x128xf32>
    %107 = vector.extract_strided_slice %105 {offsets = [0, 128], sizes = [16, 128], strides = [1, 1]} : vector<16x384xf32> to vector<16x128xf32>
    %108 = vector.extract_strided_slice %105 {offsets = [0, 256], sizes = [16, 128], strides = [1, 1]} : vector<16x384xf32> to vector<16x128xf32>
    %109 = vector.extract_strided_slice %97 {offsets = [0, 384], sizes = [16, 128], strides = [1, 1]} : vector<16x512xf32> to vector<16x128xf32>
    %110 = math.tanh %109 : vector<16x128xf32>
    %111 = arith.mulf %107, %66 : vector<16x128xf32>
    %112 = arith.mulf %106, %110 : vector<16x128xf32>
    %113 = arith.addf %111, %112 : vector<16x128xf32>
    %114 = math.tanh %113 : vector<16x128xf32>
    %115 = arith.mulf %108, %114 : vector<16x128xf32>
    %116 = vector.extract_strided_slice %94 {offsets = [0, 512], sizes = [16, 512], strides = [1, 1]} : vector<16x1024xf32> to vector<16x512xf32>
    %117 = arith.addf %116, %10 : vector<16x512xf32>
    %118 = vector.extract_strided_slice %117 {offsets = [0, 0], sizes = [16, 384], strides = [1, 1]} : vector<16x512xf32> to vector<16x384xf32>
    %cst_48 = arith.constant 5.000000e-01 : f32
    %119 = vector.broadcast %cst_48 : f32 to vector<16x384xf32>
    %120 = arith.mulf %119, %118 : vector<16x384xf32>
    %121 = math.tanh %120 : vector<16x384xf32>
    %cst_49 = arith.constant 5.000000e-01 : f32
    %122 = vector.broadcast %cst_49 : f32 to vector<16x384xf32>
    %123 = arith.mulf %122, %121 : vector<16x384xf32>
    %cst_50 = arith.constant 5.000000e-01 : f32
    %124 = vector.broadcast %cst_50 : f32 to vector<16x384xf32>
    %125 = arith.addf %123, %124 : vector<16x384xf32>
    %126 = vector.extract_strided_slice %125 {offsets = [0, 0], sizes = [16, 128], strides = [1, 1]} : vector<16x384xf32> to vector<16x128xf32>
    %127 = vector.extract_strided_slice %125 {offsets = [0, 128], sizes = [16, 128], strides = [1, 1]} : vector<16x384xf32> to vector<16x128xf32>
    %128 = vector.extract_strided_slice %125 {offsets = [0, 256], sizes = [16, 128], strides = [1, 1]} : vector<16x384xf32> to vector<16x128xf32>
    %129 = vector.extract_strided_slice %117 {offsets = [0, 384], sizes = [16, 128], strides = [1, 1]} : vector<16x512xf32> to vector<16x128xf32>
    %130 = math.tanh %129 : vector<16x128xf32>
    %131 = arith.mulf %127, %86 : vector<16x128xf32>
    %132 = arith.mulf %126, %130 : vector<16x128xf32>
    %133 = arith.addf %131, %132 : vector<16x128xf32>
    %134 = math.tanh %133 : vector<16x128xf32>
    %135 = arith.mulf %128, %134 : vector<16x128xf32>
    %136 = arith.truncf %135 : vector<16x128xf32> to vector<16x128xbf16>
    %c16_51 = arith.constant 16 : index
    %c0_52 = arith.constant 0 : index
    %137 = vector.load %arg14[%c16_51, %c0_52] : memref<128x128xbf16, #tpu.memory_space<vmem>>, vector<16x128xbf16>
    tpu.vector_store %arg14[%c16_51, %c0_52], %136 {strides = array<i32>} : memref<128x128xbf16, #tpu.memory_space<vmem>>, vector<16x128xbf16>,
    %138 = tpu.concatenate %115, %135 in 1 : vector<16x128xf32>, vector<16x128xf32> -> vector<16x256xf32>
    %139 = arith.truncf %138 : vector<16x256xf32> to vector<16x256xbf16>
    %c0_53 = arith.constant 0 : index
    %c0_54 = arith.constant 0 : index
    %140 = vector.load %arg6[%c0_53, %c0_54] : memref<256x1024xbf16, #tpu.memory_space<vmem>>, vector<256x1024xbf16>
    %cst_55 = arith.constant dense<0.000000e+00> : vector<16x1024xf32>
    %141 = tpu.matmul %139, %140, %cst_55 {dimension_numbers = #tpu.dot_dimension_numbers<[1], [0], [0], [1], [0, 0, 1, 1], [], []>} : vector<16x256xbf16>, vector<256x1024xbf16>, vector<16x1024xf32> -> vector<16x1024xf32>
    %c48 = arith.constant 48 : index
    %c0_56 = arith.constant 0 : index
    %142 = vector.load %arg13[%c48, %c0_56] : memref<128x512xf32, #tpu.memory_space<vmem>>, vector<16x512xf32>
    %143 = vector.extract_strided_slice %141 {offsets = [0, 0], sizes = [16, 512], strides = [1, 1]} : vector<16x1024xf32> to vector<16x512xf32>
    %144 = arith.addf %142, %143 : vector<16x512xf32>
    %145 = vector.extract_strided_slice %144 {offsets = [0, 0], sizes = [16, 384], strides = [1, 1]} : vector<16x512xf32> to vector<16x384xf32>
    %cst_57 = arith.constant 5.000000e-01 : f32
    %146 = vector.broadcast %cst_57 : f32 to vector<16x384xf32>
    %147 = arith.mulf %146, %145 : vector<16x384xf32>
    %148 = math.tanh %147 : vector<16x384xf32>
    %cst_58 = arith.constant 5.000000e-01 : f32
    %149 = vector.broadcast %cst_58 : f32 to vector<16x384xf32>
    %150 = arith.mulf %149, %148 : vector<16x384xf32>
    %cst_59 = arith.constant 5.000000e-01 : f32
    %151 = vector.broadcast %cst_59 : f32 to vector<16x384xf32>
    %152 = arith.addf %150, %151 : vector<16x384xf32>
    %153 = vector.extract_strided_slice %152 {offsets = [0, 0], sizes = [16, 128], strides = [1, 1]} : vector<16x384xf32> to vector<16x128xf32>
    %154 = vector.extract_strided_slice %152 {offsets = [0, 128], sizes = [16, 128], strides = [1, 1]} : vector<16x384xf32> to vector<16x128xf32>
    %155 = vector.extract_strided_slice %152 {offsets = [0, 256], sizes = [16, 128], strides = [1, 1]} : vector<16x384xf32> to vector<16x128xf32>
    %156 = vector.extract_strided_slice %144 {offsets = [0, 384], sizes = [16, 128], strides = [1, 1]} : vector<16x512xf32> to vector<16x128xf32>
    %157 = math.tanh %156 : vector<16x128xf32>
    %158 = arith.mulf %154, %113 : vector<16x128xf32>
    %159 = arith.mulf %153, %157 : vector<16x128xf32>
    %160 = arith.addf %158, %159 : vector<16x128xf32>
    %161 = math.tanh %160 : vector<16x128xf32>
    %162 = arith.mulf %155, %161 : vector<16x128xf32>
    %163 = vector.extract_strided_slice %141 {offsets = [0, 512], sizes = [16, 512], strides = [1, 1]} : vector<16x1024xf32> to vector<16x512xf32>
    %164 = arith.addf %163, %10 : vector<16x512xf32>
    %165 = vector.extract_strided_slice %164 {offsets = [0, 0], sizes = [16, 384], strides = [1, 1]} : vector<16x512xf32> to vector<16x384xf32>
    %cst_60 = arith.constant 5.000000e-01 : f32
    %166 = vector.broadcast %cst_60 : f32 to vector<16x384xf32>
    %167 = arith.mulf %166, %165 : vector<16x384xf32>
    %168 = math.tanh %167 : vector<16x384xf32>
    %cst_61 = arith.constant 5.000000e-01 : f32
    %169 = vector.broadcast %cst_61 : f32 to vector<16x384xf32>
    %170 = arith.mulf %169, %168 : vector<16x384xf32>
    %cst_62 = arith.constant 5.000000e-01 : f32
    %171 = vector.broadcast %cst_62 : f32 to vector<16x384xf32>
    %172 = arith.addf %170, %171 : vector<16x384xf32>
    %173 = vector.extract_strided_slice %172 {offsets = [0, 0], sizes = [16, 128], strides = [1, 1]} : vector<16x384xf32> to vector<16x128xf32>
    %174 = vector.extract_strided_slice %172 {offsets = [0, 128], sizes = [16, 128], strides = [1, 1]} : vector<16x384xf32> to vector<16x128xf32>
    %175 = vector.extract_strided_slice %172 {offsets = [0, 256], sizes = [16, 128], strides = [1, 1]} : vector<16x384xf32> to vector<16x128xf32>
    %176 = vector.extract_strided_slice %164 {offsets = [0, 384], sizes = [16, 128], strides = [1, 1]} : vector<16x512xf32> to vector<16x128xf32>
    %177 = math.tanh %176 : vector<16x128xf32>
    %178 = arith.mulf %174, %133 : vector<16x128xf32>
    %179 = arith.mulf %173, %177 : vector<16x128xf32>
    %180 = arith.addf %178, %179 : vector<16x128xf32>
    %181 = math.tanh %180 : vector<16x128xf32>
    %182 = arith.mulf %175, %181 : vector<16x128xf32>
    %183 = arith.truncf %182 : vector<16x128xf32> to vector<16x128xbf16>
    %c32_63 = arith.constant 32 : index
    %c0_64 = arith.constant 0 : index
    %184 = vector.load %arg14[%c32_63, %c0_64] : memref<128x128xbf16, #tpu.memory_space<vmem>>, vector<16x128xbf16>
    tpu.vector_store %arg14[%c32_63, %c0_64], %183 {strides = array<i32>} : memref<128x128xbf16, #tpu.memory_space<vmem>>, vector<16x128xbf16>,
    %185 = tpu.concatenate %162, %182 in 1 : vector<16x128xf32>, vector<16x128xf32> -> vector<16x256xf32>
    %186 = arith.truncf %185 : vector<16x256xf32> to vector<16x256xbf16>
    %c0_65 = arith.constant 0 : index
    %c0_66 = arith.constant 0 : index
    %187 = vector.load %arg6[%c0_65, %c0_66] : memref<256x1024xbf16, #tpu.memory_space<vmem>>, vector<256x1024xbf16>
    %cst_67 = arith.constant dense<0.000000e+00> : vector<16x1024xf32>
    %188 = tpu.matmul %186, %187, %cst_67 {dimension_numbers = #tpu.dot_dimension_numbers<[1], [0], [0], [1], [0, 0, 1, 1], [], []>} : vector<16x256xbf16>, vector<256x1024xbf16>, vector<16x1024xf32> -> vector<16x1024xf32>
    %c64 = arith.constant 64 : index
    %c0_68 = arith.constant 0 : index
    %189 = vector.load %arg13[%c64, %c0_68] : memref<128x512xf32, #tpu.memory_space<vmem>>, vector<16x512xf32>
    %190 = vector.extract_strided_slice %188 {offsets = [0, 0], sizes = [16, 512], strides = [1, 1]} : vector<16x1024xf32> to vector<16x512xf32>
    %191 = arith.addf %189, %190 : vector<16x512xf32>
    %192 = vector.extract_strided_slice %191 {offsets = [0, 0], sizes = [16, 384], strides = [1, 1]} : vector<16x512xf32> to vector<16x384xf32>
    %cst_69 = arith.constant 5.000000e-01 : f32
    %193 = vector.broadcast %cst_69 : f32 to vector<16x384xf32>
    %194 = arith.mulf %193, %192 : vector<16x384xf32>
    %195 = math.tanh %194 : vector<16x384xf32>
    %cst_70 = arith.constant 5.000000e-01 : f32
    %196 = vector.broadcast %cst_70 : f32 to vector<16x384xf32>
    %197 = arith.mulf %196, %195 : vector<16x384xf32>
    %cst_71 = arith.constant 5.000000e-01 : f32
    %198 = vector.broadcast %cst_71 : f32 to vector<16x384xf32>
    %199 = arith.addf %197, %198 : vector<16x384xf32>
    %200 = vector.extract_strided_slice %199 {offsets = [0, 0], sizes = [16, 128], strides = [1, 1]} : vector<16x384xf32> to vector<16x128xf32>
    %201 = vector.extract_strided_slice %199 {offsets = [0, 128], sizes = [16, 128], strides = [1, 1]} : vector<16x384xf32> to vector<16x128xf32>
    %202 = vector.extract_strided_slice %199 {offsets = [0, 256], sizes = [16, 128], strides = [1, 1]} : vector<16x384xf32> to vector<16x128xf32>
    %203 = vector.extract_strided_slice %191 {offsets = [0, 384], sizes = [16, 128], strides = [1, 1]} : vector<16x512xf32> to vector<16x128xf32>
    %204 = math.tanh %203 : vector<16x128xf32>
    %205 = arith.mulf %201, %160 : vector<16x128xf32>
    %206 = arith.mulf %200, %204 : vector<16x128xf32>
    %207 = arith.addf %205, %206 : vector<16x128xf32>
    %208 = math.tanh %207 : vector<16x128xf32>
    %209 = arith.mulf %202, %208 : vector<16x128xf32>
    %210 = vector.extract_strided_slice %188 {offsets = [0, 512], sizes = [16, 512], strides = [1, 1]} : vector<16x1024xf32> to vector<16x512xf32>
    %211 = arith.addf %210, %10 : vector<16x512xf32>
    %212 = vector.extract_strided_slice %211 {offsets = [0, 0], sizes = [16, 384], strides = [1, 1]} : vector<16x512xf32> to vector<16x384xf32>
    %cst_72 = arith.constant 5.000000e-01 : f32
    %213 = vector.broadcast %cst_72 : f32 to vector<16x384xf32>
    %214 = arith.mulf %213, %212 : vector<16x384xf32>
    %215 = math.tanh %214 : vector<16x384xf32>
    %cst_73 = arith.constant 5.000000e-01 : f32
    %216 = vector.broadcast %cst_73 : f32 to vector<16x384xf32>
    %217 = arith.mulf %216, %215 : vector<16x384xf32>
    %cst_74 = arith.constant 5.000000e-01 : f32
    %218 = vector.broadcast %cst_74 : f32 to vector<16x384xf32>
    %219 = arith.addf %217, %218 : vector<16x384xf32>
    %220 = vector.extract_strided_slice %219 {offsets = [0, 0], sizes = [16, 128], strides = [1, 1]} : vector<16x384xf32> to vector<16x128xf32>
    %221 = vector.extract_strided_slice %219 {offsets = [0, 128], sizes = [16, 128], strides = [1, 1]} : vector<16x384xf32> to vector<16x128xf32>
    %222 = vector.extract_strided_slice %219 {offsets = [0, 256], sizes = [16, 128], strides = [1, 1]} : vector<16x384xf32> to vector<16x128xf32>
    %223 = vector.extract_strided_slice %211 {offsets = [0, 384], sizes = [16, 128], strides = [1, 1]} : vector<16x512xf32> to vector<16x128xf32>
    %224 = math.tanh %223 : vector<16x128xf32>
    %225 = arith.mulf %221, %180 : vector<16x128xf32>
    %226 = arith.mulf %220, %224 : vector<16x128xf32>
    %227 = arith.addf %225, %226 : vector<16x128xf32>
    %228 = math.tanh %227 : vector<16x128xf32>
    %229 = arith.mulf %222, %228 : vector<16x128xf32>
    %230 = arith.truncf %229 : vector<16x128xf32> to vector<16x128xbf16>
    %c48_75 = arith.constant 48 : index
    %c0_76 = arith.constant 0 : index
    %231 = vector.load %arg14[%c48_75, %c0_76] : memref<128x128xbf16, #tpu.memory_space<vmem>>, vector<16x128xbf16>
    tpu.vector_store %arg14[%c48_75, %c0_76], %230 {strides = array<i32>} : memref<128x128xbf16, #tpu.memory_space<vmem>>, vector<16x128xbf16>,
    %232 = tpu.concatenate %209, %229 in 1 : vector<16x128xf32>, vector<16x128xf32> -> vector<16x256xf32>
    %233 = arith.truncf %232 : vector<16x256xf32> to vector<16x256xbf16>
    %c0_77 = arith.constant 0 : index
    %c0_78 = arith.constant 0 : index
    %234 = vector.load %arg6[%c0_77, %c0_78] : memref<256x1024xbf16, #tpu.memory_space<vmem>>, vector<256x1024xbf16>
    %cst_79 = arith.constant dense<0.000000e+00> : vector<16x1024xf32>
    %235 = tpu.matmul %233, %234, %cst_79 {dimension_numbers = #tpu.dot_dimension_numbers<[1], [0], [0], [1], [0, 0, 1, 1], [], []>} : vector<16x256xbf16>, vector<256x1024xbf16>, vector<16x1024xf32> -> vector<16x1024xf32>
    %c80 = arith.constant 80 : index
    %c0_80 = arith.constant 0 : index
    %236 = vector.load %arg13[%c80, %c0_80] : memref<128x512xf32, #tpu.memory_space<vmem>>, vector<16x512xf32>
    %237 = vector.extract_strided_slice %235 {offsets = [0, 0], sizes = [16, 512], strides = [1, 1]} : vector<16x1024xf32> to vector<16x512xf32>
    %238 = arith.addf %236, %237 : vector<16x512xf32>
    %239 = vector.extract_strided_slice %238 {offsets = [0, 0], sizes = [16, 384], strides = [1, 1]} : vector<16x512xf32> to vector<16x384xf32>
    %cst_81 = arith.constant 5.000000e-01 : f32
    %240 = vector.broadcast %cst_81 : f32 to vector<16x384xf32>
    %241 = arith.mulf %240, %239 : vector<16x384xf32>
    %242 = math.tanh %241 : vector<16x384xf32>
    %cst_82 = arith.constant 5.000000e-01 : f32
    %243 = vector.broadcast %cst_82 : f32 to vector<16x384xf32>
    %244 = arith.mulf %243, %242 : vector<16x384xf32>
    %cst_83 = arith.constant 5.000000e-01 : f32
    %245 = vector.broadcast %cst_83 : f32 to vector<16x384xf32>
    %246 = arith.addf %244, %245 : vector<16x384xf32>
    %247 = vector.extract_strided_slice %246 {offsets = [0, 0], sizes = [16, 128], strides = [1, 1]} : vector<16x384xf32> to vector<16x128xf32>
    %248 = vector.extract_strided_slice %246 {offsets = [0, 128], sizes = [16, 128], strides = [1, 1]} : vector<16x384xf32> to vector<16x128xf32>
    %249 = vector.extract_strided_slice %246 {offsets = [0, 256], sizes = [16, 128], strides = [1, 1]} : vector<16x384xf32> to vector<16x128xf32>
    %250 = vector.extract_strided_slice %238 {offsets = [0, 384], sizes = [16, 128], strides = [1, 1]} : vector<16x512xf32> to vector<16x128xf32>
    %251 = math.tanh %250 : vector<16x128xf32>
    %252 = arith.mulf %248, %207 : vector<16x128xf32>
    %253 = arith.mulf %247, %251 : vector<16x128xf32>
    %254 = arith.addf %252, %253 : vector<16x128xf32>
    %255 = math.tanh %254 : vector<16x128xf32>
    %256 = arith.mulf %249, %255 : vector<16x128xf32>
    %257 = vector.extract_strided_slice %235 {offsets = [0, 512], sizes = [16, 512], strides = [1, 1]} : vector<16x1024xf32> to vector<16x512xf32>
    %258 = arith.addf %257, %10 : vector<16x512xf32>
    %259 = vector.extract_strided_slice %258 {offsets = [0, 0], sizes = [16, 384], strides = [1, 1]} : vector<16x512xf32> to vector<16x384xf32>
    %cst_84 = arith.constant 5.000000e-01 : f32
    %260 = vector.broadcast %cst_84 : f32 to vector<16x384xf32>
    %261 = arith.mulf %260, %259 : vector<16x384xf32>
    %262 = math.tanh %261 : vector<16x384xf32>
    %cst_85 = arith.constant 5.000000e-01 : f32
    %263 = vector.broadcast %cst_85 : f32 to vector<16x384xf32>
    %264 = arith.mulf %263, %262 : vector<16x384xf32>
    %cst_86 = arith.constant 5.000000e-01 : f32
    %265 = vector.broadcast %cst_86 : f32 to vector<16x384xf32>
    %266 = arith.addf %264, %265 : vector<16x384xf32>
    %267 = vector.extract_strided_slice %266 {offsets = [0, 0], sizes = [16, 128], strides = [1, 1]} : vector<16x384xf32> to vector<16x128xf32>
    %268 = vector.extract_strided_slice %266 {offsets = [0, 128], sizes = [16, 128], strides = [1, 1]} : vector<16x384xf32> to vector<16x128xf32>
    %269 = vector.extract_strided_slice %266 {offsets = [0, 256], sizes = [16, 128], strides = [1, 1]} : vector<16x384xf32> to vector<16x128xf32>
    %270 = vector.extract_strided_slice %258 {offsets = [0, 384], sizes = [16, 128], strides = [1, 1]} : vector<16x512xf32> to vector<16x128xf32>
    %271 = math.tanh %270 : vector<16x128xf32>
    %272 = arith.mulf %268, %227 : vector<16x128xf32>
    %273 = arith.mulf %267, %271 : vector<16x128xf32>
    %274 = arith.addf %272, %273 : vector<16x128xf32>
    %275 = math.tanh %274 : vector<16x128xf32>
    %276 = arith.mulf %269, %275 : vector<16x128xf32>
    %277 = arith.truncf %276 : vector<16x128xf32> to vector<16x128xbf16>
    %c64_87 = arith.constant 64 : index
    %c0_88 = arith.constant 0 : index
    %278 = vector.load %arg14[%c64_87, %c0_88] : memref<128x128xbf16, #tpu.memory_space<vmem>>, vector<16x128xbf16>
    tpu.vector_store %arg14[%c64_87, %c0_88], %277 {strides = array<i32>} : memref<128x128xbf16, #tpu.memory_space<vmem>>, vector<16x128xbf16>,
    %279 = tpu.concatenate %256, %276 in 1 : vector<16x128xf32>, vector<16x128xf32> -> vector<16x256xf32>
    %280 = arith.truncf %279 : vector<16x256xf32> to vector<16x256xbf16>
    %c0_89 = arith.constant 0 : index
    %c0_90 = arith.constant 0 : index
    %281 = vector.load %arg6[%c0_89, %c0_90] : memref<256x1024xbf16, #tpu.memory_space<vmem>>, vector<256x1024xbf16>
    %cst_91 = arith.constant dense<0.000000e+00> : vector<16x1024xf32>
    %282 = tpu.matmul %280, %281, %cst_91 {dimension_numbers = #tpu.dot_dimension_numbers<[1], [0], [0], [1], [0, 0, 1, 1], [], []>} : vector<16x256xbf16>, vector<256x1024xbf16>, vector<16x1024xf32> -> vector<16x1024xf32>
    %c96 = arith.constant 96 : index
    %c0_92 = arith.constant 0 : index
    %283 = vector.load %arg13[%c96, %c0_92] : memref<128x512xf32, #tpu.memory_space<vmem>>, vector<16x512xf32>
    %284 = vector.extract_strided_slice %282 {offsets = [0, 0], sizes = [16, 512], strides = [1, 1]} : vector<16x1024xf32> to vector<16x512xf32>
    %285 = arith.addf %283, %284 : vector<16x512xf32>
    %286 = vector.extract_strided_slice %285 {offsets = [0, 0], sizes = [16, 384], strides = [1, 1]} : vector<16x512xf32> to vector<16x384xf32>
    %cst_93 = arith.constant 5.000000e-01 : f32
    %287 = vector.broadcast %cst_93 : f32 to vector<16x384xf32>
    %288 = arith.mulf %287, %286 : vector<16x384xf32>
    %289 = math.tanh %288 : vector<16x384xf32>
    %cst_94 = arith.constant 5.000000e-01 : f32
    %290 = vector.broadcast %cst_94 : f32 to vector<16x384xf32>
    %291 = arith.mulf %290, %289 : vector<16x384xf32>
    %cst_95 = arith.constant 5.000000e-01 : f32
    %292 = vector.broadcast %cst_95 : f32 to vector<16x384xf32>
    %293 = arith.addf %291, %292 : vector<16x384xf32>
    %294 = vector.extract_strided_slice %293 {offsets = [0, 0], sizes = [16, 128], strides = [1, 1]} : vector<16x384xf32> to vector<16x128xf32>
    %295 = vector.extract_strided_slice %293 {offsets = [0, 128], sizes = [16, 128], strides = [1, 1]} : vector<16x384xf32> to vector<16x128xf32>
    %296 = vector.extract_strided_slice %293 {offsets = [0, 256], sizes = [16, 128], strides = [1, 1]} : vector<16x384xf32> to vector<16x128xf32>
    %297 = vector.extract_strided_slice %285 {offsets = [0, 384], sizes = [16, 128], strides = [1, 1]} : vector<16x512xf32> to vector<16x128xf32>
    %298 = math.tanh %297 : vector<16x128xf32>
    %299 = arith.mulf %295, %254 : vector<16x128xf32>
    %300 = arith.mulf %294, %298 : vector<16x128xf32>
    %301 = arith.addf %299, %300 : vector<16x128xf32>
    %302 = math.tanh %301 : vector<16x128xf32>
    %303 = arith.mulf %296, %302 : vector<16x128xf32>
    %304 = vector.extract_strided_slice %282 {offsets = [0, 512], sizes = [16, 512], strides = [1, 1]} : vector<16x1024xf32> to vector<16x512xf32>
    %305 = arith.addf %304, %10 : vector<16x512xf32>
    %306 = vector.extract_strided_slice %305 {offsets = [0, 0], sizes = [16, 384], strides = [1, 1]} : vector<16x512xf32> to vector<16x384xf32>
    %cst_96 = arith.constant 5.000000e-01 : f32
    %307 = vector.broadcast %cst_96 : f32 to vector<16x384xf32>
    %308 = arith.mulf %307, %306 : vector<16x384xf32>
    %309 = math.tanh %308 : vector<16x384xf32>
    %cst_97 = arith.constant 5.000000e-01 : f32
    %310 = vector.broadcast %cst_97 : f32 to vector<16x384xf32>
    %311 = arith.mulf %310, %309 : vector<16x384xf32>
    %cst_98 = arith.constant 5.000000e-01 : f32
    %312 = vector.broadcast %cst_98 : f32 to vector<16x384xf32>
    %313 = arith.addf %311, %312 : vector<16x384xf32>
    %314 = vector.extract_strided_slice %313 {offsets = [0, 0], sizes = [16, 128], strides = [1, 1]} : vector<16x384xf32> to vector<16x128xf32>
    %315 = vector.extract_strided_slice %313 {offsets = [0, 128], sizes = [16, 128], strides = [1, 1]} : vector<16x384xf32> to vector<16x128xf32>
    %316 = vector.extract_strided_slice %313 {offsets = [0, 256], sizes = [16, 128], strides = [1, 1]} : vector<16x384xf32> to vector<16x128xf32>
    %317 = vector.extract_strided_slice %305 {offsets = [0, 384], sizes = [16, 128], strides = [1, 1]} : vector<16x512xf32> to vector<16x128xf32>
    %318 = math.tanh %317 : vector<16x128xf32>
    %319 = arith.mulf %315, %274 : vector<16x128xf32>
    %320 = arith.mulf %314, %318 : vector<16x128xf32>
    %321 = arith.addf %319, %320 : vector<16x128xf32>
    %322 = math.tanh %321 : vector<16x128xf32>
    %323 = arith.mulf %316, %322 : vector<16x128xf32>
    %324 = arith.truncf %323 : vector<16x128xf32> to vector<16x128xbf16>
    %c80_99 = arith.constant 80 : index
    %c0_100 = arith.constant 0 : index
    %325 = vector.load %arg14[%c80_99, %c0_100] : memref<128x128xbf16, #tpu.memory_space<vmem>>, vector<16x128xbf16>
    tpu.vector_store %arg14[%c80_99, %c0_100], %324 {strides = array<i32>} : memref<128x128xbf16, #tpu.memory_space<vmem>>, vector<16x128xbf16>,
    %326 = tpu.concatenate %303, %323 in 1 : vector<16x128xf32>, vector<16x128xf32> -> vector<16x256xf32>
    %327 = arith.truncf %326 : vector<16x256xf32> to vector<16x256xbf16>
    %c0_101 = arith.constant 0 : index
    %c0_102 = arith.constant 0 : index
    %328 = vector.load %arg6[%c0_101, %c0_102] : memref<256x1024xbf16, #tpu.memory_space<vmem>>, vector<256x1024xbf16>
    %cst_103 = arith.constant dense<0.000000e+00> : vector<16x1024xf32>
    %329 = tpu.matmul %327, %328, %cst_103 {dimension_numbers = #tpu.dot_dimension_numbers<[1], [0], [0], [1], [0, 0, 1, 1], [], []>} : vector<16x256xbf16>, vector<256x1024xbf16>, vector<16x1024xf32> -> vector<16x1024xf32>
    %c112 = arith.constant 112 : index
    %c0_104 = arith.constant 0 : index
    %330 = vector.load %arg13[%c112, %c0_104] : memref<128x512xf32, #tpu.memory_space<vmem>>, vector<16x512xf32>
    %331 = vector.extract_strided_slice %329 {offsets = [0, 0], sizes = [16, 512], strides = [1, 1]} : vector<16x1024xf32> to vector<16x512xf32>
    %332 = arith.addf %330, %331 : vector<16x512xf32>
    %333 = vector.extract_strided_slice %332 {offsets = [0, 0], sizes = [16, 384], strides = [1, 1]} : vector<16x512xf32> to vector<16x384xf32>
    %cst_105 = arith.constant 5.000000e-01 : f32
    %334 = vector.broadcast %cst_105 : f32 to vector<16x384xf32>
    %335 = arith.mulf %334, %333 : vector<16x384xf32>
    %336 = math.tanh %335 : vector<16x384xf32>
    %cst_106 = arith.constant 5.000000e-01 : f32
    %337 = vector.broadcast %cst_106 : f32 to vector<16x384xf32>
    %338 = arith.mulf %337, %336 : vector<16x384xf32>
    %cst_107 = arith.constant 5.000000e-01 : f32
    %339 = vector.broadcast %cst_107 : f32 to vector<16x384xf32>
    %340 = arith.addf %338, %339 : vector<16x384xf32>
    %341 = vector.extract_strided_slice %340 {offsets = [0, 0], sizes = [16, 128], strides = [1, 1]} : vector<16x384xf32> to vector<16x128xf32>
    %342 = vector.extract_strided_slice %340 {offsets = [0, 128], sizes = [16, 128], strides = [1, 1]} : vector<16x384xf32> to vector<16x128xf32>
    %343 = vector.extract_strided_slice %340 {offsets = [0, 256], sizes = [16, 128], strides = [1, 1]} : vector<16x384xf32> to vector<16x128xf32>
    %344 = vector.extract_strided_slice %332 {offsets = [0, 384], sizes = [16, 128], strides = [1, 1]} : vector<16x512xf32> to vector<16x128xf32>
    %345 = math.tanh %344 : vector<16x128xf32>
    %346 = arith.mulf %342, %301 : vector<16x128xf32>
    %347 = arith.mulf %341, %345 : vector<16x128xf32>
    %348 = arith.addf %346, %347 : vector<16x128xf32>
    %349 = math.tanh %348 : vector<16x128xf32>
    %350 = arith.mulf %343, %349 : vector<16x128xf32>
    %351 = vector.extract_strided_slice %329 {offsets = [0, 512], sizes = [16, 512], strides = [1, 1]} : vector<16x1024xf32> to vector<16x512xf32>
    %352 = arith.addf %351, %10 : vector<16x512xf32>
    %353 = vector.extract_strided_slice %352 {offsets = [0, 0], sizes = [16, 384], strides = [1, 1]} : vector<16x512xf32> to vector<16x384xf32>
    %cst_108 = arith.constant 5.000000e-01 : f32
    %354 = vector.broadcast %cst_108 : f32 to vector<16x384xf32>
    %355 = arith.mulf %354, %353 : vector<16x384xf32>
    %356 = math.tanh %355 : vector<16x384xf32>
    %cst_109 = arith.constant 5.000000e-01 : f32
    %357 = vector.broadcast %cst_109 : f32 to vector<16x384xf32>
    %358 = arith.mulf %357, %356 : vector<16x384xf32>
    %cst_110 = arith.constant 5.000000e-01 : f32
    %359 = vector.broadcast %cst_110 : f32 to vector<16x384xf32>
    %360 = arith.addf %358, %359 : vector<16x384xf32>
    %361 = vector.extract_strided_slice %360 {offsets = [0, 0], sizes = [16, 128], strides = [1, 1]} : vector<16x384xf32> to vector<16x128xf32>
    %362 = vector.extract_strided_slice %360 {offsets = [0, 128], sizes = [16, 128], strides = [1, 1]} : vector<16x384xf32> to vector<16x128xf32>
    %363 = vector.extract_strided_slice %360 {offsets = [0, 256], sizes = [16, 128], strides = [1, 1]} : vector<16x384xf32> to vector<16x128xf32>
    %364 = vector.extract_strided_slice %352 {offsets = [0, 384], sizes = [16, 128], strides = [1, 1]} : vector<16x512xf32> to vector<16x128xf32>
    %365 = math.tanh %364 : vector<16x128xf32>
    %366 = arith.mulf %362, %321 : vector<16x128xf32>
    %367 = arith.mulf %361, %365 : vector<16x128xf32>
    %368 = arith.addf %366, %367 : vector<16x128xf32>
    %369 = math.tanh %368 : vector<16x128xf32>
    %370 = arith.mulf %363, %369 : vector<16x128xf32>
    %371 = arith.truncf %370 : vector<16x128xf32> to vector<16x128xbf16>
    %c96_111 = arith.constant 96 : index
    %c0_112 = arith.constant 0 : index
    %372 = vector.load %arg14[%c96_111, %c0_112] : memref<128x128xbf16, #tpu.memory_space<vmem>>, vector<16x128xbf16>
    tpu.vector_store %arg14[%c96_111, %c0_112], %371 {strides = array<i32>} : memref<128x128xbf16, #tpu.memory_space<vmem>>, vector<16x128xbf16>,
    %373 = tpu.concatenate %350, %370 in 1 : vector<16x128xf32>, vector<16x128xf32> -> vector<16x256xf32>
    %374 = arith.truncf %373 : vector<16x256xf32> to vector<16x256xbf16>
    %c0_113 = arith.constant 0 : index
    %c0_114 = arith.constant 0 : index
    %375 = vector.load %arg6[%c0_113, %c0_114] : memref<256x1024xbf16, #tpu.memory_space<vmem>>, vector<256x1024xbf16>
    %cst_115 = arith.constant dense<0.000000e+00> : vector<16x1024xf32>
    %376 = tpu.matmul %374, %375, %cst_115 {dimension_numbers = #tpu.dot_dimension_numbers<[1], [0], [0], [1], [0, 0, 1, 1], [], []>} : vector<16x256xbf16>, vector<256x1024xbf16>, vector<16x1024xf32> -> vector<16x1024xf32>
    %377 = vector.extract_strided_slice %376 {offsets = [0, 512], sizes = [16, 512], strides = [1, 1]} : vector<16x1024xf32> to vector<16x512xf32>
    %378 = arith.addf %377, %10 : vector<16x512xf32>
    %379 = vector.extract_strided_slice %378 {offsets = [0, 0], sizes = [16, 384], strides = [1, 1]} : vector<16x512xf32> to vector<16x384xf32>
    %cst_116 = arith.constant 5.000000e-01 : f32
    %380 = vector.broadcast %cst_116 : f32 to vector<16x384xf32>
    %381 = arith.mulf %380, %379 : vector<16x384xf32>
    %382 = math.tanh %381 : vector<16x384xf32>
    %cst_117 = arith.constant 5.000000e-01 : f32
    %383 = vector.broadcast %cst_117 : f32 to vector<16x384xf32>
    %384 = arith.mulf %383, %382 : vector<16x384xf32>
    %cst_118 = arith.constant 5.000000e-01 : f32
    %385 = vector.broadcast %cst_118 : f32 to vector<16x384xf32>
    %386 = arith.addf %384, %385 : vector<16x384xf32>
    %387 = vector.extract_strided_slice %386 {offsets = [0, 0], sizes = [16, 128], strides = [1, 1]} : vector<16x384xf32> to vector<16x128xf32>
    %388 = vector.extract_strided_slice %386 {offsets = [0, 128], sizes = [16, 128], strides = [1, 1]} : vector<16x384xf32> to vector<16x128xf32>
    %389 = vector.extract_strided_slice %386 {offsets = [0, 256], sizes = [16, 128], strides = [1, 1]} : vector<16x384xf32> to vector<16x128xf32>
    %390 = vector.extract_strided_slice %378 {offsets = [0, 384], sizes = [16, 128], strides = [1, 1]} : vector<16x512xf32> to vector<16x128xf32>
    %391 = math.tanh %390 : vector<16x128xf32>
    %392 = arith.mulf %388, %368 : vector<16x128xf32>
    %393 = arith.mulf %387, %391 : vector<16x128xf32>
    %394 = arith.addf %392, %393 : vector<16x128xf32>
    %395 = math.tanh %394 : vector<16x128xf32>
    %396 = arith.mulf %389, %395 : vector<16x128xf32>
    %397 = arith.truncf %396 : vector<16x128xf32> to vector<16x128xbf16>
    %c112_119 = arith.constant 112 : index
    %c0_120 = arith.constant 0 : index
    %398 = vector.load %arg14[%c112_119, %c0_120] : memref<128x128xbf16, #tpu.memory_space<vmem>>, vector<16x128xbf16>
    tpu.vector_store %arg14[%c112_119, %c0_120], %397 {strides = array<i32>} : memref<128x128xbf16, #tpu.memory_space<vmem>>, vector<16x128xbf16>,
    %c0_121 = arith.constant 0 : index
    %c0_122 = arith.constant 0 : index
    %c0_123 = arith.constant 0 : index
    %399 = vector.load %arg11[%c0_121, %c0_122, %c0_123] : memref<2x16x128xf32, #tpu.memory_space<vmem>>, vector<1x16x128xf32>
    %400 = vector.shape_cast %399 : vector<1x16x128xf32> to vector<16x128xf32>
    %401 = vector.shape_cast %350 : vector<16x128xf32> to vector<1x16x128xf32>
    tpu.vector_store %arg11[%c0_121, %c0_122, %c0_123], %401 {strides = array<i32>} : memref<2x16x128xf32, #tpu.memory_space<vmem>>, vector<1x16x128xf32>,
    %c0_124 = arith.constant 0 : index
    %c0_125 = arith.constant 0 : index
    %c0_126 = arith.constant 0 : index
    %402 = vector.load %arg12[%c0_124, %c0_125, %c0_126] : memref<2x16x128xf32, #tpu.memory_space<vmem>>, vector<1x16x128xf32>
    %403 = vector.shape_cast %402 : vector<1x16x128xf32> to vector<16x128xf32>
    %404 = vector.shape_cast %348 : vector<16x128xf32> to vector<1x16x128xf32>
    tpu.vector_store %arg12[%c0_124, %c0_125, %c0_126], %404 {strides = array<i32>} : memref<2x16x128xf32, #tpu.memory_space<vmem>>, vector<1x16x128xf32>,
    %c1_127 = arith.constant 1 : index
    %c0_128 = arith.constant 0 : index
    %c0_129 = arith.constant 0 : index
    %405 = vector.load %arg11[%c1_127, %c0_128, %c0_129] : memref<2x16x128xf32, #tpu.memory_space<vmem>>, vector<1x16x128xf32>
    %406 = vector.shape_cast %405 : vector<1x16x128xf32> to vector<16x128xf32>
    %407 = vector.shape_cast %396 : vector<16x128xf32> to vector<1x16x128xf32>
    tpu.vector_store %arg11[%c1_127, %c0_128, %c0_129], %407 {strides = array<i32>} : memref<2x16x128xf32, #tpu.memory_space<vmem>>, vector<1x16x128xf32>,
    %c1_130 = arith.constant 1 : index
    %c0_131 = arith.constant 0 : index
    %c0_132 = arith.constant 0 : index
    %408 = vector.load %arg12[%c1_130, %c0_131, %c0_132] : memref<2x16x128xf32, #tpu.memory_space<vmem>>, vector<1x16x128xf32>
    %409 = vector.shape_cast %408 : vector<1x16x128xf32> to vector<16x128xf32>
    %410 = vector.shape_cast %394 : vector<16x128xf32> to vector<1x16x128xf32>
    tpu.vector_store %arg12[%c1_130, %c0_131, %c0_132], %410 {strides = array<i32>} : memref<2x16x128xf32, #tpu.memory_space<vmem>>, vector<1x16x128xf32>,
    %c0_133 = arith.constant 0 : index
    %c0_134 = arith.constant 0 : index
    %411 = vector.load %arg14[%c0_133, %c0_134] : memref<128x128xbf16, #tpu.memory_space<vmem>>, vector<128x128xbf16>
    %c0_135 = arith.constant 0 : index
    %c0_136 = arith.constant 0 : index
    %412 = vector.load %arg8[%c0_135, %c0_136] : memref<128x128xbf16, #tpu.memory_space<vmem>>, vector<128x128xbf16>
    %cst_137 = arith.constant dense<0.000000e+00> : vector<128x128xf32>
    %413 = tpu.matmul %411, %412, %cst_137 {dimension_numbers = #tpu.dot_dimension_numbers<[1], [0], [0], [1], [0, 0, 1, 1], [], []>} : vector<128x128xbf16>, vector<128x128xbf16>, vector<128x128xf32> -> vector<128x128xf32>
    %c0_138 = arith.constant 0 : index
    %c0_139 = arith.constant 0 : index
    %414 = vector.load %arg9[%c0_138, %c0_139] : memref<1x128xf32, #tpu.memory_space<vmem>>, vector<1x128xf32>
    %415 = vector.broadcast %414 : vector<1x128xf32> to vector<128x128xf32>
    %416 = arith.addf %413, %415 : vector<128x128xf32>
    %417 = vector.shape_cast %416 : vector<128x128xf32> to vector<8x16x128xf32>
    %c0_140 = arith.constant 0 : index
    %c0_141 = arith.constant 0 : index
    %c0_142 = arith.constant 0 : index
    %418 = vector.load %arg10[%c0_140, %c0_141, %c0_142] : memref<8x16x128xf32, #tpu.memory_space<vmem>>, vector<8x16x128xf32>
    tpu.vector_store %arg10[%c0_140, %c0_141, %c0_142], %417 {strides = array<i32>} : memref<8x16x128xf32, #tpu.memory_space<vmem>>, vector<8x16x128xf32>,
    return
  }
  func.func @transform_0(%arg0: i32) -> (i32, i32, i32) {
    %c0_i32 = arith.constant 0 : i32
    %c0_i32_0 = arith.constant 0 : i32
    %c0_i32_1 = arith.constant 0 : i32
    return %c0_i32, %arg0, %c0_i32_0 : i32, i32, i32
  }
  func.func @transform_1(%arg0: i32) -> (i32, i32, i32) {
    %c0_i32 = arith.constant 0 : i32
    %c0_i32_0 = arith.constant 0 : i32
    %c0_i32_1 = arith.constant 0 : i32
    return %c0_i32, %arg0, %c0_i32_0 : i32, i32, i32
  }
  func.func @transform_2(%arg0: i32) -> (i32, i32, i32) {
    %c0_i32 = arith.constant 0 : i32
    %c0_i32_0 = arith.constant 0 : i32
    %c0_i32_1 = arith.constant 0 : i32
    return %c0_i32, %arg0, %c0_i32_0 : i32, i32, i32
  }
  func.func @transform_3(%arg0: i32) -> (i32, i32) {
    %c0_i32 = arith.constant 0 : i32
    %c0_i32_0 = arith.constant 0 : i32
    %c0_i32_1 = arith.constant 0 : i32
    return %c0_i32, %c0_i32_0 : i32, i32
  }
  func.func @transform_4(%arg0: i32) -> (i32, i32) {
    %c0_i32 = arith.constant 0 : i32
    %c0_i32_0 = arith.constant 0 : i32
    %c0_i32_1 = arith.constant 0 : i32
    return %c0_i32, %c0_i32_0 : i32, i32
  }
  func.func @transform_5(%arg0: i32) -> (i32, i32) {
    %c0_i32 = arith.constant 0 : i32
    %c0_i32_0 = arith.constant 0 : i32
    %c0_i32_1 = arith.constant 0 : i32
    return %c0_i32, %c0_i32_0 : i32, i32
  }
  func.func @transform_6(%arg0: i32) -> (i32, i32) {
    %c0_i32 = arith.constant 0 : i32
    %c0_i32_0 = arith.constant 0 : i32
    %c0_i32_1 = arith.constant 0 : i32
    return %c0_i32, %c0_i32_0 : i32, i32
  }
  func.func @transform_7(%arg0: i32) -> (i32, i32) {
    %c0_i32 = arith.constant 0 : i32
    %c0_i32_0 = arith.constant 0 : i32
    %c0_i32_1 = arith.constant 0 : i32
    return %c0_i32, %c0_i32_0 : i32, i32
  }
  func.func @transform_8(%arg0: i32) -> (i32, i32) {
    %c0_i32 = arith.constant 0 : i32
    %c0_i32_0 = arith.constant 0 : i32
    %c0_i32_1 = arith.constant 0 : i32
    return %c0_i32, %c0_i32_0 : i32, i32
  }
  func.func @transform_9(%arg0: i32) -> (i32, i32, i32) {
    %c0_i32 = arith.constant 0 : i32
    %c0_i32_0 = arith.constant 0 : i32
    %c0_i32_1 = arith.constant 0 : i32
    return %c0_i32, %arg0, %c0_i32_0 : i32, i32, i32
  }
  func.func @transform_10(%arg0: i32) -> (i32, i32, i32) {
    %c0_i32 = arith.constant 0 : i32
    %c0_i32_0 = arith.constant 0 : i32
    %c0_i32_1 = arith.constant 0 : i32
    return %c0_i32, %arg0, %c0_i32_0 : i32, i32, i32
  }
  func.func @transform_11(%arg0: i32) -> (i32, i32, i32) {
    %c0_i32 = arith.constant 0 : i32
    %c0_i32_0 = arith.constant 0 : i32
    %c0_i32_1 = arith.constant 0 : i32
    return %c0_i32, %arg0, %c0_i32_0 : i32, i32, i32
  }
}

</mosaic_0001>

<bundles_post_ra>
// kernel: lstm_forward.1
= control target key start
LH: loop header
LB: loop body
LE: loop exit
PB: predicated region body
PF: predicated region fallthrough
CT: control target
= control target key end

     0   :  { %v14403_v1 = vmov 0   ;;  %vm138_vm0 = vcmask 130048   ;;  %s14391_s3 = inlined_call_operand.vmem [shape: bf16[16,512], index: 3, kind: input, shape index: {}]   ;;  %s14392_s0 = inlined_call_operand.vmem [shape: bf16[8,16,16], index: 0, kind: input, shape index: {}]   ;;  %s14393_s5 = inlined_call_operand.vmem [shape: bf16[256,1024], index: 5, kind: input, shape index: {}]   ;;  %s14394_s1 = inlined_call_operand.vmem [shape: f32[2,16,128], index: 1, kind: input, shape index: {}]   ;;  %s14395_s4 = inlined_call_operand.vmem [shape: f32[1,512], index: 4, kind: input, shape index: {}]   ;;  %s14396_s2 = inlined_call_operand.vmem [shape: f32[2,16,128], index: 2, kind: input, shape index: {}]   ;;  %s14397_s6 = inlined_call_operand.vmem [shape: f32[1,512], index: 6, kind: input, shape index: {}]   ;;  %s14398_s7 = inlined_call_operand.vmem [shape: bf16[128,128], index: 7, kind: input, shape index: {}]   ;;  %s14399_s11 = inlined_call_operand.vmem [shape: f32[2,16,128], index: 11, kind: output, shape index: {2}]   ;;  %s14400_s10 = inlined_call_operand.vmem [shape: f32[2,16,128], index: 10, kind: output, shape index: {1}]   ;;  %s14401_s8 = inlined_call_operand.vmem [shape: f32[1,128], index: 8, kind: input, shape index: {}]   ;;  %s14402_s9 = inlined_call_operand.vmem [shape: f32[8,16,128], index: 9, kind: output, shape index: {0}]  }
   0x1   :  { %v9827_v0 = vld [vmem:[%s14391_s3 + $0x4] ss:$16 sps:$4 sm:$0xff]   ;;  %195 = vmatprep.mubr.bf16.mxu0 %v14403_v1  ;;  %308 = vmatprep.mubr.bf16.mxu1 %v14403_v1  ;;  %v9829_v2 = vld [vmem:[%s14391_s3 + $0xc] ss:$16 sps:$4 sm:$0xff]   ;;  %v9831_v3 = vld [vmem:[%s14391_s3] ss:$16 sps:$4 sm:$0xff]  }
   0x2   :  { %163 = vmatprep.subr.bf16.mxu0 %v9827_v0  ;;  %v9832_v4 = vld [vmem:[%s14391_s3 + $0x8] ss:$16 sps:$4 sm:$0xff]   ;;  %276 = vmatprep.subr.bf16.mxu1 %v9829_v2  ;;  %v9833_v5 = vld [vmem:[%s14392_s0] sm:$0xff]   ;;  %v9835_v43 = vld [vmem:[%s14392_s0 + $0x10] sm:$0xff]  }
   0x3   :  { %v487_v6 = vld [vmem:[%s14393_s5] sm:$0xff]  ;;  %164 = vmatpush1.bf16.msra.mxu0 %v9831_v3  ;;  %277 = vmatpush1.bf16.msra.mxu1 %v9832_v4  ;;  %v488_v8 = vld [vmem:[%s14393_s5 + $0x8] sm:$0xff]  ;;  %v9836_v60 = vld [vmem:[%s14392_s0 + $0x18] sm:$0xff]  }
   0x4   :  { %v491_v7 = vld [vmem:[%s14393_s5 + $0x20] sm:$0xff]  ;;  %v492_v9 = vld [vmem:[%s14393_s5 + $0x28] sm:$0xff] }
   0x5   :  { %v10259_v10 = vcombine.low %v487_v6, %v491_v7  ;;  %v10261_v11 = vcombine.high %v487_v6, %v491_v7  ;;  %v10263_v12 = vcombine.low %v488_v8, %v492_v9  ;;  %v10265_v13 = vcombine.high %v488_v8, %v492_v9  ;;  %v495_v14 = vld [vmem:[%s14393_s5 + $0x40] sm:$0xff]  ;;  %v496_v16 = vld [vmem:[%s14393_s5 + $0x48] sm:$0xff] }
   0x6   :  { %v499_v15 = vld [vmem:[%s14393_s5 + $0x60] sm:$0xff]  ;;  %v500_v18 = vld [vmem:[%s14393_s5 + $0x68] sm:$0xff]  ;;  %8641 = vmatmul.mubr.msk.bf16.vlgmr.msra.gmra.mrb[0].mxu0 %vm138_vm0, %v9833_v5  ;;  %8649 = vmatmul.mubr.msk.bf16.vlgmr.msra.gmra.mrb[0].mxu1 %vm138_vm0, %v9833_v5 }
   0x7   :  { %v10276_v17 = vcombine.high %v495_v14, %v499_v15  ;;  %v10283_v19 = vcombine.high %v496_v16, %v500_v18  ;;  %v503_v20 = vld [vmem:[%s14393_s5 + $0x80] sm:$0xff]  ;;  %935 = vmatprep.subr.bf16.mxu0 %v10261_v11  ;;  %978 = vmatprep.subr.bf16.mxu1 %v10265_v13  ;;  %v504_v22 = vld [vmem:[%s14393_s5 + $0x88] sm:$0xff]  ;;  %v10301_v24 = vcombine.low %v495_v14, %v499_v15 }
   0x8   :  { %v507_v21 = vld [vmem:[%s14393_s5 + $0xa0] sm:$0xff]  ;;  %v508_v23 = vld [vmem:[%s14393_s5 + $0xa8] sm:$0xff]  ;;  %936 = vmatpush1.bf16.msra.mxu0 %v10259_v10  ;;  %979 = vmatpush1.bf16.msra.mxu1 %v10263_v12  ;;  %v10303_v25 = vcombine.low %v496_v16, %v500_v18 }
   0x9   :  { %v9834_v26 = vld [vmem:[%s14392_s0 + $0x8] sm:$0xff]   ;;  %937 = vmatprep.subr.bf16.mxu0 %v10276_v17  ;;  %980 = vmatprep.subr.bf16.mxu1 %v10283_v19  ;;  %v10310_v27 = vcombine.high %v503_v20, %v507_v21  ;;  %v10312_v28 = vcombine.high %v504_v22, %v508_v23  ;;  %v511_v29 = vld [vmem:[%s14393_s5 + $0xc0] sm:$0xff]  ;;  %v10330_v33 = vcombine.low %v503_v20, %v507_v21 }
   0xa   :  { %205 = vmatprep.mubr.bf16.mxu0 %v14403_v1  ;;  %318 = vmatprep.mubr.bf16.mxu1 %v14403_v1  ;;  %v515_v30 = vld [vmem:[%s14393_s5 + $0xe0] sm:$0xff]  ;;  %v512_v31 = vld [vmem:[%s14393_s5 + $0xc8] sm:$0xff]  ;;  %v10332_v34 = vcombine.low %v504_v22, %v508_v23 }
   0xb   :  { %v516_v32 = vld [vmem:[%s14393_s5 + $0xe8] sm:$0xff]  ;;  %v10336_v35 = vcombine.high %v511_v29, %v515_v30  ;;  %v519_v37 = vld [vmem:[%s14393_s5 + $0x100] sm:$0xff]  ;;  %v10358_v41 = vcombine.low %v511_v29, %v515_v30 }
   0xc   :  { %938 = vmatpush1.bf16.msra.mxu0 %v10301_v24  ;;  %981 = vmatpush1.bf16.msra.mxu1 %v10303_v25  ;;  %v10338_v36 = vcombine.high %v512_v31, %v516_v32  ;;  %v523_v38 = vld [vmem:[%s14393_s5 + $0x120] sm:$0xff]  ;;  %v520_v39 = vld [vmem:[%s14393_s5 + $0x108] sm:$0xff]  ;;  %v10360_v42 = vcombine.low %v512_v31, %v516_v32 }
   0xd   :  { %939 = vmatprep.subr.bf16.mxu0 %v10310_v27  ;;  %982 = vmatprep.subr.bf16.mxu1 %v10312_v28  ;;  %v524_v40 = vld [vmem:[%s14393_s5 + $0x128] sm:$0xff]  ;;  %v10367_v44 = vcombine.high %v519_v37, %v523_v38  ;;  %v527_v46 = vld [vmem:[%s14393_s5 + $0x140] sm:$0xff]  ;;  %v10385_v50 = vcombine.low %v519_v37, %v523_v38 }
   0xe   :  { %8642 = vmatmul.mubr.msk.bf16.gmra.mrb[4].mxu0 %vm138_vm0, %v9834_v26  ;;  %8650 = vmatmul.mubr.msk.bf16.gmra.mrb[4].mxu1 %vm138_vm0, %v9834_v26  ;;  %v10369_v45 = vcombine.high %v520_v39, %v524_v40  ;;  %v531_v47 = vld [vmem:[%s14393_s5 + $0x160] sm:$0xff]  ;;  %v528_v48 = vld [vmem:[%s14393_s5 + $0x148] sm:$0xff]  ;;  %v10387_v51 = vcombine.low %v520_v39, %v524_v40 }
   0xf   :  { %215 = vmatprep.mubr.bf16.mxu0 %v14403_v1  ;;  %328 = vmatprep.mubr.bf16.mxu1 %v14403_v1  ;;  %v532_v49 = vld [vmem:[%s14393_s5 + $0x168] sm:$0xff]  ;;  %v10391_v52 = vcombine.high %v527_v46, %v531_v47  ;;  %v535_v54 = vld [vmem:[%s14393_s5 + $0x180] sm:$0xff]  ;;  %v10413_v58 = vcombine.low %v527_v46, %v531_v47 }
  0x10   :  { %940 = vmatpush1.bf16.msra.mxu0 %v10330_v33  ;;  %983 = vmatpush1.bf16.msra.mxu1 %v10332_v34  ;;  %v10393_v53 = vcombine.high %v528_v48, %v532_v49  ;;  %v539_v55 = vld [vmem:[%s14393_s5 + $0x1a0] sm:$0xff]  ;;  %v536_v56 = vld [vmem:[%s14393_s5 + $0x188] sm:$0xff]  ;;  %v10415_v59 = vcombine.low %v528_v48, %v532_v49 }
  0x11   :  { %941 = vmatprep.subr.bf16.mxu0 %v10336_v35  ;;  %984 = vmatprep.subr.bf16.mxu1 %v10338_v36  ;;  %v540_v57 = vld [vmem:[%s14393_s5 + $0x1a8] sm:$0xff]  ;;  %v10422_v61 = vcombine.high %v535_v54, %v539_v55  ;;  %v543_v63 = vld [vmem:[%s14393_s5 + $0x1c0] sm:$0xff]  ;;  %v10440_v4 = vcombine.low %v535_v54, %v539_v55 }
  0x12   :  { %v10424_v62 = vcombine.high %v536_v56, %v540_v57  ;;  %v547_v0 = vld [vmem:[%s14393_s5 + $0x1e0] sm:$0xff]  ;;  %v544_v2 = vld [vmem:[%s14393_s5 + $0x1c8] sm:$0xff]  ;;  %v10442_v5 = vcombine.low %v536_v56, %v540_v57 }
  0x13   :  { %v548_v3 = vld [vmem:[%s14393_s5 + $0x1e8] sm:$0xff]  ;;  %v10446_v6 = vcombine.high %v543_v63, %v547_v0  ;;  %v551_v8 = vld [vmem:[%s14393_s5 + $0x200] sm:$0xff]  ;;  %v10468_v16 = vcombine.low %v543_v63, %v547_v0 }
  0x14   :  { %942 = vmatpush1.bf16.msra.mxu0 %v10358_v41  ;;  %985 = vmatpush1.bf16.msra.mxu1 %v10360_v42  ;;  %v10448_v7 = vcombine.high %v544_v2, %v548_v3  ;;  %v555_v9 = vld [vmem:[%s14393_s5 + $0x220] sm:$0xff]  ;;  %v552_v14 = vld [vmem:[%s14393_s5 + $0x208] sm:$0xff]  ;;  %v10470_v18 = vcombine.low %v544_v2, %v548_v3 }
  0x15   :  { %943 = vmatprep.subr.bf16.mxu0 %v10367_v44  ;;  %986 = vmatprep.subr.bf16.mxu1 %v10369_v45  ;;  %v556_v15 = vld [vmem:[%s14393_s5 + $0x228] sm:$0xff]  ;;  %v9837_v20 = vld [vmem:[%s14392_s0 + $0x20] sm:$0xff]   ;;  %v10477_v21 = vcombine.high %v551_v8, %v555_v9  ;;  %v10495_v31 = vcombine.low %v551_v8, %v555_v9 }
  0x16   :  { %8643 = vmatmul.mubr.msk.bf16.gmra.mrb[8].mxu0 %vm138_vm0, %v9835_v43  ;;  %8651 = vmatmul.mubr.msk.bf16.gmra.mrb[8].mxu1 %vm138_vm0, %v9835_v43  ;;  %v10479_v22 = vcombine.high %v552_v14, %v556_v15  ;;  %v559_v23 = vld [vmem:[%s14393_s5 + $0x240] sm:$0xff]  ;;  %v560_v29 = vld [vmem:[%s14393_s5 + $0x248] sm:$0xff]  ;;  %v10497_v32 = vcombine.low %v552_v14, %v556_v15 }
  0x17   :  { %225 = vmatprep.mubr.bf16.mxu0 %v14403_v1  ;;  %338 = vmatprep.mubr.bf16.mxu1 %v14403_v1  ;;  %v563_v26 = vld [vmem:[%s14393_s5 + $0x260] sm:$0xff]  ;;  %v564_v30 = vld [vmem:[%s14393_s5 + $0x268] sm:$0xff] }
  0x18   :  { %944 = vmatpush1.bf16.msra.mxu0 %v10385_v50  ;;  %987 = vmatpush1.bf16.msra.mxu1 %v10387_v51  ;;  %v10501_v37 = vcombine.high %v559_v23, %v563_v26  ;;  %v10503_v38 = vcombine.high %v560_v29, %v564_v30  ;;  %v567_v39 = vld [vmem:[%s14393_s5 + $0x280] sm:$0xff]  ;;  %v568_v43 = vld [vmem:[%s14393_s5 + $0x288] sm:$0xff]  ;;  %v10523_v47 = vcombine.low %v559_v23, %v563_v26 }
  0x19   :  { %945 = vmatprep.subr.bf16.mxu0 %v10391_v52  ;;  %988 = vmatprep.subr.bf16.mxu1 %v10393_v53  ;;  %v571_v40 = vld [vmem:[%s14393_s5 + $0x2a0] sm:$0xff]  ;;  %v572_v46 = vld [vmem:[%s14393_s5 + $0x2a8] sm:$0xff]  ;;  %v10525_v48 = vcombine.low %v560_v29, %v564_v30  ;;  %v9839_v29 = vld [vmem:[%s14392_s0 + $0x30] sm:$0xff]  }
  0x1a   :  { %v9838_v49 = vld [vmem:[%s14392_s0 + $0x28] sm:$0xff]   ;;  %v10532_v54 = vcombine.high %v567_v39, %v571_v40  ;;  %v10534_v55 = vcombine.high %v568_v43, %v572_v46  ;;  %v575_v56 = vld [vmem:[%s14393_s5 + $0x2c0] sm:$0xff]  ;;  %v10550_v0 = vcombine.low %v567_v39, %v571_v40  ;;  %v10552_v2 = vcombine.low %v568_v43, %v572_v46 }
  0x1b   :  { %v579_v57 = vld [vmem:[%s14393_s5 + $0x2e0] sm:$0xff]  ;;  %v580_v63 = vld [vmem:[%s14393_s5 + $0x2e8] sm:$0xff] }
  0x1c   :  { %946 = vmatpush1.bf16.msra.mxu0 %v10413_v58  ;;  %989 = vmatpush1.bf16.msra.mxu1 %v10415_v59  ;;  %v10556_v3 = vcombine.high %v575_v56, %v579_v57  ;;  %v583_v9 = vld [vmem:[%s14393_s5 + $0x300] sm:$0xff]  ;;  %v584_v15 = vld [vmem:[%s14393_s5 + $0x308] sm:$0xff]  ;;  %v10578_v23 = vcombine.low %v575_v56, %v579_v57 }
  0x1d   :  { %947 = vmatprep.subr.bf16.mxu0 %v10422_v61  ;;  %990 = vmatprep.subr.bf16.mxu1 %v10424_v62  ;;  %v587_v14 = vld [vmem:[%s14393_s5 + $0x320] sm:$0xff]  ;;  %v592_v46 = vld [vmem:[%s14393_s5 + $0x348] sm:$0xff] }
  0x1e   :  { %8644 = vmatmul.mubr.msk.bf16.gmra.mrb[12].mxu0 %vm138_vm0, %v9836_v60  ;;  %8652 = vmatmul.mubr.msk.bf16.gmra.mrb[12].mxu1 %vm138_vm0, %v9836_v60  ;;  %v576_v60 = vld [vmem:[%s14393_s5 + $0x2c8] sm:$0xff]  ;;  %14737 = vst [vmem:[#allocation4_spill] sm:$0xff] %v10556_v3  ;;  %14739 = vst [vmem:[#allocation6_spill] sm:$0xff] %v10578_v23  ;;  %v10587_v30 = vcombine.high %v583_v9, %v587_v14  ;;  %v591_v40 = vld [vmem:[%s14393_s5 + $0x340] sm:$0xff]  ;;  %v10605_v56 = vcombine.low %v583_v9, %v587_v14 }
  0x1f   :  { %235 = vmatprep.mubr.bf16.mxu0 %v14403_v1  ;;  %348 = vmatprep.mubr.bf16.mxu1 %v14403_v1  ;;  %v10558_v8 = vcombine.high %v576_v60, %v580_v63  ;;  %v10580_v26 = vcombine.low %v576_v60, %v580_v63  ;;  %v595_v43 = vld [vmem:[%s14393_s5 + $0x360] sm:$0xff]  ;;  %v600_v14 = vld [vmem:[%s14393_s5 + $0x388] sm:$0xff] }
  0x20   :  { %948 = vmatpush1.bf16.msra.mxu0 %v10440_v4  ;;  %991 = vmatpush1.bf16.msra.mxu1 %v10442_v5  ;;  %14741 = vst [vmem:[#allocation8_spill] sm:$0xff] %v10587_v30  ;;  %14743 = vst [vmem:[#allocation10_spill] sm:$0xff] %v10605_v56  ;;  %v10611_v60 = vcombine.high %v591_v40, %v595_v43  ;;  %v603_v9 = vld [vmem:[%s14393_s5 + $0x3a0] sm:$0xff] }
  0x21   :  { %949 = vmatprep.subr.bf16.mxu0 %v10446_v6  ;;  %992 = vmatprep.subr.bf16.mxu1 %v10448_v7  ;;  %14738 = vst [vmem:[#allocation5_spill] sm:$0xff] %v10558_v8  ;;  %14740 = vst [vmem:[#allocation7_spill] sm:$0xff] %v10580_v26 }
  0x22   :  { %14745 = vst [vmem:[#allocation12_spill] sm:$0xff] %v10611_v60 }
  0x24   :  { %950 = vmatpush1.bf16.msra.mxu0 %v10468_v16  ;;  %993 = vmatpush1.bf16.msra.mxu1 %v10470_v18 }
  0x25   :  { %951 = vmatprep.subr.bf16.mxu0 %v10477_v21  ;;  %994 = vmatprep.subr.bf16.mxu1 %v10479_v22 }
  0x26   :  { %8645 = vmatmul.mubr.msk.bf16.gmra.mrb[16].mxu0 %vm138_vm0, %v9837_v20  ;;  %8653 = vmatmul.mubr.msk.bf16.gmra.mrb[16].mxu1 %vm138_vm0, %v9837_v20  ;;  %v588_v20 = vld [vmem:[%s14393_s5 + $0x328] sm:$0xff] }
  0x27   :  { %245 = vmatprep.mubr.bf16.mxu0 %v14403_v1  ;;  %358 = vmatprep.mubr.bf16.mxu1 %v14403_v1  ;;  %v10589_v39 = vcombine.high %v584_v15, %v588_v20  ;;  %v10607_v57 = vcombine.low %v584_v15, %v588_v20  ;;  %v604_v15 = vld [vmem:[%s14393_s5 + $0x3a8] sm:$0xff]  ;;  %v14747_v20 = vmov 0  }
  0x28   :  { %952 = vmatpush1.bf16.msra.mxu0 %v10495_v31  ;;  %995 = vmatpush1.bf16.msra.mxu1 %v10497_v32 }
  0x29   :  { %953 = vmatprep.subr.bf16.mxu0 %v10501_v37  ;;  %996 = vmatprep.subr.bf16.mxu1 %v10503_v38  ;;  %14742 = vst [vmem:[#allocation9_spill] sm:$0xff] %v10589_v39  ;;  %14744 = vst [vmem:[#allocation11_spill] sm:$0xff] %v10607_v57 }
  0x2c   :  { %954 = vmatpush1.bf16.msra.mxu0 %v10523_v47  ;;  %997 = vmatpush1.bf16.msra.mxu1 %v10525_v48 }
  0x2d   :  { %955 = vmatprep.subr.bf16.mxu0 %v10532_v54  ;;  %998 = vmatprep.subr.bf16.mxu1 %v10534_v55 }
  0x2e   :  { %8646 = vmatmul.mubr.msk.bf16.gmra.mrb[20].mxu0 %vm138_vm0, %v9838_v49  ;;  %8654 = vmatmul.mubr.msk.bf16.gmra.mrb[20].mxu1 %vm138_vm0, %v9838_v49  ;;  %v596_v49 = vld [vmem:[%s14393_s5 + $0x368] sm:$0xff] }
  0x2f   :  { %255 = vmatprep.mubr.bf16.mxu0 %v14403_v1  ;;  %368 = vmatprep.mubr.bf16.mxu1 %v14403_v1  ;;  %v10613_v63 = vcombine.high %v592_v46, %v596_v49  ;;  %v599_v1 = vld [vmem:[%s14393_s5 + $0x380] sm:$0xff] }
  0x30   :  { %956 = vmatpush1.bf16.msra.mxu0 %v10550_v0  ;;  %999 = vmatpush1.bf16.msra.mxu1 %v10552_v2 }
  0x31   :  { %957 = vmatprep.subr.bf16.mxu0 %v10556_v3  ;;  %1000 = vmatprep.subr.bf16.mxu1 %v10558_v8  ;;  %14746 = vst [vmem:[#allocation13_spill] sm:$0xff] %v10613_v63 }
  0x34   :  { %958 = vmatpush1.bf16.msra.mxu0 %v10578_v23  ;;  %1001 = vmatpush1.bf16.msra.mxu1 %v10580_v26  ;;  %v8658_v26 = vld [vmem:[%s14394_s1 + $0x18] sm:$0xff]  ;;  %v10670_v23 = vcombine.low %v600_v14, %v604_v15 }
  0x35   :  { %959 = vmatprep.subr.bf16.mxu0 %v10587_v30  ;;  %1002 = vmatprep.subr.bf16.mxu1 %v10589_v39  ;;  %v10635_v39 = vcombine.low %v592_v46, %v596_v49  ;;  %v8657_v30 = vld [vmem:[%s14394_s1 + $0x10] sm:$0xff]  ;;  %v607_v46 = vld [vmem:[%s14393_s5 + $0x3c0] sm:$0xff] }
  0x36   :  { %8647 = vmatmul.mubr.msk.bf16.gmra.mrb[24].mxu0 %vm138_vm0, %v9839_v29  ;;  %8655 = vmatmul.mubr.msk.bf16.gmra.mrb[24].mxu1 %vm138_vm0, %v9839_v29  ;;  %v10633_v29 = vcombine.low %v591_v40, %v595_v43  ;;  %v10648_v40 = vcombine.high %v599_v1, %v603_v9  ;;  %v10650_v43 = vcombine.high %v600_v14, %v604_v15  ;;  %v611_v49 = vld [vmem:[%s14393_s5 + $0x3e0] sm:$0xff] }
  0x37   :  { %265 = vmatprep.mubr.bf16.mxu0 %v14747_v20  ;;  %378 = vmatprep.mubr.bf16.mxu1 %v14747_v20  ;;  %v9840_v20 = vld [vmem:[%s14392_s0 + $0x38] sm:$0xff]   ;;  %v10674_v8 = vcombine.high %v607_v46, %v611_v49 }
  0x38   :  { %960 = vmatpush1.bf16.msra.mxu0 %v10605_v56  ;;  %1003 = vmatpush1.bf16.msra.mxu1 %v10607_v57  ;;  %v10664_v57 = vpack.c.bf16 %v8658_v26, %v8657_v30  ;;  %v10668_v56 = vcombine.low %v599_v1, %v603_v9  ;;  %v10684_v1 = vcombine.low %v607_v46, %v611_v49  ;;  %v475_v30 = vld [vmem:[%s14394_s1] sm:$0xff]  ;;  %v476_v9 = vld [vmem:[%s14394_s1 + $0x8] sm:$0xff] }
  0x39   :  { %961 = vmatprep.subr.bf16.mxu0 %v10611_v60  ;;  %1004 = vmatprep.subr.bf16.mxu1 %v10613_v63  ;;  %v608_v63 = vld [vmem:[%s14393_s5 + $0x3c8] sm:$0xff]  ;;  %v485_v14 = vpack.c.bf16 %v476_v9, %v475_v30 }
  0x3a   :  { %v612_v60 = vld [vmem:[%s14393_s5 + $0x3e8] sm:$0xff] }
  0x3b   :  { %v10676_v3 = vcombine.high %v608_v63, %v612_v60  ;;  %v10686_v26 = vcombine.low %v608_v63, %v612_v60 }
  0x3c   :  { %962 = vmatpush1.bf16.msra.mxu0 %v10633_v29  ;;  %1005 = vmatpush1.bf16.msra.mxu1 %v10635_v39 }
  0x3d   :  { %963 = vmatprep.subr.bf16.mxu0 %v10648_v40  ;;  %1006 = vmatprep.subr.bf16.mxu1 %v10650_v43 }
  0x3e   :  { %8648 = vmatmul.mubr.msk.bf16.gmra.mrb[28].mxu0 %vm138_vm0, %v9840_v20  ;;  %8656 = vmatmul.mubr.msk.bf16.gmra.mrb[28].mxu1 %vm138_vm0, %v9840_v20 }
  0x3f   :  { %967 = vmatprep.mubr.bf16.mxu0 %v10664_v57  ;;  %1010 = vmatprep.mubr.bf16.mxu1 %v10664_v57 }
  0x40   :  { %964 = vmatpush1.bf16.msra.mxu0 %v10668_v56  ;;  %1007 = vmatpush1.bf16.msra.mxu1 %v10670_v23 }
  0x41   :  { %965 = vmatprep.subr.bf16.mxu0 %v10674_v8  ;;  %1008 = vmatprep.subr.bf16.mxu1 %v10676_v3 }
  0x44   :  { %966 = vmatpush1.bf16.msra.mxu0 %v10684_v1  ;;  %1009 = vmatpush1.bf16.msra.mxu1 %v10686_v26 }
  0x45   :  { %1394 = vmatprep.subr.bf16.mxu0 %v10261_v11  ;;  %1437 = vmatprep.subr.bf16.mxu1 %v10265_v13  ;;  %v14749_v11 = vld [vmem:[#allocation5_spill] sm:$0xff]  ;;  %v14751_v13 = vld [vmem:[#allocation7_spill] sm:$0xff] }
  0x47   :  { %968 = vmatmul.mubr.bf16.vlgmr.msra.gmra.mrb[0].mxu0 %v485_v14  ;;  %1011 = vmatmul.mubr.bf16.vlgmr.msra.gmra.mrb[0].mxu1 %v485_v14 }
  0x48   :  { %1395 = vmatpush1.bf16.msra.mxu0 %v10259_v10  ;;  %1438 = vmatpush1.bf16.msra.mxu1 %v10263_v12  ;;  %v14748_v10 = vld [vmem:[#allocation4_spill] sm:$0xff]  ;;  %v14750_v12 = vld [vmem:[#allocation6_spill] sm:$0xff] }
  0x49   :  { %1396 = vmatprep.subr.bf16.mxu0 %v10276_v17  ;;  %1439 = vmatprep.subr.bf16.mxu1 %v10283_v19  ;;  %v14752_v17 = vld [vmem:[#allocation8_spill] sm:$0xff]  ;;  %v14753_v19 = vld [vmem:[#allocation9_spill] sm:$0xff] }
  0x4a   :  { %1426 = vmatprep.mubr.bf16.mxu0 %v10664_v57  ;;  %1469 = vmatprep.mubr.bf16.mxu1 %v10664_v57 }
  0x4c   :  { %1397 = vmatpush1.bf16.msra.mxu0 %v10301_v24  ;;  %1440 = vmatpush1.bf16.msra.mxu1 %v10303_v25  ;;  %v14754_v24 = vld [vmem:[#allocation10_spill] sm:$0xff]  ;;  %v14755_v25 = vld [vmem:[#allocation11_spill] sm:$0xff] }
  0x4d   :  { %1398 = vmatprep.subr.bf16.mxu0 %v10310_v27  ;;  %1441 = vmatprep.subr.bf16.mxu1 %v10312_v28  ;;  %v14756_v27 = vld [vmem:[#allocation12_spill] sm:$0xff]  ;;  %v14757_v28 = vld [vmem:[#allocation13_spill] sm:$0xff] }
  0x50   :  { %1399 = vmatpush1.bf16.msra.mxu0 %v10330_v33  ;;  %1442 = vmatpush1.bf16.msra.mxu1 %v10332_v34  ;;  %v489_v33 = vld [vmem:[%s14393_s5 + $0x10] sm:$0xff] }
  0x51   :  { %1400 = vmatprep.subr.bf16.mxu0 %v10336_v35  ;;  %1443 = vmatprep.subr.bf16.mxu1 %v10338_v36  ;;  %v493_v34 = vld [vmem:[%s14393_s5 + $0x30] sm:$0xff]  ;;  %v490_v35 = vld [vmem:[%s14393_s5 + $0x18] sm:$0xff] }
  0x52   :  { %v10773_v36 = vcombine.low %v489_v33, %v493_v34 }
  0x54   :  { %1401 = vmatpush1.bf16.msra.mxu0 %v10358_v41  ;;  %1444 = vmatpush1.bf16.msra.mxu1 %v10360_v42  ;;  %v10775_v41 = vcombine.high %v489_v33, %v493_v34  ;;  %v494_v42 = vld [vmem:[%s14393_s5 + $0x38] sm:$0xff] }
  0x55   :  { %1402 = vmatprep.subr.bf16.mxu0 %v10367_v44  ;;  %1445 = vmatprep.subr.bf16.mxu1 %v10369_v45  ;;  %v10780_v44 = vcombine.low %v490_v35, %v494_v42  ;;  %v10782_v45 = vcombine.high %v490_v35, %v494_v42 }
  0x58   :  { %1403 = vmatpush1.bf16.msra.mxu0 %v10385_v50  ;;  %1446 = vmatpush1.bf16.msra.mxu1 %v10387_v51  ;;  %v58_v50 = vlaneseq }
  0x59   :  { %1404 = vmatprep.subr.bf16.mxu0 %v10391_v52  ;;  %1447 = vmatprep.subr.bf16.mxu1 %v10393_v53  ;;  %v56_v53 = vld [vmem:[%s14395_s4] sm:$0xf] }
  0x5a   :  { %v10786_v51 = vshrl.u32 %v58_v50, 7 }
  0x5c   :  { %1405 = vmatpush1.bf16.msra.mxu0 %v10413_v58  ;;  %1448 = vmatpush1.bf16.msra.mxu1 %v10415_v59  ;;  %v14418_v52 = vsub.s32 0, %v10786_v51  ;;  %v14417_v58 = vsub.s32 1, %v10786_v51 }
  0x5d   :  { %1406 = vmatprep.subr.bf16.mxu0 %v10422_v61  ;;  %1449 = vmatprep.subr.bf16.mxu1 %v10424_v62  ;;  %v14416_v61 = vsub.s32 3, %v10786_v51 }
  0x5e   :  { %v10795_v59 = vrot.slane %v56_v53, %v14418_v52  ;;  %v10800_v62 = vrot.slane %v56_v53, %v14417_v58  ;;  %v585_v58 = vld [vmem:[%s14393_s5 + $0x310] sm:$0xff] }
  0x5f   :  { %v589_v52 = vld [vmem:[%s14393_s5 + $0x330] sm:$0xff] }
  0x60   :  { %1407 = vmatpush1.bf16.msra.mxu0 %v10440_v4  ;;  %1450 = vmatpush1.bf16.msra.mxu1 %v10442_v5  ;;  %14758 = vst [vmem:[#allocation4_spill] sm:$0xff] %v10795_v59  ;;  %14759 = vst [vmem:[#allocation5_spill] sm:$0xff] %v10800_v62 }
  0x61   :  { %1408 = vmatprep.subr.bf16.mxu0 %v10446_v6  ;;  %1451 = vmatprep.subr.bf16.mxu1 %v10448_v7 }
  0x64   :  { %1409 = vmatpush1.bf16.msra.mxu0 %v10468_v16  ;;  %1452 = vmatpush1.bf16.msra.mxu1 %v10470_v18  ;;  %v10805_v16 = vrot.slane %v56_v53, %v14416_v61 }
  0x65   :  { %1410 = vmatprep.subr.bf16.mxu0 %v10477_v21  ;;  %1453 = vmatprep.subr.bf16.mxu1 %v10479_v22 }
  0x66   :  { %14760 = vst [vmem:[#allocation6_spill] sm:$0xff] %v10805_v16 }
  0x68   :  { %1411 = vmatpush1.bf16.msra.mxu0 %v10495_v31  ;;  %1454 = vmatpush1.bf16.msra.mxu1 %v10497_v32 }
  0x69   :  { %1412 = vmatprep.subr.bf16.mxu0 %v10501_v37  ;;  %1455 = vmatprep.subr.bf16.mxu1 %v10503_v38 }
  0x6c   :  { %1413 = vmatpush1.bf16.msra.mxu0 %v10523_v47  ;;  %1456 = vmatpush1.bf16.msra.mxu1 %v10525_v48  ;;  %v14415_v48 = vsub.s32 2, %v10786_v51 }
  0x6d   :  { %1414 = vmatprep.subr.bf16.mxu0 %v10532_v54  ;;  %1457 = vmatprep.subr.bf16.mxu1 %v10534_v55 }
  0x70   :  { %1415 = vmatpush1.bf16.msra.mxu0 %v10550_v0  ;;  %1458 = vmatpush1.bf16.msra.mxu1 %v10552_v2 }
  0x71   :  { %1416 = vmatprep.subr.bf16.mxu0 %v14748_v10  ;;  %1459 = vmatprep.subr.bf16.mxu1 %v14749_v11 }
  0x74   :  { %1417 = vmatpush1.bf16.msra.mxu0 %v14750_v12  ;;  %1460 = vmatpush1.bf16.msra.mxu1 %v14751_v13 }
  0x75   :  { %1418 = vmatprep.subr.bf16.mxu0 %v14752_v17  ;;  %1461 = vmatprep.subr.bf16.mxu1 %v14753_v19  ;;  %v478_v17 = vld [vmem:[%s14396_s2 + $0x8] sm:$0xff] }
  0x78   :  { %1419 = vmatpush1.bf16.msra.mxu0 %v14754_v24  ;;  %1462 = vmatpush1.bf16.msra.mxu1 %v14755_v25 }
  0x79   :  { %1420 = vmatprep.subr.bf16.mxu0 %v14756_v27  ;;  %1463 = vmatprep.subr.bf16.mxu1 %v14757_v28 }
  0x7c   :  { %1421 = vmatpush1.bf16.msra.mxu0 %v10633_v29  ;;  %1464 = vmatpush1.bf16.msra.mxu1 %v10635_v39 }
  0x7d   :  { %1422 = vmatprep.subr.bf16.mxu0 %v10648_v40  ;;  %1465 = vmatprep.subr.bf16.mxu1 %v10650_v43 }
  0x80   :  { %1423 = vmatpush1.bf16.msra.mxu0 %v10668_v56  ;;  %1466 = vmatpush1.bf16.msra.mxu1 %v10670_v23 }
  0x81   :  { %1424 = vmatprep.subr.bf16.mxu0 %v10674_v8  ;;  %1467 = vmatprep.subr.bf16.mxu1 %v10676_v3  ;;  %v10814_v8 = vrot.slane %v56_v53, %v14415_v48 }
  0x83   :  { %14761 = vst [vmem:[#allocation7_spill] sm:$0xff] %v10814_v8 }
  0x84   :  { %1425 = vmatpush1.bf16.msra.mxu0 %v10684_v1  ;;  %1468 = vmatpush1.bf16.msra.mxu1 %v10686_v26  ;;  %v477_v1 = vld [vmem:[%s14396_s2] sm:$0xff] }
  0x85   :  { %1480 = vmatprep.subr.bf16.mxu0 %v10775_v41  ;;  %1523 = vmatprep.subr.bf16.mxu1 %v10782_v45 }
 0x11a   :  { %v969_v4 = vpop.f32.mrb[0].mxu0  ;;  %v1012_v5 = vpop.f32.mrb[0].mxu1 }
 0x11b   :  { %v9698_v6 = vadd.f32 %v969_v4, %v10795_v59  ;;  %v971_v7 = vpop.f32.mrb[1].mxu0  ;;  %v1014_v18 = vpop.f32.mrb[1].mxu1  ;;  %v9730_v39 = vadd.f32 %v1012_v5, %v10814_v8  ;;  %v497_v5 = vld [vmem:[%s14393_s5 + $0x50] sm:$0xff] }
 0x11c   :  { %v9699_v21 = vadd.f32 %v971_v7, %v10800_v62  ;;  %v973_v22 = vpop.f32.mrb[2].mxu0  ;;  %v1016_v31 = vpop.f32.mrb[2].mxu1  ;;  %v9731_v0 = vadd.f32 %v1014_v18, %v10805_v16  ;;  %v501_v7 = vld [vmem:[%s14393_s5 + $0x70] sm:$0xff]  ;;  %v498_v18 = vld [vmem:[%s14393_s5 + $0x58] sm:$0xff] }
 0x11d   :  { %v1037_v32 = vmul.f32 0.5, %v9698_v6  ;;  %v9700_v37 = vadd.f32 %v973_v22, %v10795_v59  ;;  %v975_v38 = vpop.f32.mrb[3].mxu0  ;;  %v1018_v47 = vpop.f32.mrb[3].mxu1  ;;  %v9732_v56 = vadd.f32 %v1016_v31, %v10814_v8  ;;  %v1039_v15 = vmul.f32 0.5, %v9730_v39 }
 0x11e   :  { %v1038_v54 = vmul.f32 0.5, %v9699_v21  ;;  %v9701_v55 = vadd.f32 %v975_v38, %v10800_v62  ;;  %v9733_v23 = vadd.f32 %v1018_v47, %v10805_v16  ;;  %v502_v21 = vld [vmem:[%s14393_s5 + $0x78] sm:$0xff]  ;;  %v505_v47 = vld [vmem:[%s14393_s5 + $0x90] sm:$0xff] }
 0x11f   :  { %9849 = vtanh.f32 %v1037_v32  ;;  %v1040_v2 = vmul.f32 0.5, %v9700_v37  ;;  %v1042_v20 = vmul.f32 0.5, %v9732_v56  ;;  %v10845_v37 = vcombine.high %v497_v5, %v501_v7  ;;  %v513_v56 = vld [vmem:[%s14393_s5 + $0xd0] sm:$0xff] }
 0x120   :  { %v1041_v3 = vmul.f32 0.5, %v9701_v55  ;;  %9851 = vtanh.f32 %v1038_v54  ;;  %v10847_v38 = vcombine.high %v498_v18, %v502_v21  ;;  %v509_v54 = vld [vmem:[%s14393_s5 + $0xb0] sm:$0xff]  ;;  %v506_v55 = vld [vmem:[%s14393_s5 + $0x98] sm:$0xff] }
 0x121   :  { %9853 = vtanh.f32 %v1040_v2  ;;  %v10865_v2 = vcombine.low %v497_v5, %v501_v7  ;;  %v549_v7 = vld [vmem:[%s14393_s5 + $0x1f0] sm:$0xff] }
 0x122   :  { %9855 = vtanh.f32 %v9731_v0  ;;  %v510_v0 = vld [vmem:[%s14393_s5 + $0xb8] sm:$0xff] }
 0x123   :  { %9857 = vtanh.f32 %v1041_v3  ;;  %v10867_v3 = vcombine.low %v498_v18, %v502_v21  ;;  %v10873_v39 = vcombine.high %v506_v55, %v510_v0  ;;  %v546_v18 = vld [vmem:[%s14393_s5 + $0x1d8] sm:$0xff] }
 0x124   :  { %9859 = vtanh.f32 %v9733_v23  ;;  %v10871_v23 = vcombine.high %v505_v47, %v509_v54  ;;  %v550_v21 = vld [vmem:[%s14393_s5 + $0x1f8] sm:$0xff] }
 0x125   :  { %9861 = vtanh.f32 %v1039_v15  ;;  %v518_v15 = vld [vmem:[%s14393_s5 + $0xf8] sm:$0xff] }
 0x126   :  { %9863 = vtanh.f32 %v1042_v20  ;;  %v10893_v20 = vcombine.low %v506_v55, %v510_v0  ;;  %v553_v55 = vld [vmem:[%s14393_s5 + $0x210] sm:$0xff] }
 0x127   :  { %v557_v0 = vld [vmem:[%s14393_s5 + $0x230] sm:$0xff] }
 0x129   :  { %v9850_v60 = vpop.eup %9849 }
 0x12a   :  { %v1049_v63 = vmul.f32 0.5, %v9850_v60  ;;  %v9852_v29 = vpop.eup %9851  ;;  %v517_v60 = vld [vmem:[%s14393_s5 + $0xf0] sm:$0xff] }
 0x12b   :  { %v9854_v40 = vpop.eup %9853  ;;  %v1050_v46 = vmul.f32 0.5, %v9852_v29  ;;  %v10891_v29 = vcombine.low %v505_v47, %v509_v54  ;;  %v10995_v54 = vcombine.high %v546_v18, %v550_v21 }
 0x12c   :  { %v1055_v43 = vadd.f32 0.5, %v1049_v63  ;;  %v9856_v49 = vpop.eup %9855  ;;  %v1052_v26 = vmul.f32 0.5, %v9854_v40  ;;  %v514_v63 = vld [vmem:[%s14393_s5 + $0xd8] sm:$0xff]  ;;  %v10897_v40 = vcombine.high %v513_v56, %v517_v60 }
 0x12d   :  { %v9858_v30 = vpop.eup %9857  ;;  %v1056_v9 = vadd.f32 0.5, %v1050_v46  ;;  %v525_v46 = vld [vmem:[%s14393_s5 + $0x130] sm:$0xff] }
 0x12e   :  { %v1065_v14 = vmul.f32 %v9856_v49, %v1055_v43  ;;  %v1058_v10 = vadd.f32 0.5, %v1052_v26  ;;  %v1053_v11 = vmul.f32 0.5, %v9858_v30  ;;  %v9860_v12 = vpop.eup %9859  ;;  %v10899_v43 = vcombine.high %v514_v63, %v518_v15  ;;  %v522_v49 = vld [vmem:[%s14393_s5 + $0x118] sm:$0xff] }
 0x12f   :  { %v1063_v13 = vmul.f32 %v1056_v9, %v477_v1  ;;  %v9862_v33 = vpop.eup %9861  ;;  %v526_v1 = vld [vmem:[%s14393_s5 + $0x138] sm:$0xff]  ;;  %v10915_v26 = vcombine.low %v513_v56, %v517_v60  ;;  %v10917_v30 = vcombine.low %v514_v63, %v518_v15  ;;  %v11013_v15 = vcombine.low %v546_v18, %v550_v21 }
 0x130   :  { %v1059_v19 = vadd.f32 0.5, %v1053_v11  ;;  %v1066_v24 = vmul.f32 %v9860_v12, %v1058_v10  ;;  %v9864_v34 = vpop.eup %9863  ;;  %v1051_v35 = vmul.f32 0.5, %v9862_v33  ;;  %v529_v10 = vld [vmem:[%s14393_s5 + $0x150] sm:$0xff]  ;;  %v530_v12 = vld [vmem:[%s14393_s5 + $0x158] sm:$0xff] }
 0x131   :  { %v10825_v25 = vadd.f32 %v1065_v14, %v1063_v13  ;;  %v1054_v42 = vmul.f32 0.5, %v9864_v34  ;;  %v10923_v14 = vcombine.high %v522_v49, %v526_v1  ;;  %v533_v11 = vld [vmem:[%s14393_s5 + $0x170] sm:$0xff]  ;;  %v534_v13 = vld [vmem:[%s14393_s5 + $0x178] sm:$0xff] }
 0x132   :  { %v1064_v27 = vmul.f32 %v1059_v19, %v478_v17  ;;  %v1057_v53 = vadd.f32 0.5, %v1051_v35  ;;  %v10941_v19 = vcombine.low %v522_v49, %v526_v1  ;;  %v537_v33 = vld [vmem:[%s14393_s5 + $0x190] sm:$0xff]  ;;  %v538_v35 = vld [vmem:[%s14393_s5 + $0x198] sm:$0xff] }
 0x133   :  { %9865 = vtanh.f32 %v10825_v25  ;;  %v1060_v4 = vadd.f32 0.5, %v1054_v42  ;;  %v541_v34 = vld [vmem:[%s14393_s5 + $0x1b0] sm:$0xff]  ;;  %v542_v42 = vld [vmem:[%s14393_s5 + $0x1b8] sm:$0xff] }
 0x134   :  { %v10828_v28 = vadd.f32 %v1066_v24, %v1064_v27  ;;  %v10945_v24 = vcombine.high %v529_v10, %v533_v11  ;;  %v10947_v27 = vcombine.high %v530_v12, %v534_v13  ;;  %v10971_v5 = vcombine.high %v538_v35, %v542_v42  ;;  %v554_v56 = vld [vmem:[%s14393_s5 + $0x218] sm:$0xff]  ;;  %v561_v49 = vld [vmem:[%s14393_s5 + $0x250] sm:$0xff] }
 0x135   :  { %v558_v60 = vld [vmem:[%s14393_s5 + $0x238] sm:$0xff]  ;;  %v565_v1 = vld [vmem:[%s14393_s5 + $0x270] sm:$0xff] }
 0x136   :  { %9867 = vtanh.f32 %v10828_v28  ;;  %v11059_v18 = vcombine.low %v561_v49, %v565_v1 }
 0x13d   :  { %v9866_v50 = vpop.eup %9865 }
 0x13e   :  { %v1071_v22 = vmul.f32 %v9866_v50, %v1057_v53  ;;  %v10963_v50 = vcombine.low %v529_v10, %v533_v11  ;;  %v10965_v53 = vcombine.low %v530_v12, %v534_v13  ;;  %v562_v10 = vld [vmem:[%s14393_s5 + $0x258] sm:$0xff]  ;;  %v11035_v12 = vcombine.low %v553_v55, %v557_v0 }
 0x13f   :  { %v566_v11 = vld [vmem:[%s14393_s5 + $0x278] sm:$0xff]  ;;  %v11037_v13 = vcombine.low %v554_v56, %v558_v60 }
 0x140   :  { %v9868_v6 = vpop.eup %9867  ;;  %v11061_v21 = vcombine.low %v562_v10, %v566_v11 }
 0x141   :  { %v1072_v31 = vmul.f32 %v9868_v6, %v1060_v4  ;;  %v10969_v4 = vcombine.high %v537_v33, %v541_v34  ;;  %v545_v6 = vld [vmem:[%s14393_s5 + $0x1d0] sm:$0xff] }
 0x142   :  { %v10993_v47 = vcombine.high %v545_v6, %v549_v7  ;;  %v11011_v63 = vcombine.low %v545_v6, %v549_v7  ;;  %v570_v6 = vld [vmem:[%s14393_s5 + $0x298] sm:$0xff]  ;;  %14762 = vst [vmem:[#allocation8_spill] sm:$0xff] %v11061_v21 }
 0x143   :  { %v10843_v32 = vpack.c.bf16 %v1072_v31, %v1071_v22  ;;  %v10987_v22 = vcombine.low %v537_v33, %v541_v34  ;;  %v10989_v31 = vcombine.low %v538_v35, %v542_v42  ;;  %v11041_v33 = vcombine.high %v561_v49, %v565_v1  ;;  %v569_v35 = vld [vmem:[%s14393_s5 + $0x290] sm:$0xff]  ;;  %v574_v7 = vld [vmem:[%s14393_s5 + $0x2b8] sm:$0xff] }
 0x144   :  { %v11043_v34 = vcombine.high %v562_v10, %v566_v11  ;;  %v573_v42 = vld [vmem:[%s14393_s5 + $0x2b0] sm:$0xff]  ;;  %v578_v49 = vld [vmem:[%s14393_s5 + $0x2d8] sm:$0xff]  ;;  %v11085_v11 = vcombine.low %v570_v6, %v574_v7 }
 0x145   :  { %1427 = vmatmul.mubr.bf16.vlgmr.msra.gmra.mrb[4].mxu0 %v10843_v32  ;;  %1470 = vmatmul.mubr.bf16.vlgmr.msra.gmra.mrb[4].mxu1 %v10843_v32  ;;  %v582_v1 = vld [vmem:[%s14393_s5 + $0x2f8] sm:$0xff]  ;;  %v11083_v10 = vcombine.low %v569_v35, %v573_v42 }
 0x146   :  { %1481 = vmatpush1.bf16.msra.mxu0 %v10773_v36  ;;  %1524 = vmatpush1.bf16.msra.mxu1 %v10780_v44  ;;  %14766 = vst [vmem:[#allocation12_spill] sm:$0xff] %v11085_v11  ;;  %v11091_v61 = vcombine.high %v578_v49, %v582_v1 }
 0x147   :  { %1482 = vmatprep.subr.bf16.mxu0 %v10845_v37  ;;  %1525 = vmatprep.subr.bf16.mxu1 %v10847_v38  ;;  %14765 = vst [vmem:[#allocation11_spill] sm:$0xff] %v11083_v10 }
 0x148   :  { %1512 = vmatprep.mubr.bf16.mxu0 %v10664_v57  ;;  %1555 = vmatprep.mubr.bf16.mxu1 %v10664_v57  ;;  %v521_v57 = vld [vmem:[%s14393_s5 + $0x110] sm:$0xff]  ;;  %14768 = vst [vmem:[#allocation14_spill] sm:$0xff] %v11091_v61 }
 0x149   :  { %v10921_v9 = vcombine.high %v521_v57, %v525_v46  ;;  %v10939_v17 = vcombine.low %v521_v57, %v525_v46  ;;  %v11017_v57 = vcombine.high %v553_v55, %v557_v0  ;;  %v11019_v46 = vcombine.high %v554_v56, %v558_v60  ;;  %v577_v56 = vld [vmem:[%s14393_s5 + $0x2d0] sm:$0xff] }
 0x14a   :  { %1483 = vmatpush1.bf16.msra.mxu0 %v10865_v2  ;;  %1526 = vmatpush1.bf16.msra.mxu1 %v10867_v3  ;;  %v11065_v55 = vcombine.high %v569_v35, %v573_v42  ;;  %v11067_v0 = vcombine.high %v570_v6, %v574_v7  ;;  %v581_v60 = vld [vmem:[%s14393_s5 + $0x2f0] sm:$0xff]  ;;  %v586_v35 = vld [vmem:[%s14393_s5 + $0x318] sm:$0xff]  ;;  %v11109_v7 = vcombine.low %v578_v49, %v582_v1 }
 0x14b   :  { %1484 = vmatprep.subr.bf16.mxu0 %v10871_v23  ;;  %1527 = vmatprep.subr.bf16.mxu1 %v10873_v39  ;;  %v11089_v48 = vcombine.high %v577_v56, %v581_v60  ;;  %v590_v42 = vld [vmem:[%s14393_s5 + $0x338] sm:$0xff]  ;;  %v11107_v6 = vcombine.low %v577_v56, %v581_v60  ;;  %v11131_v49 = vcombine.low %v585_v58, %v589_v52 }
 0x14c   :  { %14763 = vst [vmem:[#allocation9_spill] sm:$0xff] %v11065_v55  ;;  %14764 = vst [vmem:[#allocation10_spill] sm:$0xff] %v11067_v0  ;;  %v594_v56 = vld [vmem:[%s14393_s5 + $0x358] sm:$0xff]  ;;  %v11133_v1 = vcombine.low %v586_v35, %v590_v42 }
 0x14d   :  { %14767 = vst [vmem:[#allocation13_spill] sm:$0xff] %v11089_v48  ;;  %14769 = vst [vmem:[#allocation15_spill] sm:$0xff] %v11107_v6  ;;  %v598_v60 = vld [vmem:[%s14393_s5 + $0x378] sm:$0xff] }
 0x14e   :  { %1485 = vmatpush1.bf16.msra.mxu0 %v10891_v29  ;;  %1528 = vmatpush1.bf16.msra.mxu1 %v10893_v20  ;;  %14770 = vst [vmem:[#allocation16_spill] sm:$0xff] %v11109_v7  ;;  %14773 = vst [vmem:[#allocation19_spill] sm:$0xff] %v11131_v49 }
 0x14f   :  { %1486 = vmatprep.subr.bf16.mxu0 %v10897_v40  ;;  %1529 = vmatprep.subr.bf16.mxu1 %v10899_v43  ;;  %14774 = vst [vmem:[#allocation20_spill] sm:$0xff] %v11133_v1 }
 0x152   :  { %1487 = vmatpush1.bf16.msra.mxu0 %v10915_v26  ;;  %1530 = vmatpush1.bf16.msra.mxu1 %v10917_v30 }
 0x153   :  { %1488 = vmatprep.subr.bf16.mxu0 %v10921_v9  ;;  %1531 = vmatprep.subr.bf16.mxu1 %v10923_v14 }
 0x156   :  { %1489 = vmatpush1.bf16.msra.mxu0 %v10939_v17  ;;  %1532 = vmatpush1.bf16.msra.mxu1 %v10941_v19 }
 0x157   :  { %1490 = vmatprep.subr.bf16.mxu0 %v10945_v24  ;;  %1533 = vmatprep.subr.bf16.mxu1 %v10947_v27 }
 0x15a   :  { %1491 = vmatpush1.bf16.msra.mxu0 %v10963_v50  ;;  %1534 = vmatpush1.bf16.msra.mxu1 %v10965_v53 }
 0x15b   :  { %1492 = vmatprep.subr.bf16.mxu0 %v10969_v4  ;;  %1535 = vmatprep.subr.bf16.mxu1 %v10971_v5 }
 0x15e   :  { %1493 = vmatpush1.bf16.msra.mxu0 %v10987_v22  ;;  %1536 = vmatpush1.bf16.msra.mxu1 %v10989_v31 }
 0x15f   :  { %1494 = vmatprep.subr.bf16.mxu0 %v10993_v47  ;;  %1537 = vmatprep.subr.bf16.mxu1 %v10995_v54 }
 0x162   :  { %1495 = vmatpush1.bf16.msra.mxu0 %v11011_v63  ;;  %1538 = vmatpush1.bf16.msra.mxu1 %v11013_v15 }
 0x163   :  { %1496 = vmatprep.subr.bf16.mxu0 %v11017_v57  ;;  %1539 = vmatprep.subr.bf16.mxu1 %v11019_v46 }
 0x166   :  { %1497 = vmatpush1.bf16.msra.mxu0 %v11035_v12  ;;  %1540 = vmatpush1.bf16.msra.mxu1 %v11037_v13 }
 0x167   :  { %1498 = vmatprep.subr.bf16.mxu0 %v11041_v33  ;;  %1541 = vmatprep.subr.bf16.mxu1 %v11043_v34 }
 0x16a   :  { %1499 = vmatpush1.bf16.msra.mxu0 %v11059_v18  ;;  %1542 = vmatpush1.bf16.msra.mxu1 %v11061_v21  ;;  %v593_v21 = vld [vmem:[%s14393_s5 + $0x350] sm:$0xff] }
 0x16b   :  { %1500 = vmatprep.subr.bf16.mxu0 %v11065_v55  ;;  %1543 = vmatprep.subr.bf16.mxu1 %v11067_v0  ;;  %v11113_v0 = vcombine.high %v585_v58, %v589_v52  ;;  %v11115_v55 = vcombine.high %v586_v35, %v590_v42  ;;  %v602_v52 = vld [vmem:[%s14393_s5 + $0x398] sm:$0xff]  ;;  %v11157_v42 = vcombine.low %v594_v56, %v598_v60 }
 0x16c   :  { %v606_v58 = vld [vmem:[%s14393_s5 + $0x3b8] sm:$0xff] }
 0x16d   :  { %14771 = vst [vmem:[#allocation17_spill] sm:$0xff] %v11113_v0  ;;  %14772 = vst [vmem:[#allocation18_spill] sm:$0xff] %v11115_v55 }
 0x16e   :  { %1501 = vmatpush1.bf16.msra.mxu0 %v11083_v10  ;;  %1544 = vmatpush1.bf16.msra.mxu1 %v11085_v11  ;;  %v597_v11 = vld [vmem:[%s14393_s5 + $0x370] sm:$0xff] }
 0x16f   :  { %1502 = vmatprep.subr.bf16.mxu0 %v11089_v48  ;;  %1545 = vmatprep.subr.bf16.mxu1 %v11091_v61  ;;  %v11137_v61 = vcombine.high %v593_v21, %v597_v11  ;;  %v11139_v48 = vcombine.high %v594_v56, %v598_v60  ;;  %v601_v10 = vld [vmem:[%s14393_s5 + $0x390] sm:$0xff]  ;;  %v11155_v35 = vcombine.low %v593_v21, %v597_v11  ;;  %v610_v21 = vld [vmem:[%s14393_s5 + $0x3d8] sm:$0xff] }
 0x170   :  { %v614_v11 = vld [vmem:[%s14393_s5 + $0x3f8] sm:$0xff]  ;;  %v11181_v60 = vcombine.low %v602_v52, %v606_v58 }
 0x171   :  { %14775 = vst [vmem:[#allocation21_spill] sm:$0xff] %v11137_v61  ;;  %14776 = vst [vmem:[#allocation22_spill] sm:$0xff] %v11139_v48 }
 0x172   :  { %1503 = vmatpush1.bf16.msra.mxu0 %v11107_v6  ;;  %1546 = vmatpush1.bf16.msra.mxu1 %v11109_v7  ;;  %v605_v7 = vld [vmem:[%s14393_s5 + $0x3b0] sm:$0xff]  ;;  %14777 = vst [vmem:[#allocation23_spill] sm:$0xff] %v11155_v35  ;;  %14781 = vst [vmem:[#allocation27_spill] sm:$0xff] %v11181_v60 }
 0x173   :  { %1504 = vmatprep.subr.bf16.mxu0 %v11113_v0  ;;  %1547 = vmatprep.subr.bf16.mxu1 %v11115_v55  ;;  %v11161_v55 = vcombine.high %v601_v10, %v605_v7  ;;  %v11163_v0 = vcombine.high %v602_v52, %v606_v58  ;;  %v609_v6 = vld [vmem:[%s14393_s5 + $0x3d0] sm:$0xff]  ;;  %v11179_v56 = vcombine.low %v601_v10, %v605_v7  ;;  %v1665_v10 = vld [vmem:[%s14393_s5] sm:$0xff]  ;;  %v1666_v7 = vld [vmem:[%s14393_s5 + $0x8] sm:$0xff] }
 0x174   :  { %v1673_v58 = vld [vmem:[%s14393_s5 + $0x40] sm:$0xff] }
 0x175   :  { %14778 = vst [vmem:[#allocation24_spill] sm:$0xff] %v11161_v55  ;;  %14779 = vst [vmem:[#allocation25_spill] sm:$0xff] %v11163_v0 }
 0x176   :  { %1505 = vmatpush1.bf16.msra.mxu0 %v11131_v49  ;;  %1548 = vmatpush1.bf16.msra.mxu1 %v11133_v1  ;;  %v613_v1 = vld [vmem:[%s14393_s5 + $0x3f0] sm:$0xff]  ;;  %14780 = vst [vmem:[#allocation26_spill] sm:$0xff] %v11179_v56 }
 0x177   :  { %1506 = vmatprep.subr.bf16.mxu0 %v11137_v61  ;;  %1549 = vmatprep.subr.bf16.mxu1 %v11139_v48  ;;  %v11185_v48 = vcombine.high %v609_v6, %v613_v1  ;;  %v11187_v61 = vcombine.high %v610_v21, %v614_v11  ;;  %v11191_v49 = vcombine.low %v609_v6, %v613_v1  ;;  %v1669_v6 = vld [vmem:[%s14393_s5 + $0x20] sm:$0xff] }
 0x178   :  { %v11210_v1 = vcombine.low %v1665_v10, %v1669_v6  ;;  %v11212_v52 = vcombine.high %v1665_v10, %v1669_v6  ;;  %v1674_v10 = vld [vmem:[%s14393_s5 + $0x48] sm:$0xff] }
 0x179   :  { %14782 = vst [vmem:[#allocation28_spill] sm:$0xff] %v11185_v48  ;;  %14783 = vst [vmem:[#allocation29_spill] sm:$0xff] %v11187_v61  ;;  %v1678_v6 = vld [vmem:[%s14393_s5 + $0x68] sm:$0xff] }
 0x17a   :  { %1507 = vmatpush1.bf16.msra.mxu0 %v11155_v35  ;;  %1550 = vmatpush1.bf16.msra.mxu1 %v11157_v42  ;;  %14784 = vst [vmem:[#allocation30_spill] sm:$0xff] %v11191_v49  ;;  %v11193_v35 = vcombine.low %v610_v21, %v614_v11  ;;  %14786 = vst [vmem:[#allocation32_spill] sm:$0xff] %v11210_v1  ;;  %v1677_v21 = vld [vmem:[%s14393_s5 + $0x60] sm:$0xff] }
 0x17b   :  { %1508 = vmatprep.subr.bf16.mxu0 %v11161_v55  ;;  %1551 = vmatprep.subr.bf16.mxu1 %v11163_v0  ;;  %14787 = vst [vmem:[#allocation33_spill] sm:$0xff] %v11212_v52 }
 0x17c   :  { %14785 = vst [vmem:[#allocation31_spill] sm:$0xff] %v11193_v35 }
 0x17e   :  { %1509 = vmatpush1.bf16.msra.mxu0 %v11179_v56  ;;  %1552 = vmatpush1.bf16.msra.mxu1 %v11181_v60  ;;  %v1686_v60 = vld [vmem:[%s14393_s5 + $0xa8] sm:$0xff]  ;;  %v11252_v56 = vcombine.low %v1673_v58, %v1677_v21 }
 0x17f   :  { %1510 = vmatprep.subr.bf16.mxu0 %v11185_v48  ;;  %1553 = vmatprep.subr.bf16.mxu1 %v11187_v61  ;;  %v1681_v61 = vld [vmem:[%s14393_s5 + $0x80] sm:$0xff]  ;;  %v11239_v48 = vcombine.high %v1674_v10, %v1678_v6 }
 0x180   :  { %14792 = vst [vmem:[#allocation38_spill] sm:$0xff] %v11252_v56 }
 0x181   :  { %14791 = vst [vmem:[#allocation37_spill] sm:$0xff] %v11239_v48 }
 0x182   :  { %1511 = vmatpush1.bf16.msra.mxu0 %v11191_v49  ;;  %1554 = vmatpush1.bf16.msra.mxu1 %v11193_v35  ;;  %v11227_v49 = vcombine.high %v1673_v58, %v1677_v21  ;;  %v1693_v58 = vld [vmem:[%s14393_s5 + $0xe0] sm:$0xff]  ;;  %v1690_v21 = vld [vmem:[%s14393_s5 + $0xc8] sm:$0xff] }
 0x183   :  { %2433 = vmatprep.subr.bf16.mxu0 %v11212_v52  ;;  %v11256_v52 = vcombine.low %v1674_v10, %v1678_v6  ;;  %v1694_v10 = vld [vmem:[%s14393_s5 + $0xe8] sm:$0xff] }
 0x184   :  { %14790 = vst [vmem:[#allocation36_spill] sm:$0xff] %v11227_v49 }
 0x185   :  { %1513 = vmatmul.mubr.bf16.vlgmr.msra.gmra.mrb[32].mxu0 %v10843_v32  ;;  %1556 = vmatmul.mubr.bf16.vlgmr.msra.gmra.mrb[32].mxu1 %v10843_v32  ;;  %v1670_v32 = vld [vmem:[%s14393_s5 + $0x28] sm:$0xff]  ;;  %14793 = vst [vmem:[#allocation39_spill] sm:$0xff] %v11256_v52 }
 0x186   :  { %v11223_v11 = vcombine.low %v1666_v7, %v1670_v32  ;;  %v11225_v35 = vcombine.high %v1666_v7, %v1670_v32  ;;  %v1685_v7 = vld [vmem:[%s14393_s5 + $0xa0] sm:$0xff]  ;;  %v1682_v32 = vld [vmem:[%s14393_s5 + $0x88] sm:$0xff]  ;;  %2434 = vmatpush1.bf16.msra.mxu0 %v11210_v1 }
 0x187   :  { %2435 = vmatprep.subr.bf16.mxu0 %v11227_v49  ;;  %v11258_v0 = vcombine.high %v1681_v61, %v1685_v7  ;;  %v11261_v55 = vcombine.high %v1682_v32, %v1686_v60  ;;  %v11276_v6 = vcombine.low %v1681_v61, %v1685_v7  ;;  %v1697_v1 = vld [vmem:[%s14393_s5 + $0x100] sm:$0xff]  ;;  %v1698_v7 = vld [vmem:[%s14393_s5 + $0x108] sm:$0xff] }
 0x188   :  { %14788 = vst [vmem:[#allocation34_spill] sm:$0xff] %v11223_v11  ;;  %14789 = vst [vmem:[#allocation35_spill] sm:$0xff] %v11225_v35  ;;  %2476 = vmatprep.subr.bf16.mxu1 %v11225_v35  ;;  %v1689_v35 = vld [vmem:[%s14393_s5 + $0xc0] sm:$0xff] }
 0x189   :  { %2477 = vmatpush1.bf16.msra.mxu1 %v11223_v11  ;;  %14794 = vst [vmem:[#allocation40_spill] sm:$0xff] %v11258_v0  ;;  %14795 = vst [vmem:[#allocation41_spill] sm:$0xff] %v11261_v55  ;;  %v11282_v49 = vcombine.high %v1689_v35, %v1693_v58  ;;  %v11285_v11 = vcombine.high %v1690_v21, %v1694_v10  ;;  %v1701_v61 = vld [vmem:[%s14393_s5 + $0x120] sm:$0xff] }
 0x18a   :  { %2478 = vmatprep.subr.bf16.mxu1 %v11239_v48  ;;  %2436 = vmatpush1.bf16.msra.mxu0 %v11252_v56  ;;  %14796 = vst [vmem:[#allocation42_spill] sm:$0xff] %v11276_v6  ;;  %v11280_v48 = vcombine.low %v1682_v32, %v1686_v60  ;;  %v1702_v60 = vld [vmem:[%s14393_s5 + $0x128] sm:$0xff]  ;;  %v11300_v32 = vcombine.low %v1689_v35, %v1693_v58  ;;  %v1705_v56 = vld [vmem:[%s14393_s5 + $0x140] sm:$0xff] }
 0x18b   :  { %2437 = vmatprep.subr.bf16.mxu0 %v11258_v0  ;;  %14798 = vst [vmem:[#allocation44_spill] sm:$0xff] %v11282_v49  ;;  %14799 = vst [vmem:[#allocation45_spill] sm:$0xff] %v11285_v11  ;;  %v11306_v0 = vcombine.high %v1697_v1, %v1701_v61  ;;  %v1709_v35 = vld [vmem:[%s14393_s5 + $0x160] sm:$0xff]  ;;  %v1706_v58 = vld [vmem:[%s14393_s5 + $0x148] sm:$0xff] }
 0x18c   :  { %14797 = vst [vmem:[#allocation43_spill] sm:$0xff] %v11280_v48  ;;  %14800 = vst [vmem:[#allocation46_spill] sm:$0xff] %v11300_v32 }
 0x18d   :  { %2479 = vmatpush1.bf16.msra.mxu1 %v11256_v52  ;;  %14802 = vst [vmem:[#allocation48_spill] sm:$0xff] %v11306_v0  ;;  %v11309_v52 = vcombine.high %v1698_v7, %v1702_v60 }
 0x18e   :  { %2480 = vmatprep.subr.bf16.mxu1 %v11261_v55  ;;  %2438 = vmatpush1.bf16.msra.mxu0 %v11276_v6  ;;  %v11304_v55 = vcombine.low %v1690_v21, %v1694_v10  ;;  %v1710_v21 = vld [vmem:[%s14393_s5 + $0x168] sm:$0xff]  ;;  %v11324_v10 = vcombine.low %v1697_v1, %v1701_v61  ;;  %v11336_v6 = vcombine.low %v1705_v56, %v1709_v35  ;;  %v1713_v61 = vld [vmem:[%s14393_s5 + $0x180] sm:$0xff] }
 0x18f   :  { %2439 = vmatprep.subr.bf16.mxu0 %v11282_v49  ;;  %14803 = vst [vmem:[#allocation49_spill] sm:$0xff] %v11309_v52  ;;  %v11330_v49 = vcombine.high %v1705_v56, %v1709_v35  ;;  %v11340_v1 = vcombine.low %v1706_v58, %v1710_v21  ;;  %v1717_v56 = vld [vmem:[%s14393_s5 + $0x1a0] sm:$0xff]  ;;  %v1718_v35 = vld [vmem:[%s14393_s5 + $0x1a8] sm:$0xff] }
 0x190   :  { %14801 = vst [vmem:[#allocation47_spill] sm:$0xff] %v11304_v55  ;;  %14804 = vst [vmem:[#allocation50_spill] sm:$0xff] %v11324_v10 }
 0x191   :  { %2481 = vmatpush1.bf16.msra.mxu1 %v11280_v48  ;;  %14806 = vst [vmem:[#allocation52_spill] sm:$0xff] %v11330_v49  ;;  %v11333_v48 = vcombine.high %v1706_v58, %v1710_v21  ;;  %14808 = vst [vmem:[#allocation54_spill] sm:$0xff] %v11336_v6  ;;  %v11359_v58 = vcombine.low %v1713_v61, %v1717_v56 }
 0x192   :  { %2482 = vmatprep.subr.bf16.mxu1 %v11285_v11  ;;  %2440 = vmatpush1.bf16.msra.mxu0 %v11300_v32  ;;  %v11328_v11 = vcombine.low %v1698_v7, %v1702_v60  ;;  %14809 = vst [vmem:[#allocation55_spill] sm:$0xff] %v11340_v1  ;;  %v1714_v7 = vld [vmem:[%s14393_s5 + $0x188] sm:$0xff]  ;;  %v11354_v60 = vcombine.high %v1713_v61, %v1717_v56  ;;  %v1725_v61 = vld [vmem:[%s14393_s5 + $0x1e0] sm:$0xff] }
 0x193   :  { %2441 = vmatprep.subr.bf16.mxu0 %v11306_v0  ;;  %14807 = vst [vmem:[#allocation53_spill] sm:$0xff] %v11333_v48  ;;  %14811 = vst [vmem:[#allocation57_spill] sm:$0xff] %v11359_v58  ;;  %v11361_v21 = vcombine.low %v1714_v7, %v1718_v35  ;;  %v1722_v56 = vld [vmem:[%s14393_s5 + $0x1c8] sm:$0xff] }
 0x194   :  { %14805 = vst [vmem:[#allocation51_spill] sm:$0xff] %v11328_v11  ;;  %14810 = vst [vmem:[#allocation56_spill] sm:$0xff] %v11354_v60 }
 0x195   :  { %2483 = vmatpush1.bf16.msra.mxu1 %v11304_v55  ;;  %14812 = vst [vmem:[#allocation58_spill] sm:$0xff] %v11361_v21 }
 0x196   :  { %2484 = vmatprep.subr.bf16.mxu1 %v11309_v52  ;;  %2442 = vmatpush1.bf16.msra.mxu0 %v11324_v10  ;;  %v1782_v52 = vld [vmem:[%s14393_s5 + $0x3a8] sm:$0xff] }
 0x197   :  { %2443 = vmatprep.subr.bf16.mxu0 %v11330_v49 }
 0x199   :  { %2485 = vmatpush1.bf16.msra.mxu1 %v11328_v11  ;;  %v1777_v11 = vld [vmem:[%s14393_s5 + $0x380] sm:$0xff] }
 0x19a   :  { %2486 = vmatprep.subr.bf16.mxu1 %v11333_v48  ;;  %2444 = vmatpush1.bf16.msra.mxu0 %v11336_v6  ;;  %v1721_v6 = vld [vmem:[%s14393_s5 + $0x1c0] sm:$0xff] }
 0x19b   :  { %2445 = vmatprep.subr.bf16.mxu0 %v11354_v60  ;;  %v1729_v60 = vld [vmem:[%s14393_s5 + $0x200] sm:$0xff] }
 0x19c   :  { %v1733_v48 = vld [vmem:[%s14393_s5 + $0x220] sm:$0xff] }
 0x19d   :  { %2487 = vmatpush1.bf16.msra.mxu1 %v11340_v1  ;;  %v11363_v1 = vcombine.high %v1714_v7, %v1718_v35  ;;  %v11378_v7 = vcombine.high %v1721_v6, %v1725_v61  ;;  %v1726_v35 = vld [vmem:[%s14393_s5 + $0x1e8] sm:$0xff] }
 0x19e   :  { %2446 = vmatpush1.bf16.msra.mxu0 %v11359_v58  ;;  %v11383_v58 = vcombine.low %v1721_v6, %v1725_v61  ;;  %v1730_v6 = vld [vmem:[%s14393_s5 + $0x208] sm:$0xff]  ;;  %v11402_v61 = vcombine.high %v1729_v60, %v1733_v48 }
 0x19f   :  { %14813 = vst [vmem:[#allocation59_spill] sm:$0xff] %v11363_v1  ;;  %2488 = vmatprep.subr.bf16.mxu1 %v11363_v1  ;;  %14814 = vst [vmem:[#allocation60_spill] sm:$0xff] %v11378_v7  ;;  %v11387_v1 = vcombine.high %v1722_v56, %v1726_v35  ;;  %2447 = vmatprep.subr.bf16.mxu0 %v11378_v7  ;;  %v1741_v7 = vld [vmem:[%s14393_s5 + $0x260] sm:$0xff] }
 0x1a0   :  { %14815 = vst [vmem:[#allocation61_spill] sm:$0xff] %v11383_v58  ;;  %14818 = vst [vmem:[#allocation64_spill] sm:$0xff] %v11402_v61 }
 0x1a1   :  { %2489 = vmatpush1.bf16.msra.mxu1 %v11361_v21  ;;  %v11385_v21 = vcombine.low %v1722_v56, %v1726_v35  ;;  %14817 = vst [vmem:[#allocation63_spill] sm:$0xff] %v11387_v1  ;;  %v1734_v56 = vld [vmem:[%s14393_s5 + $0x228] sm:$0xff]  ;;  %v11407_v35 = vcombine.low %v1729_v60, %v1733_v48 }
 0x1a2   :  { %2490 = vmatprep.subr.bf16.mxu1 %v11387_v1  ;;  %2448 = vmatpush1.bf16.msra.mxu0 %v11383_v58  ;;  %v11409_v58 = vcombine.low %v1730_v6, %v1734_v56  ;;  %v11411_v1 = vcombine.high %v1730_v6, %v1734_v56  ;;  %v1738_v48 = vld [vmem:[%s14393_s5 + $0x248] sm:$0xff] }
 0x1a3   :  { %14816 = vst [vmem:[#allocation62_spill] sm:$0xff] %v11385_v21  ;;  %14819 = vst [vmem:[#allocation65_spill] sm:$0xff] %v11407_v35  ;;  %2449 = vmatprep.subr.bf16.mxu0 %v11402_v61  ;;  %v1742_v6 = vld [vmem:[%s14393_s5 + $0x268] sm:$0xff]  ;;  %v1749_v61 = vld [vmem:[%s14393_s5 + $0x2a0] sm:$0xff] }
 0x1a4   :  { %14820 = vst [vmem:[#allocation66_spill] sm:$0xff] %v11409_v58  ;;  %14821 = vst [vmem:[#allocation67_spill] sm:$0xff] %v11411_v1 }
 0x1a5   :  { %2491 = vmatpush1.bf16.msra.mxu1 %v11385_v21  ;;  %v1737_v21 = vld [vmem:[%s14393_s5 + $0x240] sm:$0xff] }
 0x1a6   :  { %2492 = vmatprep.subr.bf16.mxu1 %v11411_v1  ;;  %2450 = vmatpush1.bf16.msra.mxu0 %v11407_v35  ;;  %v11426_v60 = vcombine.high %v1737_v21, %v1741_v7  ;;  %v11431_v56 = vcombine.low %v1737_v21, %v1741_v7  ;;  %v11433_v35 = vcombine.low %v1738_v48, %v1742_v6  ;;  %v1746_v21 = vld [vmem:[%s14393_s5 + $0x288] sm:$0xff] }
 0x1a7   :  { %v11435_v1 = vcombine.high %v1738_v48, %v1742_v6  ;;  %v1750_v48 = vld [vmem:[%s14393_s5 + $0x2a8] sm:$0xff] }
 0x1a8   :  { %14822 = vst [vmem:[#allocation68_spill] sm:$0xff] %v11426_v60  ;;  %14823 = vst [vmem:[#allocation69_spill] sm:$0xff] %v11431_v56  ;;  %2451 = vmatprep.subr.bf16.mxu0 %v11426_v60  ;;  %v1757_v60 = vld [vmem:[%s14393_s5 + $0x2e0] sm:$0xff] }
 0x1a9   :  { %2493 = vmatpush1.bf16.msra.mxu1 %v11409_v58  ;;  %14824 = vst [vmem:[#allocation70_spill] sm:$0xff] %v11433_v35  ;;  %14825 = vst [vmem:[#allocation71_spill] sm:$0xff] %v11435_v1  ;;  %v1745_v58 = vld [vmem:[%s14393_s5 + $0x280] sm:$0xff] }
 0x1aa   :  { %2494 = vmatprep.subr.bf16.mxu1 %v11435_v1  ;;  %2452 = vmatpush1.bf16.msra.mxu0 %v11431_v56  ;;  %v11450_v7 = vcombine.high %v1745_v58, %v1749_v61  ;;  %v11455_v6 = vcombine.low %v1745_v58, %v1749_v61  ;;  %v11457_v56 = vcombine.low %v1746_v21, %v1750_v48  ;;  %v1754_v58 = vld [vmem:[%s14393_s5 + $0x2c8] sm:$0xff] }
 0x1ab   :  { %v11459_v1 = vcombine.high %v1746_v21, %v1750_v48  ;;  %v1758_v21 = vld [vmem:[%s14393_s5 + $0x2e8] sm:$0xff] }
 0x1ac   :  { %14826 = vst [vmem:[#allocation72_spill] sm:$0xff] %v11450_v7  ;;  %14827 = vst [vmem:[#allocation73_spill] sm:$0xff] %v11455_v6  ;;  %2453 = vmatprep.subr.bf16.mxu0 %v11450_v7  ;;  %v1765_v7 = vld [vmem:[%s14393_s5 + $0x320] sm:$0xff] }
 0x1ad   :  { %2495 = vmatpush1.bf16.msra.mxu1 %v11433_v35  ;;  %14828 = vst [vmem:[#allocation74_spill] sm:$0xff] %v11457_v56  ;;  %14829 = vst [vmem:[#allocation75_spill] sm:$0xff] %v11459_v1  ;;  %v1753_v35 = vld [vmem:[%s14393_s5 + $0x2c0] sm:$0xff] }
 0x1ae   :  { %2496 = vmatprep.subr.bf16.mxu1 %v11459_v1  ;;  %2454 = vmatpush1.bf16.msra.mxu0 %v11455_v6  ;;  %v11474_v61 = vcombine.high %v1753_v35, %v1757_v60  ;;  %v11479_v48 = vcombine.low %v1753_v35, %v1757_v60  ;;  %v11481_v6 = vcombine.low %v1754_v58, %v1758_v21  ;;  %v1762_v35 = vld [vmem:[%s14393_s5 + $0x308] sm:$0xff] }
 0x1af   :  { %v11483_v1 = vcombine.high %v1754_v58, %v1758_v21  ;;  %v1766_v21 = vld [vmem:[%s14393_s5 + $0x328] sm:$0xff] }
 0x1b0   :  { %14830 = vst [vmem:[#allocation76_spill] sm:$0xff] %v11474_v61  ;;  %14831 = vst [vmem:[#allocation77_spill] sm:$0xff] %v11479_v48  ;;  %2455 = vmatprep.subr.bf16.mxu0 %v11474_v61  ;;  %v11511_v61 = vcombine.low %v1762_v35, %v1766_v21  ;;  %v11513_v49 = vcombine.high %v1762_v35, %v1766_v21  ;;  %v1781_v35 = vld [vmem:[%s14393_s5 + $0x3a0] sm:$0xff]  ;;  %v1778_v21 = vld [vmem:[%s14393_s5 + $0x388] sm:$0xff] }
 0x1b1   :  { %2497 = vmatpush1.bf16.msra.mxu1 %v11457_v56  ;;  %14832 = vst [vmem:[#allocation78_spill] sm:$0xff] %v11481_v6  ;;  %14833 = vst [vmem:[#allocation79_spill] sm:$0xff] %v11483_v1  ;;  %v1761_v56 = vld [vmem:[%s14393_s5 + $0x300] sm:$0xff]  ;;  %v11546_v55 = vcombine.high %v1777_v11, %v1781_v35  ;;  %v11549_v32 = vcombine.high %v1778_v21, %v1782_v52 }
 0x1b2   :  { %2498 = vmatprep.subr.bf16.mxu1 %v11483_v1  ;;  %2456 = vmatpush1.bf16.msra.mxu0 %v11479_v48  ;;  %v11498_v60 = vcombine.low %v1761_v56, %v1765_v7  ;;  %v11500_v58 = vcombine.high %v1761_v56, %v1765_v7  ;;  %v1769_v48 = vld [vmem:[%s14393_s5 + $0x340] sm:$0xff]  ;;  %14836 = vst [vmem:[#allocation82_spill] sm:$0xff] %v11511_v61  ;;  %14837 = vst [vmem:[#allocation83_spill] sm:$0xff] %v11513_v49  ;;  %v1770_v56 = vld [vmem:[%s14393_s5 + $0x348] sm:$0xff] }
 0x1b3   :  { %v1773_v1 = vld [vmem:[%s14393_s5 + $0x360] sm:$0xff]  ;;  %v1774_v7 = vld [vmem:[%s14393_s5 + $0x368] sm:$0xff]  ;;  %14840 = vst [vmem:[#allocation86_spill] sm:$0xff] %v11546_v55  ;;  %14841 = vst [vmem:[#allocation87_spill] sm:$0xff] %v11549_v32 }
 0x1b4   :  { %14834 = vst [vmem:[#allocation80_spill] sm:$0xff] %v11498_v60  ;;  %14835 = vst [vmem:[#allocation81_spill] sm:$0xff] %v11500_v58  ;;  %2457 = vmatprep.subr.bf16.mxu0 %v11500_v58  ;;  %v11527_v10 = vcombine.high %v1770_v56, %v1774_v7  ;;  %v11540_v0 = vcombine.low %v1769_v48, %v1773_v1  ;;  %v11544_v58 = vcombine.low %v1770_v56, %v1774_v7  ;;  %v1790_v56 = vld [vmem:[%s14393_s5 + $0x3e8] sm:$0xff] }
 0x1b5   :  { %2499 = vmatpush1.bf16.msra.mxu1 %v11481_v6  ;;  %v11515_v6 = vcombine.high %v1769_v48, %v1773_v1  ;;  %v1789_v1 = vld [vmem:[%s14393_s5 + $0x3e0] sm:$0xff]  ;;  %v1786_v48 = vld [vmem:[%s14393_s5 + $0x3c8] sm:$0xff]  ;;  %v11564_v7 = vcombine.low %v1777_v11, %v1781_v35 }
 0x1b6   :  { %14839 = vst [vmem:[#allocation85_spill] sm:$0xff] %v11527_v10  ;;  %2500 = vmatprep.subr.bf16.mxu1 %v11513_v49  ;;  %2458 = vmatpush1.bf16.msra.mxu0 %v11498_v60  ;;  %v1785_v49 = vld [vmem:[%s14393_s5 + $0x3c0] sm:$0xff]  ;;  %v11580_v11 = vcombine.low %v1786_v48, %v1790_v56 }
 0x1b7   :  { %14838 = vst [vmem:[#allocation84_spill] sm:$0xff] %v11515_v6  ;;  %2459 = vmatprep.subr.bf16.mxu0 %v11515_v6  ;;  %14842 = vst [vmem:[#allocation88_spill] sm:$0xff] %v11564_v7  ;;  %v11570_v6 = vcombine.high %v1785_v49, %v1789_v1  ;;  %v11576_v60 = vcombine.low %v1785_v49, %v1789_v1 }
 0x1b8   :  { %14847 = vst [vmem:[#allocation93_spill] sm:$0xff] %v11580_v11 }
 0x1b9   :  { %2501 = vmatpush1.bf16.msra.mxu1 %v11511_v61  ;;  %14844 = vst [vmem:[#allocation90_spill] sm:$0xff] %v11570_v6  ;;  %v11573_v61 = vcombine.high %v1786_v48, %v1790_v56  ;;  %14846 = vst [vmem:[#allocation92_spill] sm:$0xff] %v11576_v60 }
 0x1ba   :  { %2502 = vmatprep.subr.bf16.mxu1 %v11527_v10  ;;  %2460 = vmatpush1.bf16.msra.mxu0 %v11540_v0  ;;  %v11568_v10 = vcombine.low %v1778_v21, %v1782_v52 }
 0x1bb   :  { %2461 = vmatprep.subr.bf16.mxu0 %v11546_v55  ;;  %14845 = vst [vmem:[#allocation91_spill] sm:$0xff] %v11573_v61 }
 0x1bc   :  { %14843 = vst [vmem:[#allocation89_spill] sm:$0xff] %v11568_v10 }
 0x1bd   :  { %2503 = vmatpush1.bf16.msra.mxu1 %v11544_v58 }
 0x1be   :  { %2504 = vmatprep.subr.bf16.mxu1 %v11549_v32  ;;  %2462 = vmatpush1.bf16.msra.mxu0 %v11564_v7 }
 0x1bf   :  { %2463 = vmatprep.subr.bf16.mxu0 %v11570_v6 }
 0x1c1   :  { %2505 = vmatpush1.bf16.msra.mxu1 %v11568_v10 }
 0x1c2   :  { %2506 = vmatprep.subr.bf16.mxu1 %v11573_v61  ;;  %2464 = vmatpush1.bf16.msra.mxu0 %v11576_v60 }
 0x1c3   :  { %2519 = vmatprep.subr.bf16.mxu0 %v10775_v41 }
 0x1c5   :  { %2507 = vmatpush1.bf16.msra.mxu1 %v11580_v11 }
 0x1c6   :  { %2562 = vmatprep.subr.bf16.mxu1 %v10782_v45 }
 0x218   :  { %v1428_v52 = vpop.f32.mrb[4].mxu0  ;;  %v1471_v35 = vpop.f32.mrb[4].mxu1 }
 0x219   :  { %v9702_v49 = vadd.f32 %v1428_v52, %v10795_v59  ;;  %v1430_v21 = vpop.f32.mrb[5].mxu0  ;;  %v1473_v1 = vpop.f32.mrb[5].mxu1 }
 0x21a   :  { %v9703_v6 = vadd.f32 %v1430_v21, %v10800_v62  ;;  %v1432_v48 = vpop.f32.mrb[6].mxu0  ;;  %v1475_v56 = vpop.f32.mrb[6].mxu1  ;;  %v9735_v45 = vadd.f32 %v1473_v1, %v10805_v16 }
 0x21b   :  { %v1582_v10 = vmul.f32 0.5, %v9702_v49  ;;  %v9704_v61 = vadd.f32 %v1432_v48, %v10795_v59  ;;  %v1434_v60 = vpop.f32.mrb[7].mxu0  ;;  %v1477_v7 = vpop.f32.mrb[7].mxu1  ;;  %v9734_v49 = vadd.f32 %v1471_v35, %v10814_v8  ;;  %v9736_v21 = vadd.f32 %v1475_v56, %v10814_v8 }
 0x21c   :  { %v1583_v11 = vmul.f32 0.5, %v9703_v6  ;;  %v9705_v41 = vadd.f32 %v1434_v60, %v10800_v62  ;;  %v9737_v52 = vadd.f32 %v1477_v7, %v10805_v16 }
 0x21d   :  { %9869 = vtanh.f32 %v1582_v10  ;;  %v1585_v32 = vmul.f32 0.5, %v9704_v61  ;;  %v1584_v59 = vmul.f32 0.5, %v9734_v49  ;;  %v1587_v10 = vmul.f32 0.5, %v9736_v21 }
 0x21e   :  { %v1586_v55 = vmul.f32 0.5, %v9705_v41  ;;  %9871 = vtanh.f32 %v1583_v11 }
 0x21f   :  { %9873 = vtanh.f32 %v1585_v32 }
 0x220   :  { %9875 = vtanh.f32 %v9735_v45 }
 0x221   :  { %9877 = vtanh.f32 %v1586_v55 }
 0x222   :  { %9879 = vtanh.f32 %v9737_v52 }
 0x223   :  { %9881 = vtanh.f32 %v1584_v59 }
 0x224   :  { %9883 = vtanh.f32 %v1587_v10 }
 0x227   :  { %v9870_v48 = vpop.eup %9869 }
 0x228   :  { %v1594_v6 = vmul.f32 0.5, %v9870_v48  ;;  %v9872_v60 = vpop.eup %9871 }
 0x229   :  { %v9874_v62 = vpop.eup %9873  ;;  %v1595_v61 = vmul.f32 0.5, %v9872_v60 }
 0x22a   :  { %v1600_v1 = vadd.f32 0.5, %v1594_v6  ;;  %v9876_v41 = vpop.eup %9875  ;;  %v1597_v11 = vmul.f32 0.5, %v9874_v62 }
 0x22b   :  { %v9878_v32 = vpop.eup %9877  ;;  %v1601_v7 = vadd.f32 0.5, %v1595_v61 }
 0x22c   :  { %v1610_v45 = vmul.f32 %v9876_v41, %v1600_v1  ;;  %v1603_v55 = vadd.f32 0.5, %v1597_v11  ;;  %v1598_v35 = vmul.f32 0.5, %v9878_v32  ;;  %v9880_v52 = vpop.eup %9879 }
 0x22d   :  { %v1608_v56 = vmul.f32 %v1601_v7, %v10825_v25  ;;  %v9882_v59 = vpop.eup %9881 }
 0x22e   :  { %v1604_v8 = vadd.f32 0.5, %v1598_v35  ;;  %v1611_v48 = vmul.f32 %v9880_v52, %v1603_v55  ;;  %v9884_v62 = vpop.eup %9883  ;;  %v1596_v60 = vmul.f32 0.5, %v9882_v59  ;;  %v14852_v55 = vsub.s32 1, %v10786_v51 }
 0x22f   :  { %v11596_v49 = vadd.f32 %v1610_v45, %v1608_v56  ;;  %v1599_v10 = vmul.f32 0.5, %v9884_v62  ;;  %v14854_v59 = vsub.s32 3, %v10786_v51 }
 0x230   :  { %v1609_v21 = vmul.f32 %v1604_v8, %v10828_v28  ;;  %v1602_v61 = vadd.f32 0.5, %v1596_v60  ;;  %v453_v8 = vld [vmem:[%s14397_s6] sm:$0xf]  ;;  %v14850_v28 = vsub.s32 0, %v10786_v51 }
 0x231   :  { %14848 = vst [vmem:[#allocation94_spill] sm:$0xff] %v11596_v49  ;;  %9885 = vtanh.f32 %v11596_v49  ;;  %v1605_v41 = vadd.f32 0.5, %v1599_v10  ;;  %v11614_v35 = vrot.slane %v453_v8, %v14852_v55  ;;  %v11619_v62 = vrot.slane %v453_v8, %v14854_v59 }
 0x232   :  { %v11600_v6 = vadd.f32 %v1611_v48, %v1609_v21  ;;  %v11610_v45 = vrot.slane %v453_v8, %v14850_v28  ;;  %v14856_v59 = vsub.s32 2, %v10786_v51 }
 0x233   :  { %14853 = vst [vmem:[#allocation97_spill] sm:$0xff] %v11614_v35  ;;  %14855 = vst [vmem:[#allocation98_spill] sm:$0xff] %v11619_v62 }
 0x234   :  { %14849 = vst [vmem:[#allocation95_spill] sm:$0xff] %v11600_v6  ;;  %9887 = vtanh.f32 %v11600_v6  ;;  %14851 = vst [vmem:[#allocation96_spill] sm:$0xff] %v11610_v45  ;;  %v11627_v16 = vrot.slane %v453_v8, %v14856_v59 }
 0x236   :  { %14857 = vst [vmem:[#allocation99_spill] sm:$0xff] %v11627_v16 }
 0x23b   :  { %v9886_v1 = vpop.eup %9885 }
 0x23c   :  { %v1616_v11 = vmul.f32 %v9886_v1, %v1602_v61 }
 0x23e   :  { %v9888_v25 = vpop.eup %9887 }
 0x23f   :  { %v1617_v32 = vmul.f32 %v9888_v25, %v1605_v41 }
 0x241   :  { %v11603_v7 = vpack.c.bf16 %v1617_v32, %v1616_v11 }
 0x258   :  { %v1514_v52 = vpop.f32.mrb[32].mxu0  ;;  %v1557_v56 = vpop.f32.mrb[32].mxu1 }
 0x259   :  { %v1618_v48 = vadd.f32 %v1514_v52, %v11610_v45  ;;  %v1516_v21 = vpop.f32.mrb[33].mxu0  ;;  %v1559_v60 = vpop.f32.mrb[33].mxu1 }
 0x25a   :  { %v1619_v10 = vadd.f32 %v1516_v21, %v11614_v35  ;;  %v1518_v1 = vpop.f32.mrb[34].mxu0  ;;  %v1561_v61 = vpop.f32.mrb[34].mxu1  ;;  %v1621_v52 = vadd.f32 %v1559_v60, %v11619_v62  ;;  %v1620_v21 = vadd.f32 %v1557_v56, %v11627_v16 }
 0x25b   :  { %v1626_v41 = vmul.f32 0.5, %v1618_v48  ;;  %v1622_v25 = vadd.f32 %v1518_v1, %v11610_v45  ;;  %v1520_v11 = vpop.f32.mrb[35].mxu0  ;;  %v1563_v32 = vpop.f32.mrb[35].mxu1 }
 0x25c   :  { %v1627_v28 = vmul.f32 0.5, %v1619_v10  ;;  %v1623_v55 = vadd.f32 %v1520_v11, %v11614_v35  ;;  %v1625_v48 = vadd.f32 %v1563_v32, %v11619_v62  ;;  %v1624_v10 = vadd.f32 %v1561_v61, %v11627_v16 }
 0x25d   :  { %9889 = vtanh.f32 %v1626_v41  ;;  %v1629_v6 = vmul.f32 0.5, %v1622_v25  ;;  %v1628_v60 = vmul.f32 0.5, %v1620_v21 }
 0x25e   :  { %v1630_v49 = vmul.f32 0.5, %v1623_v55  ;;  %9891 = vtanh.f32 %v1627_v28  ;;  %v1631_v11 = vmul.f32 0.5, %v1624_v10  ;;  %v8660_v10 = vld [vmem:[%s14396_s2 + $0x18] sm:$0xff] }
 0x25f   :  { %9893 = vtanh.f32 %v1629_v6  ;;  %v8659_v6 = vld [vmem:[%s14396_s2 + $0x10] sm:$0xff] }
 0x260   :  { %9895 = vtanh.f32 %v1621_v52 }
 0x261   :  { %9897 = vtanh.f32 %v1630_v49 }
 0x262   :  { %9899 = vtanh.f32 %v1625_v48 }
 0x263   :  { %9901 = vtanh.f32 %v1628_v60 }
 0x264   :  { %9903 = vtanh.f32 %v1631_v11 }
 0x267   :  { %v9890_v1 = vpop.eup %9889 }
 0x268   :  { %v1638_v41 = vmul.f32 0.5, %v9890_v1  ;;  %v9892_v25 = vpop.eup %9891 }
 0x269   :  { %v9894_v28 = vpop.eup %9893  ;;  %v1639_v51 = vmul.f32 0.5, %v9892_v25 }
 0x26a   :  { %v1644_v55 = vadd.f32 0.5, %v1638_v41  ;;  %v9896_v8 = vpop.eup %9895  ;;  %v1641_v32 = vmul.f32 0.5, %v9894_v28 }
 0x26b   :  { %v9898_v49 = vpop.eup %9897  ;;  %v1645_v56 = vadd.f32 0.5, %v1639_v51 }
 0x26c   :  { %v1654_v52 = vmul.f32 %v9896_v8, %v1644_v55  ;;  %v1647_v59 = vadd.f32 0.5, %v1641_v32  ;;  %v1642_v61 = vmul.f32 0.5, %v9898_v49  ;;  %v9900_v48 = vpop.eup %9899 }
 0x26d   :  { %v1652_v21 = vmul.f32 %v8659_v6, %v1645_v56  ;;  %v9902_v60 = vpop.eup %9901 }
 0x26e   :  { %v1648_v1 = vadd.f32 0.5, %v1642_v61  ;;  %v1655_v41 = vmul.f32 %v9900_v48, %v1647_v59  ;;  %v9904_v11 = vpop.eup %9903  ;;  %v1640_v55 = vmul.f32 0.5, %v9902_v60  ;;  %v14900_v48 = vld [vmem:[#allocation49_spill] sm:$0xff]  ;;  %v14905_v60 = vld [vmem:[#allocation54_spill] sm:$0xff] }
 0x26f   :  { %v11638_v25 = vadd.f32 %v1654_v52, %v1652_v21  ;;  %v1643_v51 = vmul.f32 0.5, %v9904_v11  ;;  %v14899_v52 = vld [vmem:[#allocation48_spill] sm:$0xff]  ;;  %v14901_v21 = vld [vmem:[#allocation50_spill] sm:$0xff]  ;;  %v14906_v11 = vld [vmem:[#allocation55_spill] sm:$0xff] }
 0x270   :  { %v1653_v16 = vmul.f32 %v8660_v10, %v1648_v1  ;;  %v1646_v6 = vadd.f32 0.5, %v1640_v55  ;;  %v14902_v10 = vld [vmem:[#allocation51_spill] sm:$0xff]  ;;  %v14903_v1 = vld [vmem:[#allocation52_spill] sm:$0xff] }
 0x271   :  { %9905 = vtanh.f32 %v11638_v25  ;;  %v1649_v32 = vadd.f32 0.5, %v1643_v51  ;;  %v14907_v55 = vld [vmem:[#allocation56_spill] sm:$0xff]  ;;  %v14908_v51 = vld [vmem:[#allocation59_spill] sm:$0xff] }
 0x272   :  { %v11641_v28 = vadd.f32 %v1655_v41, %v1653_v16  ;;  %v14861_v16 = vld [vmem:[#allocation10_spill] sm:$0xff]  ;;  %v14904_v41 = vld [vmem:[#allocation53_spill] sm:$0xff] }
 0x274   :  { %9907 = vtanh.f32 %v11641_v28 }
 0x27b   :  { %v9906_v8 = vpop.eup %9905 }
 0x27c   :  { %v1660_v56 = vmul.f32 %v9906_v8, %v1646_v6  ;;  %v14909_v8 = vld [vmem:[#allocation57_spill] sm:$0xff]  ;;  %v14910_v6 = vld [vmem:[#allocation58_spill] sm:$0xff] }
 0x27e   :  { %v9908_v49 = vpop.eup %9907 }
 0x27f   :  { %v1661_v61 = vmul.f32 %v9908_v49, %v1649_v32  ;;  %v14911_v32 = vld [vmem:[#allocation60_spill] sm:$0xff]  ;;  %v14912_v49 = vld [vmem:[#allocation63_spill] sm:$0xff] }
 0x281   :  { %v11644_v59 = vpack.c.bf16 %v1661_v61, %v1660_v56  ;;  %v14913_v56 = vld [vmem:[#allocation61_spill] sm:$0xff]  ;;  %v14914_v61 = vld [vmem:[#allocation62_spill] sm:$0xff] }
 0x283   :  { %14858 = vst [vmem:[#allocation100_spill] sm:$0xff] %v11644_v59  ;;  %2465 = vmatprep.mubr.bf16.mxu0 %v11644_v59  ;;  %2508 = vmatprep.mubr.bf16.mxu1 %v11644_v59 }
 0x284   :  { %2466 = vmatmul.mubr.bf16.vlgmr.msra.gmra.mrb[8].mxu0 %v11603_v7  ;;  %2509 = vmatmul.mubr.bf16.vlgmr.msra.gmra.mrb[8].mxu1 %v11603_v7 }
 0x285   :  { %2520 = vmatpush1.bf16.msra.mxu0 %v10773_v36  ;;  %2563 = vmatpush1.bf16.msra.mxu1 %v10780_v44  ;;  %v14859_v36 = vld [vmem:[#allocation8_spill] sm:$0xff]  ;;  %v14860_v44 = vld [vmem:[#allocation9_spill] sm:$0xff] }
 0x286   :  { %2551 = vmatprep.mubr.bf16.mxu0 %v11644_v59  ;;  %2594 = vmatprep.mubr.bf16.mxu1 %v11644_v59  ;;  %v2794_v59 = vld [vmem:[%s14393_s5 + $0x2d0] sm:$0xff] }
 0x287   :  { %2521 = vmatprep.subr.bf16.mxu0 %v10845_v37  ;;  %2564 = vmatprep.subr.bf16.mxu1 %v10847_v38  ;;  %v14862_v37 = vld [vmem:[#allocation11_spill] sm:$0xff]  ;;  %v14863_v38 = vld [vmem:[#allocation12_spill] sm:$0xff] }
 0x289   :  { %2522 = vmatpush1.bf16.msra.mxu0 %v10865_v2  ;;  %2565 = vmatpush1.bf16.msra.mxu1 %v10867_v3  ;;  %v14864_v2 = vld [vmem:[#allocation13_spill] sm:$0xff]  ;;  %v14865_v3 = vld [vmem:[#allocation14_spill] sm:$0xff] }
 0x28a   :  { %2523 = vmatprep.subr.bf16.mxu0 %v10871_v23  ;;  %2566 = vmatprep.subr.bf16.mxu1 %v10873_v39  ;;  %v14866_v23 = vld [vmem:[#allocation15_spill] sm:$0xff]  ;;  %v14867_v39 = vld [vmem:[#allocation16_spill] sm:$0xff] }
 0x28d   :  { %2524 = vmatpush1.bf16.msra.mxu0 %v10891_v29  ;;  %2567 = vmatpush1.bf16.msra.mxu1 %v10893_v20  ;;  %v14868_v29 = vld [vmem:[#allocation17_spill] sm:$0xff]  ;;  %v14869_v20 = vld [vmem:[#allocation18_spill] sm:$0xff] }
 0x28e   :  { %2525 = vmatprep.subr.bf16.mxu0 %v10897_v40  ;;  %2568 = vmatprep.subr.bf16.mxu1 %v10899_v43  ;;  %v14870_v40 = vld [vmem:[#allocation19_spill] sm:$0xff]  ;;  %v14871_v43 = vld [vmem:[#allocation20_spill] sm:$0xff] }
 0x291   :  { %2526 = vmatpush1.bf16.msra.mxu0 %v10915_v26  ;;  %2569 = vmatpush1.bf16.msra.mxu1 %v10917_v30  ;;  %v14872_v26 = vld [vmem:[#allocation21_spill] sm:$0xff]  ;;  %v14873_v30 = vld [vmem:[#allocation22_spill] sm:$0xff] }
 0x292   :  { %2527 = vmatprep.subr.bf16.mxu0 %v10921_v9  ;;  %2570 = vmatprep.subr.bf16.mxu1 %v10923_v14  ;;  %v14874_v9 = vld [vmem:[#allocation23_spill] sm:$0xff]  ;;  %v14875_v14 = vld [vmem:[#allocation24_spill] sm:$0xff] }
 0x295   :  { %2528 = vmatpush1.bf16.msra.mxu0 %v10939_v17  ;;  %2571 = vmatpush1.bf16.msra.mxu1 %v10941_v19  ;;  %v14876_v17 = vld [vmem:[#allocation25_spill] sm:$0xff]  ;;  %v14877_v19 = vld [vmem:[#allocation26_spill] sm:$0xff] }
 0x296   :  { %2529 = vmatprep.subr.bf16.mxu0 %v10945_v24  ;;  %2572 = vmatprep.subr.bf16.mxu1 %v10947_v27  ;;  %v14878_v24 = vld [vmem:[#allocation27_spill] sm:$0xff]  ;;  %v14879_v27 = vld [vmem:[#allocation28_spill] sm:$0xff] }
 0x299   :  { %2530 = vmatpush1.bf16.msra.mxu0 %v10963_v50  ;;  %2573 = vmatpush1.bf16.msra.mxu1 %v10965_v53  ;;  %v14880_v50 = vld [vmem:[#allocation29_spill] sm:$0xff]  ;;  %v14881_v53 = vld [vmem:[#allocation30_spill] sm:$0xff] }
 0x29a   :  { %2531 = vmatprep.subr.bf16.mxu0 %v10969_v4  ;;  %2574 = vmatprep.subr.bf16.mxu1 %v10971_v5  ;;  %v14882_v4 = vld [vmem:[#allocation31_spill] sm:$0xff]  ;;  %v14883_v5 = vld [vmem:[#allocation33_spill] sm:$0xff] }
 0x29d   :  { %2532 = vmatpush1.bf16.msra.mxu0 %v10987_v22  ;;  %2575 = vmatpush1.bf16.msra.mxu1 %v10989_v31  ;;  %v14884_v22 = vld [vmem:[#allocation35_spill] sm:$0xff]  ;;  %v14885_v31 = vld [vmem:[#allocation32_spill] sm:$0xff] }
 0x29e   :  { %2533 = vmatprep.subr.bf16.mxu0 %v10993_v47  ;;  %2576 = vmatprep.subr.bf16.mxu1 %v10995_v54  ;;  %v14886_v47 = vld [vmem:[#allocation34_spill] sm:$0xff]  ;;  %v14887_v54 = vld [vmem:[#allocation36_spill] sm:$0xff] }
 0x2a1   :  { %2534 = vmatpush1.bf16.msra.mxu0 %v11011_v63  ;;  %2577 = vmatpush1.bf16.msra.mxu1 %v11013_v15  ;;  %v14888_v63 = vld [vmem:[#allocation37_spill] sm:$0xff]  ;;  %v14889_v15 = vld [vmem:[#allocation38_spill] sm:$0xff] }
 0x2a2   :  { %2535 = vmatprep.subr.bf16.mxu0 %v11017_v57  ;;  %2578 = vmatprep.subr.bf16.mxu1 %v11019_v46  ;;  %v14890_v57 = vld [vmem:[#allocation39_spill] sm:$0xff]  ;;  %v14891_v46 = vld [vmem:[#allocation40_spill] sm:$0xff] }
 0x2a5   :  { %2536 = vmatpush1.bf16.msra.mxu0 %v11035_v12  ;;  %2579 = vmatpush1.bf16.msra.mxu1 %v11037_v13  ;;  %v14892_v12 = vld [vmem:[#allocation41_spill] sm:$0xff]  ;;  %v14893_v13 = vld [vmem:[#allocation42_spill] sm:$0xff] }
 0x2a6   :  { %2537 = vmatprep.subr.bf16.mxu0 %v11041_v33  ;;  %2580 = vmatprep.subr.bf16.mxu1 %v11043_v34  ;;  %v14894_v33 = vld [vmem:[#allocation43_spill] sm:$0xff]  ;;  %v14895_v34 = vld [vmem:[#allocation44_spill] sm:$0xff] }
 0x2a9   :  { %2538 = vmatpush1.bf16.msra.mxu0 %v11059_v18  ;;  %2581 = vmatpush1.bf16.msra.mxu1 %v14859_v36  ;;  %v14896_v18 = vld [vmem:[#allocation45_spill] sm:$0xff]  ;;  %v14915_v36 = vld [vmem:[#allocation64_spill] sm:$0xff] }
 0x2aa   :  { %2539 = vmatprep.subr.bf16.mxu0 %v14860_v44  ;;  %2582 = vmatprep.subr.bf16.mxu1 %v14861_v16  ;;  %v14916_v44 = vld [vmem:[#allocation67_spill] sm:$0xff]  ;;  %v14917_v16 = vld [vmem:[#allocation65_spill] sm:$0xff] }
 0x2ad   :  { %2540 = vmatpush1.bf16.msra.mxu0 %v14862_v37  ;;  %2583 = vmatpush1.bf16.msra.mxu1 %v14863_v38  ;;  %v14918_v37 = vld [vmem:[#allocation66_spill] sm:$0xff]  ;;  %v14919_v38 = vld [vmem:[#allocation68_spill] sm:$0xff] }
 0x2ae   :  { %2541 = vmatprep.subr.bf16.mxu0 %v14864_v2  ;;  %2584 = vmatprep.subr.bf16.mxu1 %v14865_v3  ;;  %v14920_v2 = vld [vmem:[#allocation71_spill] sm:$0xff]  ;;  %v14921_v3 = vld [vmem:[#allocation69_spill] sm:$0xff] }
 0x2b1   :  { %2542 = vmatpush1.bf16.msra.mxu0 %v14866_v23  ;;  %2585 = vmatpush1.bf16.msra.mxu1 %v14867_v39  ;;  %v14922_v23 = vld [vmem:[#allocation70_spill] sm:$0xff]  ;;  %v14923_v39 = vld [vmem:[#allocation72_spill] sm:$0xff] }
 0x2b2   :  { %2543 = vmatprep.subr.bf16.mxu0 %v14868_v29  ;;  %2586 = vmatprep.subr.bf16.mxu1 %v14869_v20  ;;  %v14924_v29 = vld [vmem:[#allocation75_spill] sm:$0xff]  ;;  %v14925_v20 = vld [vmem:[#allocation73_spill] sm:$0xff] }
 0x2b5   :  { %2544 = vmatpush1.bf16.msra.mxu0 %v14870_v40  ;;  %2587 = vmatpush1.bf16.msra.mxu1 %v14871_v43  ;;  %v14926_v40 = vld [vmem:[#allocation74_spill] sm:$0xff]  ;;  %v14927_v43 = vld [vmem:[#allocation76_spill] sm:$0xff] }
 0x2b6   :  { %2545 = vmatprep.subr.bf16.mxu0 %v14872_v26  ;;  %2588 = vmatprep.subr.bf16.mxu1 %v14873_v30  ;;  %v14928_v26 = vld [vmem:[#allocation79_spill] sm:$0xff]  ;;  %v14929_v30 = vld [vmem:[#allocation77_spill] sm:$0xff] }
 0x2b9   :  { %2546 = vmatpush1.bf16.msra.mxu0 %v14874_v9  ;;  %2589 = vmatpush1.bf16.msra.mxu1 %v11157_v42  ;;  %v14897_v42 = vld [vmem:[#allocation46_spill] sm:$0xff] }
 0x2ba   :  { %2547 = vmatprep.subr.bf16.mxu0 %v14875_v14  ;;  %2590 = vmatprep.subr.bf16.mxu1 %v14876_v17  ;;  %v14930_v9 = vld [vmem:[#allocation78_spill] sm:$0xff]  ;;  %v14931_v14 = vld [vmem:[#allocation81_spill] sm:$0xff]  ;;  %v14932_v17 = vld [vmem:[#allocation83_spill] sm:$0xff] }
 0x2bd   :  { %2548 = vmatpush1.bf16.msra.mxu0 %v14877_v19  ;;  %2591 = vmatpush1.bf16.msra.mxu1 %v14878_v24  ;;  %v14933_v19 = vld [vmem:[#allocation80_spill] sm:$0xff]  ;;  %v14934_v24 = vld [vmem:[#allocation82_spill] sm:$0xff] }
 0x2be   :  { %2549 = vmatprep.subr.bf16.mxu0 %v14879_v27  ;;  %2592 = vmatprep.subr.bf16.mxu1 %v14880_v50  ;;  %v14935_v27 = vld [vmem:[#allocation84_spill] sm:$0xff]  ;;  %v14936_v50 = vld [vmem:[#allocation85_spill] sm:$0xff] }
 0x2c1   :  { %2550 = vmatpush1.bf16.msra.mxu0 %v14881_v53  ;;  %2593 = vmatpush1.bf16.msra.mxu1 %v14882_v4  ;;  %v14937_v53 = vld [vmem:[#allocation86_spill] sm:$0xff]  ;;  %v14938_v4 = vld [vmem:[#allocation87_spill] sm:$0xff] }
 0x2c2   :  { %3472 = vmatprep.subr.bf16.mxu0 %v14883_v5  ;;  %3515 = vmatprep.subr.bf16.mxu1 %v14884_v22  ;;  %v14939_v5 = vld [vmem:[#allocation88_spill] sm:$0xff]  ;;  %v14940_v22 = vld [vmem:[#allocation89_spill] sm:$0xff] }
 0x2c4   :  { %2552 = vmatmul.mubr.bf16.vlgmr.msra.gmra.mrb[36].mxu0 %v11603_v7  ;;  %2595 = vmatmul.mubr.bf16.vlgmr.msra.gmra.mrb[36].mxu1 %v11603_v7  ;;  %v14898_v7 = vld [vmem:[#allocation47_spill] sm:$0xff] }
 0x2c5   :  { %3473 = vmatpush1.bf16.msra.mxu0 %v14885_v31  ;;  %3516 = vmatpush1.bf16.msra.mxu1 %v14886_v47  ;;  %v14941_v31 = vld [vmem:[#allocation90_spill] sm:$0xff]  ;;  %v14942_v47 = vld [vmem:[#allocation91_spill] sm:$0xff] }
 0x2c6   :  { %3474 = vmatprep.subr.bf16.mxu0 %v14887_v54  ;;  %3517 = vmatprep.subr.bf16.mxu1 %v14888_v63  ;;  %v14943_v54 = vld [vmem:[#allocation92_spill] sm:$0xff]  ;;  %v14944_v63 = vld [vmem:[#allocation93_spill] sm:$0xff] }
 0x2c9   :  { %3475 = vmatpush1.bf16.msra.mxu0 %v14889_v15  ;;  %3518 = vmatpush1.bf16.msra.mxu1 %v14890_v57  ;;  %v2707_v15 = vld [vmem:[%s14393_s5 + $0x18] sm:$0xff] }
 0x2ca   :  { %3476 = vmatprep.subr.bf16.mxu0 %v14891_v46  ;;  %3519 = vmatprep.subr.bf16.mxu1 %v14892_v12  ;;  %v2711_v12 = vld [vmem:[%s14393_s5 + $0x38] sm:$0xff] }
 0x2cd   :  { %3477 = vmatpush1.bf16.msra.mxu0 %v14893_v13  ;;  %3520 = vmatpush1.bf16.msra.mxu1 %v14894_v33  ;;  %v11796_v13 = vcombine.low %v2707_v15, %v2711_v12  ;;  %v11798_v33 = vcombine.high %v2707_v15, %v2711_v12 }
 0x2ce   :  { %3478 = vmatprep.subr.bf16.mxu0 %v14895_v34  ;;  %3521 = vmatprep.subr.bf16.mxu1 %v14896_v18 }
 0x2d1   :  { %3479 = vmatpush1.bf16.msra.mxu0 %v14897_v42  ;;  %3522 = vmatpush1.bf16.msra.mxu1 %v14898_v7  ;;  %v14945_v42 = vld [vmem:[#allocation4_spill] sm:$0xff] }
 0x2d2   :  { %3480 = vmatprep.subr.bf16.mxu0 %v14899_v52  ;;  %3523 = vmatprep.subr.bf16.mxu1 %v14900_v48 }
 0x2d5   :  { %3481 = vmatpush1.bf16.msra.mxu0 %v14901_v21  ;;  %3524 = vmatpush1.bf16.msra.mxu1 %v14902_v10  ;;  %v14946_v21 = vld [vmem:[#allocation5_spill] sm:$0xff] }
 0x2d6   :  { %3482 = vmatprep.subr.bf16.mxu0 %v14903_v1  ;;  %3525 = vmatprep.subr.bf16.mxu1 %v14904_v41 }
 0x2d9   :  { %3483 = vmatpush1.bf16.msra.mxu0 %v14905_v60  ;;  %3526 = vmatpush1.bf16.msra.mxu1 %v14906_v11 }
 0x2da   :  { %3484 = vmatprep.subr.bf16.mxu0 %v14907_v55  ;;  %3527 = vmatprep.subr.bf16.mxu1 %v14908_v51 }
 0x2dd   :  { %3485 = vmatpush1.bf16.msra.mxu0 %v14909_v8  ;;  %3528 = vmatpush1.bf16.msra.mxu1 %v14910_v6 }
 0x2de   :  { %3486 = vmatprep.subr.bf16.mxu0 %v14911_v32  ;;  %3529 = vmatprep.subr.bf16.mxu1 %v14912_v49  ;;  %v14947_v32 = vld [vmem:[#allocation6_spill] sm:$0xff] }
 0x2e1   :  { %3487 = vmatpush1.bf16.msra.mxu0 %v14913_v56  ;;  %3530 = vmatpush1.bf16.msra.mxu1 %v14914_v61 }
 0x2e2   :  { %3488 = vmatprep.subr.bf16.mxu0 %v14915_v36  ;;  %3531 = vmatprep.subr.bf16.mxu1 %v14916_v44  ;;  %v14948_v44 = vld [vmem:[#allocation7_spill] sm:$0xff] }
 0x2e5   :  { %3489 = vmatpush1.bf16.msra.mxu0 %v14917_v16  ;;  %3532 = vmatpush1.bf16.msra.mxu1 %v14918_v37 }
 0x2e6   :  { %3490 = vmatprep.subr.bf16.mxu0 %v14919_v38  ;;  %3533 = vmatprep.subr.bf16.mxu1 %v14920_v2 }
 0x2e9   :  { %3491 = vmatpush1.bf16.msra.mxu0 %v14921_v3  ;;  %3534 = vmatpush1.bf16.msra.mxu1 %v14922_v23 }
 0x2ea   :  { %3492 = vmatprep.subr.bf16.mxu0 %v14923_v39  ;;  %3535 = vmatprep.subr.bf16.mxu1 %v14924_v29 }
 0x2ed   :  { %3493 = vmatpush1.bf16.msra.mxu0 %v14925_v20  ;;  %3536 = vmatpush1.bf16.msra.mxu1 %v14926_v40 }
 0x2ee   :  { %3494 = vmatprep.subr.bf16.mxu0 %v14927_v43  ;;  %3537 = vmatprep.subr.bf16.mxu1 %v14928_v26 }
 0x2f1   :  { %3495 = vmatpush1.bf16.msra.mxu0 %v14929_v30  ;;  %3538 = vmatpush1.bf16.msra.mxu1 %v14930_v9 }
 0x2f2   :  { %3496 = vmatprep.subr.bf16.mxu0 %v14931_v14  ;;  %3539 = vmatprep.subr.bf16.mxu1 %v14932_v17 }
 0x2f5   :  { %3497 = vmatpush1.bf16.msra.mxu0 %v14933_v19  ;;  %3540 = vmatpush1.bf16.msra.mxu1 %v14934_v24 }
 0x2f6   :  { %3498 = vmatprep.subr.bf16.mxu0 %v14935_v27  ;;  %3541 = vmatprep.subr.bf16.mxu1 %v14936_v50  ;;  %v14949_v27 = vld [vmem:[#allocation94_spill] sm:$0xff] }
 0x2f9   :  { %3499 = vmatpush1.bf16.msra.mxu0 %v11540_v0  ;;  %3542 = vmatpush1.bf16.msra.mxu1 %v11544_v58  ;;  %v2706_v0 = vld [vmem:[%s14393_s5 + $0x10] sm:$0xff] }
 0x2fa   :  { %3500 = vmatprep.subr.bf16.mxu0 %v14937_v53  ;;  %3543 = vmatprep.subr.bf16.mxu1 %v14938_v4  ;;  %v2710_v58 = vld [vmem:[%s14393_s5 + $0x30] sm:$0xff] }
 0x2fb   :  { %v11789_v57 = vcombine.low %v2706_v0, %v2710_v58  ;;  %v11791_v46 = vcombine.high %v2706_v0, %v2710_v58 }
 0x2fd   :  { %3501 = vmatpush1.bf16.msra.mxu0 %v14939_v5  ;;  %3544 = vmatpush1.bf16.msra.mxu1 %v14940_v22  ;;  %v14950_v22 = vld [vmem:[#allocation95_spill] sm:$0xff] }
 0x2fe   :  { %3502 = vmatprep.subr.bf16.mxu0 %v14941_v31  ;;  %3545 = vmatprep.subr.bf16.mxu1 %v14942_v47 }
 0x301   :  { %3503 = vmatpush1.bf16.msra.mxu0 %v14943_v54  ;;  %3546 = vmatpush1.bf16.msra.mxu1 %v14944_v63 }
 0x302   :  { %3558 = vmatprep.subr.bf16.mxu0 %v11791_v46  ;;  %3601 = vmatprep.subr.bf16.mxu1 %v11798_v33 }
 0x357   :  { %v2467_v34 = vpop.f32.mrb[8].mxu0  ;;  %v2510_v18 = vpop.f32.mrb[8].mxu1 }
 0x358   :  { %v9706_v7 = vadd.f32 %v2467_v34, %v14945_v42  ;;  %v2469_v52 = vpop.f32.mrb[9].mxu0  ;;  %v2512_v48 = vpop.f32.mrb[9].mxu1  ;;  %v9738_v16 = vadd.f32 %v2510_v18, %v14948_v44 }
 0x359   :  { %v9707_v10 = vadd.f32 %v2469_v52, %v14946_v21  ;;  %v2471_v1 = vpop.f32.mrb[10].mxu0  ;;  %v2514_v41 = vpop.f32.mrb[10].mxu1  ;;  %v9739_v49 = vadd.f32 %v2512_v48, %v14947_v32 }
 0x35a   :  { %v2621_v60 = vmul.f32 0.5, %v9706_v7  ;;  %v9708_v11 = vadd.f32 %v2471_v1, %v14945_v42  ;;  %v2473_v55 = vpop.f32.mrb[11].mxu0  ;;  %v2516_v51 = vpop.f32.mrb[11].mxu1  ;;  %v9740_v37 = vadd.f32 %v2514_v41, %v14948_v44  ;;  %v2623_v3 = vmul.f32 0.5, %v9738_v16 }
 0x35b   :  { %v2622_v8 = vmul.f32 0.5, %v9707_v10  ;;  %v9709_v6 = vadd.f32 %v2473_v55, %v14946_v21  ;;  %v9741_v36 = vadd.f32 %v2516_v51, %v14947_v32 }
 0x35c   :  { %9909 = vtanh.f32 %v2621_v60  ;;  %v2624_v56 = vmul.f32 0.5, %v9708_v11  ;;  %v2626_v39 = vmul.f32 0.5, %v9740_v37 }
 0x35d   :  { %v2625_v61 = vmul.f32 0.5, %v9709_v6  ;;  %9911 = vtanh.f32 %v2622_v8 }
 0x35e   :  { %9913 = vtanh.f32 %v2624_v56 }
 0x35f   :  { %9915 = vtanh.f32 %v9739_v49 }
 0x360   :  { %9917 = vtanh.f32 %v2625_v61 }
 0x361   :  { %9919 = vtanh.f32 %v9741_v36 }
 0x362   :  { %9921 = vtanh.f32 %v2623_v3 }
 0x363   :  { %9923 = vtanh.f32 %v2626_v39 }
 0x366   :  { %v9910_v38 = vpop.eup %9909 }
 0x367   :  { %v2633_v2 = vmul.f32 0.5, %v9910_v38  ;;  %v9912_v23 = vpop.eup %9911 }
 0x368   :  { %v9914_v29 = vpop.eup %9913  ;;  %v2634_v40 = vmul.f32 0.5, %v9912_v23  ;;  %v14951_v23 = vld [vmem:[#allocation99_spill] sm:$0xff] }
 0x369   :  { %v2639_v20 = vadd.f32 0.5, %v2633_v2  ;;  %v9916_v43 = vpop.eup %9915  ;;  %v2636_v26 = vmul.f32 0.5, %v9914_v29 }
 0x36a   :  { %v9918_v30 = vpop.eup %9917  ;;  %v2640_v9 = vadd.f32 0.5, %v2634_v40 }
 0x36b   :  { %v2649_v14 = vmul.f32 %v9916_v43, %v2639_v20  ;;  %v2642_v17 = vadd.f32 0.5, %v2636_v26  ;;  %v2637_v19 = vmul.f32 0.5, %v9918_v30  ;;  %v9920_v24 = vpop.eup %9919 }
 0x36c   :  { %v2647_v50 = vmul.f32 %v2640_v9, %v14949_v27  ;;  %v9922_v54 = vpop.eup %9921 }
 0x36d   :  { %v2643_v53 = vadd.f32 0.5, %v2637_v19  ;;  %v2650_v4 = vmul.f32 %v9920_v24, %v2642_v17  ;;  %v9924_v63 = vpop.eup %9923  ;;  %v2635_v0 = vmul.f32 0.5, %v9922_v54 }
 0x36e   :  { %v11811_v5 = vadd.f32 %v2649_v14, %v2647_v50  ;;  %v2638_v58 = vmul.f32 0.5, %v9924_v63 }
 0x36f   :  { %v2648_v31 = vmul.f32 %v2643_v53, %v14950_v22  ;;  %v2641_v12 = vadd.f32 0.5, %v2635_v0 }
 0x370   :  { %9925 = vtanh.f32 %v11811_v5  ;;  %v2644_v34 = vadd.f32 0.5, %v2638_v58 }
 0x371   :  { %v11815_v47 = vadd.f32 %v2650_v4, %v2648_v31 }
 0x373   :  { %9927 = vtanh.f32 %v11815_v47 }
 0x37a   :  { %v9926_v15 = vpop.eup %9925 }
 0x37b   :  { %v2655_v7 = vmul.f32 %v9926_v15, %v2641_v12 }
 0x37d   :  { %v9928_v18 = vpop.eup %9927 }
 0x37e   :  { %v2656_v52 = vmul.f32 %v9928_v18, %v2644_v34 }
 0x380   :  { %v11818_v48 = vpack.c.bf16 %v2656_v52, %v2655_v7 }
 0x397   :  { %v2553_v10 = vpop.f32.mrb[36].mxu0  ;;  %v2596_v1 = vpop.f32.mrb[36].mxu1 }
 0x398   :  { %v2657_v41 = vadd.f32 %v2553_v10, %v11610_v45  ;;  %v2555_v60 = vpop.f32.mrb[37].mxu0  ;;  %v2598_v11 = vpop.f32.mrb[37].mxu1  ;;  %v2659_v39 = vadd.f32 %v2596_v1, %v14951_v23 }
 0x399   :  { %v2658_v55 = vadd.f32 %v2555_v60, %v11614_v35  ;;  %v2557_v51 = vpop.f32.mrb[38].mxu0  ;;  %v2600_v8 = vpop.f32.mrb[38].mxu1  ;;  %v2660_v37 = vadd.f32 %v2598_v11, %v11619_v62 }
 0x39a   :  { %v2665_v6 = vmul.f32 0.5, %v2657_v41  ;;  %v2661_v49 = vadd.f32 %v2557_v51, %v11610_v45  ;;  %v2559_v56 = vpop.f32.mrb[39].mxu0  ;;  %v2602_v61 = vpop.f32.mrb[39].mxu1  ;;  %v2663_v29 = vadd.f32 %v2600_v8, %v14951_v23  ;;  %v2667_v43 = vmul.f32 0.5, %v2659_v39  ;;  %v2715_v51 = vld [vmem:[%s14393_s5 + $0x58] sm:$0xff] }
 0x39b   :  { %v2666_v36 = vmul.f32 0.5, %v2658_v55  ;;  %v2662_v16 = vadd.f32 %v2559_v56, %v11614_v35  ;;  %v2664_v3 = vadd.f32 %v2602_v61, %v11619_v62  ;;  %v2718_v55 = vld [vmem:[%s14393_s5 + $0x70] sm:$0xff]  ;;  %v2719_v8 = vld [vmem:[%s14393_s5 + $0x78] sm:$0xff] }
 0x39c   :  { %9929 = vtanh.f32 %v2665_v6  ;;  %v2668_v38 = vmul.f32 0.5, %v2661_v49  ;;  %v2670_v30 = vmul.f32 0.5, %v2663_v29  ;;  %v2722_v49 = vld [vmem:[%s14393_s5 + $0x90] sm:$0xff]  ;;  %v11857_v61 = vcombine.high %v2715_v51, %v2719_v8 }
 0x39d   :  { %v2669_v2 = vmul.f32 0.5, %v2662_v16  ;;  %9931 = vtanh.f32 %v2666_v36  ;;  %v2726_v36 = vld [vmem:[%s14393_s5 + $0xb0] sm:$0xff]  ;;  %v2723_v16 = vld [vmem:[%s14393_s5 + $0x98] sm:$0xff] }
 0x39e   :  { %9933 = vtanh.f32 %v2668_v38  ;;  %v2730_v29 = vld [vmem:[%s14393_s5 + $0xd0] sm:$0xff] }
 0x39f   :  { %9935 = vtanh.f32 %v2660_v37  ;;  %v2727_v37 = vld [vmem:[%s14393_s5 + $0xb8] sm:$0xff] }
 0x3a0   :  { %9937 = vtanh.f32 %v2669_v2  ;;  %v11874_v2 = vcombine.low %v2715_v51, %v2719_v8  ;;  %v11880_v39 = vcombine.high %v2723_v16, %v2727_v37  ;;  %v2766_v51 = vld [vmem:[%s14393_s5 + $0x1f0] sm:$0xff]  ;;  %v2763_v8 = vld [vmem:[%s14393_s5 + $0x1d8] sm:$0xff] }
 0x3a1   :  { %9939 = vtanh.f32 %v2664_v3  ;;  %v11878_v3 = vcombine.high %v2722_v49, %v2726_v36 }
 0x3a2   :  { %9941 = vtanh.f32 %v2667_v43  ;;  %v2735_v43 = vld [vmem:[%s14393_s5 + $0xf8] sm:$0xff] }
 0x3a3   :  { %9943 = vtanh.f32 %v2670_v30  ;;  %v11900_v30 = vcombine.low %v2723_v16, %v2727_v37 }
 0x3a6   :  { %v9930_v20 = vpop.eup %9929 }
 0x3a7   :  { %v2677_v40 = vmul.f32 0.5, %v9930_v20  ;;  %v9932_v26 = vpop.eup %9931  ;;  %v2734_v20 = vld [vmem:[%s14393_s5 + $0xf0] sm:$0xff] }
 0x3a8   :  { %v9934_v9 = vpop.eup %9933  ;;  %v2678_v17 = vmul.f32 0.5, %v9932_v26  ;;  %v11898_v26 = vcombine.low %v2722_v49, %v2726_v36  ;;  %v2767_v49 = vld [vmem:[%s14393_s5 + $0x1f8] sm:$0xff] }
 0x3a9   :  { %v2683_v14 = vadd.f32 0.5, %v2677_v40  ;;  %v9936_v19 = vpop.eup %9935  ;;  %v2680_v24 = vmul.f32 0.5, %v9934_v9  ;;  %v2731_v40 = vld [vmem:[%s14393_s5 + $0xd8] sm:$0xff]  ;;  %v11904_v9 = vcombine.high %v2730_v29, %v2734_v20 }
 0x3aa   :  { %v9938_v27 = vpop.eup %9937  ;;  %v2684_v50 = vadd.f32 0.5, %v2678_v17  ;;  %v2738_v17 = vld [vmem:[%s14393_s5 + $0x110] sm:$0xff] }
 0x3ab   :  { %v2693_v53 = vmul.f32 %v9936_v19, %v2683_v14  ;;  %v2686_v4 = vadd.f32 0.5, %v2680_v24  ;;  %v2681_v22 = vmul.f32 0.5, %v9938_v27  ;;  %v9940_v31 = vpop.eup %9939  ;;  %v11906_v14 = vcombine.high %v2731_v40, %v2735_v43  ;;  %v2742_v19 = vld [vmem:[%s14393_s5 + $0x130] sm:$0xff]  ;;  %v2739_v24 = vld [vmem:[%s14393_s5 + $0x118] sm:$0xff] }
 0x3ac   :  { %v2691_v54 = vmul.f32 %v2684_v50, %v11638_v25  ;;  %v9942_v34 = vpop.eup %9941  ;;  %v2743_v27 = vld [vmem:[%s14393_s5 + $0x138] sm:$0xff]  ;;  %v11922_v50 = vcombine.low %v2730_v29, %v2734_v20  ;;  %v12002_v29 = vcombine.high %v2763_v8, %v2767_v49  ;;  %v2770_v20 = vld [vmem:[%s14393_s5 + $0x210] sm:$0xff] }
 0x3ad   :  { %v2687_v63 = vadd.f32 0.5, %v2681_v22  ;;  %v2694_v0 = vmul.f32 %v9940_v31, %v2686_v4  ;;  %v9944_v18 = vpop.eup %9943  ;;  %v2679_v7 = vmul.f32 0.5, %v9942_v34  ;;  %v11928_v4 = vcombine.high %v2738_v17, %v2742_v19  ;;  %v2746_v31 = vld [vmem:[%s14393_s5 + $0x150] sm:$0xff] }
 0x3ae   :  { %v11829_v58 = vadd.f32 %v2693_v53, %v2691_v54  ;;  %v2682_v52 = vmul.f32 0.5, %v9944_v18  ;;  %v11924_v53 = vcombine.low %v2731_v40, %v2735_v43  ;;  %v11930_v22 = vcombine.high %v2739_v24, %v2743_v27  ;;  %v2750_v54 = vld [vmem:[%s14393_s5 + $0x170] sm:$0xff]  ;;  %v2771_v43 = vld [vmem:[%s14393_s5 + $0x218] sm:$0xff] }
 0x3af   :  { %v2692_v15 = vmul.f32 %v2687_v63, %v11641_v28  ;;  %v2685_v1 = vadd.f32 0.5, %v2679_v7  ;;  %v2714_v28 = vld [vmem:[%s14393_s5 + $0x50] sm:$0xff]  ;;  %v2747_v63 = vld [vmem:[%s14393_s5 + $0x158] sm:$0xff]  ;;  %v11948_v34 = vcombine.low %v2739_v24, %v2743_v27  ;;  %v11952_v18 = vcombine.high %v2746_v31, %v2750_v54 }
 0x3b0   :  { %9945 = vtanh.f32 %v11829_v58  ;;  %v2688_v41 = vadd.f32 0.5, %v2682_v52  ;;  %v11855_v56 = vcombine.high %v2714_v28, %v2718_v55  ;;  %v11872_v38 = vcombine.low %v2714_v28, %v2718_v55  ;;  %v2754_v52 = vld [vmem:[%s14393_s5 + $0x190] sm:$0xff] }
 0x3b1   :  { %v11833_v12 = vadd.f32 %v2694_v0, %v2692_v15  ;;  %v2751_v0 = vld [vmem:[%s14393_s5 + $0x178] sm:$0xff]  ;;  %v11946_v15 = vcombine.low %v2738_v17, %v2742_v19  ;;  %v2762_v55 = vld [vmem:[%s14393_s5 + $0x1d0] sm:$0xff]  ;;  %v12020_v24 = vcombine.low %v2763_v8, %v2767_v49 }
 0x3b2   :  { %v11954_v7 = vcombine.high %v2747_v63, %v2751_v0  ;;  %v12000_v37 = vcombine.high %v2762_v55, %v2766_v51  ;;  %v2774_v40 = vld [vmem:[%s14393_s5 + $0x230] sm:$0xff]  ;;  %v2775_v17 = vld [vmem:[%s14393_s5 + $0x238] sm:$0xff]  ;;  %v12018_v19 = vcombine.low %v2762_v55, %v2766_v51 }
 0x3b3   :  { %9947 = vtanh.f32 %v11833_v12  ;;  %v12024_v27 = vcombine.high %v2770_v20, %v2774_v40  ;;  %v2786_v51 = vld [vmem:[%s14393_s5 + $0x290] sm:$0xff]  ;;  %v2787_v49 = vld [vmem:[%s14393_s5 + $0x298] sm:$0xff] }
 0x3b4   :  { %v2790_v8 = vld [vmem:[%s14393_s5 + $0x2b0] sm:$0xff] }
 0x3ba   :  { %v9946_v10 = vpop.eup %9945 }
 0x3bb   :  { %v2699_v60 = vmul.f32 %v9946_v10, %v2685_v1  ;;  %v2758_v10 = vld [vmem:[%s14393_s5 + $0x1b0] sm:$0xff]  ;;  %v2755_v1 = vld [vmem:[%s14393_s5 + $0x198] sm:$0xff] }
 0x3bc   :  { %v11994_v36 = vcombine.low %v2754_v52, %v2758_v10 }
 0x3bd   :  { %v9948_v25 = vpop.eup %9947 }
 0x3be   :  { %v2700_v11 = vmul.f32 %v9948_v25, %v2688_v41  ;;  %v2759_v41 = vld [vmem:[%s14393_s5 + $0x1b8] sm:$0xff]  ;;  %v11970_v25 = vcombine.low %v2746_v31, %v2750_v54  ;;  %v12026_v31 = vcombine.high %v2771_v43, %v2775_v17  ;;  %v2778_v54 = vld [vmem:[%s14393_s5 + $0x250] sm:$0xff] }
 0x3bf   :  { %v11978_v28 = vcombine.high %v2755_v1, %v2759_v41  ;;  %v11996_v16 = vcombine.low %v2755_v1, %v2759_v41  ;;  %v12044_v1 = vcombine.low %v2771_v43, %v2775_v17  ;;  %v12072_v17 = vcombine.high %v2786_v51, %v2790_v8 }
 0x3c0   :  { %v11848_v6 = vpack.c.bf16 %v2700_v11, %v2699_v60  ;;  %v11972_v60 = vcombine.low %v2747_v63, %v2751_v0  ;;  %v11976_v11 = vcombine.high %v2754_v52, %v2758_v10  ;;  %v2782_v63 = vld [vmem:[%s14393_s5 + $0x270] sm:$0xff]  ;;  %v2779_v0 = vld [vmem:[%s14393_s5 + $0x258] sm:$0xff]  ;;  %v12042_v10 = vcombine.low %v2770_v20, %v2774_v40 }
 0x3c1   :  { %v2783_v52 = vld [vmem:[%s14393_s5 + $0x278] sm:$0xff]  ;;  %14954 = vst [vmem:[#allocation10_spill] sm:$0xff] %v12044_v1  ;;  %v12048_v41 = vcombine.high %v2778_v54, %v2782_v63  ;;  %v12066_v40 = vcombine.low %v2778_v54, %v2782_v63  ;;  %14959 = vst [vmem:[#allocation15_spill] sm:$0xff] %v12072_v17 }
 0x3c2   :  { %14952 = vst [vmem:[#allocation8_spill] sm:$0xff] %v11848_v6  ;;  %3504 = vmatprep.mubr.bf16.mxu0 %v11848_v6  ;;  %3547 = vmatprep.mubr.bf16.mxu1 %v11848_v6  ;;  %14953 = vst [vmem:[#allocation9_spill] sm:$0xff] %v12042_v10  ;;  %v12050_v55 = vcombine.high %v2779_v0, %v2783_v52  ;;  %v2791_v20 = vld [vmem:[%s14393_s5 + $0x2b8] sm:$0xff]  ;;  %v12068_v43 = vcombine.low %v2779_v0, %v2783_v52 }
 0x3c3   :  { %3505 = vmatmul.mubr.bf16.vlgmr.msra.gmra.mrb[12].mxu0 %v11818_v48  ;;  %3548 = vmatmul.mubr.bf16.vlgmr.msra.gmra.mrb[12].mxu1 %v11818_v48  ;;  %14955 = vst [vmem:[#allocation11_spill] sm:$0xff] %v12048_v41  ;;  %14957 = vst [vmem:[#allocation13_spill] sm:$0xff] %v12066_v40  ;;  %v2795_v54 = vld [vmem:[%s14393_s5 + $0x2d8] sm:$0xff]  ;;  %v12090_v0 = vcombine.low %v2786_v51, %v2790_v8  ;;  %v12092_v52 = vcombine.low %v2787_v49, %v2791_v20 }
 0x3c4   :  { %3559 = vmatpush1.bf16.msra.mxu0 %v11789_v57  ;;  %3602 = vmatpush1.bf16.msra.mxu1 %v11796_v13  ;;  %14956 = vst [vmem:[#allocation12_spill] sm:$0xff] %v12050_v55  ;;  %14958 = vst [vmem:[#allocation14_spill] sm:$0xff] %v12068_v43  ;;  %v2799_v63 = vld [vmem:[%s14393_s5 + $0x2f8] sm:$0xff] }
 0x3c5   :  { %3590 = vmatprep.mubr.bf16.mxu0 %v11848_v6  ;;  %3633 = vmatprep.mubr.bf16.mxu1 %v11848_v6  ;;  %v12074_v6 = vcombine.high %v2787_v49, %v2791_v20  ;;  %14961 = vst [vmem:[#allocation17_spill] sm:$0xff] %v12090_v0  ;;  %14962 = vst [vmem:[#allocation18_spill] sm:$0xff] %v12092_v52  ;;  %v2803_v51 = vld [vmem:[%s14393_s5 + $0x318] sm:$0xff]  ;;  %v12116_v20 = vcombine.low %v2795_v54, %v2799_v63 }
 0x3c6   :  { %3560 = vmatprep.subr.bf16.mxu0 %v11855_v56  ;;  %3603 = vmatprep.subr.bf16.mxu1 %v11857_v61  ;;  %v2807_v8 = vld [vmem:[%s14393_s5 + $0x338] sm:$0xff] }
 0x3c7   :  { %14960 = vst [vmem:[#allocation16_spill] sm:$0xff] %v12074_v6  ;;  %14966 = vst [vmem:[#allocation22_spill] sm:$0xff] %v12116_v20 }
 0x3c8   :  { %3561 = vmatpush1.bf16.msra.mxu0 %v11872_v38  ;;  %3604 = vmatpush1.bf16.msra.mxu1 %v11874_v2 }
 0x3c9   :  { %3562 = vmatprep.subr.bf16.mxu0 %v11878_v3  ;;  %3605 = vmatprep.subr.bf16.mxu1 %v11880_v39 }
 0x3cc   :  { %3563 = vmatpush1.bf16.msra.mxu0 %v11898_v26  ;;  %3606 = vmatpush1.bf16.msra.mxu1 %v11900_v30 }
 0x3cd   :  { %3564 = vmatprep.subr.bf16.mxu0 %v11904_v9  ;;  %3607 = vmatprep.subr.bf16.mxu1 %v11906_v14 }
 0x3d0   :  { %3565 = vmatpush1.bf16.msra.mxu0 %v11922_v50  ;;  %3608 = vmatpush1.bf16.msra.mxu1 %v11924_v53 }
 0x3d1   :  { %3566 = vmatprep.subr.bf16.mxu0 %v11928_v4  ;;  %3609 = vmatprep.subr.bf16.mxu1 %v11930_v22 }
 0x3d4   :  { %3567 = vmatpush1.bf16.msra.mxu0 %v11946_v15  ;;  %3610 = vmatpush1.bf16.msra.mxu1 %v11948_v34 }
 0x3d5   :  { %3568 = vmatprep.subr.bf16.mxu0 %v11952_v18  ;;  %3611 = vmatprep.subr.bf16.mxu1 %v11954_v7 }
 0x3d8   :  { %3569 = vmatpush1.bf16.msra.mxu0 %v11970_v25  ;;  %3612 = vmatpush1.bf16.msra.mxu1 %v11972_v60 }
 0x3d9   :  { %3570 = vmatprep.subr.bf16.mxu0 %v11976_v11  ;;  %3613 = vmatprep.subr.bf16.mxu1 %v11978_v28 }
 0x3dc   :  { %3571 = vmatpush1.bf16.msra.mxu0 %v11994_v36  ;;  %3614 = vmatpush1.bf16.msra.mxu1 %v11996_v16 }
 0x3dd   :  { %3572 = vmatprep.subr.bf16.mxu0 %v12000_v37  ;;  %3615 = vmatprep.subr.bf16.mxu1 %v12002_v29 }
 0x3e0   :  { %3573 = vmatpush1.bf16.msra.mxu0 %v12018_v19  ;;  %3616 = vmatpush1.bf16.msra.mxu1 %v12020_v24 }
 0x3e1   :  { %3574 = vmatprep.subr.bf16.mxu0 %v12024_v27  ;;  %3617 = vmatprep.subr.bf16.mxu1 %v12026_v31 }
 0x3e4   :  { %3575 = vmatpush1.bf16.msra.mxu0 %v12042_v10  ;;  %3618 = vmatpush1.bf16.msra.mxu1 %v12044_v1  ;;  %v2798_v1 = vld [vmem:[%s14393_s5 + $0x2f0] sm:$0xff] }
 0x3e5   :  { %3576 = vmatprep.subr.bf16.mxu0 %v12048_v41  ;;  %3619 = vmatprep.subr.bf16.mxu1 %v12050_v55  ;;  %v12096_v55 = vcombine.high %v2794_v59, %v2798_v1  ;;  %v12098_v41 = vcombine.high %v2795_v54, %v2799_v63  ;;  %v2802_v10 = vld [vmem:[%s14393_s5 + $0x310] sm:$0xff]  ;;  %v12114_v49 = vcombine.low %v2794_v59, %v2798_v1  ;;  %v2811_v59 = vld [vmem:[%s14393_s5 + $0x358] sm:$0xff] }
 0x3e6   :  { %v2815_v1 = vld [vmem:[%s14393_s5 + $0x378] sm:$0xff]  ;;  %v12140_v63 = vcombine.low %v2803_v51, %v2807_v8 }
 0x3e7   :  { %14963 = vst [vmem:[#allocation19_spill] sm:$0xff] %v12096_v55  ;;  %14964 = vst [vmem:[#allocation20_spill] sm:$0xff] %v12098_v41 }
 0x3e8   :  { %3577 = vmatpush1.bf16.msra.mxu0 %v12066_v40  ;;  %3620 = vmatpush1.bf16.msra.mxu1 %v12068_v43  ;;  %v2806_v43 = vld [vmem:[%s14393_s5 + $0x330] sm:$0xff]  ;;  %14965 = vst [vmem:[#allocation21_spill] sm:$0xff] %v12114_v49  ;;  %14970 = vst [vmem:[#allocation26_spill] sm:$0xff] %v12140_v63 }
 0x3e9   :  { %3578 = vmatprep.subr.bf16.mxu0 %v12072_v17  ;;  %3621 = vmatprep.subr.bf16.mxu1 %v12074_v6  ;;  %v12120_v6 = vcombine.high %v2802_v10, %v2806_v43  ;;  %v12122_v17 = vcombine.high %v2803_v51, %v2807_v8  ;;  %v2810_v40 = vld [vmem:[%s14393_s5 + $0x350] sm:$0xff]  ;;  %v12138_v54 = vcombine.low %v2802_v10, %v2806_v43  ;;  %v2819_v10 = vld [vmem:[%s14393_s5 + $0x398] sm:$0xff] }
 0x3ea   :  { %v2823_v43 = vld [vmem:[%s14393_s5 + $0x3b8] sm:$0xff]  ;;  %v12164_v8 = vcombine.low %v2811_v59, %v2815_v1 }
 0x3eb   :  { %14967 = vst [vmem:[#allocation23_spill] sm:$0xff] %v12120_v6  ;;  %14968 = vst [vmem:[#allocation24_spill] sm:$0xff] %v12122_v17 }
 0x3ec   :  { %3579 = vmatpush1.bf16.msra.mxu0 %v12090_v0  ;;  %3622 = vmatpush1.bf16.msra.mxu1 %v12092_v52  ;;  %v2814_v52 = vld [vmem:[%s14393_s5 + $0x370] sm:$0xff]  ;;  %14969 = vst [vmem:[#allocation25_spill] sm:$0xff] %v12138_v54 }
 0x3ed   :  { %3580 = vmatprep.subr.bf16.mxu0 %v12096_v55  ;;  %3623 = vmatprep.subr.bf16.mxu1 %v12098_v41  ;;  %v12144_v41 = vcombine.high %v2810_v40, %v2814_v52  ;;  %v12146_v55 = vcombine.high %v2811_v59, %v2815_v1  ;;  %v2818_v0 = vld [vmem:[%s14393_s5 + $0x390] sm:$0xff]  ;;  %v12162_v51 = vcombine.low %v2810_v40, %v2814_v52  ;;  %v2827_v40 = vld [vmem:[%s14393_s5 + $0x3d8] sm:$0xff] }
 0x3ee   :  { %v2831_v52 = vld [vmem:[%s14393_s5 + $0x3f8] sm:$0xff]  ;;  %v12188_v1 = vcombine.low %v2819_v10, %v2823_v43 }
 0x3ef   :  { %14971 = vst [vmem:[#allocation27_spill] sm:$0xff] %v12144_v41  ;;  %14972 = vst [vmem:[#allocation28_spill] sm:$0xff] %v12146_v55 }
 0x3f0   :  { %3581 = vmatpush1.bf16.msra.mxu0 %v12114_v49  ;;  %3624 = vmatpush1.bf16.msra.mxu1 %v12116_v20  ;;  %v2822_v20 = vld [vmem:[%s14393_s5 + $0x3b0] sm:$0xff]  ;;  %14973 = vst [vmem:[#allocation29_spill] sm:$0xff] %v12162_v51  ;;  %14977 = vst [vmem:[#allocation35_spill] sm:$0xff] %v12188_v1 }
 0x3f1   :  { %3582 = vmatprep.subr.bf16.mxu0 %v12120_v6  ;;  %3625 = vmatprep.subr.bf16.mxu1 %v12122_v17  ;;  %v12168_v17 = vcombine.high %v2818_v0, %v2822_v20  ;;  %v12170_v6 = vcombine.high %v2819_v10, %v2823_v43  ;;  %v2826_v49 = vld [vmem:[%s14393_s5 + $0x3d0] sm:$0xff]  ;;  %v12186_v59 = vcombine.low %v2818_v0, %v2822_v20  ;;  %v3743_v0 = vld [vmem:[%s14393_s5] sm:$0xff]  ;;  %v3744_v20 = vld [vmem:[%s14393_s5 + $0x8] sm:$0xff] }
 0x3f2   :  { %v3751_v43 = vld [vmem:[%s14393_s5 + $0x40] sm:$0xff] }
 0x3f3   :  { %14974 = vst [vmem:[#allocation30_spill] sm:$0xff] %v12168_v17  ;;  %14975 = vst [vmem:[#allocation31_spill] sm:$0xff] %v12170_v6 }
 0x3f4   :  { %3583 = vmatpush1.bf16.msra.mxu0 %v12138_v54  ;;  %3626 = vmatpush1.bf16.msra.mxu1 %v12140_v63  ;;  %v2830_v63 = vld [vmem:[%s14393_s5 + $0x3f0] sm:$0xff]  ;;  %14976 = vst [vmem:[#allocation33_spill] sm:$0xff] %v12186_v59 }
 0x3f5   :  { %3584 = vmatprep.subr.bf16.mxu0 %v12144_v41  ;;  %3627 = vmatprep.subr.bf16.mxu1 %v12146_v55  ;;  %v12192_v55 = vcombine.high %v2826_v49, %v2830_v63  ;;  %v12194_v41 = vcombine.high %v2827_v40, %v2831_v52  ;;  %v12198_v54 = vcombine.low %v2826_v49, %v2830_v63  ;;  %v3747_v49 = vld [vmem:[%s14393_s5 + $0x20] sm:$0xff] }
 0x3f6   :  { %v12217_v63 = vcombine.low %v3743_v0, %v3747_v49  ;;  %v12219_v10 = vcombine.high %v3743_v0, %v3747_v49  ;;  %v3752_v0 = vld [vmem:[%s14393_s5 + $0x48] sm:$0xff] }
 0x3f7   :  { %14978 = vst [vmem:[#allocation32_spill] sm:$0xff] %v12192_v55  ;;  %14979 = vst [vmem:[#allocation34_spill] sm:$0xff] %v12194_v41  ;;  %v3756_v49 = vld [vmem:[%s14393_s5 + $0x68] sm:$0xff] }
 0x3f8   :  { %3585 = vmatpush1.bf16.msra.mxu0 %v12162_v51  ;;  %3628 = vmatpush1.bf16.msra.mxu1 %v12164_v8  ;;  %14980 = vst [vmem:[#allocation36_spill] sm:$0xff] %v12198_v54  ;;  %v12200_v51 = vcombine.low %v2827_v40, %v2831_v52  ;;  %14982 = vst [vmem:[#allocation38_spill] sm:$0xff] %v12217_v63  ;;  %v3755_v40 = vld [vmem:[%s14393_s5 + $0x60] sm:$0xff] }
 0x3f9   :  { %3586 = vmatprep.subr.bf16.mxu0 %v12168_v17  ;;  %3629 = vmatprep.subr.bf16.mxu1 %v12170_v6  ;;  %14983 = vst [vmem:[#allocation39_spill] sm:$0xff] %v12219_v10 }
 0x3fa   :  { %14981 = vst [vmem:[#allocation37_spill] sm:$0xff] %v12200_v51 }
 0x3fc   :  { %3587 = vmatpush1.bf16.msra.mxu0 %v12186_v59  ;;  %3630 = vmatpush1.bf16.msra.mxu1 %v12188_v1  ;;  %v3764_v1 = vld [vmem:[%s14393_s5 + $0xa8] sm:$0xff]  ;;  %v12259_v59 = vcombine.low %v3751_v43, %v3755_v40 }
 0x3fd   :  { %3588 = vmatprep.subr.bf16.mxu0 %v12192_v55  ;;  %3631 = vmatprep.subr.bf16.mxu1 %v12194_v41  ;;  %v3759_v41 = vld [vmem:[%s14393_s5 + $0x80] sm:$0xff]  ;;  %v12246_v55 = vcombine.high %v3752_v0, %v3756_v49 }
 0x3fe   :  { %14988 = vst [vmem:[#allocation44_spill] sm:$0xff] %v12259_v59 }
 0x3ff   :  { %14987 = vst [vmem:[#allocation43_spill] sm:$0xff] %v12246_v55 }
 0x400   :  { %3589 = vmatpush1.bf16.msra.mxu0 %v12198_v54  ;;  %3632 = vmatpush1.bf16.msra.mxu1 %v12200_v51  ;;  %v12234_v54 = vcombine.high %v3751_v43, %v3755_v40  ;;  %v3771_v43 = vld [vmem:[%s14393_s5 + $0xe0] sm:$0xff]  ;;  %v3768_v40 = vld [vmem:[%s14393_s5 + $0xc8] sm:$0xff] }
 0x401   :  { %4511 = vmatprep.subr.bf16.mxu0 %v12219_v10  ;;  %v12263_v10 = vcombine.low %v3752_v0, %v3756_v49  ;;  %v3772_v0 = vld [vmem:[%s14393_s5 + $0xe8] sm:$0xff] }
 0x402   :  { %14986 = vst [vmem:[#allocation42_spill] sm:$0xff] %v12234_v54 }
 0x403   :  { %3591 = vmatmul.mubr.bf16.vlgmr.msra.gmra.mrb[40].mxu0 %v11818_v48  ;;  %3634 = vmatmul.mubr.bf16.vlgmr.msra.gmra.mrb[40].mxu1 %v11818_v48  ;;  %v3748_v48 = vld [vmem:[%s14393_s5 + $0x28] sm:$0xff]  ;;  %14989 = vst [vmem:[#allocation45_spill] sm:$0xff] %v12263_v10 }
 0x404   :  { %v12230_v52 = vcombine.low %v3744_v20, %v3748_v48  ;;  %v12232_v51 = vcombine.high %v3744_v20, %v3748_v48  ;;  %v3763_v20 = vld [vmem:[%s14393_s5 + $0xa0] sm:$0xff]  ;;  %v3760_v48 = vld [vmem:[%s14393_s5 + $0x88] sm:$0xff]  ;;  %4512 = vmatpush1.bf16.msra.mxu0 %v12217_v63 }
 0x405   :  { %4513 = vmatprep.subr.bf16.mxu0 %v12234_v54  ;;  %v12265_v6 = vcombine.high %v3759_v41, %v3763_v20  ;;  %v12268_v17 = vcombine.high %v3760_v48, %v3764_v1  ;;  %v12283_v49 = vcombine.low %v3759_v41, %v3763_v20  ;;  %v3775_v63 = vld [vmem:[%s14393_s5 + $0x100] sm:$0xff]  ;;  %v3776_v20 = vld [vmem:[%s14393_s5 + $0x108] sm:$0xff] }
 0x406   :  { %14984 = vst [vmem:[#allocation40_spill] sm:$0xff] %v12230_v52  ;;  %14985 = vst [vmem:[#allocation41_spill] sm:$0xff] %v12232_v51  ;;  %4554 = vmatprep.subr.bf16.mxu1 %v12232_v51  ;;  %v3767_v51 = vld [vmem:[%s14393_s5 + $0xc0] sm:$0xff] }
 0x407   :  { %4555 = vmatpush1.bf16.msra.mxu1 %v12230_v52  ;;  %14990 = vst [vmem:[#allocation46_spill] sm:$0xff] %v12265_v6  ;;  %14991 = vst [vmem:[#allocation47_spill] sm:$0xff] %v12268_v17  ;;  %v12289_v54 = vcombine.high %v3767_v51, %v3771_v43  ;;  %v12292_v52 = vcombine.high %v3768_v40, %v3772_v0  ;;  %v3779_v41 = vld [vmem:[%s14393_s5 + $0x120] sm:$0xff] }
 0x408   :  { %4556 = vmatprep.subr.bf16.mxu1 %v12246_v55  ;;  %4514 = vmatpush1.bf16.msra.mxu0 %v12259_v59  ;;  %14992 = vst [vmem:[#allocation48_spill] sm:$0xff] %v12283_v49  ;;  %v12287_v55 = vcombine.low %v3760_v48, %v3764_v1  ;;  %v3780_v1 = vld [vmem:[%s14393_s5 + $0x128] sm:$0xff]  ;;  %v12307_v48 = vcombine.low %v3767_v51, %v3771_v43  ;;  %v3783_v59 = vld [vmem:[%s14393_s5 + $0x140] sm:$0xff] }
 0x409   :  { %4515 = vmatprep.subr.bf16.mxu0 %v12265_v6  ;;  %14994 = vst [vmem:[#allocation50_spill] sm:$0xff] %v12289_v54  ;;  %14995 = vst [vmem:[#allocation51_spill] sm:$0xff] %v12292_v52  ;;  %v12313_v6 = vcombine.high %v3775_v63, %v3779_v41  ;;  %v3787_v51 = vld [vmem:[%s14393_s5 + $0x160] sm:$0xff]  ;;  %v3784_v43 = vld [vmem:[%s14393_s5 + $0x148] sm:$0xff] }
 0x40a   :  { %14993 = vst [vmem:[#allocation49_spill] sm:$0xff] %v12287_v55  ;;  %14996 = vst [vmem:[#allocation52_spill] sm:$0xff] %v12307_v48 }
 0x40b   :  { %4557 = vmatpush1.bf16.msra.mxu1 %v12263_v10  ;;  %14998 = vst [vmem:[#allocation54_spill] sm:$0xff] %v12313_v6  ;;  %v12316_v10 = vcombine.high %v3776_v20, %v3780_v1 }
 0x40c   :  { %4558 = vmatprep.subr.bf16.mxu1 %v12268_v17  ;;  %4516 = vmatpush1.bf16.msra.mxu0 %v12283_v49  ;;  %v12311_v17 = vcombine.low %v3768_v40, %v3772_v0  ;;  %v3788_v40 = vld [vmem:[%s14393_s5 + $0x168] sm:$0xff]  ;;  %v12331_v0 = vcombine.low %v3775_v63, %v3779_v41  ;;  %v12343_v49 = vcombine.low %v3783_v59, %v3787_v51  ;;  %v3791_v41 = vld [vmem:[%s14393_s5 + $0x180] sm:$0xff] }
 0x40d   :  { %4517 = vmatprep.subr.bf16.mxu0 %v12289_v54  ;;  %14999 = vst [vmem:[#allocation55_spill] sm:$0xff] %v12316_v10  ;;  %v12337_v54 = vcombine.high %v3783_v59, %v3787_v51  ;;  %v12347_v63 = vcombine.low %v3784_v43, %v3788_v40  ;;  %v3795_v59 = vld [vmem:[%s14393_s5 + $0x1a0] sm:$0xff]  ;;  %v3796_v51 = vld [vmem:[%s14393_s5 + $0x1a8] sm:$0xff] }
 0x40e   :  { %14997 = vst [vmem:[#allocation53_spill] sm:$0xff] %v12311_v17  ;;  %15000 = vst [vmem:[#allocation56_spill] sm:$0xff] %v12331_v0 }
 0x40f   :  { %4559 = vmatpush1.bf16.msra.mxu1 %v12287_v55  ;;  %15002 = vst [vmem:[#allocation57_spill] sm:$0xff] %v12337_v54  ;;  %v12340_v55 = vcombine.high %v3784_v43, %v3788_v40  ;;  %15004 = vst [vmem:[#allocation60_spill] sm:$0xff] %v12343_v49  ;;  %v12366_v43 = vcombine.low %v3791_v41, %v3795_v59 }
 0x410   :  { %4560 = vmatprep.subr.bf16.mxu1 %v12292_v52  ;;  %4518 = vmatpush1.bf16.msra.mxu0 %v12307_v48  ;;  %v12335_v52 = vcombine.low %v3776_v20, %v3780_v1  ;;  %15005 = vst [vmem:[#allocation63_spill] sm:$0xff] %v12347_v63  ;;  %v3792_v20 = vld [vmem:[%s14393_s5 + $0x188] sm:$0xff]  ;;  %v12361_v1 = vcombine.high %v3791_v41, %v3795_v59  ;;  %v3803_v41 = vld [vmem:[%s14393_s5 + $0x1e0] sm:$0xff] }
 0x411   :  { %4519 = vmatprep.subr.bf16.mxu0 %v12313_v6  ;;  %15003 = vst [vmem:[#allocation58_spill] sm:$0xff] %v12340_v55  ;;  %15007 = vst [vmem:[#allocation62_spill] sm:$0xff] %v12366_v43  ;;  %v12368_v40 = vcombine.low %v3792_v20, %v3796_v51  ;;  %v3800_v59 = vld [vmem:[%s14393_s5 + $0x1c8] sm:$0xff] }
 0x412   :  { %15001 = vst [vmem:[#allocation59_spill] sm:$0xff] %v12335_v52  ;;  %15006 = vst [vmem:[#allocation61_spill] sm:$0xff] %v12361_v1 }
 0x413   :  { %4561 = vmatpush1.bf16.msra.mxu1 %v12311_v17  ;;  %15008 = vst [vmem:[#allocation64_spill] sm:$0xff] %v12368_v40 }
 0x414   :  { %4562 = vmatprep.subr.bf16.mxu1 %v12316_v10  ;;  %4520 = vmatpush1.bf16.msra.mxu0 %v12331_v0  ;;  %v3860_v10 = vld [vmem:[%s14393_s5 + $0x3a8] sm:$0xff] }
 0x415   :  { %4521 = vmatprep.subr.bf16.mxu0 %v12337_v54 }
 0x417   :  { %4563 = vmatpush1.bf16.msra.mxu1 %v12335_v52  ;;  %v3855_v52 = vld [vmem:[%s14393_s5 + $0x380] sm:$0xff] }
 0x418   :  { %4564 = vmatprep.subr.bf16.mxu1 %v12340_v55  ;;  %4522 = vmatpush1.bf16.msra.mxu0 %v12343_v49  ;;  %v3799_v49 = vld [vmem:[%s14393_s5 + $0x1c0] sm:$0xff] }
 0x419   :  { %4523 = vmatprep.subr.bf16.mxu0 %v12361_v1  ;;  %v3807_v1 = vld [vmem:[%s14393_s5 + $0x200] sm:$0xff] }
 0x41a   :  { %v3811_v55 = vld [vmem:[%s14393_s5 + $0x220] sm:$0xff] }
 0x41b   :  { %4565 = vmatpush1.bf16.msra.mxu1 %v12347_v63  ;;  %v12370_v63 = vcombine.high %v3792_v20, %v3796_v51  ;;  %v12385_v20 = vcombine.high %v3799_v49, %v3803_v41  ;;  %v3804_v51 = vld [vmem:[%s14393_s5 + $0x1e8] sm:$0xff] }
 0x41c   :  { %4524 = vmatpush1.bf16.msra.mxu0 %v12366_v43  ;;  %v12390_v43 = vcombine.low %v3799_v49, %v3803_v41  ;;  %v3808_v49 = vld [vmem:[%s14393_s5 + $0x208] sm:$0xff]  ;;  %v12409_v41 = vcombine.high %v3807_v1, %v3811_v55 }
 0x41d   :  { %15009 = vst [vmem:[#allocation67_spill] sm:$0xff] %v12370_v63  ;;  %4566 = vmatprep.subr.bf16.mxu1 %v12370_v63  ;;  %15010 = vst [vmem:[#allocation65_spill] sm:$0xff] %v12385_v20  ;;  %v12394_v63 = vcombine.high %v3800_v59, %v3804_v51  ;;  %4525 = vmatprep.subr.bf16.mxu0 %v12385_v20  ;;  %v3819_v20 = vld [vmem:[%s14393_s5 + $0x260] sm:$0xff] }
 0x41e   :  { %15011 = vst [vmem:[#allocation66_spill] sm:$0xff] %v12390_v43  ;;  %15014 = vst [vmem:[#allocation69_spill] sm:$0xff] %v12409_v41 }
 0x41f   :  { %4567 = vmatpush1.bf16.msra.mxu1 %v12368_v40  ;;  %v12392_v40 = vcombine.low %v3800_v59, %v3804_v51  ;;  %15013 = vst [vmem:[#allocation71_spill] sm:$0xff] %v12394_v63  ;;  %v3812_v59 = vld [vmem:[%s14393_s5 + $0x228] sm:$0xff]  ;;  %v12414_v51 = vcombine.low %v3807_v1, %v3811_v55 }
 0x420   :  { %4568 = vmatprep.subr.bf16.mxu1 %v12394_v63  ;;  %4526 = vmatpush1.bf16.msra.mxu0 %v12390_v43  ;;  %v12416_v43 = vcombine.low %v3808_v49, %v3812_v59  ;;  %v12418_v63 = vcombine.high %v3808_v49, %v3812_v59  ;;  %v3816_v55 = vld [vmem:[%s14393_s5 + $0x248] sm:$0xff] }
 0x421   :  { %15012 = vst [vmem:[#allocation68_spill] sm:$0xff] %v12392_v40  ;;  %15015 = vst [vmem:[#allocation70_spill] sm:$0xff] %v12414_v51  ;;  %4527 = vmatprep.subr.bf16.mxu0 %v12409_v41  ;;  %v3820_v49 = vld [vmem:[%s14393_s5 + $0x268] sm:$0xff]  ;;  %v3827_v41 = vld [vmem:[%s14393_s5 + $0x2a0] sm:$0xff] }
 0x422   :  { %15016 = vst [vmem:[#allocation72_spill] sm:$0xff] %v12416_v43  ;;  %15017 = vst [vmem:[#allocation75_spill] sm:$0xff] %v12418_v63 }
 0x423   :  { %4569 = vmatpush1.bf16.msra.mxu1 %v12392_v40  ;;  %v3815_v40 = vld [vmem:[%s14393_s5 + $0x240] sm:$0xff] }
 0x424   :  { %4570 = vmatprep.subr.bf16.mxu1 %v12418_v63  ;;  %4528 = vmatpush1.bf16.msra.mxu0 %v12414_v51  ;;  %v12433_v1 = vcombine.high %v3815_v40, %v3819_v20  ;;  %v12438_v59 = vcombine.low %v3815_v40, %v3819_v20  ;;  %v12440_v51 = vcombine.low %v3816_v55, %v3820_v49  ;;  %v3824_v40 = vld [vmem:[%s14393_s5 + $0x288] sm:$0xff] }
 0x425   :  { %v12442_v63 = vcombine.high %v3816_v55, %v3820_v49  ;;  %v3828_v55 = vld [vmem:[%s14393_s5 + $0x2a8] sm:$0xff] }
 0x426   :  { %15018 = vst [vmem:[#allocation73_spill] sm:$0xff] %v12433_v1  ;;  %15019 = vst [vmem:[#allocation74_spill] sm:$0xff] %v12438_v59  ;;  %4529 = vmatprep.subr.bf16.mxu0 %v12433_v1  ;;  %v3835_v1 = vld [vmem:[%s14393_s5 + $0x2e0] sm:$0xff] }
 0x427   :  { %4571 = vmatpush1.bf16.msra.mxu1 %v12416_v43  ;;  %15020 = vst [vmem:[#allocation76_spill] sm:$0xff] %v12440_v51  ;;  %15021 = vst [vmem:[#allocation79_spill] sm:$0xff] %v12442_v63  ;;  %v3823_v43 = vld [vmem:[%s14393_s5 + $0x280] sm:$0xff] }
 0x428   :  { %4572 = vmatprep.subr.bf16.mxu1 %v12442_v63  ;;  %4530 = vmatpush1.bf16.msra.mxu0 %v12438_v59  ;;  %v12457_v20 = vcombine.high %v3823_v43, %v3827_v41  ;;  %v12462_v49 = vcombine.low %v3823_v43, %v3827_v41  ;;  %v12464_v59 = vcombine.low %v3824_v40, %v3828_v55  ;;  %v3832_v43 = vld [vmem:[%s14393_s5 + $0x2c8] sm:$0xff] }
 0x429   :  { %v12466_v63 = vcombine.high %v3824_v40, %v3828_v55  ;;  %v3836_v40 = vld [vmem:[%s14393_s5 + $0x2e8] sm:$0xff] }
 0x42a   :  { %15022 = vst [vmem:[#allocation77_spill] sm:$0xff] %v12457_v20  ;;  %15023 = vst [vmem:[#allocation78_spill] sm:$0xff] %v12462_v49  ;;  %4531 = vmatprep.subr.bf16.mxu0 %v12457_v20  ;;  %v3843_v20 = vld [vmem:[%s14393_s5 + $0x320] sm:$0xff] }
 0x42b   :  { %4573 = vmatpush1.bf16.msra.mxu1 %v12440_v51  ;;  %15024 = vst [vmem:[#allocation81_spill] sm:$0xff] %v12464_v59  ;;  %15025 = vst [vmem:[#allocation83_spill] sm:$0xff] %v12466_v63  ;;  %v3831_v51 = vld [vmem:[%s14393_s5 + $0x2c0] sm:$0xff] }
 0x42c   :  { %4574 = vmatprep.subr.bf16.mxu1 %v12466_v63  ;;  %4532 = vmatpush1.bf16.msra.mxu0 %v12462_v49  ;;  %v12481_v41 = vcombine.high %v3831_v51, %v3835_v1  ;;  %v12486_v55 = vcombine.low %v3831_v51, %v3835_v1  ;;  %v12488_v49 = vcombine.low %v3832_v43, %v3836_v40  ;;  %v3840_v51 = vld [vmem:[%s14393_s5 + $0x308] sm:$0xff] }
 0x42d   :  { %v12490_v63 = vcombine.high %v3832_v43, %v3836_v40  ;;  %v3844_v40 = vld [vmem:[%s14393_s5 + $0x328] sm:$0xff] }
 0x42e   :  { %15026 = vst [vmem:[#allocation80_spill] sm:$0xff] %v12481_v41  ;;  %15027 = vst [vmem:[#allocation82_spill] sm:$0xff] %v12486_v55  ;;  %4533 = vmatprep.subr.bf16.mxu0 %v12481_v41  ;;  %v12518_v41 = vcombine.low %v3840_v51, %v3844_v40  ;;  %v12520_v54 = vcombine.high %v3840_v51, %v3844_v40  ;;  %v3859_v51 = vld [vmem:[%s14393_s5 + $0x3a0] sm:$0xff]  ;;  %v3856_v40 = vld [vmem:[%s14393_s5 + $0x388] sm:$0xff] }
 0x42f   :  { %4575 = vmatpush1.bf16.msra.mxu1 %v12464_v59  ;;  %15028 = vst [vmem:[#allocation84_spill] sm:$0xff] %v12488_v49  ;;  %15029 = vst [vmem:[#allocation85_spill] sm:$0xff] %v12490_v63  ;;  %v3839_v59 = vld [vmem:[%s14393_s5 + $0x300] sm:$0xff]  ;;  %v12553_v17 = vcombine.high %v3855_v52, %v3859_v51  ;;  %v12556_v48 = vcombine.high %v3856_v40, %v3860_v10 }
 0x430   :  { %4576 = vmatprep.subr.bf16.mxu1 %v12490_v63  ;;  %4534 = vmatpush1.bf16.msra.mxu0 %v12486_v55  ;;  %v12505_v1 = vcombine.low %v3839_v59, %v3843_v20  ;;  %v12507_v43 = vcombine.high %v3839_v59, %v3843_v20  ;;  %v3847_v55 = vld [vmem:[%s14393_s5 + $0x340] sm:$0xff]  ;;  %15032 = vst [vmem:[#allocation88_spill] sm:$0xff] %v12518_v41  ;;  %15033 = vst [vmem:[#allocation89_spill] sm:$0xff] %v12520_v54  ;;  %v3848_v59 = vld [vmem:[%s14393_s5 + $0x348] sm:$0xff] }
 0x431   :  { %v3851_v63 = vld [vmem:[%s14393_s5 + $0x360] sm:$0xff]  ;;  %v3852_v20 = vld [vmem:[%s14393_s5 + $0x368] sm:$0xff]  ;;  %15036 = vst [vmem:[#allocation92_spill] sm:$0xff] %v12553_v17  ;;  %15037 = vst [vmem:[#allocation93_spill] sm:$0xff] %v12556_v48 }
 0x432   :  { %15030 = vst [vmem:[#allocation86_spill] sm:$0xff] %v12505_v1  ;;  %15031 = vst [vmem:[#allocation87_spill] sm:$0xff] %v12507_v43  ;;  %4535 = vmatprep.subr.bf16.mxu0 %v12507_v43  ;;  %v12534_v0 = vcombine.high %v3848_v59, %v3852_v20  ;;  %v12547_v6 = vcombine.low %v3847_v55, %v3851_v63  ;;  %v12551_v43 = vcombine.low %v3848_v59, %v3852_v20  ;;  %v3868_v59 = vld [vmem:[%s14393_s5 + $0x3e8] sm:$0xff] }
 0x433   :  { %4577 = vmatpush1.bf16.msra.mxu1 %v12488_v49  ;;  %v12522_v49 = vcombine.high %v3847_v55, %v3851_v63  ;;  %v3867_v63 = vld [vmem:[%s14393_s5 + $0x3e0] sm:$0xff]  ;;  %v3864_v55 = vld [vmem:[%s14393_s5 + $0x3c8] sm:$0xff]  ;;  %v12571_v20 = vcombine.low %v3855_v52, %v3859_v51 }
 0x434   :  { %15035 = vst [vmem:[#allocation91_spill] sm:$0xff] %v12534_v0  ;;  %4578 = vmatprep.subr.bf16.mxu1 %v12520_v54  ;;  %4536 = vmatpush1.bf16.msra.mxu0 %v12505_v1  ;;  %v3863_v54 = vld [vmem:[%s14393_s5 + $0x3c0] sm:$0xff]  ;;  %v12587_v52 = vcombine.low %v3864_v55, %v3868_v59 }
 0x435   :  { %15034 = vst [vmem:[#allocation90_spill] sm:$0xff] %v12522_v49  ;;  %4537 = vmatprep.subr.bf16.mxu0 %v12522_v49  ;;  %15038 = vst [vmem:[#allocation94_spill] sm:$0xff] %v12571_v20  ;;  %v12577_v49 = vcombine.high %v3863_v54, %v3867_v63  ;;  %v12583_v1 = vcombine.low %v3863_v54, %v3867_v63 }
 0x436   :  { %15043 = vst [vmem:[#allocation104_spill] sm:$0xff] %v12587_v52 }
 0x437   :  { %4579 = vmatpush1.bf16.msra.mxu1 %v12518_v41  ;;  %15040 = vst [vmem:[#allocation101_spill] sm:$0xff] %v12577_v49  ;;  %v12580_v41 = vcombine.high %v3864_v55, %v3868_v59  ;;  %15042 = vst [vmem:[#allocation103_spill] sm:$0xff] %v12583_v1 }
 0x438   :  { %4580 = vmatprep.subr.bf16.mxu1 %v12534_v0  ;;  %4538 = vmatpush1.bf16.msra.mxu0 %v12547_v6  ;;  %v12575_v0 = vcombine.low %v3856_v40, %v3860_v10 }
 0x439   :  { %4539 = vmatprep.subr.bf16.mxu0 %v12553_v17  ;;  %15041 = vst [vmem:[#allocation102_spill] sm:$0xff] %v12580_v41 }
 0x43a   :  { %15039 = vst [vmem:[#allocation95_spill] sm:$0xff] %v12575_v0 }
 0x43b   :  { %4581 = vmatpush1.bf16.msra.mxu1 %v12551_v43 }
 0x43c   :  { %4582 = vmatprep.subr.bf16.mxu1 %v12556_v48  ;;  %4540 = vmatpush1.bf16.msra.mxu0 %v12571_v20 }
 0x43d   :  { %4541 = vmatprep.subr.bf16.mxu0 %v12577_v49 }
 0x43f   :  { %4583 = vmatpush1.bf16.msra.mxu1 %v12575_v0 }
 0x440   :  { %4584 = vmatprep.subr.bf16.mxu1 %v12580_v41  ;;  %4542 = vmatpush1.bf16.msra.mxu0 %v12583_v1 }
 0x441   :  { %4597 = vmatprep.subr.bf16.mxu0 %v11791_v46 }
 0x443   :  { %4585 = vmatpush1.bf16.msra.mxu1 %v12587_v52 }
 0x444   :  { %4640 = vmatprep.subr.bf16.mxu1 %v11798_v33 }
 0x496   :  { %v3506_v10 = vpop.f32.mrb[12].mxu0  ;;  %v3549_v51 = vpop.f32.mrb[12].mxu1 }
 0x497   :  { %v9710_v54 = vadd.f32 %v3506_v10, %v14945_v42  ;;  %v3508_v40 = vpop.f32.mrb[13].mxu0  ;;  %v3551_v63 = vpop.f32.mrb[13].mxu1 }
 0x498   :  { %v9711_v49 = vadd.f32 %v3508_v40, %v14946_v21  ;;  %v3510_v55 = vpop.f32.mrb[14].mxu0  ;;  %v3553_v59 = vpop.f32.mrb[14].mxu1  ;;  %v9743_v33 = vadd.f32 %v3551_v63, %v14947_v32 }
 0x499   :  { %v3660_v0 = vmul.f32 0.5, %v9710_v54  ;;  %v9712_v41 = vadd.f32 %v3510_v55, %v14945_v42  ;;  %v3512_v1 = vpop.f32.mrb[15].mxu0  ;;  %v3555_v20 = vpop.f32.mrb[15].mxu1  ;;  %v9742_v54 = vadd.f32 %v3549_v51, %v14948_v44  ;;  %v9744_v40 = vadd.f32 %v3553_v59, %v14948_v44 }
 0x49a   :  { %v3661_v52 = vmul.f32 0.5, %v9711_v49  ;;  %v9713_v46 = vadd.f32 %v3512_v1, %v14946_v21  ;;  %v9745_v10 = vadd.f32 %v3555_v20, %v14947_v32 }
 0x49b   :  { %9949 = vtanh.f32 %v3660_v0  ;;  %v3663_v48 = vmul.f32 0.5, %v9712_v41  ;;  %v3662_v42 = vmul.f32 0.5, %v9742_v54  ;;  %v3665_v0 = vmul.f32 0.5, %v9744_v40 }
 0x49c   :  { %v3664_v17 = vmul.f32 0.5, %v9713_v46  ;;  %9951 = vtanh.f32 %v3661_v52 }
 0x49d   :  { %9953 = vtanh.f32 %v3663_v48 }
 0x49e   :  { %9955 = vtanh.f32 %v9743_v33 }
 0x49f   :  { %9957 = vtanh.f32 %v3664_v17 }
 0x4a0   :  { %9959 = vtanh.f32 %v9745_v10 }
 0x4a1   :  { %9961 = vtanh.f32 %v3662_v42 }
 0x4a2   :  { %9963 = vtanh.f32 %v3665_v0 }
 0x4a5   :  { %v9950_v55 = vpop.eup %9949 }
 0x4a6   :  { %v3672_v49 = vmul.f32 0.5, %v9950_v55  ;;  %v9952_v1 = vpop.eup %9951 }
 0x4a7   :  { %v9954_v21 = vpop.eup %9953  ;;  %v3673_v41 = vmul.f32 0.5, %v9952_v1 }
 0x4a8   :  { %v3678_v63 = vadd.f32 0.5, %v3672_v49  ;;  %v9956_v46 = vpop.eup %9955  ;;  %v3675_v52 = vmul.f32 0.5, %v9954_v21 }
 0x4a9   :  { %v9958_v48 = vpop.eup %9957  ;;  %v3679_v20 = vadd.f32 0.5, %v3673_v41 }
 0x4aa   :  { %v3688_v33 = vmul.f32 %v9956_v46, %v3678_v63  ;;  %v3681_v17 = vadd.f32 0.5, %v3675_v52  ;;  %v3676_v51 = vmul.f32 0.5, %v9958_v48  ;;  %v9960_v10 = vpop.eup %9959 }
 0x4ab   :  { %v3686_v59 = vmul.f32 %v3679_v20, %v11811_v5  ;;  %v9962_v42 = vpop.eup %9961 }
 0x4ac   :  { %v3682_v44 = vadd.f32 0.5, %v3676_v51  ;;  %v3689_v55 = vmul.f32 %v9960_v10, %v3681_v17  ;;  %v9964_v21 = vpop.eup %9963  ;;  %v3674_v1 = vmul.f32 0.5, %v9962_v42 }
 0x4ad   :  { %v12603_v54 = vadd.f32 %v3688_v33, %v3686_v59  ;;  %v3677_v0 = vmul.f32 0.5, %v9964_v21 }
 0x4ae   :  { %v3687_v40 = vmul.f32 %v3682_v44, %v11815_v47  ;;  %v3680_v41 = vadd.f32 0.5, %v3674_v1 }
 0x4af   :  { %9965 = vtanh.f32 %v12603_v54  ;;  %v3683_v46 = vadd.f32 0.5, %v3677_v0 }
 0x4b0   :  { %v12607_v49 = vadd.f32 %v3689_v55, %v3687_v40 }
 0x4b2   :  { %9967 = vtanh.f32 %v12607_v49 }
 0x4b9   :  { %v9966_v63 = vpop.eup %9965 }
 0x4ba   :  { %v3694_v52 = vmul.f32 %v9966_v63, %v3680_v41 }
 0x4bc   :  { %v9968_v5 = vpop.eup %9967 }
 0x4bd   :  { %v3695_v48 = vmul.f32 %v9968_v5, %v3683_v46 }
 0x4bf   :  { %v12610_v20 = vpack.c.bf16 %v3695_v48, %v3694_v52 }
 0x4d6   :  { %v3592_v33 = vpop.f32.mrb[40].mxu0  ;;  %v3635_v44 = vpop.f32.mrb[40].mxu1 }
 0x4d7   :  { %v3696_v47 = vadd.f32 %v3592_v33, %v11610_v45  ;;  %v3594_v17 = vpop.f32.mrb[41].mxu0  ;;  %v3637_v51 = vpop.f32.mrb[41].mxu1  ;;  %v3698_v48 = vadd.f32 %v3635_v44, %v14951_v23 }
 0x4d8   :  { %v3697_v10 = vadd.f32 %v3594_v17, %v11614_v35  ;;  %v3596_v59 = vpop.f32.mrb[42].mxu0  ;;  %v3639_v55 = vpop.f32.mrb[42].mxu1  ;;  %v3699_v41 = vadd.f32 %v3637_v51, %v11619_v62 }
 0x4d9   :  { %v3704_v40 = vmul.f32 0.5, %v3696_v47  ;;  %v3700_v42 = vadd.f32 %v3596_v59, %v11610_v45  ;;  %v3598_v21 = vpop.f32.mrb[43].mxu0  ;;  %v3641_v1 = vpop.f32.mrb[43].mxu1  ;;  %v3702_v33 = vadd.f32 %v3639_v55, %v14951_v23 }
 0x4da   :  { %v3705_v0 = vmul.f32 0.5, %v3697_v10  ;;  %v3701_v63 = vadd.f32 %v3598_v21, %v11614_v35  ;;  %v3703_v52 = vadd.f32 %v3641_v1, %v11619_v62  ;;  %v3706_v10 = vmul.f32 0.5, %v3698_v48 }
 0x4db   :  { %9969 = vtanh.f32 %v3704_v40  ;;  %v3707_v46 = vmul.f32 0.5, %v3700_v42  ;;  %v3709_v40 = vmul.f32 0.5, %v3702_v33 }
 0x4dc   :  { %v3708_v5 = vmul.f32 0.5, %v3701_v63  ;;  %9971 = vtanh.f32 %v3705_v0 }
 0x4dd   :  { %9973 = vtanh.f32 %v3707_v46 }
 0x4de   :  { %9975 = vtanh.f32 %v3699_v41 }
 0x4df   :  { %9977 = vtanh.f32 %v3708_v5 }
 0x4e0   :  { %9979 = vtanh.f32 %v3703_v52 }
 0x4e1   :  { %9981 = vtanh.f32 %v3706_v10 }
 0x4e2   :  { %9983 = vtanh.f32 %v3709_v40 }
 0x4e5   :  { %v9970_v47 = vpop.eup %9969 }
 0x4e6   :  { %v3716_v17 = vmul.f32 0.5, %v9970_v47  ;;  %v9972_v59 = vpop.eup %9971 }
 0x4e7   :  { %v9974_v21 = vpop.eup %9973  ;;  %v3717_v42 = vmul.f32 0.5, %v9972_v59 }
 0x4e8   :  { %v3722_v51 = vadd.f32 0.5, %v3716_v17  ;;  %v9976_v63 = vpop.eup %9975  ;;  %v3719_v0 = vmul.f32 0.5, %v9974_v21 }
 0x4e9   :  { %v9978_v46 = vpop.eup %9977  ;;  %v3723_v1 = vadd.f32 0.5, %v3717_v42 }
 0x4ea   :  { %v3732_v41 = vmul.f32 %v9976_v63, %v3722_v51  ;;  %v3725_v5 = vadd.f32 0.5, %v3719_v0  ;;  %v3720_v44 = vmul.f32 0.5, %v9978_v46  ;;  %v9980_v52 = vpop.eup %9979 }
 0x4eb   :  { %v3730_v55 = vmul.f32 %v3723_v1, %v11829_v58  ;;  %v9982_v10 = vpop.eup %9981 }
 0x4ec   :  { %v3726_v23 = vadd.f32 0.5, %v3720_v44  ;;  %v3733_v47 = vmul.f32 %v9980_v52, %v3725_v5  ;;  %v9984_v59 = vpop.eup %9983  ;;  %v3718_v21 = vmul.f32 0.5, %v9982_v10  ;;  %v15081_v5 = vld [vmem:[#allocation45_spill] sm:$0xff]  ;;  %v15082_v44 = vld [vmem:[#allocation46_spill] sm:$0xff]  ;;  %v15083_v52 = vld [vmem:[#allocation47_spill] sm:$0xff] }
 0x4ed   :  { %v12621_v48 = vadd.f32 %v3732_v41, %v3730_v55  ;;  %v3721_v40 = vmul.f32 0.5, %v9984_v59  ;;  %v15080_v41 = vld [vmem:[#allocation44_spill] sm:$0xff]  ;;  %v15089_v59 = vld [vmem:[#allocation53_spill] sm:$0xff] }
 0x4ee   :  { %v3731_v33 = vmul.f32 %v3726_v23, %v11833_v12  ;;  %v3724_v42 = vadd.f32 0.5, %v3718_v21  ;;  %v15047_v23 = vld [vmem:[#allocation11_spill] sm:$0xff]  ;;  %v15048_v12 = vld [vmem:[#allocation12_spill] sm:$0xff]  ;;  %v15090_v21 = vld [vmem:[#allocation54_spill] sm:$0xff] }
 0x4ef   :  { %9985 = vtanh.f32 %v12621_v48  ;;  %v3727_v63 = vadd.f32 0.5, %v3721_v40  ;;  %v15084_v55 = vld [vmem:[#allocation48_spill] sm:$0xff]  ;;  %v15091_v40 = vld [vmem:[#allocation55_spill] sm:$0xff] }
 0x4f0   :  { %v12625_v17 = vadd.f32 %v3733_v47, %v3731_v33  ;;  %v15085_v47 = vld [vmem:[#allocation49_spill] sm:$0xff]  ;;  %v15087_v33 = vld [vmem:[#allocation51_spill] sm:$0xff]  ;;  %v15088_v10 = vld [vmem:[#allocation52_spill] sm:$0xff] }
 0x4f2   :  { %9987 = vtanh.f32 %v12625_v17 }
 0x4f9   :  { %v9986_v51 = vpop.eup %9985 }
 0x4fa   :  { %v3738_v0 = vmul.f32 %v9986_v51, %v3724_v42  ;;  %v15092_v51 = vld [vmem:[#allocation56_spill] sm:$0xff]  ;;  %v15093_v42 = vld [vmem:[#allocation59_spill] sm:$0xff] }
 0x4fc   :  { %v9988_v58 = vpop.eup %9987 }
 0x4fd   :  { %v3739_v46 = vmul.f32 %v9988_v58, %v3727_v63  ;;  %v15094_v63 = vld [vmem:[#allocation57_spill] sm:$0xff]  ;;  %v15095_v58 = vld [vmem:[#allocation58_spill] sm:$0xff] }
 0x4ff   :  { %v12628_v1 = vpack.c.bf16 %v3739_v46, %v3738_v0  ;;  %v15096_v0 = vld [vmem:[#allocation60_spill] sm:$0xff]  ;;  %v15097_v46 = vld [vmem:[#allocation63_spill] sm:$0xff] }
 0x501   :  { %15044 = vst [vmem:[#allocation105_spill] sm:$0xff] %v12628_v1  ;;  %4543 = vmatprep.mubr.bf16.mxu0 %v12628_v1  ;;  %4586 = vmatprep.mubr.bf16.mxu1 %v12628_v1 }
 0x502   :  { %4544 = vmatmul.mubr.bf16.vlgmr.msra.gmra.mrb[16].mxu0 %v12610_v20  ;;  %4587 = vmatmul.mubr.bf16.vlgmr.msra.gmra.mrb[16].mxu1 %v12610_v20 }
 0x503   :  { %4598 = vmatpush1.bf16.msra.mxu0 %v11789_v57  ;;  %4641 = vmatpush1.bf16.msra.mxu1 %v11796_v13  ;;  %v15045_v57 = vld [vmem:[#allocation9_spill] sm:$0xff]  ;;  %v15046_v13 = vld [vmem:[#allocation10_spill] sm:$0xff] }
 0x504   :  { %4629 = vmatprep.mubr.bf16.mxu0 %v12628_v1  ;;  %4672 = vmatprep.mubr.bf16.mxu1 %v12628_v1  ;;  %v4872_v1 = vld [vmem:[%s14393_s5 + $0x2d0] sm:$0xff] }
 0x505   :  { %4599 = vmatprep.subr.bf16.mxu0 %v11855_v56  ;;  %4642 = vmatprep.subr.bf16.mxu1 %v11857_v61  ;;  %v15049_v56 = vld [vmem:[#allocation13_spill] sm:$0xff]  ;;  %v15050_v61 = vld [vmem:[#allocation14_spill] sm:$0xff] }
 0x507   :  { %4600 = vmatpush1.bf16.msra.mxu0 %v11872_v38  ;;  %4643 = vmatpush1.bf16.msra.mxu1 %v11874_v2  ;;  %v15051_v38 = vld [vmem:[#allocation15_spill] sm:$0xff]  ;;  %v15052_v2 = vld [vmem:[#allocation16_spill] sm:$0xff] }
 0x508   :  { %4601 = vmatprep.subr.bf16.mxu0 %v11878_v3  ;;  %4644 = vmatprep.subr.bf16.mxu1 %v11880_v39  ;;  %v15053_v3 = vld [vmem:[#allocation17_spill] sm:$0xff]  ;;  %v15054_v39 = vld [vmem:[#allocation18_spill] sm:$0xff] }
 0x50b   :  { %4602 = vmatpush1.bf16.msra.mxu0 %v11898_v26  ;;  %4645 = vmatpush1.bf16.msra.mxu1 %v11900_v30  ;;  %v15055_v26 = vld [vmem:[#allocation19_spill] sm:$0xff]  ;;  %v15056_v30 = vld [vmem:[#allocation20_spill] sm:$0xff] }
 0x50c   :  { %4603 = vmatprep.subr.bf16.mxu0 %v11904_v9  ;;  %4646 = vmatprep.subr.bf16.mxu1 %v11906_v14  ;;  %v15057_v9 = vld [vmem:[#allocation21_spill] sm:$0xff]  ;;  %v15058_v14 = vld [vmem:[#allocation22_spill] sm:$0xff] }
 0x50f   :  { %4604 = vmatpush1.bf16.msra.mxu0 %v11922_v50  ;;  %4647 = vmatpush1.bf16.msra.mxu1 %v11924_v53  ;;  %v15059_v50 = vld [vmem:[#allocation23_spill] sm:$0xff]  ;;  %v15060_v53 = vld [vmem:[#allocation24_spill] sm:$0xff] }
 0x510   :  { %4605 = vmatprep.subr.bf16.mxu0 %v11928_v4  ;;  %4648 = vmatprep.subr.bf16.mxu1 %v11930_v22  ;;  %v15061_v4 = vld [vmem:[#allocation25_spill] sm:$0xff]  ;;  %v15062_v22 = vld [vmem:[#allocation26_spill] sm:$0xff] }
 0x513   :  { %4606 = vmatpush1.bf16.msra.mxu0 %v11946_v15  ;;  %4649 = vmatpush1.bf16.msra.mxu1 %v11948_v34  ;;  %v15063_v15 = vld [vmem:[#allocation27_spill] sm:$0xff]  ;;  %v15064_v34 = vld [vmem:[#allocation28_spill] sm:$0xff] }
 0x514   :  { %4607 = vmatprep.subr.bf16.mxu0 %v11952_v18  ;;  %4650 = vmatprep.subr.bf16.mxu1 %v11954_v7  ;;  %v15065_v18 = vld [vmem:[#allocation29_spill] sm:$0xff]  ;;  %v15066_v7 = vld [vmem:[#allocation30_spill] sm:$0xff] }
 0x517   :  { %4608 = vmatpush1.bf16.msra.mxu0 %v11970_v25  ;;  %4651 = vmatpush1.bf16.msra.mxu1 %v11972_v60  ;;  %v15067_v25 = vld [vmem:[#allocation31_spill] sm:$0xff]  ;;  %v15068_v60 = vld [vmem:[#allocation33_spill] sm:$0xff] }
 0x518   :  { %4609 = vmatprep.subr.bf16.mxu0 %v11976_v11  ;;  %4652 = vmatprep.subr.bf16.mxu1 %v11978_v28  ;;  %v15069_v11 = vld [vmem:[#allocation35_spill] sm:$0xff]  ;;  %v15070_v28 = vld [vmem:[#allocation32_spill] sm:$0xff] }
 0x51b   :  { %4610 = vmatpush1.bf16.msra.mxu0 %v11994_v36  ;;  %4653 = vmatpush1.bf16.msra.mxu1 %v11996_v16  ;;  %v15071_v36 = vld [vmem:[#allocation34_spill] sm:$0xff]  ;;  %v15072_v16 = vld [vmem:[#allocation36_spill] sm:$0xff] }
 0x51c   :  { %4611 = vmatprep.subr.bf16.mxu0 %v12000_v37  ;;  %4654 = vmatprep.subr.bf16.mxu1 %v12002_v29  ;;  %v15073_v37 = vld [vmem:[#allocation37_spill] sm:$0xff]  ;;  %v15074_v29 = vld [vmem:[#allocation39_spill] sm:$0xff] }
 0x51f   :  { %4612 = vmatpush1.bf16.msra.mxu0 %v12018_v19  ;;  %4655 = vmatpush1.bf16.msra.mxu1 %v12020_v24  ;;  %v15075_v19 = vld [vmem:[#allocation41_spill] sm:$0xff]  ;;  %v15076_v24 = vld [vmem:[#allocation38_spill] sm:$0xff] }
 0x520   :  { %4613 = vmatprep.subr.bf16.mxu0 %v12024_v27  ;;  %4656 = vmatprep.subr.bf16.mxu1 %v12026_v31  ;;  %v15077_v27 = vld [vmem:[#allocation40_spill] sm:$0xff]  ;;  %v15078_v31 = vld [vmem:[#allocation42_spill] sm:$0xff] }
 0x523   :  { %4614 = vmatpush1.bf16.msra.mxu0 %v15045_v57  ;;  %4657 = vmatpush1.bf16.msra.mxu1 %v15046_v13  ;;  %v15098_v57 = vld [vmem:[#allocation61_spill] sm:$0xff]  ;;  %v15099_v13 = vld [vmem:[#allocation67_spill] sm:$0xff] }
 0x524   :  { %4615 = vmatprep.subr.bf16.mxu0 %v15047_v23  ;;  %4658 = vmatprep.subr.bf16.mxu1 %v15048_v12  ;;  %v15100_v23 = vld [vmem:[#allocation62_spill] sm:$0xff]  ;;  %v15101_v12 = vld [vmem:[#allocation64_spill] sm:$0xff] }
 0x527   :  { %4616 = vmatpush1.bf16.msra.mxu0 %v15049_v56  ;;  %4659 = vmatpush1.bf16.msra.mxu1 %v15050_v61  ;;  %v15102_v56 = vld [vmem:[#allocation65_spill] sm:$0xff]  ;;  %v15103_v61 = vld [vmem:[#allocation71_spill] sm:$0xff] }
 0x528   :  { %4617 = vmatprep.subr.bf16.mxu0 %v15051_v38  ;;  %4660 = vmatprep.subr.bf16.mxu1 %v15052_v2  ;;  %v15104_v38 = vld [vmem:[#allocation66_spill] sm:$0xff]  ;;  %v15105_v2 = vld [vmem:[#allocation68_spill] sm:$0xff] }
 0x52b   :  { %4618 = vmatpush1.bf16.msra.mxu0 %v15053_v3  ;;  %4661 = vmatpush1.bf16.msra.mxu1 %v15054_v39  ;;  %v15106_v3 = vld [vmem:[#allocation69_spill] sm:$0xff]  ;;  %v15107_v39 = vld [vmem:[#allocation75_spill] sm:$0xff] }
 0x52c   :  { %4619 = vmatprep.subr.bf16.mxu0 %v15055_v26  ;;  %4662 = vmatprep.subr.bf16.mxu1 %v15056_v30  ;;  %v15108_v26 = vld [vmem:[#allocation70_spill] sm:$0xff]  ;;  %v15109_v30 = vld [vmem:[#allocation72_spill] sm:$0xff] }
 0x52f   :  { %4620 = vmatpush1.bf16.msra.mxu0 %v15057_v9  ;;  %4663 = vmatpush1.bf16.msra.mxu1 %v15058_v14  ;;  %v15110_v9 = vld [vmem:[#allocation73_spill] sm:$0xff]  ;;  %v15111_v14 = vld [vmem:[#allocation79_spill] sm:$0xff] }
 0x530   :  { %4621 = vmatprep.subr.bf16.mxu0 %v15059_v50  ;;  %4664 = vmatprep.subr.bf16.mxu1 %v15060_v53  ;;  %v15112_v50 = vld [vmem:[#allocation74_spill] sm:$0xff]  ;;  %v15113_v53 = vld [vmem:[#allocation76_spill] sm:$0xff] }
 0x533   :  { %4622 = vmatpush1.bf16.msra.mxu0 %v15061_v4  ;;  %4665 = vmatpush1.bf16.msra.mxu1 %v15062_v22  ;;  %v15114_v4 = vld [vmem:[#allocation77_spill] sm:$0xff]  ;;  %v15115_v22 = vld [vmem:[#allocation83_spill] sm:$0xff] }
 0x534   :  { %4623 = vmatprep.subr.bf16.mxu0 %v15063_v15  ;;  %4666 = vmatprep.subr.bf16.mxu1 %v15064_v34  ;;  %v15116_v15 = vld [vmem:[#allocation78_spill] sm:$0xff]  ;;  %v15117_v34 = vld [vmem:[#allocation81_spill] sm:$0xff] }
 0x537   :  { %4624 = vmatpush1.bf16.msra.mxu0 %v15065_v18  ;;  %4667 = vmatpush1.bf16.msra.mxu1 %v12164_v8  ;;  %v15079_v8 = vld [vmem:[#allocation43_spill] sm:$0xff]  ;;  %v15118_v18 = vld [vmem:[#allocation80_spill] sm:$0xff] }
 0x538   :  { %4625 = vmatprep.subr.bf16.mxu0 %v15066_v7  ;;  %4668 = vmatprep.subr.bf16.mxu1 %v15067_v25  ;;  %v15119_v7 = vld [vmem:[#allocation85_spill] sm:$0xff]  ;;  %v15120_v25 = vld [vmem:[#allocation82_spill] sm:$0xff] }
 0x53b   :  { %4626 = vmatpush1.bf16.msra.mxu0 %v15068_v60  ;;  %4669 = vmatpush1.bf16.msra.mxu1 %v15069_v11  ;;  %v15121_v60 = vld [vmem:[#allocation84_spill] sm:$0xff]  ;;  %v15122_v11 = vld [vmem:[#allocation87_spill] sm:$0xff] }
 0x53c   :  { %4627 = vmatprep.subr.bf16.mxu0 %v15070_v28  ;;  %4670 = vmatprep.subr.bf16.mxu1 %v15071_v36  ;;  %v15123_v28 = vld [vmem:[#allocation89_spill] sm:$0xff]  ;;  %v15124_v36 = vld [vmem:[#allocation86_spill] sm:$0xff] }
 0x53f   :  { %4628 = vmatpush1.bf16.msra.mxu0 %v15072_v16  ;;  %4671 = vmatpush1.bf16.msra.mxu1 %v15073_v37  ;;  %v15125_v16 = vld [vmem:[#allocation88_spill] sm:$0xff]  ;;  %v15126_v37 = vld [vmem:[#allocation90_spill] sm:$0xff] }
 0x540   :  { %5550 = vmatprep.subr.bf16.mxu0 %v15074_v29  ;;  %5593 = vmatprep.subr.bf16.mxu1 %v15075_v19  ;;  %v15127_v29 = vld [vmem:[#allocation91_spill] sm:$0xff]  ;;  %v15128_v19 = vld [vmem:[#allocation92_spill] sm:$0xff] }
 0x542   :  { %4630 = vmatmul.mubr.bf16.vlgmr.msra.gmra.mrb[44].mxu0 %v12610_v20  ;;  %4673 = vmatmul.mubr.bf16.vlgmr.msra.gmra.mrb[44].mxu1 %v12610_v20  ;;  %v15086_v20 = vld [vmem:[#allocation50_spill] sm:$0xff] }
 0x543   :  { %5551 = vmatpush1.bf16.msra.mxu0 %v15076_v24  ;;  %5594 = vmatpush1.bf16.msra.mxu1 %v15077_v27  ;;  %v15129_v24 = vld [vmem:[#allocation93_spill] sm:$0xff]  ;;  %v15130_v27 = vld [vmem:[#allocation94_spill] sm:$0xff] }
 0x544   :  { %5552 = vmatprep.subr.bf16.mxu0 %v15078_v31  ;;  %5595 = vmatprep.subr.bf16.mxu1 %v15079_v8  ;;  %v15131_v31 = vld [vmem:[#allocation95_spill] sm:$0xff]  ;;  %v15132_v8 = vld [vmem:[#allocation101_spill] sm:$0xff] }
 0x547   :  { %5553 = vmatpush1.bf16.msra.mxu0 %v15080_v41  ;;  %5596 = vmatpush1.bf16.msra.mxu1 %v15081_v5  ;;  %v15133_v41 = vld [vmem:[#allocation102_spill] sm:$0xff]  ;;  %v15134_v5 = vld [vmem:[#allocation103_spill] sm:$0xff] }
 0x548   :  { %5554 = vmatprep.subr.bf16.mxu0 %v15082_v44  ;;  %5597 = vmatprep.subr.bf16.mxu1 %v15083_v52  ;;  %v15135_v44 = vld [vmem:[#allocation104_spill] sm:$0xff]  ;;  %v4785_v52 = vld [vmem:[%s14393_s5 + $0x18] sm:$0xff] }
 0x54b   :  { %5555 = vmatpush1.bf16.msra.mxu0 %v15084_v55  ;;  %5598 = vmatpush1.bf16.msra.mxu1 %v15085_v47 }
 0x54c   :  { %5556 = vmatprep.subr.bf16.mxu0 %v15086_v20  ;;  %5599 = vmatprep.subr.bf16.mxu1 %v15087_v33  ;;  %v4789_v20 = vld [vmem:[%s14393_s5 + $0x38] sm:$0xff] }
 0x54d   :  { %v12780_v33 = vcombine.low %v4785_v52, %v4789_v20 }
 0x54f   :  { %5557 = vmatpush1.bf16.msra.mxu0 %v15088_v10  ;;  %5600 = vmatpush1.bf16.msra.mxu1 %v15089_v59  ;;  %v12782_v10 = vcombine.high %v4785_v52, %v4789_v20 }
 0x550   :  { %5558 = vmatprep.subr.bf16.mxu0 %v15090_v21  ;;  %5601 = vmatprep.subr.bf16.mxu1 %v15091_v40  ;;  %v15136_v40 = vld [vmem:[#allocation4_spill] sm:$0xff] }
 0x553   :  { %5559 = vmatpush1.bf16.msra.mxu0 %v15092_v51  ;;  %5602 = vmatpush1.bf16.msra.mxu1 %v15093_v42 }
 0x554   :  { %5560 = vmatprep.subr.bf16.mxu0 %v15094_v63  ;;  %5603 = vmatprep.subr.bf16.mxu1 %v15095_v58  ;;  %v15137_v58 = vld [vmem:[#allocation5_spill] sm:$0xff] }
 0x557   :  { %5561 = vmatpush1.bf16.msra.mxu0 %v15096_v0  ;;  %5604 = vmatpush1.bf16.msra.mxu1 %v15097_v46 }
 0x558   :  { %5562 = vmatprep.subr.bf16.mxu0 %v15098_v57  ;;  %5605 = vmatprep.subr.bf16.mxu1 %v15099_v13 }
 0x55b   :  { %5563 = vmatpush1.bf16.msra.mxu0 %v15100_v23  ;;  %5606 = vmatpush1.bf16.msra.mxu1 %v15101_v12 }
 0x55c   :  { %5564 = vmatprep.subr.bf16.mxu0 %v15102_v56  ;;  %5607 = vmatprep.subr.bf16.mxu1 %v15103_v61 }
 0x55f   :  { %5565 = vmatpush1.bf16.msra.mxu0 %v15104_v38  ;;  %5608 = vmatpush1.bf16.msra.mxu1 %v15105_v2 }
 0x560   :  { %5566 = vmatprep.subr.bf16.mxu0 %v15106_v3  ;;  %5609 = vmatprep.subr.bf16.mxu1 %v15107_v39 }
 0x563   :  { %5567 = vmatpush1.bf16.msra.mxu0 %v15108_v26  ;;  %5610 = vmatpush1.bf16.msra.mxu1 %v15109_v30  ;;  %v15138_v30 = vld [vmem:[#allocation7_spill] sm:$0xff] }
 0x564   :  { %5568 = vmatprep.subr.bf16.mxu0 %v15110_v9  ;;  %5611 = vmatprep.subr.bf16.mxu1 %v15111_v14 }
 0x567   :  { %5569 = vmatpush1.bf16.msra.mxu0 %v15112_v50  ;;  %5612 = vmatpush1.bf16.msra.mxu1 %v15113_v53 }
 0x568   :  { %5570 = vmatprep.subr.bf16.mxu0 %v15114_v4  ;;  %5613 = vmatprep.subr.bf16.mxu1 %v15115_v22 }
 0x56b   :  { %5571 = vmatpush1.bf16.msra.mxu0 %v15116_v15  ;;  %5614 = vmatpush1.bf16.msra.mxu1 %v15117_v34 }
 0x56c   :  { %5572 = vmatprep.subr.bf16.mxu0 %v15118_v18  ;;  %5615 = vmatprep.subr.bf16.mxu1 %v15119_v7 }
 0x56f   :  { %5573 = vmatpush1.bf16.msra.mxu0 %v15120_v25  ;;  %5616 = vmatpush1.bf16.msra.mxu1 %v15121_v60 }
 0x570   :  { %5574 = vmatprep.subr.bf16.mxu0 %v15122_v11  ;;  %5617 = vmatprep.subr.bf16.mxu1 %v15123_v28 }
 0x573   :  { %5575 = vmatpush1.bf16.msra.mxu0 %v15124_v36  ;;  %5618 = vmatpush1.bf16.msra.mxu1 %v15125_v16 }
 0x574   :  { %5576 = vmatprep.subr.bf16.mxu0 %v15126_v37  ;;  %5619 = vmatprep.subr.bf16.mxu1 %v15127_v29 }
 0x577   :  { %5577 = vmatpush1.bf16.msra.mxu0 %v12547_v6  ;;  %5620 = vmatpush1.bf16.msra.mxu1 %v12551_v43  ;;  %v4784_v6 = vld [vmem:[%s14393_s5 + $0x10] sm:$0xff] }
 0x578   :  { %5578 = vmatprep.subr.bf16.mxu0 %v15128_v19  ;;  %5621 = vmatprep.subr.bf16.mxu1 %v15129_v24  ;;  %v4788_v43 = vld [vmem:[%s14393_s5 + $0x30] sm:$0xff] }
 0x579   :  { %v12773_v55 = vcombine.low %v4784_v6, %v4788_v43  ;;  %v12775_v47 = vcombine.high %v4784_v6, %v4788_v43 }
 0x57b   :  { %5579 = vmatpush1.bf16.msra.mxu0 %v15130_v27  ;;  %5622 = vmatpush1.bf16.msra.mxu1 %v15131_v31 }
 0x57c   :  { %5580 = vmatprep.subr.bf16.mxu0 %v15132_v8  ;;  %5623 = vmatprep.subr.bf16.mxu1 %v15133_v41 }
 0x57f   :  { %5581 = vmatpush1.bf16.msra.mxu0 %v15134_v5  ;;  %5624 = vmatpush1.bf16.msra.mxu1 %v15135_v44 }
 0x580   :  { %5636 = vmatprep.subr.bf16.mxu0 %v12775_v47  ;;  %5679 = vmatprep.subr.bf16.mxu1 %v12782_v10 }
 0x5d5   :  { %v4545_v59 = vpop.f32.mrb[16].mxu0  ;;  %v4588_v21 = vpop.f32.mrb[16].mxu1 }
 0x5d6   :  { %v9714_v51 = vadd.f32 %v4545_v59, %v15136_v40  ;;  %v4547_v42 = vpop.f32.mrb[17].mxu0  ;;  %v4590_v63 = vpop.f32.mrb[17].mxu1  ;;  %v9746_v9 = vadd.f32 %v4588_v21, %v15138_v30 }
 0x5d7   :  { %v9715_v0 = vadd.f32 %v4547_v42, %v15137_v58  ;;  %v4549_v46 = vpop.f32.mrb[18].mxu0  ;;  %v4592_v57 = vpop.f32.mrb[18].mxu1  ;;  %v9747_v2 = vadd.f32 %v4590_v63, %v14947_v32 }
 0x5d8   :  { %v4699_v13 = vmul.f32 0.5, %v9714_v51  ;;  %v9716_v23 = vadd.f32 %v4549_v46, %v15136_v40  ;;  %v4551_v12 = vpop.f32.mrb[19].mxu0  ;;  %v4594_v56 = vpop.f32.mrb[19].mxu1  ;;  %v9748_v14 = vadd.f32 %v4592_v57, %v15138_v30  ;;  %v4701_v4 = vmul.f32 0.5, %v9746_v9 }
 0x5d9   :  { %v4700_v61 = vmul.f32 0.5, %v9715_v0  ;;  %v9717_v38 = vadd.f32 %v4551_v12, %v15137_v58  ;;  %v9749_v26 = vadd.f32 %v4594_v56, %v14947_v32 }
 0x5da   :  { %9989 = vtanh.f32 %v4699_v13  ;;  %v4702_v3 = vmul.f32 0.5, %v9716_v23  ;;  %v4704_v15 = vmul.f32 0.5, %v9748_v14 }
 0x5db   :  { %v4703_v39 = vmul.f32 0.5, %v9717_v38  ;;  %9991 = vtanh.f32 %v4700_v61 }
 0x5dc   :  { %9993 = vtanh.f32 %v4702_v3 }
 0x5dd   :  { %9995 = vtanh.f32 %v9747_v2 }
 0x5de   :  { %9997 = vtanh.f32 %v4703_v39 }
 0x5df   :  { %9999 = vtanh.f32 %v9749_v26 }
 0x5e0   :  { %10001 = vtanh.f32 %v4701_v4 }
 0x5e1   :  { %10003 = vtanh.f32 %v4704_v15 }
 0x5e4   :  { %v9990_v50 = vpop.eup %9989 }
 0x5e5   :  { %v4711_v53 = vmul.f32 0.5, %v9990_v50  ;;  %v9992_v22 = vpop.eup %9991 }
 0x5e6   :  { %v9994_v34 = vpop.eup %9993  ;;  %v4712_v7 = vmul.f32 0.5, %v9992_v22 }
 0x5e7   :  { %v4717_v18 = vadd.f32 0.5, %v4711_v53  ;;  %v9996_v25 = vpop.eup %9995  ;;  %v4714_v60 = vmul.f32 0.5, %v9994_v34  ;;  %v15139_v53 = vld [vmem:[#allocation99_spill] sm:$0xff] }
 0x5e8   :  { %v9998_v11 = vpop.eup %9997  ;;  %v4718_v28 = vadd.f32 0.5, %v4712_v7 }
 0x5e9   :  { %v4727_v36 = vmul.f32 %v9996_v25, %v4717_v18  ;;  %v4720_v16 = vadd.f32 0.5, %v4714_v60  ;;  %v4715_v37 = vmul.f32 0.5, %v9998_v11  ;;  %v10000_v29 = vpop.eup %9999 }
 0x5ea   :  { %v4725_v19 = vmul.f32 %v4718_v28, %v12603_v54  ;;  %v10002_v5 = vpop.eup %10001 }
 0x5eb   :  { %v4721_v24 = vadd.f32 0.5, %v4715_v37  ;;  %v4728_v27 = vmul.f32 %v10000_v29, %v4720_v16  ;;  %v10004_v44 = vpop.eup %10003  ;;  %v4713_v6 = vmul.f32 0.5, %v10002_v5 }
 0x5ec   :  { %v12795_v31 = vadd.f32 %v4727_v36, %v4725_v19  ;;  %v4716_v43 = vmul.f32 0.5, %v10004_v44 }
 0x5ed   :  { %v4726_v8 = vmul.f32 %v4721_v24, %v12607_v49  ;;  %v4719_v20 = vadd.f32 0.5, %v4713_v6 }
 0x5ee   :  { %10005 = vtanh.f32 %v12795_v31  ;;  %v4722_v59 = vadd.f32 0.5, %v4716_v43 }
 0x5ef   :  { %v12799_v41 = vadd.f32 %v4728_v27, %v4726_v8 }
 0x5f1   :  { %10007 = vtanh.f32 %v12799_v41 }
 0x5f8   :  { %v10006_v52 = vpop.eup %10005 }
 0x5f9   :  { %v4733_v21 = vmul.f32 %v10006_v52, %v4719_v20 }
 0x5fb   :  { %v10008_v54 = vpop.eup %10007 }
 0x5fc   :  { %v4734_v51 = vmul.f32 %v10008_v54, %v4722_v59 }
 0x5fe   :  { %v12802_v42 = vpack.c.bf16 %v4734_v51, %v4733_v21 }
 0x615   :  { %v4631_v63 = vpop.f32.mrb[44].mxu0  ;;  %v4674_v49 = vpop.f32.mrb[44].mxu1 }
 0x616   :  { %v4735_v0 = vadd.f32 %v4631_v63, %v11610_v45  ;;  %v4633_v46 = vpop.f32.mrb[45].mxu0  ;;  %v4676_v57 = vpop.f32.mrb[45].mxu1  ;;  %v4737_v4 = vadd.f32 %v4674_v49, %v15139_v53 }
 0x617   :  { %v4736_v13 = vadd.f32 %v4633_v46, %v11614_v35  ;;  %v4635_v23 = vpop.f32.mrb[46].mxu0  ;;  %v4678_v12 = vpop.f32.mrb[46].mxu1  ;;  %v4738_v26 = vadd.f32 %v4676_v57, %v11619_v62 }
 0x618   :  { %v4743_v56 = vmul.f32 0.5, %v4735_v0  ;;  %v4739_v61 = vadd.f32 %v4635_v23, %v11610_v45  ;;  %v4637_v38 = vpop.f32.mrb[47].mxu0  ;;  %v4680_v2 = vpop.f32.mrb[47].mxu1  ;;  %v4741_v22 = vadd.f32 %v4678_v12, %v15139_v53  ;;  %v4745_v18 = vmul.f32 0.5, %v4737_v4  ;;  %v4793_v23 = vld [vmem:[%s14393_s5 + $0x58] sm:$0xff] }
 0x619   :  { %v4744_v3 = vmul.f32 0.5, %v4736_v13  ;;  %v4740_v39 = vadd.f32 %v4637_v38, %v11614_v35  ;;  %v4742_v50 = vadd.f32 %v4680_v2, %v11619_v62  ;;  %v4796_v13 = vld [vmem:[%s14393_s5 + $0x70] sm:$0xff]  ;;  %v4797_v12 = vld [vmem:[%s14393_s5 + $0x78] sm:$0xff] }
 0x61a   :  { %10009 = vtanh.f32 %v4743_v56  ;;  %v4746_v9 = vmul.f32 0.5, %v4739_v61  ;;  %v4748_v25 = vmul.f32 0.5, %v4741_v22  ;;  %v4800_v61 = vld [vmem:[%s14393_s5 + $0x90] sm:$0xff]  ;;  %v12841_v2 = vcombine.high %v4793_v23, %v4797_v12 }
 0x61b   :  { %v4747_v14 = vmul.f32 0.5, %v4740_v39  ;;  %10011 = vtanh.f32 %v4744_v3  ;;  %v4804_v3 = vld [vmem:[%s14393_s5 + $0xb0] sm:$0xff]  ;;  %v4801_v39 = vld [vmem:[%s14393_s5 + $0x98] sm:$0xff] }
 0x61c   :  { %10013 = vtanh.f32 %v4746_v9  ;;  %v4808_v22 = vld [vmem:[%s14393_s5 + $0xd0] sm:$0xff] }
 0x61d   :  { %10015 = vtanh.f32 %v4738_v26  ;;  %v4805_v26 = vld [vmem:[%s14393_s5 + $0xb8] sm:$0xff] }
 0x61e   :  { %10017 = vtanh.f32 %v4747_v14  ;;  %v12858_v14 = vcombine.low %v4793_v23, %v4797_v12  ;;  %v12864_v4 = vcombine.high %v4801_v39, %v4805_v26  ;;  %v4844_v23 = vld [vmem:[%s14393_s5 + $0x1f0] sm:$0xff]  ;;  %v4841_v12 = vld [vmem:[%s14393_s5 + $0x1d8] sm:$0xff] }
 0x61f   :  { %10019 = vtanh.f32 %v4742_v50  ;;  %v12862_v50 = vcombine.high %v4800_v61, %v4804_v3 }
 0x620   :  { %10021 = vtanh.f32 %v4745_v18  ;;  %v4813_v18 = vld [vmem:[%s14393_s5 + $0xf8] sm:$0xff] }
 0x621   :  { %10023 = vtanh.f32 %v4748_v25  ;;  %v12884_v25 = vcombine.low %v4801_v39, %v4805_v26 }
 0x624   :  { %v10010_v15 = vpop.eup %10009 }
 0x625   :  { %v4755_v34 = vmul.f32 0.5, %v10010_v15  ;;  %v10012_v7 = vpop.eup %10011  ;;  %v4812_v15 = vld [vmem:[%s14393_s5 + $0xf0] sm:$0xff] }
 0x626   :  { %v10014_v60 = vpop.eup %10013  ;;  %v4756_v28 = vmul.f32 0.5, %v10012_v7  ;;  %v12882_v7 = vcombine.low %v4800_v61, %v4804_v3  ;;  %v4845_v61 = vld [vmem:[%s14393_s5 + $0x1f8] sm:$0xff] }
 0x627   :  { %v4761_v11 = vadd.f32 0.5, %v4755_v34  ;;  %v10016_v36 = vpop.eup %10015  ;;  %v4758_v16 = vmul.f32 0.5, %v10014_v60  ;;  %v4809_v34 = vld [vmem:[%s14393_s5 + $0xd8] sm:$0xff]  ;;  %v12888_v60 = vcombine.high %v4808_v22, %v4812_v15 }
 0x628   :  { %v10018_v37 = vpop.eup %10017  ;;  %v4762_v29 = vadd.f32 0.5, %v4756_v28  ;;  %v4816_v28 = vld [vmem:[%s14393_s5 + $0x110] sm:$0xff] }
 0x629   :  { %v4771_v19 = vmul.f32 %v10016_v36, %v4761_v11  ;;  %v4764_v24 = vadd.f32 0.5, %v4758_v16  ;;  %v4759_v27 = vmul.f32 0.5, %v10018_v37  ;;  %v10020_v8 = vpop.eup %10019  ;;  %v12890_v11 = vcombine.high %v4809_v34, %v4813_v18  ;;  %v4820_v36 = vld [vmem:[%s14393_s5 + $0x130] sm:$0xff]  ;;  %v4817_v16 = vld [vmem:[%s14393_s5 + $0x118] sm:$0xff] }
 0x62a   :  { %v4769_v5 = vmul.f32 %v4762_v29, %v12621_v48  ;;  %v10022_v59 = vpop.eup %10021  ;;  %v4821_v37 = vld [vmem:[%s14393_s5 + $0x138] sm:$0xff]  ;;  %v12906_v29 = vcombine.low %v4808_v22, %v4812_v15  ;;  %v12986_v22 = vcombine.high %v4841_v12, %v4845_v61  ;;  %v4848_v15 = vld [vmem:[%s14393_s5 + $0x210] sm:$0xff] }
 0x62b   :  { %v4765_v44 = vadd.f32 0.5, %v4759_v27  ;;  %v4772_v6 = vmul.f32 %v10020_v8, %v4764_v24  ;;  %v10024_v54 = vpop.eup %10023  ;;  %v4757_v21 = vmul.f32 0.5, %v10022_v59  ;;  %v12912_v24 = vcombine.high %v4816_v28, %v4820_v36  ;;  %v4824_v8 = vld [vmem:[%s14393_s5 + $0x150] sm:$0xff] }
 0x62c   :  { %v12813_v43 = vadd.f32 %v4771_v19, %v4769_v5  ;;  %v4760_v51 = vmul.f32 0.5, %v10024_v54  ;;  %v12908_v19 = vcombine.low %v4809_v34, %v4813_v18  ;;  %v12914_v27 = vcombine.high %v4817_v16, %v4821_v37  ;;  %v4828_v5 = vld [vmem:[%s14393_s5 + $0x170] sm:$0xff]  ;;  %v4849_v18 = vld [vmem:[%s14393_s5 + $0x218] sm:$0xff] }
 0x62d   :  { %v4770_v52 = vmul.f32 %v4765_v44, %v12625_v17  ;;  %v4763_v49 = vadd.f32 0.5, %v4757_v21  ;;  %v4792_v17 = vld [vmem:[%s14393_s5 + $0x50] sm:$0xff]  ;;  %v4825_v44 = vld [vmem:[%s14393_s5 + $0x158] sm:$0xff]  ;;  %v12932_v59 = vcombine.low %v4817_v16, %v4821_v37  ;;  %v12936_v54 = vcombine.high %v4824_v8, %v4828_v5 }
 0x62e   :  { %10025 = vtanh.f32 %v12813_v43  ;;  %v4766_v0 = vadd.f32 0.5, %v4760_v51  ;;  %v12839_v38 = vcombine.high %v4792_v17, %v4796_v13  ;;  %v12856_v9 = vcombine.low %v4792_v17, %v4796_v13  ;;  %v4832_v51 = vld [vmem:[%s14393_s5 + $0x190] sm:$0xff] }
 0x62f   :  { %v12817_v20 = vadd.f32 %v4772_v6, %v4770_v52  ;;  %v4829_v6 = vld [vmem:[%s14393_s5 + $0x178] sm:$0xff]  ;;  %v12930_v52 = vcombine.low %v4816_v28, %v4820_v36  ;;  %v4840_v13 = vld [vmem:[%s14393_s5 + $0x1d0] sm:$0xff]  ;;  %v13004_v16 = vcombine.low %v4841_v12, %v4845_v61 }
 0x630   :  { %v12938_v21 = vcombine.high %v4825_v44, %v4829_v6  ;;  %v12984_v26 = vcombine.high %v4840_v13, %v4844_v23  ;;  %v4852_v34 = vld [vmem:[%s14393_s5 + $0x230] sm:$0xff]  ;;  %v4853_v28 = vld [vmem:[%s14393_s5 + $0x238] sm:$0xff]  ;;  %v13002_v36 = vcombine.low %v4840_v13, %v4844_v23 }
 0x631   :  { %10027 = vtanh.f32 %v12817_v20  ;;  %v13008_v37 = vcombine.high %v4848_v15, %v4852_v34  ;;  %v4864_v23 = vld [vmem:[%s14393_s5 + $0x290] sm:$0xff]  ;;  %v4865_v61 = vld [vmem:[%s14393_s5 + $0x298] sm:$0xff] }
 0x632   :  { %v4868_v12 = vld [vmem:[%s14393_s5 + $0x2b0] sm:$0xff] }
 0x638   :  { %v10026_v63 = vpop.eup %10025 }
 0x639   :  { %v4777_v46 = vmul.f32 %v10026_v63, %v4763_v49  ;;  %v4836_v63 = vld [vmem:[%s14393_s5 + $0x1b0] sm:$0xff]  ;;  %v4833_v49 = vld [vmem:[%s14393_s5 + $0x198] sm:$0xff] }
 0x63a   :  { %v12978_v3 = vcombine.low %v4832_v51, %v4836_v63 }
 0x63b   :  { %v10028_v48 = vpop.eup %10027 }
 0x63c   :  { %v4778_v57 = vmul.f32 %v10028_v48, %v4766_v0  ;;  %v4837_v0 = vld [vmem:[%s14393_s5 + $0x1b8] sm:$0xff]  ;;  %v12954_v48 = vcombine.low %v4824_v8, %v4828_v5  ;;  %v13010_v8 = vcombine.high %v4849_v18, %v4853_v28  ;;  %v4856_v5 = vld [vmem:[%s14393_s5 + $0x250] sm:$0xff] }
 0x63d   :  { %v12962_v17 = vcombine.high %v4833_v49, %v4837_v0  ;;  %v12980_v39 = vcombine.low %v4833_v49, %v4837_v0  ;;  %v13028_v49 = vcombine.low %v4849_v18, %v4853_v28  ;;  %v13056_v28 = vcombine.high %v4864_v23, %v4868_v12 }
 0x63e   :  { %v12832_v56 = vpack.c.bf16 %v4778_v57, %v4777_v46  ;;  %v12956_v46 = vcombine.low %v4825_v44, %v4829_v6  ;;  %v12960_v57 = vcombine.high %v4832_v51, %v4836_v63  ;;  %v4860_v44 = vld [vmem:[%s14393_s5 + $0x270] sm:$0xff]  ;;  %v4857_v6 = vld [vmem:[%s14393_s5 + $0x258] sm:$0xff]  ;;  %v13026_v63 = vcombine.low %v4848_v15, %v4852_v34 }
 0x63f   :  { %v4861_v51 = vld [vmem:[%s14393_s5 + $0x278] sm:$0xff]  ;;  %15142 = vst [vmem:[#allocation11_spill] sm:$0xff] %v13028_v49  ;;  %v13032_v0 = vcombine.high %v4856_v5, %v4860_v44  ;;  %v13050_v34 = vcombine.low %v4856_v5, %v4860_v44  ;;  %15147 = vst [vmem:[#allocation16_spill] sm:$0xff] %v13056_v28 }
 0x640   :  { %15140 = vst [vmem:[#allocation9_spill] sm:$0xff] %v12832_v56  ;;  %5582 = vmatprep.mubr.bf16.mxu0 %v12832_v56  ;;  %5625 = vmatprep.mubr.bf16.mxu1 %v12832_v56  ;;  %15141 = vst [vmem:[#allocation10_spill] sm:$0xff] %v13026_v63  ;;  %v13034_v13 = vcombine.high %v4857_v6, %v4861_v51  ;;  %v4869_v15 = vld [vmem:[%s14393_s5 + $0x2b8] sm:$0xff]  ;;  %v13052_v18 = vcombine.low %v4857_v6, %v4861_v51 }
 0x641   :  { %5583 = vmatmul.mubr.bf16.vlgmr.msra.gmra.mrb[20].mxu0 %v12802_v42  ;;  %5626 = vmatmul.mubr.bf16.vlgmr.msra.gmra.mrb[20].mxu1 %v12802_v42  ;;  %15143 = vst [vmem:[#allocation12_spill] sm:$0xff] %v13032_v0  ;;  %15145 = vst [vmem:[#allocation14_spill] sm:$0xff] %v13050_v34  ;;  %v4873_v5 = vld [vmem:[%s14393_s5 + $0x2d8] sm:$0xff]  ;;  %v13074_v6 = vcombine.low %v4864_v23, %v4868_v12  ;;  %v13076_v51 = vcombine.low %v4865_v61, %v4869_v15 }
 0x642   :  { %5637 = vmatpush1.bf16.msra.mxu0 %v12773_v55  ;;  %5680 = vmatpush1.bf16.msra.mxu1 %v12780_v33  ;;  %15144 = vst [vmem:[#allocation13_spill] sm:$0xff] %v13034_v13  ;;  %15146 = vst [vmem:[#allocation15_spill] sm:$0xff] %v13052_v18  ;;  %v4877_v44 = vld [vmem:[%s14393_s5 + $0x2f8] sm:$0xff] }
 0x643   :  { %5668 = vmatprep.mubr.bf16.mxu0 %v12832_v56  ;;  %5711 = vmatprep.mubr.bf16.mxu1 %v12832_v56  ;;  %v13058_v56 = vcombine.high %v4865_v61, %v4869_v15  ;;  %15149 = vst [vmem:[#allocation18_spill] sm:$0xff] %v13074_v6  ;;  %15150 = vst [vmem:[#allocation19_spill] sm:$0xff] %v13076_v51  ;;  %v4881_v23 = vld [vmem:[%s14393_s5 + $0x318] sm:$0xff]  ;;  %v13100_v15 = vcombine.low %v4873_v5, %v4877_v44 }
 0x644   :  { %5638 = vmatprep.subr.bf16.mxu0 %v12839_v38  ;;  %5681 = vmatprep.subr.bf16.mxu1 %v12841_v2  ;;  %v4885_v12 = vld [vmem:[%s14393_s5 + $0x338] sm:$0xff] }
 0x645   :  { %15148 = vst [vmem:[#allocation17_spill] sm:$0xff] %v13058_v56  ;;  %15154 = vst [vmem:[#allocation23_spill] sm:$0xff] %v13100_v15 }
 0x646   :  { %5639 = vmatpush1.bf16.msra.mxu0 %v12856_v9  ;;  %5682 = vmatpush1.bf16.msra.mxu1 %v12858_v14 }
 0x647   :  { %5640 = vmatprep.subr.bf16.mxu0 %v12862_v50  ;;  %5683 = vmatprep.subr.bf16.mxu1 %v12864_v4 }
 0x64a   :  { %5641 = vmatpush1.bf16.msra.mxu0 %v12882_v7  ;;  %5684 = vmatpush1.bf16.msra.mxu1 %v12884_v25 }
 0x64b   :  { %5642 = vmatprep.subr.bf16.mxu0 %v12888_v60  ;;  %5685 = vmatprep.subr.bf16.mxu1 %v12890_v11 }
 0x64e   :  { %5643 = vmatpush1.bf16.msra.mxu0 %v12906_v29  ;;  %5686 = vmatpush1.bf16.msra.mxu1 %v12908_v19 }
 0x64f   :  { %5644 = vmatprep.subr.bf16.mxu0 %v12912_v24  ;;  %5687 = vmatprep.subr.bf16.mxu1 %v12914_v27 }
 0x652   :  { %5645 = vmatpush1.bf16.msra.mxu0 %v12930_v52  ;;  %5688 = vmatpush1.bf16.msra.mxu1 %v12932_v59 }
 0x653   :  { %5646 = vmatprep.subr.bf16.mxu0 %v12936_v54  ;;  %5689 = vmatprep.subr.bf16.mxu1 %v12938_v21 }
 0x656   :  { %5647 = vmatpush1.bf16.msra.mxu0 %v12954_v48  ;;  %5690 = vmatpush1.bf16.msra.mxu1 %v12956_v46 }
 0x657   :  { %5648 = vmatprep.subr.bf16.mxu0 %v12960_v57  ;;  %5691 = vmatprep.subr.bf16.mxu1 %v12962_v17 }
 0x65a   :  { %5649 = vmatpush1.bf16.msra.mxu0 %v12978_v3  ;;  %5692 = vmatpush1.bf16.msra.mxu1 %v12980_v39 }
 0x65b   :  { %5650 = vmatprep.subr.bf16.mxu0 %v12984_v26  ;;  %5693 = vmatprep.subr.bf16.mxu1 %v12986_v22 }
 0x65e   :  { %5651 = vmatpush1.bf16.msra.mxu0 %v13002_v36  ;;  %5694 = vmatpush1.bf16.msra.mxu1 %v13004_v16 }
 0x65f   :  { %5652 = vmatprep.subr.bf16.mxu0 %v13008_v37  ;;  %5695 = vmatprep.subr.bf16.mxu1 %v13010_v8 }
 0x662   :  { %5653 = vmatpush1.bf16.msra.mxu0 %v13026_v63  ;;  %5696 = vmatpush1.bf16.msra.mxu1 %v13028_v49  ;;  %v4876_v49 = vld [vmem:[%s14393_s5 + $0x2f0] sm:$0xff] }
 0x663   :  { %5654 = vmatprep.subr.bf16.mxu0 %v13032_v0  ;;  %5697 = vmatprep.subr.bf16.mxu1 %v13034_v13  ;;  %v13080_v13 = vcombine.high %v4872_v1, %v4876_v49  ;;  %v13082_v0 = vcombine.high %v4873_v5, %v4877_v44  ;;  %v4880_v63 = vld [vmem:[%s14393_s5 + $0x310] sm:$0xff]  ;;  %v13098_v61 = vcombine.low %v4872_v1, %v4876_v49  ;;  %v4889_v1 = vld [vmem:[%s14393_s5 + $0x358] sm:$0xff] }
 0x664   :  { %v4893_v49 = vld [vmem:[%s14393_s5 + $0x378] sm:$0xff]  ;;  %v13124_v44 = vcombine.low %v4881_v23, %v4885_v12 }
 0x665   :  { %15151 = vst [vmem:[#allocation20_spill] sm:$0xff] %v13080_v13  ;;  %15152 = vst [vmem:[#allocation21_spill] sm:$0xff] %v13082_v0 }
 0x666   :  { %5655 = vmatpush1.bf16.msra.mxu0 %v13050_v34  ;;  %5698 = vmatpush1.bf16.msra.mxu1 %v13052_v18  ;;  %v4884_v18 = vld [vmem:[%s14393_s5 + $0x330] sm:$0xff]  ;;  %15153 = vst [vmem:[#allocation22_spill] sm:$0xff] %v13098_v61  ;;  %15158 = vst [vmem:[#allocation27_spill] sm:$0xff] %v13124_v44 }
 0x667   :  { %5656 = vmatprep.subr.bf16.mxu0 %v13056_v28  ;;  %5699 = vmatprep.subr.bf16.mxu1 %v13058_v56  ;;  %v13104_v56 = vcombine.high %v4880_v63, %v4884_v18  ;;  %v13106_v28 = vcombine.high %v4881_v23, %v4885_v12  ;;  %v4888_v34 = vld [vmem:[%s14393_s5 + $0x350] sm:$0xff]  ;;  %v13122_v5 = vcombine.low %v4880_v63, %v4884_v18  ;;  %v4897_v63 = vld [vmem:[%s14393_s5 + $0x398] sm:$0xff] }
 0x668   :  { %v4901_v18 = vld [vmem:[%s14393_s5 + $0x3b8] sm:$0xff]  ;;  %v13148_v12 = vcombine.low %v4889_v1, %v4893_v49 }
 0x669   :  { %15155 = vst [vmem:[#allocation24_spill] sm:$0xff] %v13104_v56  ;;  %15156 = vst [vmem:[#allocation25_spill] sm:$0xff] %v13106_v28 }
 0x66a   :  { %5657 = vmatpush1.bf16.msra.mxu0 %v13074_v6  ;;  %5700 = vmatpush1.bf16.msra.mxu1 %v13076_v51  ;;  %v4892_v51 = vld [vmem:[%s14393_s5 + $0x370] sm:$0xff]  ;;  %15157 = vst [vmem:[#allocation26_spill] sm:$0xff] %v13122_v5 }
 0x66b   :  { %5658 = vmatprep.subr.bf16.mxu0 %v13080_v13  ;;  %5701 = vmatprep.subr.bf16.mxu1 %v13082_v0  ;;  %v13128_v0 = vcombine.high %v4888_v34, %v4892_v51  ;;  %v13130_v13 = vcombine.high %v4889_v1, %v4893_v49  ;;  %v4896_v6 = vld [vmem:[%s14393_s5 + $0x390] sm:$0xff]  ;;  %v13146_v23 = vcombine.low %v4888_v34, %v4892_v51  ;;  %v4905_v34 = vld [vmem:[%s14393_s5 + $0x3d8] sm:$0xff] }
 0x66c   :  { %v4909_v51 = vld [vmem:[%s14393_s5 + $0x3f8] sm:$0xff]  ;;  %v13172_v49 = vcombine.low %v4897_v63, %v4901_v18 }
 0x66d   :  { %15159 = vst [vmem:[#allocation28_spill] sm:$0xff] %v13128_v0  ;;  %15160 = vst [vmem:[#allocation29_spill] sm:$0xff] %v13130_v13 }
 0x66e   :  { %5659 = vmatpush1.bf16.msra.mxu0 %v13098_v61  ;;  %5702 = vmatpush1.bf16.msra.mxu1 %v13100_v15  ;;  %v4900_v15 = vld [vmem:[%s14393_s5 + $0x3b0] sm:$0xff]  ;;  %15161 = vst [vmem:[#allocation30_spill] sm:$0xff] %v13146_v23  ;;  %15165 = vst [vmem:[#allocation32_spill] sm:$0xff] %v13172_v49 }
 0x66f   :  { %5660 = vmatprep.subr.bf16.mxu0 %v13104_v56  ;;  %5703 = vmatprep.subr.bf16.mxu1 %v13106_v28  ;;  %v13152_v28 = vcombine.high %v4896_v6, %v4900_v15  ;;  %v13154_v56 = vcombine.high %v4897_v63, %v4901_v18  ;;  %v4904_v61 = vld [vmem:[%s14393_s5 + $0x3d0] sm:$0xff]  ;;  %v13170_v1 = vcombine.low %v4896_v6, %v4900_v15  ;;  %v5821_v6 = vld [vmem:[%s14393_s5] sm:$0xff]  ;;  %v5822_v15 = vld [vmem:[%s14393_s5 + $0x8] sm:$0xff] }
 0x670   :  { %v5829_v18 = vld [vmem:[%s14393_s5 + $0x40] sm:$0xff] }
 0x671   :  { %15162 = vst [vmem:[#allocation31_spill] sm:$0xff] %v13152_v28  ;;  %15163 = vst [vmem:[#allocation33_spill] sm:$0xff] %v13154_v56 }
 0x672   :  { %5661 = vmatpush1.bf16.msra.mxu0 %v13122_v5  ;;  %5704 = vmatpush1.bf16.msra.mxu1 %v13124_v44  ;;  %v4908_v44 = vld [vmem:[%s14393_s5 + $0x3f0] sm:$0xff]  ;;  %15164 = vst [vmem:[#allocation35_spill] sm:$0xff] %v13170_v1 }
 0x673   :  { %5662 = vmatprep.subr.bf16.mxu0 %v13128_v0  ;;  %5705 = vmatprep.subr.bf16.mxu1 %v13130_v13  ;;  %v13176_v13 = vcombine.high %v4904_v61, %v4908_v44  ;;  %v13178_v0 = vcombine.high %v4905_v34, %v4909_v51  ;;  %v13182_v5 = vcombine.low %v4904_v61, %v4908_v44  ;;  %v5825_v61 = vld [vmem:[%s14393_s5 + $0x20] sm:$0xff] }
 0x674   :  { %v13201_v44 = vcombine.low %v5821_v6, %v5825_v61  ;;  %v13203_v63 = vcombine.high %v5821_v6, %v5825_v61  ;;  %v5830_v6 = vld [vmem:[%s14393_s5 + $0x48] sm:$0xff] }
 0x675   :  { %15166 = vst [vmem:[#allocation34_spill] sm:$0xff] %v13176_v13  ;;  %15167 = vst [vmem:[#allocation36_spill] sm:$0xff] %v13178_v0  ;;  %v5834_v61 = vld [vmem:[%s14393_s5 + $0x68] sm:$0xff] }
 0x676   :  { %5663 = vmatpush1.bf16.msra.mxu0 %v13146_v23  ;;  %5706 = vmatpush1.bf16.msra.mxu1 %v13148_v12  ;;  %15168 = vst [vmem:[#allocation37_spill] sm:$0xff] %v13182_v5  ;;  %v13184_v23 = vcombine.low %v4905_v34, %v4909_v51  ;;  %15170 = vst [vmem:[#allocation41_spill] sm:$0xff] %v13201_v44  ;;  %v5833_v34 = vld [vmem:[%s14393_s5 + $0x60] sm:$0xff] }
 0x677   :  { %5664 = vmatprep.subr.bf16.mxu0 %v13152_v28  ;;  %5707 = vmatprep.subr.bf16.mxu1 %v13154_v56  ;;  %15171 = vst [vmem:[#allocation38_spill] sm:$0xff] %v13203_v63 }
 0x678   :  { %15169 = vst [vmem:[#allocation39_spill] sm:$0xff] %v13184_v23 }
 0x67a   :  { %5665 = vmatpush1.bf16.msra.mxu0 %v13170_v1  ;;  %5708 = vmatpush1.bf16.msra.mxu1 %v13172_v49  ;;  %v5842_v49 = vld [vmem:[%s14393_s5 + $0xa8] sm:$0xff]  ;;  %v13243_v1 = vcombine.low %v5829_v18, %v5833_v34 }
 0x67b   :  { %5666 = vmatprep.subr.bf16.mxu0 %v13176_v13  ;;  %5709 = vmatprep.subr.bf16.mxu1 %v13178_v0  ;;  %v5837_v0 = vld [vmem:[%s14393_s5 + $0x80] sm:$0xff]  ;;  %v13230_v13 = vcombine.high %v5830_v6, %v5834_v61 }
 0x67c   :  { %15176 = vst [vmem:[#allocation45_spill] sm:$0xff] %v13243_v1 }
 0x67d   :  { %15175 = vst [vmem:[#allocation44_spill] sm:$0xff] %v13230_v13 }
 0x67e   :  { %5667 = vmatpush1.bf16.msra.mxu0 %v13182_v5  ;;  %5710 = vmatpush1.bf16.msra.mxu1 %v13184_v23  ;;  %v13218_v5 = vcombine.high %v5829_v18, %v5833_v34  ;;  %v5849_v18 = vld [vmem:[%s14393_s5 + $0xe0] sm:$0xff]  ;;  %v5846_v34 = vld [vmem:[%s14393_s5 + $0xc8] sm:$0xff] }
 0x67f   :  { %6589 = vmatprep.subr.bf16.mxu0 %v13203_v63  ;;  %v13247_v63 = vcombine.low %v5830_v6, %v5834_v61  ;;  %v5850_v6 = vld [vmem:[%s14393_s5 + $0xe8] sm:$0xff] }
 0x680   :  { %15174 = vst [vmem:[#allocation43_spill] sm:$0xff] %v13218_v5 }
 0x681   :  { %5669 = vmatmul.mubr.bf16.vlgmr.msra.gmra.mrb[48].mxu0 %v12802_v42  ;;  %5712 = vmatmul.mubr.bf16.vlgmr.msra.gmra.mrb[48].mxu1 %v12802_v42  ;;  %v5826_v42 = vld [vmem:[%s14393_s5 + $0x28] sm:$0xff]  ;;  %15177 = vst [vmem:[#allocation46_spill] sm:$0xff] %v13247_v63 }
 0x682   :  { %v13214_v51 = vcombine.low %v5822_v15, %v5826_v42  ;;  %v13216_v23 = vcombine.high %v5822_v15, %v5826_v42  ;;  %v5841_v15 = vld [vmem:[%s14393_s5 + $0xa0] sm:$0xff]  ;;  %v5838_v42 = vld [vmem:[%s14393_s5 + $0x88] sm:$0xff]  ;;  %6590 = vmatpush1.bf16.msra.mxu0 %v13201_v44 }
 0x683   :  { %6591 = vmatprep.subr.bf16.mxu0 %v13218_v5  ;;  %v13249_v56 = vcombine.high %v5837_v0, %v5841_v15  ;;  %v13252_v28 = vcombine.high %v5838_v42, %v5842_v49  ;;  %v13267_v61 = vcombine.low %v5837_v0, %v5841_v15  ;;  %v5853_v44 = vld [vmem:[%s14393_s5 + $0x100] sm:$0xff]  ;;  %v5854_v15 = vld [vmem:[%s14393_s5 + $0x108] sm:$0xff] }
 0x684   :  { %15172 = vst [vmem:[#allocation40_spill] sm:$0xff] %v13214_v51  ;;  %15173 = vst [vmem:[#allocation42_spill] sm:$0xff] %v13216_v23  ;;  %6632 = vmatprep.subr.bf16.mxu1 %v13216_v23  ;;  %v5845_v23 = vld [vmem:[%s14393_s5 + $0xc0] sm:$0xff] }
 0x685   :  { %6633 = vmatpush1.bf16.msra.mxu1 %v13214_v51  ;;  %15178 = vst [vmem:[#allocation47_spill] sm:$0xff] %v13249_v56  ;;  %15179 = vst [vmem:[#allocation48_spill] sm:$0xff] %v13252_v28  ;;  %v13273_v5 = vcombine.high %v5845_v23, %v5849_v18  ;;  %v13276_v51 = vcombine.high %v5846_v34, %v5850_v6  ;;  %v5857_v0 = vld [vmem:[%s14393_s5 + $0x120] sm:$0xff] }
 0x686   :  { %6634 = vmatprep.subr.bf16.mxu1 %v13230_v13  ;;  %6592 = vmatpush1.bf16.msra.mxu0 %v13243_v1  ;;  %15180 = vst [vmem:[#allocation49_spill] sm:$0xff] %v13267_v61  ;;  %v13271_v13 = vcombine.low %v5838_v42, %v5842_v49  ;;  %v5858_v49 = vld [vmem:[%s14393_s5 + $0x128] sm:$0xff]  ;;  %v13291_v42 = vcombine.low %v5845_v23, %v5849_v18  ;;  %v5861_v1 = vld [vmem:[%s14393_s5 + $0x140] sm:$0xff] }
 0x687   :  { %6593 = vmatprep.subr.bf16.mxu0 %v13249_v56  ;;  %15182 = vst [vmem:[#allocation51_spill] sm:$0xff] %v13273_v5  ;;  %15183 = vst [vmem:[#allocation52_spill] sm:$0xff] %v13276_v51  ;;  %v13297_v56 = vcombine.high %v5853_v44, %v5857_v0  ;;  %v5865_v23 = vld [vmem:[%s14393_s5 + $0x160] sm:$0xff]  ;;  %v5862_v18 = vld [vmem:[%s14393_s5 + $0x148] sm:$0xff] }
 0x688   :  { %15181 = vst [vmem:[#allocation50_spill] sm:$0xff] %v13271_v13  ;;  %15184 = vst [vmem:[#allocation53_spill] sm:$0xff] %v13291_v42 }
 0x689   :  { %6635 = vmatpush1.bf16.msra.mxu1 %v13247_v63  ;;  %15186 = vst [vmem:[#allocation55_spill] sm:$0xff] %v13297_v56  ;;  %v13300_v63 = vcombine.high %v5854_v15, %v5858_v49 }
 0x68a   :  { %6636 = vmatprep.subr.bf16.mxu1 %v13252_v28  ;;  %6594 = vmatpush1.bf16.msra.mxu0 %v13267_v61  ;;  %v13295_v28 = vcombine.low %v5846_v34, %v5850_v6  ;;  %v5866_v34 = vld [vmem:[%s14393_s5 + $0x168] sm:$0xff]  ;;  %v13315_v6 = vcombine.low %v5853_v44, %v5857_v0  ;;  %v13327_v61 = vcombine.low %v5861_v1, %v5865_v23  ;;  %v5869_v0 = vld [vmem:[%s14393_s5 + $0x180] sm:$0xff] }
 0x68b   :  { %6595 = vmatprep.subr.bf16.mxu0 %v13273_v5  ;;  %15187 = vst [vmem:[#allocation56_spill] sm:$0xff] %v13300_v63  ;;  %v13321_v5 = vcombine.high %v5861_v1, %v5865_v23  ;;  %v13331_v44 = vcombine.low %v5862_v18, %v5866_v34  ;;  %v5873_v1 = vld [vmem:[%s14393_s5 + $0x1a0] sm:$0xff]  ;;  %v5874_v23 = vld [vmem:[%s14393_s5 + $0x1a8] sm:$0xff] }
 0x68c   :  { %15185 = vst [vmem:[#allocation54_spill] sm:$0xff] %v13295_v28  ;;  %15188 = vst [vmem:[#allocation59_spill] sm:$0xff] %v13315_v6 }
 0x68d   :  { %6637 = vmatpush1.bf16.msra.mxu1 %v13271_v13  ;;  %15190 = vst [vmem:[#allocation58_spill] sm:$0xff] %v13321_v5  ;;  %v13324_v13 = vcombine.high %v5862_v18, %v5866_v34  ;;  %15192 = vst [vmem:[#allocation63_spill] sm:$0xff] %v13327_v61  ;;  %v13350_v18 = vcombine.low %v5869_v0, %v5873_v1 }
 0x68e   :  { %6638 = vmatprep.subr.bf16.mxu1 %v13276_v51  ;;  %6596 = vmatpush1.bf16.msra.mxu0 %v13291_v42  ;;  %v13319_v51 = vcombine.low %v5854_v15, %v5858_v49  ;;  %15193 = vst [vmem:[#allocation61_spill] sm:$0xff] %v13331_v44  ;;  %v5870_v15 = vld [vmem:[%s14393_s5 + $0x188] sm:$0xff]  ;;  %v13345_v49 = vcombine.high %v5869_v0, %v5873_v1  ;;  %v5881_v0 = vld [vmem:[%s14393_s5 + $0x1e0] sm:$0xff] }
 0x68f   :  { %6597 = vmatprep.subr.bf16.mxu0 %v13297_v56  ;;  %15191 = vst [vmem:[#allocation60_spill] sm:$0xff] %v13324_v13  ;;  %15195 = vst [vmem:[#allocation62_spill] sm:$0xff] %v13350_v18  ;;  %v13352_v34 = vcombine.low %v5870_v15, %v5874_v23  ;;  %v5878_v1 = vld [vmem:[%s14393_s5 + $0x1c8] sm:$0xff] }
 0x690   :  { %15189 = vst [vmem:[#allocation57_spill] sm:$0xff] %v13319_v51  ;;  %15194 = vst [vmem:[#allocation67_spill] sm:$0xff] %v13345_v49 }
 0x691   :  { %6639 = vmatpush1.bf16.msra.mxu1 %v13295_v28  ;;  %15196 = vst [vmem:[#allocation64_spill] sm:$0xff] %v13352_v34 }
 0x692   :  { %6640 = vmatprep.subr.bf16.mxu1 %v13300_v63  ;;  %6598 = vmatpush1.bf16.msra.mxu0 %v13315_v6  ;;  %v5938_v63 = vld [vmem:[%s14393_s5 + $0x3a8] sm:$0xff] }
 0x693   :  { %6599 = vmatprep.subr.bf16.mxu0 %v13321_v5 }
 0x695   :  { %6641 = vmatpush1.bf16.msra.mxu1 %v13319_v51  ;;  %v5933_v51 = vld [vmem:[%s14393_s5 + $0x380] sm:$0xff] }
 0x696   :  { %6642 = vmatprep.subr.bf16.mxu1 %v13324_v13  ;;  %6600 = vmatpush1.bf16.msra.mxu0 %v13327_v61  ;;  %v5877_v61 = vld [vmem:[%s14393_s5 + $0x1c0] sm:$0xff] }
 0x697   :  { %6601 = vmatprep.subr.bf16.mxu0 %v13345_v49  ;;  %v5885_v49 = vld [vmem:[%s14393_s5 + $0x200] sm:$0xff] }
 0x698   :  { %v5889_v13 = vld [vmem:[%s14393_s5 + $0x220] sm:$0xff] }
 0x699   :  { %6643 = vmatpush1.bf16.msra.mxu1 %v13331_v44  ;;  %v13354_v44 = vcombine.high %v5870_v15, %v5874_v23  ;;  %v13369_v15 = vcombine.high %v5877_v61, %v5881_v0  ;;  %v5882_v23 = vld [vmem:[%s14393_s5 + $0x1e8] sm:$0xff] }
 0x69a   :  { %6602 = vmatpush1.bf16.msra.mxu0 %v13350_v18  ;;  %v13374_v18 = vcombine.low %v5877_v61, %v5881_v0  ;;  %v5886_v61 = vld [vmem:[%s14393_s5 + $0x208] sm:$0xff]  ;;  %v13393_v0 = vcombine.high %v5885_v49, %v5889_v13 }
 0x69b   :  { %15197 = vst [vmem:[#allocation65_spill] sm:$0xff] %v13354_v44  ;;  %6644 = vmatprep.subr.bf16.mxu1 %v13354_v44  ;;  %15198 = vst [vmem:[#allocation71_spill] sm:$0xff] %v13369_v15  ;;  %v13378_v44 = vcombine.high %v5878_v1, %v5882_v23  ;;  %6603 = vmatprep.subr.bf16.mxu0 %v13369_v15  ;;  %v5897_v15 = vld [vmem:[%s14393_s5 + $0x260] sm:$0xff] }
 0x69c   :  { %15199 = vst [vmem:[#allocation66_spill] sm:$0xff] %v13374_v18  ;;  %15202 = vst [vmem:[#allocation75_spill] sm:$0xff] %v13393_v0 }
 0x69d   :  { %6645 = vmatpush1.bf16.msra.mxu1 %v13352_v34  ;;  %v13376_v34 = vcombine.low %v5878_v1, %v5882_v23  ;;  %15201 = vst [vmem:[#allocation69_spill] sm:$0xff] %v13378_v44  ;;  %v5890_v1 = vld [vmem:[%s14393_s5 + $0x228] sm:$0xff]  ;;  %v13398_v23 = vcombine.low %v5885_v49, %v5889_v13 }
 0x69e   :  { %6646 = vmatprep.subr.bf16.mxu1 %v13378_v44  ;;  %6604 = vmatpush1.bf16.msra.mxu0 %v13374_v18  ;;  %v13400_v18 = vcombine.low %v5886_v61, %v5890_v1  ;;  %v13402_v44 = vcombine.high %v5886_v61, %v5890_v1  ;;  %v5894_v13 = vld [vmem:[%s14393_s5 + $0x248] sm:$0xff] }
 0x69f   :  { %15200 = vst [vmem:[#allocation68_spill] sm:$0xff] %v13376_v34  ;;  %15203 = vst [vmem:[#allocation70_spill] sm:$0xff] %v13398_v23  ;;  %6605 = vmatprep.subr.bf16.mxu0 %v13393_v0  ;;  %v5898_v61 = vld [vmem:[%s14393_s5 + $0x268] sm:$0xff]  ;;  %v5905_v0 = vld [vmem:[%s14393_s5 + $0x2a0] sm:$0xff] }
 0x6a0   :  { %15204 = vst [vmem:[#allocation72_spill] sm:$0xff] %v13400_v18  ;;  %15205 = vst [vmem:[#allocation73_spill] sm:$0xff] %v13402_v44 }
 0x6a1   :  { %6647 = vmatpush1.bf16.msra.mxu1 %v13376_v34  ;;  %v5893_v34 = vld [vmem:[%s14393_s5 + $0x240] sm:$0xff] }
 0x6a2   :  { %6648 = vmatprep.subr.bf16.mxu1 %v13402_v44  ;;  %6606 = vmatpush1.bf16.msra.mxu0 %v13398_v23  ;;  %v13417_v49 = vcombine.high %v5893_v34, %v5897_v15  ;;  %v13422_v1 = vcombine.low %v5893_v34, %v5897_v15  ;;  %v13424_v23 = vcombine.low %v5894_v13, %v5898_v61  ;;  %v5902_v34 = vld [vmem:[%s14393_s5 + $0x288] sm:$0xff] }
 0x6a3   :  { %v13426_v44 = vcombine.high %v5894_v13, %v5898_v61  ;;  %v5906_v13 = vld [vmem:[%s14393_s5 + $0x2a8] sm:$0xff] }
 0x6a4   :  { %15206 = vst [vmem:[#allocation79_spill] sm:$0xff] %v13417_v49  ;;  %15207 = vst [vmem:[#allocation74_spill] sm:$0xff] %v13422_v1  ;;  %6607 = vmatprep.subr.bf16.mxu0 %v13417_v49  ;;  %v5913_v49 = vld [vmem:[%s14393_s5 + $0x2e0] sm:$0xff] }
 0x6a5   :  { %6649 = vmatpush1.bf16.msra.mxu1 %v13400_v18  ;;  %15208 = vst [vmem:[#allocation76_spill] sm:$0xff] %v13424_v23  ;;  %15209 = vst [vmem:[#allocation77_spill] sm:$0xff] %v13426_v44  ;;  %v5901_v18 = vld [vmem:[%s14393_s5 + $0x280] sm:$0xff] }
 0x6a6   :  { %6650 = vmatprep.subr.bf16.mxu1 %v13426_v44  ;;  %6608 = vmatpush1.bf16.msra.mxu0 %v13422_v1  ;;  %v13441_v15 = vcombine.high %v5901_v18, %v5905_v0  ;;  %v13446_v61 = vcombine.low %v5901_v18, %v5905_v0  ;;  %v13448_v1 = vcombine.low %v5902_v34, %v5906_v13  ;;  %v5910_v18 = vld [vmem:[%s14393_s5 + $0x2c8] sm:$0xff] }
 0x6a7   :  { %v13450_v44 = vcombine.high %v5902_v34, %v5906_v13  ;;  %v5914_v34 = vld [vmem:[%s14393_s5 + $0x2e8] sm:$0xff] }
 0x6a8   :  { %15210 = vst [vmem:[#allocation83_spill] sm:$0xff] %v13441_v15  ;;  %15211 = vst [vmem:[#allocation78_spill] sm:$0xff] %v13446_v61  ;;  %6609 = vmatprep.subr.bf16.mxu0 %v13441_v15  ;;  %v5921_v15 = vld [vmem:[%s14393_s5 + $0x320] sm:$0xff] }
 0x6a9   :  { %6651 = vmatpush1.bf16.msra.mxu1 %v13424_v23  ;;  %15212 = vst [vmem:[#allocation81_spill] sm:$0xff] %v13448_v1  ;;  %15213 = vst [vmem:[#allocation80_spill] sm:$0xff] %v13450_v44  ;;  %v5909_v23 = vld [vmem:[%s14393_s5 + $0x2c0] sm:$0xff] }
 0x6aa   :  { %6652 = vmatprep.subr.bf16.mxu1 %v13450_v44  ;;  %6610 = vmatpush1.bf16.msra.mxu0 %v13446_v61  ;;  %v13465_v0 = vcombine.high %v5909_v23, %v5913_v49  ;;  %v13470_v13 = vcombine.low %v5909_v23, %v5913_v49  ;;  %v13472_v61 = vcombine.low %v5910_v18, %v5914_v34  ;;  %v5918_v23 = vld [vmem:[%s14393_s5 + $0x308] sm:$0xff] }
 0x6ab   :  { %v13474_v44 = vcombine.high %v5910_v18, %v5914_v34  ;;  %v5922_v34 = vld [vmem:[%s14393_s5 + $0x328] sm:$0xff] }
 0x6ac   :  { %15214 = vst [vmem:[#allocation85_spill] sm:$0xff] %v13465_v0  ;;  %15215 = vst [vmem:[#allocation82_spill] sm:$0xff] %v13470_v13  ;;  %6611 = vmatprep.subr.bf16.mxu0 %v13465_v0  ;;  %v13502_v0 = vcombine.low %v5918_v23, %v5922_v34  ;;  %v13504_v5 = vcombine.high %v5918_v23, %v5922_v34  ;;  %v5937_v23 = vld [vmem:[%s14393_s5 + $0x3a0] sm:$0xff]  ;;  %v5934_v34 = vld [vmem:[%s14393_s5 + $0x388] sm:$0xff] }
 0x6ad   :  { %6653 = vmatpush1.bf16.msra.mxu1 %v13448_v1  ;;  %15216 = vst [vmem:[#allocation84_spill] sm:$0xff] %v13472_v61  ;;  %15217 = vst [vmem:[#allocation87_spill] sm:$0xff] %v13474_v44  ;;  %v5917_v1 = vld [vmem:[%s14393_s5 + $0x300] sm:$0xff]  ;;  %v13537_v28 = vcombine.high %v5933_v51, %v5937_v23  ;;  %v13540_v42 = vcombine.high %v5934_v34, %v5938_v63 }
 0x6ae   :  { %6654 = vmatprep.subr.bf16.mxu1 %v13474_v44  ;;  %6612 = vmatpush1.bf16.msra.mxu0 %v13470_v13  ;;  %v13489_v49 = vcombine.low %v5917_v1, %v5921_v15  ;;  %v13491_v18 = vcombine.high %v5917_v1, %v5921_v15  ;;  %v5925_v13 = vld [vmem:[%s14393_s5 + $0x340] sm:$0xff]  ;;  %15220 = vst [vmem:[#allocation88_spill] sm:$0xff] %v13502_v0  ;;  %15221 = vst [vmem:[#allocation90_spill] sm:$0xff] %v13504_v5  ;;  %v5926_v1 = vld [vmem:[%s14393_s5 + $0x348] sm:$0xff] }
 0x6af   :  { %v5929_v44 = vld [vmem:[%s14393_s5 + $0x360] sm:$0xff]  ;;  %v5930_v15 = vld [vmem:[%s14393_s5 + $0x368] sm:$0xff]  ;;  %15224 = vst [vmem:[#allocation93_spill] sm:$0xff] %v13537_v28  ;;  %15225 = vst [vmem:[#allocation94_spill] sm:$0xff] %v13540_v42 }
 0x6b0   :  { %15218 = vst [vmem:[#allocation89_spill] sm:$0xff] %v13489_v49  ;;  %15219 = vst [vmem:[#allocation86_spill] sm:$0xff] %v13491_v18  ;;  %6613 = vmatprep.subr.bf16.mxu0 %v13491_v18  ;;  %v13518_v6 = vcombine.high %v5926_v1, %v5930_v15  ;;  %v13531_v56 = vcombine.low %v5925_v13, %v5929_v44  ;;  %v13535_v18 = vcombine.low %v5926_v1, %v5930_v15  ;;  %v5946_v1 = vld [vmem:[%s14393_s5 + $0x3e8] sm:$0xff] }
 0x6b1   :  { %6655 = vmatpush1.bf16.msra.mxu1 %v13472_v61  ;;  %v13506_v61 = vcombine.high %v5925_v13, %v5929_v44  ;;  %v5945_v44 = vld [vmem:[%s14393_s5 + $0x3e0] sm:$0xff]  ;;  %v5942_v13 = vld [vmem:[%s14393_s5 + $0x3c8] sm:$0xff]  ;;  %v13555_v15 = vcombine.low %v5933_v51, %v5937_v23 }
 0x6b2   :  { %15223 = vst [vmem:[#allocation92_spill] sm:$0xff] %v13518_v6  ;;  %6656 = vmatprep.subr.bf16.mxu1 %v13504_v5  ;;  %6614 = vmatpush1.bf16.msra.mxu0 %v13489_v49  ;;  %v5941_v5 = vld [vmem:[%s14393_s5 + $0x3c0] sm:$0xff]  ;;  %v13571_v51 = vcombine.low %v5942_v13, %v5946_v1 }
 0x6b3   :  { %15222 = vst [vmem:[#allocation91_spill] sm:$0xff] %v13506_v61  ;;  %6615 = vmatprep.subr.bf16.mxu0 %v13506_v61  ;;  %15226 = vst [vmem:[#allocation95_spill] sm:$0xff] %v13555_v15  ;;  %v13561_v61 = vcombine.high %v5941_v5, %v5945_v44  ;;  %v13567_v49 = vcombine.low %v5941_v5, %v5945_v44 }
 0x6b4   :  { %15231 = vst [vmem:[#allocation106_spill] sm:$0xff] %v13571_v51 }
 0x6b5   :  { %6657 = vmatpush1.bf16.msra.mxu1 %v13502_v0  ;;  %15228 = vst [vmem:[#allocation102_spill] sm:$0xff] %v13561_v61  ;;  %v13564_v0 = vcombine.high %v5942_v13, %v5946_v1  ;;  %15230 = vst [vmem:[#allocation104_spill] sm:$0xff] %v13567_v49 }
 0x6b6   :  { %6658 = vmatprep.subr.bf16.mxu1 %v13518_v6  ;;  %6616 = vmatpush1.bf16.msra.mxu0 %v13531_v56  ;;  %v13559_v6 = vcombine.low %v5934_v34, %v5938_v63 }
 0x6b7   :  { %6617 = vmatprep.subr.bf16.mxu0 %v13537_v28  ;;  %15229 = vst [vmem:[#allocation103_spill] sm:$0xff] %v13564_v0 }
 0x6b8   :  { %15227 = vst [vmem:[#allocation101_spill] sm:$0xff] %v13559_v6 }
 0x6b9   :  { %6659 = vmatpush1.bf16.msra.mxu1 %v13535_v18 }
 0x6ba   :  { %6660 = vmatprep.subr.bf16.mxu1 %v13540_v42  ;;  %6618 = vmatpush1.bf16.msra.mxu0 %v13555_v15 }
 0x6bb   :  { %6619 = vmatprep.subr.bf16.mxu0 %v13561_v61 }
 0x6bd   :  { %6661 = vmatpush1.bf16.msra.mxu1 %v13559_v6 }
 0x6be   :  { %6662 = vmatprep.subr.bf16.mxu1 %v13564_v0  ;;  %6620 = vmatpush1.bf16.msra.mxu0 %v13567_v49 }
 0x6bf   :  { %6675 = vmatprep.subr.bf16.mxu0 %v12775_v47 }
 0x6c1   :  { %6663 = vmatpush1.bf16.msra.mxu1 %v13571_v51 }
 0x6c2   :  { %6718 = vmatprep.subr.bf16.mxu1 %v12782_v10 }
 0x714   :  { %v5584_v63 = vpop.f32.mrb[20].mxu0  ;;  %v5627_v23 = vpop.f32.mrb[20].mxu1 }
 0x715   :  { %v9718_v5 = vadd.f32 %v5584_v63, %v15136_v40  ;;  %v5586_v34 = vpop.f32.mrb[21].mxu0  ;;  %v5629_v44 = vpop.f32.mrb[21].mxu1 }
 0x716   :  { %v9719_v61 = vadd.f32 %v5586_v34, %v15137_v58  ;;  %v5588_v13 = vpop.f32.mrb[22].mxu0  ;;  %v5631_v1 = vpop.f32.mrb[22].mxu1  ;;  %v9751_v10 = vadd.f32 %v5629_v44, %v14947_v32 }
 0x717   :  { %v5738_v6 = vmul.f32 0.5, %v9718_v5  ;;  %v9720_v0 = vadd.f32 %v5588_v13, %v15136_v40  ;;  %v5590_v49 = vpop.f32.mrb[23].mxu0  ;;  %v5633_v15 = vpop.f32.mrb[23].mxu1  ;;  %v9750_v5 = vadd.f32 %v5627_v23, %v15138_v30  ;;  %v9752_v34 = vadd.f32 %v5631_v1, %v15138_v30 }
 0x718   :  { %v5739_v51 = vmul.f32 0.5, %v9719_v61  ;;  %v9721_v47 = vadd.f32 %v5590_v49, %v15137_v58  ;;  %v9753_v63 = vadd.f32 %v5633_v15, %v14947_v32 }
 0x719   :  { %10029 = vtanh.f32 %v5738_v6  ;;  %v5741_v42 = vmul.f32 0.5, %v9720_v0  ;;  %v5740_v40 = vmul.f32 0.5, %v9750_v5  ;;  %v5743_v6 = vmul.f32 0.5, %v9752_v34 }
 0x71a   :  { %v5742_v28 = vmul.f32 0.5, %v9721_v47  ;;  %10031 = vtanh.f32 %v5739_v51 }
 0x71b   :  { %10033 = vtanh.f32 %v5741_v42 }
 0x71c   :  { %10035 = vtanh.f32 %v9751_v10 }
 0x71d   :  { %10037 = vtanh.f32 %v5742_v28 }
 0x71e   :  { %10039 = vtanh.f32 %v9753_v63 }
 0x71f   :  { %10041 = vtanh.f32 %v5740_v40 }
 0x720   :  { %10043 = vtanh.f32 %v5743_v6 }
 0x723   :  { %v10030_v13 = vpop.eup %10029 }
 0x724   :  { %v5750_v61 = vmul.f32 0.5, %v10030_v13  ;;  %v10032_v49 = vpop.eup %10031 }
 0x725   :  { %v10034_v58 = vpop.eup %10033  ;;  %v5751_v0 = vmul.f32 0.5, %v10032_v49 }
 0x726   :  { %v5756_v44 = vadd.f32 0.5, %v5750_v61  ;;  %v10036_v47 = vpop.eup %10035  ;;  %v5753_v51 = vmul.f32 0.5, %v10034_v58 }
 0x727   :  { %v10038_v42 = vpop.eup %10037  ;;  %v5757_v15 = vadd.f32 0.5, %v5751_v0 }
 0x728   :  { %v5766_v10 = vmul.f32 %v10036_v47, %v5756_v44  ;;  %v5759_v28 = vadd.f32 0.5, %v5753_v51  ;;  %v5754_v23 = vmul.f32 0.5, %v10038_v42  ;;  %v10040_v63 = vpop.eup %10039 }
 0x729   :  { %v5764_v1 = vmul.f32 %v5757_v15, %v12795_v31  ;;  %v10042_v40 = vpop.eup %10041 }
 0x72a   :  { %v5760_v30 = vadd.f32 0.5, %v5754_v23  ;;  %v5767_v13 = vmul.f32 %v10040_v63, %v5759_v28  ;;  %v10044_v58 = vpop.eup %10043  ;;  %v5752_v49 = vmul.f32 0.5, %v10042_v40 }
 0x72b   :  { %v13587_v5 = vadd.f32 %v5766_v10, %v5764_v1  ;;  %v5755_v6 = vmul.f32 0.5, %v10044_v58 }
 0x72c   :  { %v5765_v34 = vmul.f32 %v5760_v30, %v12799_v41  ;;  %v5758_v0 = vadd.f32 0.5, %v5752_v49 }
 0x72d   :  { %10045 = vtanh.f32 %v13587_v5  ;;  %v5761_v47 = vadd.f32 0.5, %v5755_v6 }
 0x72e   :  { %v13591_v61 = vadd.f32 %v5767_v13, %v5765_v34 }
 0x730   :  { %10047 = vtanh.f32 %v13591_v61 }
 0x737   :  { %v10046_v44 = vpop.eup %10045 }
 0x738   :  { %v5772_v51 = vmul.f32 %v10046_v44, %v5758_v0 }
 0x73a   :  { %v10048_v31 = vpop.eup %10047 }
 0x73b   :  { %v5773_v42 = vmul.f32 %v10048_v31, %v5761_v47 }
 0x73d   :  { %v13594_v15 = vpack.c.bf16 %v5773_v42, %v5772_v51 }
 0x754   :  { %v5670_v10 = vpop.f32.mrb[48].mxu0  ;;  %v5713_v30 = vpop.f32.mrb[48].mxu1 }
 0x755   :  { %v5774_v41 = vadd.f32 %v5670_v10, %v11610_v45  ;;  %v5672_v28 = vpop.f32.mrb[49].mxu0  ;;  %v5715_v23 = vpop.f32.mrb[49].mxu1  ;;  %v5776_v42 = vadd.f32 %v5713_v30, %v15139_v53 }
 0x756   :  { %v5775_v63 = vadd.f32 %v5672_v28, %v11614_v35  ;;  %v5674_v1 = vpop.f32.mrb[50].mxu0  ;;  %v5717_v13 = vpop.f32.mrb[50].mxu1  ;;  %v5777_v0 = vadd.f32 %v5715_v23, %v11619_v62 }
 0x757   :  { %v5782_v34 = vmul.f32 0.5, %v5774_v41  ;;  %v5778_v40 = vadd.f32 %v5674_v1, %v11610_v45  ;;  %v5676_v58 = vpop.f32.mrb[51].mxu0  ;;  %v5719_v49 = vpop.f32.mrb[51].mxu1  ;;  %v5780_v10 = vadd.f32 %v5717_v13, %v15139_v53 }
 0x758   :  { %v5783_v6 = vmul.f32 0.5, %v5775_v63  ;;  %v5779_v44 = vadd.f32 %v5676_v58, %v11614_v35  ;;  %v5781_v51 = vadd.f32 %v5719_v49, %v11619_v62  ;;  %v5784_v63 = vmul.f32 0.5, %v5776_v42 }
 0x759   :  { %10049 = vtanh.f32 %v5782_v34  ;;  %v5785_v47 = vmul.f32 0.5, %v5778_v40  ;;  %v5787_v34 = vmul.f32 0.5, %v5780_v10 }
 0x75a   :  { %v5786_v31 = vmul.f32 0.5, %v5779_v44  ;;  %10051 = vtanh.f32 %v5783_v6 }
 0x75b   :  { %10053 = vtanh.f32 %v5785_v47 }
 0x75c   :  { %10055 = vtanh.f32 %v5777_v0 }
 0x75d   :  { %10057 = vtanh.f32 %v5786_v31 }
 0x75e   :  { %10059 = vtanh.f32 %v5781_v51 }
 0x75f   :  { %10061 = vtanh.f32 %v5784_v63 }
 0x760   :  { %10063 = vtanh.f32 %v5787_v34 }
 0x763   :  { %v10050_v41 = vpop.eup %10049 }
 0x764   :  { %v5794_v28 = vmul.f32 0.5, %v10050_v41  ;;  %v10052_v1 = vpop.eup %10051 }
 0x765   :  { %v10054_v58 = vpop.eup %10053  ;;  %v5795_v40 = vmul.f32 0.5, %v10052_v1 }
 0x766   :  { %v5800_v23 = vadd.f32 0.5, %v5794_v28  ;;  %v10056_v44 = vpop.eup %10055  ;;  %v5797_v6 = vmul.f32 0.5, %v10054_v58 }
 0x767   :  { %v10058_v47 = vpop.eup %10057  ;;  %v5801_v49 = vadd.f32 0.5, %v5795_v40 }
 0x768   :  { %v5810_v0 = vmul.f32 %v10056_v44, %v5800_v23  ;;  %v5803_v31 = vadd.f32 0.5, %v5797_v6  ;;  %v5798_v30 = vmul.f32 0.5, %v10058_v47  ;;  %v10060_v51 = vpop.eup %10059 }
 0x769   :  { %v5808_v13 = vmul.f32 %v5801_v49, %v12813_v43  ;;  %v10062_v63 = vpop.eup %10061 }
 0x76a   :  { %v5804_v53 = vadd.f32 0.5, %v5798_v30  ;;  %v5811_v41 = vmul.f32 %v10060_v51, %v5803_v31  ;;  %v10064_v1 = vpop.eup %10063  ;;  %v5796_v58 = vmul.f32 0.5, %v10062_v63  ;;  %v15269_v31 = vld [vmem:[#allocation46_spill] sm:$0xff]  ;;  %v15270_v30 = vld [vmem:[#allocation47_spill] sm:$0xff]  ;;  %v15271_v51 = vld [vmem:[#allocation48_spill] sm:$0xff] }
 0x76b   :  { %v13605_v42 = vadd.f32 %v5810_v0, %v5808_v13  ;;  %v5799_v34 = vmul.f32 0.5, %v10064_v1  ;;  %v15268_v0 = vld [vmem:[#allocation45_spill] sm:$0xff]  ;;  %v15277_v1 = vld [vmem:[#allocation54_spill] sm:$0xff] }
 0x76c   :  { %v5809_v10 = vmul.f32 %v5804_v53, %v12817_v20  ;;  %v5802_v40 = vadd.f32 0.5, %v5796_v58  ;;  %v15235_v53 = vld [vmem:[#allocation12_spill] sm:$0xff]  ;;  %v15236_v20 = vld [vmem:[#allocation13_spill] sm:$0xff]  ;;  %v15278_v58 = vld [vmem:[#allocation55_spill] sm:$0xff] }
 0x76d   :  { %10065 = vtanh.f32 %v13605_v42  ;;  %v5805_v44 = vadd.f32 0.5, %v5799_v34  ;;  %v15272_v13 = vld [vmem:[#allocation49_spill] sm:$0xff]  ;;  %v15279_v34 = vld [vmem:[#allocation56_spill] sm:$0xff] }
 0x76e   :  { %v13609_v28 = vadd.f32 %v5811_v41, %v5809_v10  ;;  %v15273_v41 = vld [vmem:[#allocation50_spill] sm:$0xff]  ;;  %v15275_v10 = vld [vmem:[#allocation52_spill] sm:$0xff]  ;;  %v15276_v63 = vld [vmem:[#allocation53_spill] sm:$0xff] }
 0x770   :  { %10067 = vtanh.f32 %v13609_v28 }
 0x777   :  { %v10066_v23 = vpop.eup %10065 }
 0x778   :  { %v5816_v6 = vmul.f32 %v10066_v23, %v5802_v40  ;;  %v15280_v23 = vld [vmem:[#allocation59_spill] sm:$0xff]  ;;  %v15281_v40 = vld [vmem:[#allocation57_spill] sm:$0xff] }
 0x77a   :  { %v10068_v43 = vpop.eup %10067 }
 0x77b   :  { %v5817_v47 = vmul.f32 %v10068_v43, %v5805_v44  ;;  %v15282_v44 = vld [vmem:[#allocation58_spill] sm:$0xff]  ;;  %v15283_v43 = vld [vmem:[#allocation60_spill] sm:$0xff] }
 0x77d   :  { %v13612_v49 = vpack.c.bf16 %v5817_v47, %v5816_v6  ;;  %v15284_v6 = vld [vmem:[#allocation63_spill] sm:$0xff]  ;;  %v15285_v47 = vld [vmem:[#allocation61_spill] sm:$0xff] }
 0x77f   :  { %15232 = vst [vmem:[#allocation107_spill] sm:$0xff] %v13612_v49  ;;  %6621 = vmatprep.mubr.bf16.mxu0 %v13612_v49  ;;  %6664 = vmatprep.mubr.bf16.mxu1 %v13612_v49 }
 0x780   :  { %6622 = vmatmul.mubr.bf16.vlgmr.msra.gmra.mrb[24].mxu0 %v13594_v15  ;;  %6665 = vmatmul.mubr.bf16.vlgmr.msra.gmra.mrb[24].mxu1 %v13594_v15 }
 0x781   :  { %6676 = vmatpush1.bf16.msra.mxu0 %v12773_v55  ;;  %6719 = vmatpush1.bf16.msra.mxu1 %v12780_v33  ;;  %v15233_v55 = vld [vmem:[#allocation10_spill] sm:$0xff]  ;;  %v15234_v33 = vld [vmem:[#allocation11_spill] sm:$0xff] }
 0x782   :  { %6707 = vmatprep.mubr.bf16.mxu0 %v13612_v49  ;;  %6750 = vmatprep.mubr.bf16.mxu1 %v13612_v49  ;;  %v6950_v49 = vld [vmem:[%s14393_s5 + $0x2d0] sm:$0xff] }
 0x783   :  { %6677 = vmatprep.subr.bf16.mxu0 %v12839_v38  ;;  %6720 = vmatprep.subr.bf16.mxu1 %v12841_v2  ;;  %v15237_v38 = vld [vmem:[#allocation14_spill] sm:$0xff]  ;;  %v15238_v2 = vld [vmem:[#allocation15_spill] sm:$0xff] }
 0x785   :  { %6678 = vmatpush1.bf16.msra.mxu0 %v12856_v9  ;;  %6721 = vmatpush1.bf16.msra.mxu1 %v12858_v14  ;;  %v15239_v9 = vld [vmem:[#allocation16_spill] sm:$0xff]  ;;  %v15240_v14 = vld [vmem:[#allocation17_spill] sm:$0xff] }
 0x786   :  { %6679 = vmatprep.subr.bf16.mxu0 %v12862_v50  ;;  %6722 = vmatprep.subr.bf16.mxu1 %v12864_v4  ;;  %v15241_v50 = vld [vmem:[#allocation18_spill] sm:$0xff]  ;;  %v15242_v4 = vld [vmem:[#allocation19_spill] sm:$0xff] }
 0x789   :  { %6680 = vmatpush1.bf16.msra.mxu0 %v12882_v7  ;;  %6723 = vmatpush1.bf16.msra.mxu1 %v12884_v25  ;;  %v15243_v7 = vld [vmem:[#allocation20_spill] sm:$0xff]  ;;  %v15244_v25 = vld [vmem:[#allocation21_spill] sm:$0xff] }
 0x78a   :  { %6681 = vmatprep.subr.bf16.mxu0 %v12888_v60  ;;  %6724 = vmatprep.subr.bf16.mxu1 %v12890_v11  ;;  %v15245_v60 = vld [vmem:[#allocation22_spill] sm:$0xff]  ;;  %v15246_v11 = vld [vmem:[#allocation23_spill] sm:$0xff] }
 0x78d   :  { %6682 = vmatpush1.bf16.msra.mxu0 %v12906_v29  ;;  %6725 = vmatpush1.bf16.msra.mxu1 %v12908_v19  ;;  %v15247_v29 = vld [vmem:[#allocation24_spill] sm:$0xff]  ;;  %v15248_v19 = vld [vmem:[#allocation25_spill] sm:$0xff] }
 0x78e   :  { %6683 = vmatprep.subr.bf16.mxu0 %v12912_v24  ;;  %6726 = vmatprep.subr.bf16.mxu1 %v12914_v27  ;;  %v15249_v24 = vld [vmem:[#allocation26_spill] sm:$0xff]  ;;  %v15250_v27 = vld [vmem:[#allocation27_spill] sm:$0xff] }
 0x791   :  { %6684 = vmatpush1.bf16.msra.mxu0 %v12930_v52  ;;  %6727 = vmatpush1.bf16.msra.mxu1 %v12932_v59  ;;  %v15251_v52 = vld [vmem:[#allocation28_spill] sm:$0xff]  ;;  %v15252_v59 = vld [vmem:[#allocation29_spill] sm:$0xff] }
 0x792   :  { %6685 = vmatprep.subr.bf16.mxu0 %v12936_v54  ;;  %6728 = vmatprep.subr.bf16.mxu1 %v12938_v21  ;;  %v15253_v54 = vld [vmem:[#allocation30_spill] sm:$0xff]  ;;  %v15254_v21 = vld [vmem:[#allocation31_spill] sm:$0xff] }
 0x795   :  { %6686 = vmatpush1.bf16.msra.mxu0 %v12954_v48  ;;  %6729 = vmatpush1.bf16.msra.mxu1 %v12956_v46  ;;  %v15255_v48 = vld [vmem:[#allocation33_spill] sm:$0xff]  ;;  %v15256_v46 = vld [vmem:[#allocation35_spill] sm:$0xff] }
 0x796   :  { %6687 = vmatprep.subr.bf16.mxu0 %v12960_v57  ;;  %6730 = vmatprep.subr.bf16.mxu1 %v12962_v17  ;;  %v15257_v57 = vld [vmem:[#allocation32_spill] sm:$0xff]  ;;  %v15258_v17 = vld [vmem:[#allocation34_spill] sm:$0xff] }
 0x799   :  { %6688 = vmatpush1.bf16.msra.mxu0 %v12978_v3  ;;  %6731 = vmatpush1.bf16.msra.mxu1 %v12980_v39  ;;  %v15259_v3 = vld [vmem:[#allocation36_spill] sm:$0xff]  ;;  %v15260_v39 = vld [vmem:[#allocation37_spill] sm:$0xff] }
 0x79a   :  { %6689 = vmatprep.subr.bf16.mxu0 %v12984_v26  ;;  %6732 = vmatprep.subr.bf16.mxu1 %v12986_v22  ;;  %v15261_v26 = vld [vmem:[#allocation39_spill] sm:$0xff]  ;;  %v15262_v22 = vld [vmem:[#allocation38_spill] sm:$0xff] }
 0x79d   :  { %6690 = vmatpush1.bf16.msra.mxu0 %v13002_v36  ;;  %6733 = vmatpush1.bf16.msra.mxu1 %v13004_v16  ;;  %v15263_v36 = vld [vmem:[#allocation42_spill] sm:$0xff]  ;;  %v15264_v16 = vld [vmem:[#allocation41_spill] sm:$0xff] }
 0x79e   :  { %6691 = vmatprep.subr.bf16.mxu0 %v13008_v37  ;;  %6734 = vmatprep.subr.bf16.mxu1 %v13010_v8  ;;  %v15265_v37 = vld [vmem:[#allocation40_spill] sm:$0xff]  ;;  %v15266_v8 = vld [vmem:[#allocation43_spill] sm:$0xff] }
 0x7a1   :  { %6692 = vmatpush1.bf16.msra.mxu0 %v15233_v55  ;;  %6735 = vmatpush1.bf16.msra.mxu1 %v15234_v33  ;;  %v15286_v55 = vld [vmem:[#allocation67_spill] sm:$0xff]  ;;  %v15287_v33 = vld [vmem:[#allocation65_spill] sm:$0xff] }
 0x7a2   :  { %6693 = vmatprep.subr.bf16.mxu0 %v15235_v53  ;;  %6736 = vmatprep.subr.bf16.mxu1 %v15236_v20  ;;  %v15288_v53 = vld [vmem:[#allocation62_spill] sm:$0xff]  ;;  %v15289_v20 = vld [vmem:[#allocation64_spill] sm:$0xff] }
 0x7a5   :  { %6694 = vmatpush1.bf16.msra.mxu0 %v15237_v38  ;;  %6737 = vmatpush1.bf16.msra.mxu1 %v15238_v2  ;;  %v15290_v38 = vld [vmem:[#allocation71_spill] sm:$0xff]  ;;  %v15291_v2 = vld [vmem:[#allocation69_spill] sm:$0xff] }
 0x7a6   :  { %6695 = vmatprep.subr.bf16.mxu0 %v15239_v9  ;;  %6738 = vmatprep.subr.bf16.mxu1 %v15240_v14  ;;  %v15292_v9 = vld [vmem:[#allocation66_spill] sm:$0xff]  ;;  %v15293_v14 = vld [vmem:[#allocation68_spill] sm:$0xff] }
 0x7a9   :  { %6696 = vmatpush1.bf16.msra.mxu0 %v15241_v50  ;;  %6739 = vmatpush1.bf16.msra.mxu1 %v15242_v4  ;;  %v15294_v50 = vld [vmem:[#allocation75_spill] sm:$0xff]  ;;  %v15295_v4 = vld [vmem:[#allocation73_spill] sm:$0xff] }
 0x7aa   :  { %6697 = vmatprep.subr.bf16.mxu0 %v15243_v7  ;;  %6740 = vmatprep.subr.bf16.mxu1 %v15244_v25  ;;  %v15296_v7 = vld [vmem:[#allocation70_spill] sm:$0xff]  ;;  %v15297_v25 = vld [vmem:[#allocation72_spill] sm:$0xff] }
 0x7ad   :  { %6698 = vmatpush1.bf16.msra.mxu0 %v15245_v60  ;;  %6741 = vmatpush1.bf16.msra.mxu1 %v15246_v11  ;;  %v15298_v60 = vld [vmem:[#allocation79_spill] sm:$0xff]  ;;  %v15299_v11 = vld [vmem:[#allocation77_spill] sm:$0xff] }
 0x7ae   :  { %6699 = vmatprep.subr.bf16.mxu0 %v15247_v29  ;;  %6742 = vmatprep.subr.bf16.mxu1 %v15248_v19  ;;  %v15300_v29 = vld [vmem:[#allocation74_spill] sm:$0xff]  ;;  %v15301_v19 = vld [vmem:[#allocation76_spill] sm:$0xff] }
 0x7b1   :  { %6700 = vmatpush1.bf16.msra.mxu0 %v15249_v24  ;;  %6743 = vmatpush1.bf16.msra.mxu1 %v15250_v27  ;;  %v15302_v24 = vld [vmem:[#allocation83_spill] sm:$0xff]  ;;  %v15303_v27 = vld [vmem:[#allocation80_spill] sm:$0xff] }
 0x7b2   :  { %6701 = vmatprep.subr.bf16.mxu0 %v15251_v52  ;;  %6744 = vmatprep.subr.bf16.mxu1 %v15252_v59  ;;  %v15304_v52 = vld [vmem:[#allocation78_spill] sm:$0xff]  ;;  %v15305_v59 = vld [vmem:[#allocation81_spill] sm:$0xff] }
 0x7b5   :  { %6702 = vmatpush1.bf16.msra.mxu0 %v15253_v54  ;;  %6745 = vmatpush1.bf16.msra.mxu1 %v13148_v12  ;;  %v15267_v12 = vld [vmem:[#allocation44_spill] sm:$0xff]  ;;  %v15306_v54 = vld [vmem:[#allocation85_spill] sm:$0xff] }
 0x7b6   :  { %6703 = vmatprep.subr.bf16.mxu0 %v15254_v21  ;;  %6746 = vmatprep.subr.bf16.mxu1 %v15255_v48  ;;  %v15307_v21 = vld [vmem:[#allocation87_spill] sm:$0xff]  ;;  %v15308_v48 = vld [vmem:[#allocation82_spill] sm:$0xff] }
 0x7b9   :  { %6704 = vmatpush1.bf16.msra.mxu0 %v15256_v46  ;;  %6747 = vmatpush1.bf16.msra.mxu1 %v15257_v57  ;;  %v15309_v46 = vld [vmem:[#allocation84_spill] sm:$0xff]  ;;  %v15310_v57 = vld [vmem:[#allocation86_spill] sm:$0xff] }
 0x7ba   :  { %6705 = vmatprep.subr.bf16.mxu0 %v15258_v17  ;;  %6748 = vmatprep.subr.bf16.mxu1 %v15259_v3  ;;  %v15311_v17 = vld [vmem:[#allocation90_spill] sm:$0xff]  ;;  %v15312_v3 = vld [vmem:[#allocation89_spill] sm:$0xff] }
 0x7bd   :  { %6706 = vmatpush1.bf16.msra.mxu0 %v15260_v39  ;;  %6749 = vmatpush1.bf16.msra.mxu1 %v15261_v26  ;;  %v15313_v39 = vld [vmem:[#allocation88_spill] sm:$0xff]  ;;  %v15314_v26 = vld [vmem:[#allocation91_spill] sm:$0xff] }
 0x7be   :  { %7628 = vmatprep.subr.bf16.mxu0 %v15262_v22  ;;  %7671 = vmatprep.subr.bf16.mxu1 %v15263_v36  ;;  %v15315_v22 = vld [vmem:[#allocation92_spill] sm:$0xff]  ;;  %v15316_v36 = vld [vmem:[#allocation93_spill] sm:$0xff] }
 0x7c0   :  { %6708 = vmatmul.mubr.bf16.vlgmr.msra.gmra.mrb[52].mxu0 %v13594_v15  ;;  %6751 = vmatmul.mubr.bf16.vlgmr.msra.gmra.mrb[52].mxu1 %v13594_v15  ;;  %v15274_v15 = vld [vmem:[#allocation51_spill] sm:$0xff] }
 0x7c1   :  { %7629 = vmatpush1.bf16.msra.mxu0 %v15264_v16  ;;  %7672 = vmatpush1.bf16.msra.mxu1 %v15265_v37  ;;  %v15317_v16 = vld [vmem:[#allocation94_spill] sm:$0xff]  ;;  %v15318_v37 = vld [vmem:[#allocation95_spill] sm:$0xff] }
 0x7c2   :  { %7630 = vmatprep.subr.bf16.mxu0 %v15266_v8  ;;  %7673 = vmatprep.subr.bf16.mxu1 %v15267_v12  ;;  %v15319_v8 = vld [vmem:[#allocation101_spill] sm:$0xff]  ;;  %v15320_v12 = vld [vmem:[#allocation102_spill] sm:$0xff] }
 0x7c5   :  { %7631 = vmatpush1.bf16.msra.mxu0 %v15268_v0  ;;  %7674 = vmatpush1.bf16.msra.mxu1 %v15269_v31  ;;  %v15321_v0 = vld [vmem:[#allocation103_spill] sm:$0xff]  ;;  %v15322_v31 = vld [vmem:[#allocation104_spill] sm:$0xff] }
 0x7c6   :  { %7632 = vmatprep.subr.bf16.mxu0 %v15270_v30  ;;  %7675 = vmatprep.subr.bf16.mxu1 %v15271_v51  ;;  %v15323_v30 = vld [vmem:[#allocation106_spill] sm:$0xff]  ;;  %v6863_v51 = vld [vmem:[%s14393_s5 + $0x18] sm:$0xff] }
 0x7c9   :  { %7633 = vmatpush1.bf16.msra.mxu0 %v15272_v13  ;;  %7676 = vmatpush1.bf16.msra.mxu1 %v15273_v41 }
 0x7ca   :  { %7634 = vmatprep.subr.bf16.mxu0 %v15274_v15  ;;  %7677 = vmatprep.subr.bf16.mxu1 %v15275_v10  ;;  %v6867_v15 = vld [vmem:[%s14393_s5 + $0x38] sm:$0xff] }
 0x7cb   :  { %v13764_v10 = vcombine.low %v6863_v51, %v6867_v15 }
 0x7cd   :  { %7635 = vmatpush1.bf16.msra.mxu0 %v15276_v63  ;;  %7678 = vmatpush1.bf16.msra.mxu1 %v15277_v1  ;;  %v13766_v63 = vcombine.high %v6863_v51, %v6867_v15 }
 0x7ce   :  { %7636 = vmatprep.subr.bf16.mxu0 %v15278_v58  ;;  %7679 = vmatprep.subr.bf16.mxu1 %v15279_v34  ;;  %v15324_v34 = vld [vmem:[#allocation4_spill] sm:$0xff] }
 0x7d1   :  { %7637 = vmatpush1.bf16.msra.mxu0 %v15280_v23  ;;  %7680 = vmatpush1.bf16.msra.mxu1 %v15281_v40 }
 0x7d2   :  { %7638 = vmatprep.subr.bf16.mxu0 %v15282_v44  ;;  %7681 = vmatprep.subr.bf16.mxu1 %v15283_v43  ;;  %v15325_v43 = vld [vmem:[#allocation5_spill] sm:$0xff] }
 0x7d5   :  { %7639 = vmatpush1.bf16.msra.mxu0 %v15284_v6  ;;  %7682 = vmatpush1.bf16.msra.mxu1 %v15285_v47 }
 0x7d6   :  { %7640 = vmatprep.subr.bf16.mxu0 %v15286_v55  ;;  %7683 = vmatprep.subr.bf16.mxu1 %v15287_v33 }
 0x7d9   :  { %7641 = vmatpush1.bf16.msra.mxu0 %v15288_v53  ;;  %7684 = vmatpush1.bf16.msra.mxu1 %v15289_v20 }
 0x7da   :  { %7642 = vmatprep.subr.bf16.mxu0 %v15290_v38  ;;  %7685 = vmatprep.subr.bf16.mxu1 %v15291_v2 }
 0x7dd   :  { %7643 = vmatpush1.bf16.msra.mxu0 %v15292_v9  ;;  %7686 = vmatpush1.bf16.msra.mxu1 %v15293_v14 }
 0x7de   :  { %7644 = vmatprep.subr.bf16.mxu0 %v15294_v50  ;;  %7687 = vmatprep.subr.bf16.mxu1 %v15295_v4 }
 0x7e1   :  { %7645 = vmatpush1.bf16.msra.mxu0 %v15296_v7  ;;  %7688 = vmatpush1.bf16.msra.mxu1 %v15297_v25  ;;  %v15326_v25 = vld [vmem:[#allocation7_spill] sm:$0xff] }
 0x7e2   :  { %7646 = vmatprep.subr.bf16.mxu0 %v15298_v60  ;;  %7689 = vmatprep.subr.bf16.mxu1 %v15299_v11 }
 0x7e5   :  { %7647 = vmatpush1.bf16.msra.mxu0 %v15300_v29  ;;  %7690 = vmatpush1.bf16.msra.mxu1 %v15301_v19 }
 0x7e6   :  { %7648 = vmatprep.subr.bf16.mxu0 %v15302_v24  ;;  %7691 = vmatprep.subr.bf16.mxu1 %v15303_v27 }
 0x7e9   :  { %7649 = vmatpush1.bf16.msra.mxu0 %v15304_v52  ;;  %7692 = vmatpush1.bf16.msra.mxu1 %v15305_v59 }
 0x7ea   :  { %7650 = vmatprep.subr.bf16.mxu0 %v15306_v54  ;;  %7693 = vmatprep.subr.bf16.mxu1 %v15307_v21 }
 0x7ed   :  { %7651 = vmatpush1.bf16.msra.mxu0 %v15308_v48  ;;  %7694 = vmatpush1.bf16.msra.mxu1 %v15309_v46 }
 0x7ee   :  { %7652 = vmatprep.subr.bf16.mxu0 %v15310_v57  ;;  %7695 = vmatprep.subr.bf16.mxu1 %v15311_v17 }
 0x7f1   :  { %7653 = vmatpush1.bf16.msra.mxu0 %v15312_v3  ;;  %7696 = vmatpush1.bf16.msra.mxu1 %v15313_v39 }
 0x7f2   :  { %7654 = vmatprep.subr.bf16.mxu0 %v15314_v26  ;;  %7697 = vmatprep.subr.bf16.mxu1 %v15315_v22 }
 0x7f5   :  { %7655 = vmatpush1.bf16.msra.mxu0 %v13531_v56  ;;  %7698 = vmatpush1.bf16.msra.mxu1 %v13535_v18  ;;  %v6862_v56 = vld [vmem:[%s14393_s5 + $0x10] sm:$0xff] }
 0x7f6   :  { %7656 = vmatprep.subr.bf16.mxu0 %v15316_v36  ;;  %7699 = vmatprep.subr.bf16.mxu1 %v15317_v16  ;;  %v6866_v18 = vld [vmem:[%s14393_s5 + $0x30] sm:$0xff] }
 0x7f7   :  { %v13757_v13 = vcombine.low %v6862_v56, %v6866_v18  ;;  %v13759_v41 = vcombine.high %v6862_v56, %v6866_v18 }
 0x7f9   :  { %7657 = vmatpush1.bf16.msra.mxu0 %v15318_v37  ;;  %7700 = vmatpush1.bf16.msra.mxu1 %v15319_v8 }
 0x7fa   :  { %7658 = vmatprep.subr.bf16.mxu0 %v15320_v12  ;;  %7701 = vmatprep.subr.bf16.mxu1 %v15321_v0 }
 0x7fd   :  { %7659 = vmatpush1.bf16.msra.mxu0 %v15322_v31  ;;  %7702 = vmatpush1.bf16.msra.mxu1 %v15323_v30 }
 0x7fe   :  { %7714 = vmatprep.subr.bf16.mxu0 %v13759_v41  ;;  %7757 = vmatprep.subr.bf16.mxu1 %v13766_v63 }
 0x853   :  { %v6623_v1 = vpop.f32.mrb[24].mxu0  ;;  %v6666_v58 = vpop.f32.mrb[24].mxu1 }
 0x854   :  { %v9722_v23 = vadd.f32 %v6623_v1, %v15324_v34  ;;  %v6625_v40 = vpop.f32.mrb[25].mxu0  ;;  %v6668_v44 = vpop.f32.mrb[25].mxu1  ;;  %v9754_v60 = vadd.f32 %v6666_v58, %v15326_v25 }
 0x855   :  { %v9723_v6 = vadd.f32 %v6625_v40, %v15325_v43  ;;  %v6627_v47 = vpop.f32.mrb[26].mxu0  ;;  %v6670_v55 = vpop.f32.mrb[26].mxu1  ;;  %v9755_v14 = vadd.f32 %v6668_v44, %v14947_v32 }
 0x856   :  { %v6777_v33 = vmul.f32 0.5, %v9722_v23  ;;  %v9724_v53 = vadd.f32 %v6627_v47, %v15324_v34  ;;  %v6629_v20 = vpop.f32.mrb[27].mxu0  ;;  %v6672_v38 = vpop.f32.mrb[27].mxu1  ;;  %v9756_v11 = vadd.f32 %v6670_v55, %v15326_v25  ;;  %v6779_v24 = vmul.f32 0.5, %v9754_v60  ;;  %v6970_v25 = vld [vmem:[%s14393_s5 + $0x370] sm:$0xff] }
 0x857   :  { %v6778_v2 = vmul.f32 0.5, %v9723_v6  ;;  %v9725_v9 = vadd.f32 %v6629_v20, %v15325_v43  ;;  %v9757_v7 = vadd.f32 %v6672_v38, %v14947_v32  ;;  %v6974_v34 = vld [vmem:[%s14393_s5 + $0x390] sm:$0xff] }
 0x858   :  { %10069 = vtanh.f32 %v6777_v33  ;;  %v6780_v50 = vmul.f32 0.5, %v9724_v53  ;;  %v6782_v52 = vmul.f32 0.5, %v9756_v11 }
 0x859   :  { %v6781_v4 = vmul.f32 0.5, %v9725_v9  ;;  %10071 = vtanh.f32 %v6778_v2 }
 0x85a   :  { %10073 = vtanh.f32 %v6780_v50 }
 0x85b   :  { %10075 = vtanh.f32 %v9755_v14 }
 0x85c   :  { %10077 = vtanh.f32 %v6781_v4 }
 0x85d   :  { %10079 = vtanh.f32 %v9757_v7 }
 0x85e   :  { %10081 = vtanh.f32 %v6779_v24 }
 0x85f   :  { %10083 = vtanh.f32 %v6782_v52 }
 0x862   :  { %v10070_v29 = vpop.eup %10069 }
 0x863   :  { %v6789_v19 = vmul.f32 0.5, %v10070_v29  ;;  %v10072_v27 = vpop.eup %10071 }
 0x864   :  { %v10074_v59 = vpop.eup %10073  ;;  %v6790_v21 = vmul.f32 0.5, %v10072_v27 }
 0x865   :  { %v6795_v54 = vadd.f32 0.5, %v6789_v19  ;;  %v10076_v48 = vpop.eup %10075  ;;  %v6792_v46 = vmul.f32 0.5, %v10074_v59  ;;  %v15329_v19 = vld [vmem:[#allocation99_spill] sm:$0xff] }
 0x866   :  { %v10078_v57 = vpop.eup %10077  ;;  %v6796_v17 = vadd.f32 0.5, %v6790_v21 }
 0x867   :  { %v6805_v3 = vmul.f32 %v10076_v48, %v6795_v54  ;;  %v6798_v39 = vadd.f32 0.5, %v6792_v46  ;;  %v6793_v26 = vmul.f32 0.5, %v10078_v57  ;;  %v10080_v22 = vpop.eup %10079 }
 0x868   :  { %v6803_v36 = vmul.f32 %v6796_v17, %v13587_v5  ;;  %v10082_v31 = vpop.eup %10081 }
 0x869   :  { %v6799_v16 = vadd.f32 0.5, %v6793_v26  ;;  %v6806_v37 = vmul.f32 %v10080_v22, %v6798_v39  ;;  %v10084_v30 = vpop.eup %10083  ;;  %v6791_v56 = vmul.f32 0.5, %v10082_v31 }
 0x86a   :  { %v13779_v8 = vadd.f32 %v6805_v3, %v6803_v36  ;;  %v6794_v18 = vmul.f32 0.5, %v10084_v30 }
 0x86b   :  { %v6804_v12 = vmul.f32 %v6799_v16, %v13591_v61  ;;  %v6797_v15 = vadd.f32 0.5, %v6791_v56 }
 0x86c   :  { %15327 = vst [vmem:[#allocation10_spill] sm:$0xff] %v13779_v8  ;;  %10085 = vtanh.f32 %v13779_v8  ;;  %v6800_v1 = vadd.f32 0.5, %v6794_v18  ;;  %v6966_v8 = vld [vmem:[%s14393_s5 + $0x350] sm:$0xff] }
 0x86d   :  { %v13783_v0 = vadd.f32 %v6806_v37, %v6804_v12  ;;  %v14112_v32 = vcombine.high %v6966_v8, %v6970_v25 }
 0x86f   :  { %15328 = vst [vmem:[#allocation11_spill] sm:$0xff] %v13783_v0  ;;  %10087 = vtanh.f32 %v13783_v0  ;;  %15339 = vst [vmem:[#allocation21_spill] sm:$0xff] %v14112_v32 }
 0x876   :  { %v10086_v51 = vpop.eup %10085 }
 0x877   :  { %v6811_v58 = vmul.f32 %v10086_v51, %v6797_v15 }
 0x879   :  { %v10088_v5 = vpop.eup %10087 }
 0x87a   :  { %v6812_v23 = vmul.f32 %v10088_v5, %v6800_v1 }
 0x87c   :  { %v13786_v40 = vpack.c.bf16 %v6812_v23, %v6811_v58 }
 0x893   :  { %v6709_v44 = vpop.f32.mrb[52].mxu0  ;;  %v6752_v61 = vpop.f32.mrb[52].mxu1 }
 0x894   :  { %v6813_v6 = vadd.f32 %v6709_v44, %v11610_v45  ;;  %v6711_v47 = vpop.f32.mrb[53].mxu0  ;;  %v6754_v55 = vpop.f32.mrb[53].mxu1  ;;  %v6815_v24 = vadd.f32 %v6752_v61, %v15329_v19 }
 0x895   :  { %v6814_v33 = vadd.f32 %v6711_v47, %v11614_v35  ;;  %v6713_v53 = vpop.f32.mrb[54].mxu0  ;;  %v6756_v20 = vpop.f32.mrb[54].mxu1  ;;  %v6816_v7 = vadd.f32 %v6754_v55, %v11619_v62 }
 0x896   :  { %v6821_v38 = vmul.f32 0.5, %v6813_v6  ;;  %v6817_v2 = vadd.f32 %v6713_v53, %v11610_v45  ;;  %v6715_v9 = vpop.f32.mrb[55].mxu0  ;;  %v6758_v14 = vpop.f32.mrb[55].mxu1  ;;  %v6819_v27 = vadd.f32 %v6756_v20, %v15329_v19  ;;  %v6823_v54 = vmul.f32 0.5, %v6815_v24  ;;  %v6871_v53 = vld [vmem:[%s14393_s5 + $0x58] sm:$0xff] }
 0x897   :  { %v6822_v50 = vmul.f32 0.5, %v6814_v33  ;;  %v6818_v4 = vadd.f32 %v6715_v9, %v11614_v35  ;;  %v6820_v29 = vadd.f32 %v6758_v14, %v11619_v62  ;;  %v6874_v33 = vld [vmem:[%s14393_s5 + $0x70] sm:$0xff]  ;;  %v6875_v20 = vld [vmem:[%s14393_s5 + $0x78] sm:$0xff] }
 0x898   :  { %10089 = vtanh.f32 %v6821_v38  ;;  %v6824_v60 = vmul.f32 0.5, %v6817_v2  ;;  %v6826_v48 = vmul.f32 0.5, %v6819_v27  ;;  %v6878_v2 = vld [vmem:[%s14393_s5 + $0x90] sm:$0xff]  ;;  %v13825_v14 = vcombine.high %v6871_v53, %v6875_v20 }
 0x899   :  { %v6825_v11 = vmul.f32 0.5, %v6818_v4  ;;  %10091 = vtanh.f32 %v6822_v50  ;;  %v6882_v50 = vld [vmem:[%s14393_s5 + $0xb0] sm:$0xff]  ;;  %v6879_v4 = vld [vmem:[%s14393_s5 + $0x98] sm:$0xff] }
 0x89a   :  { %10093 = vtanh.f32 %v6824_v60  ;;  %v6886_v27 = vld [vmem:[%s14393_s5 + $0xd0] sm:$0xff] }
 0x89b   :  { %10095 = vtanh.f32 %v6816_v7  ;;  %v6883_v7 = vld [vmem:[%s14393_s5 + $0xb8] sm:$0xff]  ;;  %v6958_v62 = vld [vmem:[%s14393_s5 + $0x310] sm:$0xff] }
 0x89c   :  { %10097 = vtanh.f32 %v6825_v11  ;;  %v13842_v11 = vcombine.low %v6871_v53, %v6875_v20  ;;  %v13848_v24 = vcombine.high %v6879_v4, %v6883_v7  ;;  %v6922_v53 = vld [vmem:[%s14393_s5 + $0x1f0] sm:$0xff]  ;;  %v6919_v20 = vld [vmem:[%s14393_s5 + $0x1d8] sm:$0xff] }
 0x89d   :  { %10099 = vtanh.f32 %v6820_v29  ;;  %v13846_v29 = vcombine.high %v6878_v2, %v6882_v50  ;;  %v6962_v35 = vld [vmem:[%s14393_s5 + $0x330] sm:$0xff] }
 0x89e   :  { %10101 = vtanh.f32 %v6823_v54  ;;  %v6891_v54 = vld [vmem:[%s14393_s5 + $0xf8] sm:$0xff]  ;;  %v14088_v45 = vcombine.high %v6958_v62, %v6962_v35 }
 0x89f   :  { %10103 = vtanh.f32 %v6826_v48  ;;  %v13868_v48 = vcombine.low %v6879_v4, %v6883_v7 }
 0x8a0   :  { %15335 = vst [vmem:[#allocation17_spill] sm:$0xff] %v14088_v45 }
 0x8a2   :  { %v10090_v52 = vpop.eup %10089 }
 0x8a3   :  { %v6833_v59 = vmul.f32 0.5, %v10090_v52  ;;  %v10092_v21 = vpop.eup %10091  ;;  %v6890_v52 = vld [vmem:[%s14393_s5 + $0xf0] sm:$0xff] }
 0x8a4   :  { %v10094_v46 = vpop.eup %10093  ;;  %v6834_v17 = vmul.f32 0.5, %v10092_v21  ;;  %v13866_v21 = vcombine.low %v6878_v2, %v6882_v50  ;;  %v6923_v2 = vld [vmem:[%s14393_s5 + $0x1f8] sm:$0xff] }
 0x8a5   :  { %v6839_v57 = vadd.f32 0.5, %v6833_v59  ;;  %v10096_v3 = vpop.eup %10095  ;;  %v6836_v39 = vmul.f32 0.5, %v10094_v46  ;;  %v6887_v59 = vld [vmem:[%s14393_s5 + $0xd8] sm:$0xff]  ;;  %v13872_v46 = vcombine.high %v6886_v27, %v6890_v52 }
 0x8a6   :  { %v10098_v26 = vpop.eup %10097  ;;  %v6840_v22 = vadd.f32 0.5, %v6834_v17  ;;  %v6894_v17 = vld [vmem:[%s14393_s5 + $0x110] sm:$0xff] }
 0x8a7   :  { %v6849_v36 = vmul.f32 %v10096_v3, %v6839_v57  ;;  %v6842_v16 = vadd.f32 0.5, %v6836_v39  ;;  %v6837_v37 = vmul.f32 0.5, %v10098_v26  ;;  %v10100_v12 = vpop.eup %10099  ;;  %v13874_v57 = vcombine.high %v6887_v59, %v6891_v54  ;;  %v6898_v3 = vld [vmem:[%s14393_s5 + $0x130] sm:$0xff]  ;;  %v6895_v39 = vld [vmem:[%s14393_s5 + $0x118] sm:$0xff] }
 0x8a8   :  { %v6847_v31 = vmul.f32 %v6840_v22, %v13605_v42  ;;  %v10102_v1 = vpop.eup %10101  ;;  %v6899_v26 = vld [vmem:[%s14393_s5 + $0x138] sm:$0xff]  ;;  %v13890_v22 = vcombine.low %v6886_v27, %v6890_v52  ;;  %v13970_v27 = vcombine.high %v6919_v20, %v6923_v2  ;;  %v6926_v52 = vld [vmem:[%s14393_s5 + $0x210] sm:$0xff] }
 0x8a9   :  { %v6843_v30 = vadd.f32 0.5, %v6837_v37  ;;  %v6850_v56 = vmul.f32 %v10100_v12, %v6842_v16  ;;  %v10104_v5 = vpop.eup %10103  ;;  %v6835_v58 = vmul.f32 0.5, %v10102_v1  ;;  %v13896_v16 = vcombine.high %v6894_v17, %v6898_v3  ;;  %v6902_v12 = vld [vmem:[%s14393_s5 + $0x150] sm:$0xff] }
 0x8aa   :  { %v13797_v18 = vadd.f32 %v6849_v36, %v6847_v31  ;;  %v6838_v23 = vmul.f32 0.5, %v10104_v5  ;;  %v13892_v36 = vcombine.low %v6887_v59, %v6891_v54  ;;  %v13898_v37 = vcombine.high %v6895_v39, %v6899_v26  ;;  %v6906_v31 = vld [vmem:[%s14393_s5 + $0x170] sm:$0xff]  ;;  %v6927_v54 = vld [vmem:[%s14393_s5 + $0x218] sm:$0xff] }
 0x8ab   :  { %v6848_v51 = vmul.f32 %v6843_v30, %v13609_v28  ;;  %v6841_v61 = vadd.f32 0.5, %v6835_v58  ;;  %v6870_v28 = vld [vmem:[%s14393_s5 + $0x50] sm:$0xff]  ;;  %v6903_v30 = vld [vmem:[%s14393_s5 + $0x158] sm:$0xff]  ;;  %v13916_v1 = vcombine.low %v6895_v39, %v6899_v26  ;;  %v13920_v5 = vcombine.high %v6902_v12, %v6906_v31 }
 0x8ac   :  { %15330 = vst [vmem:[#allocation12_spill] sm:$0xff] %v13797_v18  ;;  %10105 = vtanh.f32 %v13797_v18  ;;  %v6844_v6 = vadd.f32 0.5, %v6838_v23  ;;  %v13823_v9 = vcombine.high %v6870_v28, %v6874_v33  ;;  %v13840_v60 = vcombine.low %v6870_v28, %v6874_v33  ;;  %v6910_v23 = vld [vmem:[%s14393_s5 + $0x190] sm:$0xff] }
 0x8ad   :  { %v13801_v15 = vadd.f32 %v6850_v56, %v6848_v51  ;;  %v6907_v56 = vld [vmem:[%s14393_s5 + $0x178] sm:$0xff]  ;;  %v13914_v51 = vcombine.low %v6894_v17, %v6898_v3  ;;  %v6918_v33 = vld [vmem:[%s14393_s5 + $0x1d0] sm:$0xff]  ;;  %v13988_v39 = vcombine.low %v6919_v20, %v6923_v2 }
 0x8ae   :  { %v13922_v58 = vcombine.high %v6903_v30, %v6907_v56  ;;  %v13968_v7 = vcombine.high %v6918_v33, %v6922_v53  ;;  %v6930_v59 = vld [vmem:[%s14393_s5 + $0x230] sm:$0xff]  ;;  %v6931_v17 = vld [vmem:[%s14393_s5 + $0x238] sm:$0xff]  ;;  %v13986_v3 = vcombine.low %v6918_v33, %v6922_v53 }
 0x8af   :  { %15331 = vst [vmem:[#allocation13_spill] sm:$0xff] %v13801_v15  ;;  %10107 = vtanh.f32 %v13801_v15  ;;  %v13992_v26 = vcombine.high %v6926_v52, %v6930_v59  ;;  %v6942_v53 = vld [vmem:[%s14393_s5 + $0x290] sm:$0xff]  ;;  %v6943_v2 = vld [vmem:[%s14393_s5 + $0x298] sm:$0xff] }
 0x8b0   :  { %v6946_v20 = vld [vmem:[%s14393_s5 + $0x2b0] sm:$0xff] }
 0x8b1   :  { %v6954_v15 = vld [vmem:[%s14393_s5 + $0x2f0] sm:$0xff] }
 0x8b2   :  { %v14064_v18 = vcombine.high %v6950_v49, %v6954_v15 }
 0x8b6   :  { %v10106_v44 = vpop.eup %10105 }
 0x8b7   :  { %v6855_v47 = vmul.f32 %v10106_v44, %v6841_v61  ;;  %v6914_v44 = vld [vmem:[%s14393_s5 + $0x1b0] sm:$0xff]  ;;  %v6911_v61 = vld [vmem:[%s14393_s5 + $0x198] sm:$0xff] }
 0x8b8   :  { %v13962_v50 = vcombine.low %v6910_v23, %v6914_v44 }
 0x8b9   :  { %v10108_v42 = vpop.eup %10107 }
 0x8ba   :  { %v6856_v55 = vmul.f32 %v10108_v42, %v6844_v6  ;;  %v6915_v6 = vld [vmem:[%s14393_s5 + $0x1b8] sm:$0xff]  ;;  %v13938_v42 = vcombine.low %v6902_v12, %v6906_v31  ;;  %v13994_v12 = vcombine.high %v6927_v54, %v6931_v17  ;;  %v6934_v31 = vld [vmem:[%s14393_s5 + $0x250] sm:$0xff] }
 0x8bb   :  { %v13946_v28 = vcombine.high %v6911_v61, %v6915_v6  ;;  %v13964_v4 = vcombine.low %v6911_v61, %v6915_v6  ;;  %v14012_v61 = vcombine.low %v6927_v54, %v6931_v17  ;;  %v14040_v17 = vcombine.high %v6942_v53, %v6946_v20 }
 0x8bc   :  { %v13816_v38 = vpack.c.bf16 %v6856_v55, %v6855_v47  ;;  %v13940_v47 = vcombine.low %v6903_v30, %v6907_v56  ;;  %v13944_v55 = vcombine.high %v6910_v23, %v6914_v44  ;;  %v6938_v30 = vld [vmem:[%s14393_s5 + $0x270] sm:$0xff]  ;;  %v6935_v56 = vld [vmem:[%s14393_s5 + $0x258] sm:$0xff]  ;;  %v14010_v44 = vcombine.low %v6926_v52, %v6930_v59 }
 0x8bd   :  { %v6939_v23 = vld [vmem:[%s14393_s5 + $0x278] sm:$0xff]  ;;  %v14016_v6 = vcombine.high %v6934_v31, %v6938_v30  ;;  %v14034_v59 = vcombine.low %v6934_v31, %v6938_v30 }
 0x8be   :  { %15332 = vst [vmem:[#allocation14_spill] sm:$0xff] %v13816_v38  ;;  %7660 = vmatprep.mubr.bf16.mxu0 %v13816_v38  ;;  %7703 = vmatprep.mubr.bf16.mxu1 %v13816_v38  ;;  %v14018_v33 = vcombine.high %v6935_v56, %v6939_v23  ;;  %v6947_v52 = vld [vmem:[%s14393_s5 + $0x2b8] sm:$0xff]  ;;  %v14036_v54 = vcombine.low %v6935_v56, %v6939_v23 }
 0x8bf   :  { %7661 = vmatmul.mubr.bf16.vlgmr.msra.gmra.mrb[28].mxu0 %v13786_v40  ;;  %7704 = vmatmul.mubr.bf16.vlgmr.msra.gmra.mrb[28].mxu1 %v13786_v40  ;;  %v6951_v31 = vld [vmem:[%s14393_s5 + $0x2d8] sm:$0xff]  ;;  %v14058_v56 = vcombine.low %v6942_v53, %v6946_v20  ;;  %v14060_v23 = vcombine.low %v6943_v2, %v6947_v52 }
 0x8c0   :  { %7715 = vmatpush1.bf16.msra.mxu0 %v13757_v13  ;;  %7758 = vmatpush1.bf16.msra.mxu1 %v13764_v10  ;;  %v6955_v30 = vld [vmem:[%s14393_s5 + $0x2f8] sm:$0xff] }
 0x8c1   :  { %7746 = vmatprep.mubr.bf16.mxu0 %v13816_v38  ;;  %7789 = vmatprep.mubr.bf16.mxu1 %v13816_v38  ;;  %v14042_v38 = vcombine.high %v6943_v2, %v6947_v52  ;;  %v14066_v19 = vcombine.high %v6951_v31, %v6955_v30  ;;  %v6959_v53 = vld [vmem:[%s14393_s5 + $0x318] sm:$0xff]  ;;  %v14082_v2 = vcombine.low %v6950_v49, %v6954_v15 }
 0x8c2   :  { %7716 = vmatprep.subr.bf16.mxu0 %v13823_v9  ;;  %7759 = vmatprep.subr.bf16.mxu1 %v13825_v14  ;;  %v6963_v20 = vld [vmem:[%s14393_s5 + $0x338] sm:$0xff]  ;;  %v14084_v52 = vcombine.low %v6951_v31, %v6955_v30  ;;  %v14106_v31 = vcombine.low %v6958_v62, %v6962_v35 }
 0x8c3   :  { %15333 = vst [vmem:[#allocation15_spill] sm:$0xff] %v14082_v2  ;;  %v14090_v0 = vcombine.high %v6959_v53, %v6963_v20  ;;  %v6967_v49 = vld [vmem:[%s14393_s5 + $0x358] sm:$0xff]  ;;  %v14108_v30 = vcombine.low %v6959_v53, %v6963_v20  ;;  %v14130_v53 = vcombine.low %v6966_v8, %v6970_v25 }
 0x8c4   :  { %7717 = vmatpush1.bf16.msra.mxu0 %v13840_v60  ;;  %7760 = vmatpush1.bf16.msra.mxu1 %v13842_v11  ;;  %15334 = vst [vmem:[#allocation16_spill] sm:$0xff] %v14084_v52  ;;  %v6971_v15 = vld [vmem:[%s14393_s5 + $0x378] sm:$0xff]  ;;  %15337 = vst [vmem:[#allocation19_spill] sm:$0xff] %v14106_v31 }
 0x8c5   :  { %7718 = vmatprep.subr.bf16.mxu0 %v13846_v29  ;;  %7761 = vmatprep.subr.bf16.mxu1 %v13848_v24  ;;  %15336 = vst [vmem:[#allocation18_spill] sm:$0xff] %v14090_v0  ;;  %15338 = vst [vmem:[#allocation20_spill] sm:$0xff] %v14108_v30  ;;  %v14114_v43 = vcombine.high %v6967_v49, %v6971_v15  ;;  %v6975_v35 = vld [vmem:[%s14393_s5 + $0x398] sm:$0xff]  ;;  %v14132_v20 = vcombine.low %v6967_v49, %v6971_v15 }
 0x8c6   :  { %v6979_v62 = vld [vmem:[%s14393_s5 + $0x3b8] sm:$0xff]  ;;  %15341 = vst [vmem:[#allocation23_spill] sm:$0xff] %v14130_v53 }
 0x8c7   :  { %15340 = vst [vmem:[#allocation22_spill] sm:$0xff] %v14114_v43  ;;  %v6983_v25 = vld [vmem:[%s14393_s5 + $0x3d8] sm:$0xff]  ;;  %v14156_v15 = vcombine.low %v6975_v35, %v6979_v62 }
 0x8c8   :  { %7719 = vmatpush1.bf16.msra.mxu0 %v13866_v21  ;;  %7762 = vmatpush1.bf16.msra.mxu1 %v13868_v48  ;;  %v6987_v8 = vld [vmem:[%s14393_s5 + $0x3f8] sm:$0xff] }
 0x8c9   :  { %7720 = vmatprep.subr.bf16.mxu0 %v13872_v46  ;;  %7763 = vmatprep.subr.bf16.mxu1 %v13874_v57 }
 0x8cc   :  { %7721 = vmatpush1.bf16.msra.mxu0 %v13890_v22  ;;  %7764 = vmatpush1.bf16.msra.mxu1 %v13892_v36 }
 0x8cd   :  { %7722 = vmatprep.subr.bf16.mxu0 %v13896_v16  ;;  %7765 = vmatprep.subr.bf16.mxu1 %v13898_v37 }
 0x8d0   :  { %7723 = vmatpush1.bf16.msra.mxu0 %v13914_v51  ;;  %7766 = vmatpush1.bf16.msra.mxu1 %v13916_v1 }
 0x8d1   :  { %7724 = vmatprep.subr.bf16.mxu0 %v13920_v5  ;;  %7767 = vmatprep.subr.bf16.mxu1 %v13922_v58 }
 0x8d4   :  { %7725 = vmatpush1.bf16.msra.mxu0 %v13938_v42  ;;  %7768 = vmatpush1.bf16.msra.mxu1 %v13940_v47 }
 0x8d5   :  { %7726 = vmatprep.subr.bf16.mxu0 %v13944_v55  ;;  %7769 = vmatprep.subr.bf16.mxu1 %v13946_v28 }
 0x8d8   :  { %7727 = vmatpush1.bf16.msra.mxu0 %v13962_v50  ;;  %7770 = vmatpush1.bf16.msra.mxu1 %v13964_v4 }
 0x8d9   :  { %7728 = vmatprep.subr.bf16.mxu0 %v13968_v7  ;;  %7771 = vmatprep.subr.bf16.mxu1 %v13970_v27 }
 0x8dc   :  { %7729 = vmatpush1.bf16.msra.mxu0 %v13986_v3  ;;  %7772 = vmatpush1.bf16.msra.mxu1 %v13988_v39 }
 0x8dd   :  { %7730 = vmatprep.subr.bf16.mxu0 %v13992_v26  ;;  %7773 = vmatprep.subr.bf16.mxu1 %v13994_v12 }
 0x8e0   :  { %7731 = vmatpush1.bf16.msra.mxu0 %v14010_v44  ;;  %7774 = vmatpush1.bf16.msra.mxu1 %v14012_v61 }
 0x8e1   :  { %7732 = vmatprep.subr.bf16.mxu0 %v14016_v6  ;;  %7775 = vmatprep.subr.bf16.mxu1 %v14018_v33 }
 0x8e4   :  { %7733 = vmatpush1.bf16.msra.mxu0 %v14034_v59  ;;  %7776 = vmatpush1.bf16.msra.mxu1 %v14036_v54 }
 0x8e5   :  { %7734 = vmatprep.subr.bf16.mxu0 %v14040_v17  ;;  %7777 = vmatprep.subr.bf16.mxu1 %v14042_v38 }
 0x8e8   :  { %7735 = vmatpush1.bf16.msra.mxu0 %v14058_v56  ;;  %7778 = vmatpush1.bf16.msra.mxu1 %v14060_v23 }
 0x8e9   :  { %7736 = vmatprep.subr.bf16.mxu0 %v14064_v18  ;;  %7779 = vmatprep.subr.bf16.mxu1 %v14066_v19 }
 0x8ec   :  { %7737 = vmatpush1.bf16.msra.mxu0 %v14082_v2  ;;  %7780 = vmatpush1.bf16.msra.mxu1 %v14084_v52  ;;  %v6978_v52 = vld [vmem:[%s14393_s5 + $0x3b0] sm:$0xff] }
 0x8ed   :  { %7738 = vmatprep.subr.bf16.mxu0 %v14088_v45  ;;  %7781 = vmatprep.subr.bf16.mxu1 %v14090_v0  ;;  %v14136_v0 = vcombine.high %v6974_v34, %v6978_v52  ;;  %v14138_v45 = vcombine.high %v6975_v35, %v6979_v62  ;;  %v6982_v2 = vld [vmem:[%s14393_s5 + $0x3d0] sm:$0xff]  ;;  %v14154_v49 = vcombine.low %v6974_v34, %v6978_v52  ;;  %v15346_v34 = vld [vmem:[#allocation19_spill] sm:$0xff] }
 0x8f0   :  { %7739 = vmatpush1.bf16.msra.mxu0 %v14106_v31  ;;  %7782 = vmatpush1.bf16.msra.mxu1 %v14108_v30  ;;  %v6986_v30 = vld [vmem:[%s14393_s5 + $0x3f0] sm:$0xff] }
 0x8f1   :  { %7740 = vmatprep.subr.bf16.mxu0 %v14112_v32  ;;  %7783 = vmatprep.subr.bf16.mxu1 %v14114_v43  ;;  %v14160_v43 = vcombine.high %v6982_v2, %v6986_v30  ;;  %v14162_v32 = vcombine.high %v6983_v25, %v6987_v8  ;;  %v14166_v31 = vcombine.low %v6982_v2, %v6986_v30  ;;  %v15356_v30 = vld [vmem:[#allocation11_spill] sm:$0xff] }
 0x8f4   :  { %7741 = vmatpush1.bf16.msra.mxu0 %v14130_v53  ;;  %7784 = vmatpush1.bf16.msra.mxu1 %v14132_v20  ;;  %v14168_v53 = vcombine.low %v6983_v25, %v6987_v8 }
 0x8f5   :  { %7742 = vmatprep.subr.bf16.mxu0 %v14136_v0  ;;  %7785 = vmatprep.subr.bf16.mxu1 %v14138_v45 }
 0x8f8   :  { %7743 = vmatpush1.bf16.msra.mxu0 %v14154_v49  ;;  %7786 = vmatpush1.bf16.msra.mxu1 %v14156_v15 }
 0x8f9   :  { %7744 = vmatprep.subr.bf16.mxu0 %v14160_v43  ;;  %7787 = vmatprep.subr.bf16.mxu1 %v14162_v32 }
 0x8fc   :  { %7745 = vmatpush1.bf16.msra.mxu0 %v14166_v31  ;;  %7788 = vmatpush1.bf16.msra.mxu1 %v14168_v53 }
 0x8fd   :  { %8283 = vmatprep.subr.bf16.mxu0 %v13759_v41  ;;  %8326 = vmatprep.subr.bf16.mxu1 %v13766_v63  ;;  %v15343_v41 = vld [vmem:[#allocation16_spill] sm:$0xff]  ;;  %v15345_v63 = vld [vmem:[#allocation18_spill] sm:$0xff] }
 0x8ff   :  { %7747 = vmatmul.mubr.bf16.vlgmr.msra.gmra.mrb[56].mxu0 %v13786_v40  ;;  %7790 = vmatmul.mubr.bf16.vlgmr.msra.gmra.mrb[56].mxu1 %v13786_v40  ;;  %v15347_v40 = vld [vmem:[#allocation20_spill] sm:$0xff] }
 0x900   :  { %8284 = vmatpush1.bf16.msra.mxu0 %v13757_v13  ;;  %8327 = vmatpush1.bf16.msra.mxu1 %v13764_v10  ;;  %v15342_v13 = vld [vmem:[#allocation15_spill] sm:$0xff]  ;;  %v15344_v10 = vld [vmem:[#allocation17_spill] sm:$0xff] }
 0x901   :  { %8285 = vmatprep.subr.bf16.mxu0 %v13823_v9  ;;  %8328 = vmatprep.subr.bf16.mxu1 %v13825_v14  ;;  %v15349_v9 = vld [vmem:[#allocation22_spill] sm:$0xff]  ;;  %v15350_v14 = vld [vmem:[#allocation23_spill] sm:$0xff] }
 0x904   :  { %8286 = vmatpush1.bf16.msra.mxu0 %v13840_v60  ;;  %8329 = vmatpush1.bf16.msra.mxu1 %v13842_v11 }
 0x905   :  { %8287 = vmatprep.subr.bf16.mxu0 %v13846_v29  ;;  %8330 = vmatprep.subr.bf16.mxu1 %v13848_v24 }
 0x908   :  { %8288 = vmatpush1.bf16.msra.mxu0 %v13866_v21  ;;  %8331 = vmatpush1.bf16.msra.mxu1 %v13868_v48 }
 0x909   :  { %8289 = vmatprep.subr.bf16.mxu0 %v13872_v46  ;;  %8332 = vmatprep.subr.bf16.mxu1 %v13874_v57 }
 0x90c   :  { %8290 = vmatpush1.bf16.msra.mxu0 %v13890_v22  ;;  %8333 = vmatpush1.bf16.msra.mxu1 %v13892_v36 }
 0x90d   :  { %8291 = vmatprep.subr.bf16.mxu0 %v13896_v16  ;;  %8334 = vmatprep.subr.bf16.mxu1 %v13898_v37  ;;  %v15353_v37 = vld [vmem:[#allocation6_spill] sm:$0xff] }
 0x910   :  { %8292 = vmatpush1.bf16.msra.mxu0 %v13914_v51  ;;  %8335 = vmatpush1.bf16.msra.mxu1 %v13916_v1 }
 0x911   :  { %8293 = vmatprep.subr.bf16.mxu0 %v13920_v5  ;;  %8336 = vmatprep.subr.bf16.mxu1 %v13922_v58 }
 0x914   :  { %8294 = vmatpush1.bf16.msra.mxu0 %v13938_v42  ;;  %8337 = vmatpush1.bf16.msra.mxu1 %v13940_v47  ;;  %v15354_v42 = vld [vmem:[#allocation7_spill] sm:$0xff] }
 0x915   :  { %8295 = vmatprep.subr.bf16.mxu0 %v13944_v55  ;;  %8338 = vmatprep.subr.bf16.mxu1 %v13946_v28 }
 0x918   :  { %8296 = vmatpush1.bf16.msra.mxu0 %v13962_v50  ;;  %8339 = vmatpush1.bf16.msra.mxu1 %v13964_v4 }
 0x919   :  { %8297 = vmatprep.subr.bf16.mxu0 %v13968_v7  ;;  %8340 = vmatprep.subr.bf16.mxu1 %v13970_v27 }
 0x91c   :  { %8298 = vmatpush1.bf16.msra.mxu0 %v13986_v3  ;;  %8341 = vmatpush1.bf16.msra.mxu1 %v13988_v39 }
 0x91d   :  { %8299 = vmatprep.subr.bf16.mxu0 %v13992_v26  ;;  %8342 = vmatprep.subr.bf16.mxu1 %v13994_v12 }
 0x920   :  { %8300 = vmatpush1.bf16.msra.mxu0 %v14010_v44  ;;  %8343 = vmatpush1.bf16.msra.mxu1 %v14012_v61 }
 0x921   :  { %8301 = vmatprep.subr.bf16.mxu0 %v14016_v6  ;;  %8344 = vmatprep.subr.bf16.mxu1 %v14018_v33 }
 0x924   :  { %8302 = vmatpush1.bf16.msra.mxu0 %v14034_v59  ;;  %8345 = vmatpush1.bf16.msra.mxu1 %v14036_v54 }
 0x925   :  { %8303 = vmatprep.subr.bf16.mxu0 %v14040_v17  ;;  %8346 = vmatprep.subr.bf16.mxu1 %v14042_v38  ;;  %v15348_v38 = vld [vmem:[#allocation21_spill] sm:$0xff] }
 0x928   :  { %8304 = vmatpush1.bf16.msra.mxu0 %v14058_v56  ;;  %8347 = vmatpush1.bf16.msra.mxu1 %v14060_v23  ;;  %v15355_v56 = vld [vmem:[#allocation10_spill] sm:$0xff] }
 0x929   :  { %8305 = vmatprep.subr.bf16.mxu0 %v14064_v18  ;;  %8348 = vmatprep.subr.bf16.mxu1 %v14066_v19  ;;  %v14243_v19 = vld [vmem:[%s14398_s7] sm:$0xff]  }
 0x92a   :  { %v15351_v18 = vld [vmem:[#allocation4_spill] sm:$0xff] }
 0x92c   :  { %8306 = vmatpush1.bf16.msra.mxu0 %v15342_v13  ;;  %8349 = vmatpush1.bf16.msra.mxu1 %v15343_v41 }
 0x92d   :  { %8307 = vmatprep.subr.bf16.mxu0 %v15344_v10  ;;  %8350 = vmatprep.subr.bf16.mxu1 %v15345_v63 }
 0x930   :  { %8308 = vmatpush1.bf16.msra.mxu0 %v15346_v34  ;;  %8351 = vmatpush1.bf16.msra.mxu1 %v15347_v40 }
 0x931   :  { %8309 = vmatprep.subr.bf16.mxu0 %v15348_v38  ;;  %8352 = vmatprep.subr.bf16.mxu1 %v15349_v9  ;;  %v15357_v9 = vld [vmem:[#allocation96_spill] sm:$0xff] }
 0x934   :  { %8310 = vmatpush1.bf16.msra.mxu0 %v15350_v14  ;;  %8353 = vmatpush1.bf16.msra.mxu1 %v14132_v20 }
 0x935   :  { %8311 = vmatprep.subr.bf16.mxu0 %v14136_v0  ;;  %8354 = vmatprep.subr.bf16.mxu1 %v14138_v45 }
 0x938   :  { %8312 = vmatpush1.bf16.msra.mxu0 %v14154_v49  ;;  %8355 = vmatpush1.bf16.msra.mxu1 %v14156_v15 }
 0x939   :  { %8313 = vmatprep.subr.bf16.mxu0 %v14160_v43  ;;  %8356 = vmatprep.subr.bf16.mxu1 %v14162_v32  ;;  %v15352_v32 = vld [vmem:[#allocation5_spill] sm:$0xff] }
 0x93c   :  { %8314 = vmatpush1.bf16.msra.mxu0 %v14166_v31  ;;  %8357 = vmatpush1.bf16.msra.mxu1 %v14168_v53 }
 0x93d   :  { %9650 = vmatprep.subr.bf16.mxu0 %v14243_v19  ;;  %9682 = vmatprep.subr.bf16.mxu1 %v14243_v19 }
 0x992   :  { %v7662_v45 = vpop.f32.mrb[28].mxu0  ;;  %v7705_v0 = vpop.f32.mrb[28].mxu1 }
 0x993   :  { %v9726_v60 = vadd.f32 %v7662_v45, %v15351_v18  ;;  %v7664_v43 = vpop.f32.mrb[29].mxu0  ;;  %v7707_v11 = vpop.f32.mrb[29].mxu1  ;;  %v9758_v47 = vadd.f32 %v7705_v0, %v15354_v42 }
 0x994   :  { %v9727_v29 = vadd.f32 %v7664_v43, %v15352_v32  ;;  %v7666_v24 = vpop.f32.mrb[30].mxu0  ;;  %v7709_v21 = vpop.f32.mrb[30].mxu1  ;;  %v9759_v51 = vadd.f32 %v7707_v11, %v15353_v37 }
 0x995   :  { %v7816_v48 = vmul.f32 0.5, %v9726_v60  ;;  %v9728_v46 = vadd.f32 %v7666_v24, %v15351_v18  ;;  %v7668_v57 = vpop.f32.mrb[31].mxu0  ;;  %v7711_v22 = vpop.f32.mrb[31].mxu1  ;;  %v9760_v55 = vadd.f32 %v7709_v21, %v15354_v42  ;;  %v7818_v28 = vmul.f32 0.5, %v9758_v47  ;;  %v15358_v18 = vld [vmem:[#allocation97_spill] sm:$0xff] }
 0x996   :  { %v7817_v36 = vmul.f32 0.5, %v9727_v29  ;;  %v9729_v16 = vadd.f32 %v7668_v57, %v15352_v32  ;;  %v9761_v58 = vadd.f32 %v7711_v22, %v15353_v37  ;;  %v15359_v57 = vld [vmem:[#allocation98_spill] sm:$0xff] }
 0x997   :  { %10109 = vtanh.f32 %v7816_v48  ;;  %v7819_v1 = vmul.f32 0.5, %v9728_v46  ;;  %v7821_v27 = vmul.f32 0.5, %v9760_v55 }
 0x998   :  { %v7820_v5 = vmul.f32 0.5, %v9729_v16  ;;  %10111 = vtanh.f32 %v7817_v36 }
 0x999   :  { %10113 = vtanh.f32 %v7819_v1 }
 0x99a   :  { %10115 = vtanh.f32 %v9759_v51  ;;  %v15360_v51 = vld [vmem:[#allocation99_spill] sm:$0xff] }
 0x99b   :  { %10117 = vtanh.f32 %v7820_v5 }
 0x99c   :  { %10119 = vtanh.f32 %v9761_v58 }
 0x99d   :  { %10121 = vtanh.f32 %v7818_v28 }
 0x99e   :  { %10123 = vtanh.f32 %v7821_v27 }
 0x9a1   :  { %v10110_v50 = vpop.eup %10109 }
 0x9a2   :  { %v7828_v4 = vmul.f32 0.5, %v10110_v50  ;;  %v10112_v7 = vpop.eup %10111 }
 0x9a3   :  { %v10114_v3 = vpop.eup %10113  ;;  %v7829_v26 = vmul.f32 0.5, %v10112_v7 }
 0x9a4   :  { %v7834_v39 = vadd.f32 0.5, %v7828_v4  ;;  %v10116_v12 = vpop.eup %10115  ;;  %v7831_v44 = vmul.f32 0.5, %v10114_v3 }
 0x9a5   :  { %v10118_v61 = vpop.eup %10117  ;;  %v7835_v6 = vadd.f32 0.5, %v7829_v26 }
 0x9a6   :  { %v7844_v33 = vmul.f32 %v10116_v12, %v7834_v39  ;;  %v7837_v59 = vadd.f32 0.5, %v7831_v44  ;;  %v7832_v54 = vmul.f32 0.5, %v10118_v61  ;;  %v10120_v17 = vpop.eup %10119 }
 0x9a7   :  { %v7842_v23 = vmul.f32 %v7835_v6, %v15355_v56  ;;  %v10122_v53 = vpop.eup %10121 }
 0x9a8   :  { %v7838_v2 = vadd.f32 0.5, %v7832_v54  ;;  %v7845_v52 = vmul.f32 %v10120_v17, %v7837_v59  ;;  %v10124_v20 = vpop.eup %10123  ;;  %v7830_v25 = vmul.f32 0.5, %v10122_v53 }
 0x9a9   :  { %v7846_v31 = vadd.f32 %v7844_v33, %v7842_v23  ;;  %v7833_v8 = vmul.f32 0.5, %v10124_v20  ;;  %v15361_v33 = vld [vmem:[#allocation12_spill] sm:$0xff]  ;;  %v15362_v23 = vld [vmem:[#allocation13_spill] sm:$0xff] }
 0x9aa   :  { %v7843_v35 = vmul.f32 %v7838_v2, %v15356_v30  ;;  %v7836_v49 = vadd.f32 0.5, %v7830_v25 }
 0x9ab   :  { %10125 = vtanh.f32 %v7846_v31  ;;  %8417 = vst [vmem:[%s14399_s11] sm:$0xff] %v7846_v31  ;;  %v7839_v41 = vadd.f32 0.5, %v7833_v8 }
 0x9ac   :  { %v7847_v62 = vadd.f32 %v7845_v52, %v7843_v35 }
 0x9ae   :  { %10127 = vtanh.f32 %v7847_v62  ;;  %8418 = vst [vmem:[%s14399_s11 + $0x8] sm:$0xff] %v7847_v62 }
 0x9b5   :  { %v10126_v15 = vpop.eup %10125 }
 0x9b6   :  { %v7850_v13 = vmul.f32 %v10126_v15, %v7836_v49 }
 0x9b8   :  { %v10128_v10 = vpop.eup %10127  ;;  %8415 = vst [vmem:[%s14400_s10] sm:$0xff] %v7850_v13 }
 0x9b9   :  { %v7851_v63 = vmul.f32 %v10128_v10, %v7839_v41  ;;  %v9842_v41 = vld [vmem:[%s14398_s7 + $0x8] sm:$0xff]   ;;  %v15363_v10 = vld [vmem:[#allocation100_spill] sm:$0xff] }
 0x9bb   :  { %v14266_v34 = vpack.c.bf16 %v7851_v63, %v7850_v13  ;;  %8416 = vst [vmem:[%s14400_s10 + $0x8] sm:$0xff] %v7851_v63  ;;  %v15364_v63 = vld [vmem:[#allocation107_spill] sm:$0xff] }
 0x9d2   :  { %v7748_v40 = vpop.f32.mrb[56].mxu0  ;;  %v7791_v38 = vpop.f32.mrb[56].mxu1 }
 0x9d3   :  { %v7852_v14 = vadd.f32 %v7748_v40, %v15357_v9  ;;  %v7750_v45 = vpop.f32.mrb[57].mxu0  ;;  %v7793_v0 = vpop.f32.mrb[57].mxu1  ;;  %v7854_v1 = vadd.f32 %v7791_v38, %v15360_v51  ;;  %v9843_v40 = vld [vmem:[%s14398_s7 + $0x10] sm:$0xff]   ;;  %v9846_v38 = vld [vmem:[%s14398_s7 + $0x28] sm:$0xff]  }
 0x9d4   :  { %v7853_v60 = vadd.f32 %v7750_v45, %v15358_v18  ;;  %v7752_v43 = vpop.f32.mrb[58].mxu0  ;;  %v7795_v11 = vpop.f32.mrb[58].mxu1  ;;  %v7855_v22 = vadd.f32 %v7793_v0, %v15359_v57  ;;  %v9848_v45 = vld [vmem:[%s14398_s7 + $0x38] sm:$0xff]   ;;  %v15365_v0 = vld [vmem:[#allocation8_spill] sm:$0xff] }
 0x9d5   :  { %v7860_v32 = vmul.f32 0.5, %v7852_v14  ;;  %v7856_v29 = vadd.f32 %v7752_v43, %v15357_v9  ;;  %v7754_v24 = vpop.f32.mrb[59].mxu0  ;;  %v7797_v21 = vpop.f32.mrb[59].mxu1  ;;  %v7858_v5 = vadd.f32 %v7795_v11, %v15360_v51  ;;  %v7862_v47 = vmul.f32 0.5, %v7854_v1  ;;  %v9847_v14 = vld [vmem:[%s14398_s7 + $0x30] sm:$0xff]   ;;  %v15367_v43 = vld [vmem:[#allocation105_spill] sm:$0xff] }
 0x9d6   :  { %v7861_v48 = vmul.f32 0.5, %v7853_v60  ;;  %v7857_v46 = vadd.f32 %v7754_v24, %v15358_v18  ;;  %v7859_v37 = vadd.f32 %v7797_v21, %v15359_v57  ;;  %v15366_v60 = vld [vmem:[#allocation14_spill] sm:$0xff]  ;;  %v15368_v11 = vld [vmem:[#allocation9_spill] sm:$0xff] }
 0x9d7   :  { %10129 = vtanh.f32 %v7860_v32  ;;  %v7863_v36 = vmul.f32 0.5, %v7856_v29  ;;  %v7865_v28 = vmul.f32 0.5, %v7858_v5 }
 0x9d8   :  { %v7864_v16 = vmul.f32 0.5, %v7857_v46  ;;  %10131 = vtanh.f32 %v7861_v48 }
 0x9d9   :  { %10133 = vtanh.f32 %v7863_v36 }
 0x9da   :  { %10135 = vtanh.f32 %v7855_v22 }
 0x9db   :  { %10137 = vtanh.f32 %v7864_v16 }
 0x9dc   :  { %10139 = vtanh.f32 %v7859_v37 }
 0x9dd   :  { %10141 = vtanh.f32 %v7862_v47 }
 0x9de   :  { %10143 = vtanh.f32 %v7865_v28 }
 0x9e1   :  { %v10130_v58 = vpop.eup %10129 }
 0x9e2   :  { %v7872_v42 = vmul.f32 0.5, %v10130_v58  ;;  %v10132_v55 = vpop.eup %10131 }
 0x9e3   :  { %v10134_v50 = vpop.eup %10133  ;;  %v7873_v7 = vmul.f32 0.5, %v10132_v55 }
 0x9e4   :  { %v7878_v4 = vadd.f32 0.5, %v7872_v42  ;;  %v10136_v27 = vpop.eup %10135  ;;  %v7875_v3 = vmul.f32 0.5, %v10134_v50 }
 0x9e5   :  { %v10138_v39 = vpop.eup %10137  ;;  %v7879_v26 = vadd.f32 0.5, %v7873_v7 }
 0x9e6   :  { %v7888_v12 = vmul.f32 %v10136_v27, %v7878_v4  ;;  %v7881_v44 = vadd.f32 0.5, %v7875_v3  ;;  %v7876_v61 = vmul.f32 0.5, %v10138_v39  ;;  %v10140_v6 = vpop.eup %10139 }
 0x9e7   :  { %v7886_v59 = vmul.f32 %v7879_v26, %v15361_v33  ;;  %v10142_v31 = vpop.eup %10141 }
 0x9e8   :  { %v7882_v54 = vadd.f32 0.5, %v7876_v61  ;;  %v7889_v17 = vmul.f32 %v10140_v6, %v7881_v44  ;;  %v10144_v30 = vpop.eup %10143  ;;  %v7874_v35 = vmul.f32 0.5, %v10142_v31 }
 0x9e9   :  { %v14280_v56 = vadd.f32 %v7888_v12, %v7886_v59  ;;  %v7877_v62 = vmul.f32 0.5, %v10144_v30 }
 0x9ea   :  { %v7887_v2 = vmul.f32 %v7882_v54, %v15362_v23  ;;  %v7880_v20 = vadd.f32 0.5, %v7874_v35 }
 0x9eb   :  { %10145 = vtanh.f32 %v14280_v56  ;;  %v7883_v25 = vadd.f32 0.5, %v7877_v62 }
 0x9ec   :  { %v14284_v52 = vadd.f32 %v7889_v17, %v7887_v2 }
 0x9ee   :  { %10147 = vtanh.f32 %v14284_v52 }
 0x9f5   :  { %v10146_v53 = vpop.eup %10145 }
 0x9f6   :  { %v7894_v49 = vmul.f32 %v10146_v53, %v7880_v20 }
 0x9f8   :  { %v10148_v8 = vpop.eup %10147 }
 0x9f9   :  { %v7895_v15 = vmul.f32 %v10148_v8, %v7883_v25 }
 0x9fb   :  { %v7896_v13 = vpack.c.bf16 %v7895_v15, %v7894_v49 }
 0x9fd   :  { %8315 = vmatprep.mubr.bf16.mxu0 %v7896_v13  ;;  %8358 = vmatprep.mubr.bf16.mxu1 %v7896_v13 }
 0x9fe   :  { %8316 = vmatmul.mubr.bf16.vlgmr.msra.gmra.mrb[60].mxu0 %v14266_v34  ;;  %8359 = vmatmul.mubr.bf16.vlgmr.msra.gmra.mrb[60].mxu1 %v14266_v34  ;;  %v9844_v34 = vld [vmem:[%s14398_s7 + $0x18] sm:$0xff]  }
 0x9ff   :  { %9651 = vmatpush3.bf16.msra.mxu0 %v14243_v19  ;;  %9690 = vmatpush3.bf16.msra.mxu1 %v14243_v19  ;;  %v9845_v19 = vld [vmem:[%s14398_s7 + $0x20] sm:$0xff]  }
 0xa00   :  { %9666 = vmatprep.mubr.bf16.mxu0 %v15363_v10  ;;  %9674 = vmatprep.mubr.bf16.mxu1 %v15364_v63 }
 0xa01   :  { %9652 = vmatprep.subr.bf16.mxu0 %v9842_v41  ;;  %9683 = vmatprep.subr.bf16.mxu1 %v9842_v41 }
 0xa03   :  { %9653 = vmatpush3.bf16.msra.mxu0 %v9842_v41  ;;  %9691 = vmatpush3.bf16.msra.mxu1 %v9842_v41 }
 0xa04   :  { %9654 = vmatprep.subr.bf16.mxu0 %v9843_v40  ;;  %9684 = vmatprep.subr.bf16.mxu1 %v9843_v40 }
 0xa07   :  { %9655 = vmatpush3.bf16.msra.mxu0 %v9843_v40  ;;  %9692 = vmatpush3.bf16.msra.mxu1 %v9843_v40 }
 0xa08   :  { %9656 = vmatprep.subr.bf16.mxu0 %v9844_v34  ;;  %9685 = vmatprep.subr.bf16.mxu1 %v9844_v34 }
 0xa0b   :  { %9657 = vmatpush3.bf16.msra.mxu0 %v9844_v34  ;;  %9693 = vmatpush3.bf16.msra.mxu1 %v9844_v34 }
 0xa0c   :  { %9658 = vmatprep.subr.bf16.mxu0 %v9845_v19  ;;  %9686 = vmatprep.subr.bf16.mxu1 %v9845_v19 }
 0xa0f   :  { %9659 = vmatpush3.bf16.msra.mxu0 %v9845_v19  ;;  %9694 = vmatpush3.bf16.msra.mxu1 %v9845_v19 }
 0xa10   :  { %9660 = vmatprep.subr.bf16.mxu0 %v9846_v38  ;;  %9687 = vmatprep.subr.bf16.mxu1 %v9846_v38 }
 0xa13   :  { %9661 = vmatpush3.bf16.msra.mxu0 %v9846_v38  ;;  %9695 = vmatpush3.bf16.msra.mxu1 %v9846_v38 }
 0xa14   :  { %9662 = vmatprep.subr.bf16.mxu0 %v9847_v14  ;;  %9688 = vmatprep.subr.bf16.mxu1 %v9847_v14 }
 0xa17   :  { %9663 = vmatpush3.bf16.msra.mxu0 %v9847_v14  ;;  %9696 = vmatpush3.bf16.msra.mxu1 %v9847_v14 }
 0xa18   :  { %9664 = vmatprep.subr.bf16.mxu0 %v9848_v45  ;;  %9689 = vmatprep.subr.bf16.mxu1 %v9848_v45 }
 0xa1b   :  { %9665 = vmatpush3.bf16.msra.mxu0 %v9848_v45  ;;  %9697 = vmatpush3.bf16.msra.mxu1 %v9848_v45 }
 0xa1e   :  { %9667 = vmatmul.mubr.bf16.vlgmr.msra.gmra.mrb[64].mxu0 %v15365_v0  ;;  %9675 = vmatmul.mubr.bf16.vlgmr.msra.gmra.mrb[64].mxu1 %v15366_v60 }
 0xa1f   :  { %9670 = vmatprep.mubr.bf16.mxu0 %v15367_v43  ;;  %9678 = vmatprep.mubr.bf16.mxu1 %v7896_v13 }
 0xa26   :  { %9671 = vmatmul.mubr.bf16.gmra.mrb[68].mxu0 %v15368_v11 }
 0xad1   :  { %v8317_v32 = vpop.f32.mrb[60].mxu0  ;;  %v8360_v29 = vpop.f32.mrb[60].mxu1 }
 0xad2   :  { %v8369_v24 = vadd.f32 %v8317_v32, %v15357_v9  ;;  %v8319_v21 = vpop.f32.mrb[61].mxu0  ;;  %v8362_v48 = vpop.f32.mrb[61].mxu1  ;;  %v8371_v4 = vadd.f32 %v8360_v29, %v15360_v51 }
 0xad3   :  { %v8370_v46 = vadd.f32 %v8319_v21, %v15358_v18  ;;  %v8321_v22 = vpop.f32.mrb[62].mxu0  ;;  %v8364_v36 = vpop.f32.mrb[62].mxu1  ;;  %v8372_v47 = vadd.f32 %v8362_v48, %v15359_v57 }
 0xad4   :  { %v8377_v16 = vmul.f32 0.5, %v8369_v24  ;;  %v8373_v37 = vadd.f32 %v8321_v22, %v15357_v9  ;;  %v8323_v1 = vpop.f32.mrb[63].mxu0  ;;  %v8366_v5 = vpop.f32.mrb[63].mxu1  ;;  %v8375_v9 = vadd.f32 %v8364_v36, %v15360_v51  ;;  %v8379_v7 = vmul.f32 0.5, %v8371_v4 }
 0xad5   :  { %v8378_v58 = vmul.f32 0.5, %v8370_v46  ;;  %v8374_v42 = vadd.f32 %v8323_v1, %v15358_v18  ;;  %v8376_v50 = vadd.f32 %v8366_v5, %v15359_v57 }
 0xad6   :  { %10149 = vtanh.f32 %v8377_v16  ;;  %v8380_v55 = vmul.f32 0.5, %v8373_v37  ;;  %v8382_v39 = vmul.f32 0.5, %v8375_v9 }
 0xad7   :  { %v8381_v28 = vmul.f32 0.5, %v8374_v42  ;;  %10151 = vtanh.f32 %v8378_v58 }
 0xad8   :  { %10153 = vtanh.f32 %v8380_v55 }
 0xad9   :  { %10155 = vtanh.f32 %v8372_v47 }
 0xada   :  { %10157 = vtanh.f32 %v8381_v28 }
 0xadb   :  { %10159 = vtanh.f32 %v8376_v50 }
 0xadc   :  { %10161 = vtanh.f32 %v8379_v7 }
 0xadd   :  { %10163 = vtanh.f32 %v8382_v39 }
 0xae0   :  { %v10150_v27 = vpop.eup %10149 }
 0xae1   :  { %v8389_v3 = vmul.f32 0.5, %v10150_v27  ;;  %v10152_v18 = vpop.eup %10151 }
 0xae2   :  { %v10154_v26 = vpop.eup %10153  ;;  %v8390_v44 = vmul.f32 0.5, %v10152_v18 }
 0xae3   :  { %v8395_v12 = vadd.f32 0.5, %v8389_v3  ;;  %v10156_v61 = vpop.eup %10155  ;;  %v8392_v6 = vmul.f32 0.5, %v10154_v26 }
 0xae4   :  { %v10158_v33 = vpop.eup %10157  ;;  %v8396_v57 = vadd.f32 0.5, %v8390_v44 }
 0xae5   :  { %v8405_v59 = vmul.f32 %v10156_v61, %v8395_v12  ;;  %v8398_v54 = vadd.f32 0.5, %v8392_v6  ;;  %v8393_v17 = vmul.f32 0.5, %v10158_v33  ;;  %v10160_v23 = vpop.eup %10159 }
 0xae6   :  { %v8403_v51 = vmul.f32 %v8396_v57, %v14280_v56  ;;  %v10162_v53 = vpop.eup %10161  ;;  %v9625_v56 = vld [vmem:[%s14401_s8] ss:$0 sm:$0xff] }
 0xae7   :  { %v8399_v2 = vadd.f32 0.5, %v8393_v17  ;;  %v8406_v31 = vmul.f32 %v10160_v23, %v8398_v54  ;;  %v10164_v20 = vpop.eup %10163  ;;  %v8391_v25 = vmul.f32 0.5, %v10162_v53 }
 0xae8   :  { %v8407_v30 = vadd.f32 %v8405_v59, %v8403_v51  ;;  %v8394_v10 = vmul.f32 0.5, %v10164_v20 }
 0xae9   :  { %v8404_v35 = vmul.f32 %v8399_v2, %v14284_v52  ;;  %v8397_v38 = vadd.f32 0.5, %v8391_v25 }
 0xaea   :  { %10165 = vtanh.f32 %v8407_v30  ;;  %9623 = vst [vmem:[%s14399_s11 + $0x10] sm:$0xff] %v8407_v30  ;;  %v8400_v24 = vadd.f32 0.5, %v8394_v10 }
 0xaeb   :  { %v8408_v62 = vadd.f32 %v8406_v31, %v8404_v35 }
 0xaed   :  { %10167 = vtanh.f32 %v8408_v62  ;;  %9624 = vst [vmem:[%s14399_s11 + $0x18] sm:$0xff] %v8408_v62 }
 0xaf1   :  { %v9668_v8 = vpop.f32.mrb[64].mxu0  ;;  %v9676_v52 = vpop.f32.mrb[64].mxu1 }
 0xaf2   :  { %v8547_v49 = vadd.f32 %v9668_v8, %v9625_v56  ;;  %v8579_v15 = vadd.f32 %v9676_v52, %v9625_v56  ;;  %v8538_v13 = vpop.f32.mrb[65].mxu0  ;;  %v8570_v41 = vpop.f32.mrb[65].mxu1 }
 0xaf3   :  { %v8539_v63 = vadd.f32 %v9625_v56, %v8538_v13  ;;  %v8571_v40 = vadd.f32 %v9625_v56, %v8570_v41  ;;  %v9669_v34 = vpop.f32.mrb[66].mxu0  ;;  %v9677_v19 = vpop.f32.mrb[66].mxu1 }
 0xaf4   :  { %8603 = vst [vmem:[%s14402_s9 + $0x10] sm:$0xff] %v8547_v49  ;;  %8611 = vst [vmem:[%s14402_s9 + $0x50] sm:$0xff] %v8579_v15  ;;  %v8550_v14 = vadd.f32 %v9669_v34, %v9625_v56  ;;  %v8582_v45 = vadd.f32 %v9677_v19, %v9625_v56  ;;  %v8541_v0 = vpop.f32.mrb[67].mxu0  ;;  %v8573_v60 = vpop.f32.mrb[67].mxu1 }
 0xaf5   :  { %v10166_v43 = vpop.eup %10165  ;;  %8601 = vst [vmem:[%s14402_s9] sm:$0xff] %v8539_v63  ;;  %8609 = vst [vmem:[%s14402_s9 + $0x40] sm:$0xff] %v8571_v40  ;;  %v8542_v11 = vadd.f32 %v9625_v56, %v8541_v0  ;;  %v8574_v32 = vadd.f32 %v9625_v56, %v8573_v60 }
 0xaf6   :  { %8604 = vst [vmem:[%s14402_s9 + $0x18] sm:$0xff] %v8550_v14  ;;  %8612 = vst [vmem:[%s14402_s9 + $0x58] sm:$0xff] %v8582_v45  ;;  %v8411_v29 = vmul.f32 %v10166_v43, %v8397_v38 }
 0xaf7   :  { %8602 = vst [vmem:[%s14402_s9 + $0x8] sm:$0xff] %v8542_v11  ;;  %8610 = vst [vmem:[%s14402_s9 + $0x48] sm:$0xff] %v8574_v32  ;;  %v10168_v21 = vpop.eup %10167 }
 0xaf8   :  { %9621 = vst [vmem:[%s14400_s10 + $0x10] sm:$0xff] %v8411_v29  ;;  %v8412_v46 = vmul.f32 %v10168_v21, %v8400_v24 }
 0xaf9   :  { %v9672_v48 = vpop.f32.mrb[68].mxu0 }
 0xafa   :  { %v8563_v22 = vadd.f32 %v9672_v48, %v9625_v56  ;;  %v8554_v36 = vpop.f32.mrb[69].mxu0  ;;  %v8413_v1 = vpack.c.bf16 %v8412_v46, %v8411_v29  ;;  %9622 = vst [vmem:[%s14400_s10 + $0x18] sm:$0xff] %v8412_v46 }
 0xafb   :  { %v8555_v16 = vadd.f32 %v9625_v56, %v8554_v36  ;;  %v9673_v37 = vpop.f32.mrb[70].mxu0 }
 0xafc   :  { %8607 = vst [vmem:[%s14402_s9 + $0x30] sm:$0xff] %v8563_v22  ;;  %v8566_v5 = vadd.f32 %v9673_v37, %v9625_v56  ;;  %v8557_v58 = vpop.f32.mrb[71].mxu0  ;;  %9679 = vmatmul.mubr.bf16.gmra.mrb[68].mxu1 %v8413_v1 }
 0xafd   :  { %8605 = vst [vmem:[%s14402_s9 + $0x20] sm:$0xff] %v8555_v16  ;;  %v8558_v42 = vadd.f32 %v9625_v56, %v8557_v58 }
 0xafe   :  { %8608 = vst [vmem:[%s14402_s9 + $0x38] sm:$0xff] %v8566_v5 }
 0xaff   :  { %8606 = vst [vmem:[%s14402_s9 + $0x28] sm:$0xff] %v8558_v42 }
 0xbcf   :  { %v9680_v47 = vpop.f32.mrb[68].mxu1 }
 0xbd0   :  { %v8595_v55 = vadd.f32 %v9680_v47, %v9625_v56  ;;  %v8586_v28 = vpop.f32.mrb[69].mxu1 }
 0xbd1   :  { %v8587_v50 = vadd.f32 %v9625_v56, %v8586_v28  ;;  %v9681_v4 = vpop.f32.mrb[70].mxu1 }
 0xbd2   :  { %8615 = vst [vmem:[%s14402_s9 + $0x70] sm:$0xff] %v8595_v55  ;;  %v8598_v9 = vadd.f32 %v9681_v4, %v9625_v56  ;;  %v8589_v7 = vpop.f32.mrb[71].mxu1 }
 0xbd3   :  { %8613 = vst [vmem:[%s14402_s9 + $0x60] sm:$0xff] %v8587_v50  ;;  %v8590_v27 = vadd.f32 %v9625_v56, %v8589_v7 }
 0xbd4   :  { %8616 = vst [vmem:[%s14402_s9 + $0x78] sm:$0xff] %v8598_v9 }
 0xbd5   :  { %8614 = vst [vmem:[%s14402_s9 + $0x68] sm:$0xff] %v8590_v27 }

</bundles_post_ra>
